<compile_context>
chip_gen: v7x
topology: tpu7x:2x2x1
jax: 0.10.0
libtpu: 0.0.40
codegen_flags: <defaults>
</compile_context>

<pallas_src>
import functools

import jax
import jax.numpy as jnp
import numpy as np
from jax.experimental import pallas as pl
from jax.experimental.pallas import tpu as pltpu

n_embd = 384
num_heads = 6
head_size = n_embd // num_heads  # 64


# ------------------------------ kernel ---------------------------------------
def fused_mha_kernel(x_ref, wqkv_ref, wp_ref, bp_ref, o_ref, *, Bb, H, hs):
    """Fused multi-head causal self-attention over a (Bb, T, C) block.

    x_ref    : (Bb, T, C)       bf16
    wqkv_ref : (C, 3*H*hs)      bf16   columns: [q heads | k heads | v heads],
                                       q-columns pre-scaled by hs**-0.5
    wp_ref   : (H*hs, C)        bf16
    bp_ref   : (1, C)           f32
    o_ref    : (Bb, T, C)       bf16
    """
    T = x_ref.shape[1]
    C = x_ref.shape[2]
    hhs = H * hs

    # Single wide QKV projection at M = Bb*T (fills the MXU when B is merged).
    x2d = x_ref[...].reshape(Bb * T, C)                       # bf16
    qkv = jnp.dot(x2d, wqkv_ref[...],
                  preferred_element_type=jnp.float32)          # (Bb*T, 3*hhs) f32
    # One wide f32 -> bf16 cast; everything downstream slices packed bf16.
    qkv = qkv.astype(jnp.bfloat16)

    # Causal bool mask, built once and shared by all batches / heads.
    row = jax.lax.broadcasted_iota(jnp.int32, (T, T), 0)
    col = jax.lax.broadcasted_iota(jnp.int32, (T, T), 1)
    causal = col <= row                                        # (T, T) bool

    for b in range(Bb):                                        # static (Bb <= 2)
        r0 = b * T
        # Accumulator starts from the broadcast bias (f32).
        acc = jnp.broadcast_to(bp_ref[...], (T, C)).astype(jnp.float32)

        for h in range(H):                                     # static unrolled
            qh = qkv[r0:r0 + T, 0 * hhs + h * hs:0 * hhs + (h + 1) * hs]
            kh = qkv[r0:r0 + T, 1 * hhs + h * hs:1 * hhs + (h + 1) * hs]
            vh = qkv[r0:r0 + T, 2 * hhs + h * hs:2 * hhs + (h + 1) * hs]

            # q @ k^T by contracting last dims (no materialized transpose in
            # source; scale already folded into the q weight columns).
            # NOTE(v6e): if the Mosaic dump shows per-head vxpose here, the
            # alternative is one pre-transpose of the full k slab.
            s = jax.lax.dot_general(
                qh, kh, (((1,), (1,)), ((), ())),
                preferred_element_type=jnp.float32)            # (T, T) f32

            # Where-select mask (large finite negative; no -inf bias held live).
            s = jnp.where(causal, s, jnp.float32(-1e30))

            # Online-style softmax pieces, normalization deferred past the
            # PV matmul so the reciprocal scales (T,hs) not (T,T).
            m = jnp.max(s, axis=-1, keepdims=True)
            p = jnp.exp(s - m)                                 # unnormalized
            denom = jnp.sum(p, axis=-1, keepdims=True)

            out_h = jnp.dot(p.astype(jnp.bfloat16), vh,
                            preferred_element_type=jnp.float32)  # (T, hs) f32
            # approx reciprocal runs on the EUP slot (deliberate ~2^-12 rel-err
            # accuracy tradeoff, well inside the test tolerance).
            out_h = out_h * pl.reciprocal(denom, approx=True)

            # Per-head projection accumulate -> no lane-packing concat, and the
            # (T,hs) intermediate is freed immediately.
            acc = acc + jnp.dot(out_h.astype(jnp.bfloat16),
                                wp_ref[h * hs:(h + 1) * hs, :],
                                preferred_element_type=jnp.float32)

        # Lane-dense bf16 store (halves output HBM writeback).
        o_ref[b] = acc.astype(o_ref.dtype)


# ------------------------------ params prep -----------------------------------
def prepare_params(wq, wk, wv, wp, bp):
    """Hoisted one-time repack: stack q/k/v weights, fold the softmax scale
    into the q columns, and cast weights to bf16 (kept out of the forward)."""
    H, C, hs = wq.shape
    scale = hs ** (-0.5)

    def flat(w):  # (H, C, hs) -> (C, H*hs)
        return jnp.transpose(w, (1, 0, 2)).reshape(C, H * hs)

    wqkv = jnp.concatenate([flat(wq) * scale, flat(wk), flat(wv)], axis=-1)
    return (wqkv.astype(jnp.bfloat16),
            wp.astype(jnp.bfloat16),
            bp.astype(jnp.float32))


# ------------------------------ wrapper ---------------------------------------
def multi_head_attention(x, wqkv, wp, bp, *, H, hs, batch_block=None):
    B, T, C = x.shape

    if batch_block is None:
        kind = jax.devices()[0].device_kind.lower()
        # v7x: 2 TensorCores/chip -> keep B on the grid ("parallel") so the
        # batch shards across cores.  v5e/v6e (1 TC): merge B into one block
        # (M = B*T fills the 256-wide v6e MXU, drops grid-step overhead).
        batch_block = 1 if "v7" in kind else B
    Bb = batch_block
    assert B % Bb == 0

    kernel = functools.partial(fused_mha_kernel, Bb=Bb, H=H, hs=hs)

    out = pl.pallas_call(
        kernel,
        out_shape=jax.ShapeDtypeStruct((B, T, C), jnp.bfloat16),
        grid=(B // Bb,),
        in_specs=[
            pl.BlockSpec((Bb, T, C), lambda b: (b, 0, 0)),
            pl.BlockSpec((C, 3 * H * hs), lambda b: (0, 0)),
            pl.BlockSpec((H * hs, C), lambda b: (0, 0)),
            pl.BlockSpec((1, C), lambda b: (0, 0)),
        ],
        out_specs=pl.BlockSpec((Bb, T, C), lambda b: (b, 0, 0)),
        compiler_params=pltpu.CompilerParams(
            dimension_semantics=("parallel",)),
    )(x.astype(jnp.bfloat16), wqkv, wp, bp)
    return out


# ------------------------------ reference -------------------------------------
def ref_mha(x, wq, wk, wv, wp, bp):
    q = jnp.einsum("btc,hcd->bhtd", x, wq)
    k = jnp.einsum("btc,hcd->bhtd", x, wk)
    v = jnp.einsum("btc,hcd->bhtd", x, wv)
    scores = jnp.einsum("bhtd,bhsd->bhts", q, k) * (head_size ** -0.5)
    T = x.shape[1]
    mask = jnp.tril(jnp.ones((T, T), dtype=bool))
    scores = jnp.where(mask, scores, -jnp.inf)
    p = jax.nn.softmax(scores, axis=-1)
    o = jnp.einsum("bhts,bhsd->bhtd", p, v)
    cat = jnp.transpose(o, (0, 2, 1, 3)).reshape(x.shape[0], T, -1)
    return cat @ wp + bp


# -------------------------------- main -----------------------------------------
if __name__ == "__main__":
    B, T = 2, 128  # T <= block_size (256)

    key = jax.random.PRNGKey(0)
    k_x, k_q, k_k, k_v, k_p, k_b = jax.random.split(key, 6)

    x = jax.random.normal(k_x, (B, T, n_embd), dtype=jnp.float32)
    # deterministic synthetic parameters (shapes match the PyTorch module)
    wq = 0.02 * jax.random.normal(k_q, (num_heads, n_embd, head_size), jnp.float32)
    wk = 0.02 * jax.random.normal(k_k, (num_heads, n_embd, head_size), jnp.float32)
    wv = 0.02 * jax.random.normal(k_v, (num_heads, n_embd, head_size), jnp.float32)
    wp = 0.02 * jax.random.normal(k_p, (num_heads * head_size, n_embd), jnp.float32)
    bp = 0.02 * jax.random.normal(k_b, (1, n_embd), jnp.float32)

    # One-time weight repack (kept out of the per-call path).
    wqkv_b, wp_b, bp_f = prepare_params(wq, wk, wv, wp, bp)
    wqkv_b, wp_b, bp_f = jax.block_until_ready((wqkv_b, wp_b, bp_f))

    out = multi_head_attention(x, wqkv_b, wp_b, bp_f, H=num_heads, hs=head_size)
    out = jax.block_until_ready(out)

    ref = jax.block_until_ready(ref_mha(x, wq, wk, wv, wp, bp))
    # bf16 MXU operands / bf16 output with f32 accumulation -> relaxed tolerance.
    np.testing.assert_allclose(np.asarray(out, dtype=np.float32),
                               np.asarray(ref), rtol=2e-2, atol=2e-2)

    print("KERNEL_OK")
</pallas_src>

<mosaic_0001>
module attributes {stable_mosaic.version = 11 : i64} {
  func.func @fused_mha_kernel(%arg0: i32, %arg1: memref<2x128x384xbf16, #tpu.memory_space<vmem>>, %arg2: memref<384x1152xbf16, #tpu.memory_space<vmem>>, %arg3: memref<384x384xbf16, #tpu.memory_space<vmem>>, %arg4: memref<1x384xf32, #tpu.memory_space<vmem>>, %arg5: memref<2x128x384xbf16, #tpu.memory_space<vmem>>) attributes {dimension_semantics = [#tpu.dimension_semantics<parallel>], iteration_bounds = array<i64: 1>, scalar_prefetch = 0 : i64, scratch_operands = 0 : i64, tpu.core_type = #tpu.core_type<tc>, window_params = [{transform_indices = @transform_0, window_bounds = array<i64: 2, 128, 384>}, {pipeline_mode = #tpu.pipeline_mode<synchronous>, transform_indices = @transform_1, window_bounds = array<i64: 384, 1152>}, {pipeline_mode = #tpu.pipeline_mode<synchronous>, transform_indices = @transform_2, window_bounds = array<i64: 384, 384>}, {pipeline_mode = #tpu.pipeline_mode<synchronous>, transform_indices = @transform_3, window_bounds = array<i64: 1, 384>}, {transform_indices = @transform_4, window_bounds = array<i64: 2, 128, 384>}]} {
    %c0 = arith.constant 0 : index
    %c0_0 = arith.constant 0 : index
    %c0_1 = arith.constant 0 : index
    %0 = vector.load %arg1[%c0, %c0_0, %c0_1] : memref<2x128x384xbf16, #tpu.memory_space<vmem>>, vector<2x128x384xbf16>
    %1 = vector.shape_cast %0 : vector<2x128x384xbf16> to vector<256x384xbf16>
    %c0_2 = arith.constant 0 : index
    %c0_3 = arith.constant 0 : index
    %2 = vector.load %arg2[%c0_2, %c0_3] : memref<384x1152xbf16, #tpu.memory_space<vmem>>, vector<384x1152xbf16>
    %cst = arith.constant dense<0.000000e+00> : vector<256x1152xf32>
    %3 = tpu.matmul %1, %2, %cst {dimension_numbers = #tpu.dot_dimension_numbers<[1], [0], [0], [1], [0, 0, 1, 1], [], []>} : vector<256x384xbf16>, vector<384x1152xbf16>, vector<256x1152xf32> -> vector<256x1152xf32>
    %4 = arith.truncf %3 : vector<256x1152xf32> to vector<256x1152xbf16>
    %5 = tpu.iota {dimensions = array<i32: 0>} : vector<128x128xi32>
    %6 = tpu.iota {dimensions = array<i32: 1>} : vector<128x128xi32>
    %7 = arith.cmpi sle, %6, %5 : vector<128x128xi32>
    %c0_4 = arith.constant 0 : index
    %c0_5 = arith.constant 0 : index
    %8 = vector.load %arg4[%c0_4, %c0_5] : memref<1x384xf32, #tpu.memory_space<vmem>>, vector<1x384xf32>
    %9 = vector.shape_cast %8 : vector<1x384xf32> to vector<1x384xf32>
    %10 = vector.broadcast %9 : vector<1x384xf32> to vector<128x384xf32>
    %11 = vector.extract_strided_slice %4 {offsets = [0, 0], sizes = [128, 64], strides = [1, 1]} : vector<256x1152xbf16> to vector<128x64xbf16>
    %12 = vector.extract_strided_slice %4 {offsets = [0, 384], sizes = [128, 64], strides = [1, 1]} : vector<256x1152xbf16> to vector<128x64xbf16>
    %13 = vector.extract_strided_slice %4 {offsets = [0, 768], sizes = [128, 64], strides = [1, 1]} : vector<256x1152xbf16> to vector<128x64xbf16>
    %cst_6 = arith.constant dense<0.000000e+00> : vector<128x128xf32>
    %14 = tpu.matmul %11, %12, %cst_6 {dimension_numbers = #tpu.dot_dimension_numbers<[1], [1], [0], [0], [0, 0, 1, 0], [], []>} : vector<128x64xbf16>, vector<128x64xbf16>, vector<128x128xf32> -> vector<128x128xf32>
    %cst_7 = arith.constant -1.000000e+30 : f32
    %15 = vector.broadcast %cst_7 : f32 to vector<128x128xf32>
    %16 = arith.select %7, %14, %15 : vector<128x128xi1>, vector<128x128xf32>
    %cst_8 = arith.constant dense<0xFF800000> : vector<128xf32>
    %17 = vector.multi_reduction <maximumf>, %16, %cst_8 [1] : vector<128x128xf32> to vector<128xf32>
    %18 = vector.shape_cast %17 : vector<128xf32> to vector<128x1xf32>
    %19 = vector.broadcast %18 : vector<128x1xf32> to vector<128x128xf32>
    %20 = arith.subf %16, %19 : vector<128x128xf32>
    %21 = math.exp %20 : vector<128x128xf32>
    %cst_9 = arith.constant dense<0.000000e+00> : vector<128xf32>
    %22 = vector.multi_reduction <add>, %21, %cst_9 [1] : vector<128x128xf32> to vector<128xf32>
    %23 = vector.shape_cast %22 : vector<128xf32> to vector<128x1xf32>
    %24 = arith.truncf %21 : vector<128x128xf32> to vector<128x128xbf16>
    %cst_10 = arith.constant dense<0.000000e+00> : vector<128x64xf32>
    %25 = tpu.matmul %24, %13, %cst_10 {dimension_numbers = #tpu.dot_dimension_numbers<[1], [0], [0], [1], [0, 0, 1, 1], [], []>} : vector<128x128xbf16>, vector<128x64xbf16>, vector<128x64xf32> -> vector<128x64xf32>
    %26 = tpu.reciprocal %23 {approx = true} : vector<128x1xf32> -> vector<128x1xf32>
    %27 = vector.broadcast %26 : vector<128x1xf32> to vector<128x64xf32>
    %28 = arith.mulf %25, %27 : vector<128x64xf32>
    %29 = arith.truncf %28 : vector<128x64xf32> to vector<128x64xbf16>
    %c0_11 = arith.constant 0 : index
    %c0_12 = arith.constant 0 : index
    %30 = vector.load %arg3[%c0_11, %c0_12] : memref<384x384xbf16, #tpu.memory_space<vmem>>, vector<64x384xbf16>
    %cst_13 = arith.constant dense<0.000000e+00> : vector<128x384xf32>
    %31 = tpu.matmul %29, %30, %cst_13 {dimension_numbers = #tpu.dot_dimension_numbers<[1], [0], [0], [1], [0, 0, 1, 1], [], []>} : vector<128x64xbf16>, vector<64x384xbf16>, vector<128x384xf32> -> vector<128x384xf32>
    %32 = arith.addf %10, %31 : vector<128x384xf32>
    %33 = vector.extract_strided_slice %4 {offsets = [0, 64], sizes = [128, 64], strides = [1, 1]} : vector<256x1152xbf16> to vector<128x64xbf16>
    %34 = vector.extract_strided_slice %4 {offsets = [0, 448], sizes = [128, 64], strides = [1, 1]} : vector<256x1152xbf16> to vector<128x64xbf16>
    %35 = vector.extract_strided_slice %4 {offsets = [0, 832], sizes = [128, 64], strides = [1, 1]} : vector<256x1152xbf16> to vector<128x64xbf16>
    %cst_14 = arith.constant dense<0.000000e+00> : vector<128x128xf32>
    %36 = tpu.matmul %33, %34, %cst_14 {dimension_numbers = #tpu.dot_dimension_numbers<[1], [1], [0], [0], [0, 0, 1, 0], [], []>} : vector<128x64xbf16>, vector<128x64xbf16>, vector<128x128xf32> -> vector<128x128xf32>
    %cst_15 = arith.constant -1.000000e+30 : f32
    %37 = vector.broadcast %cst_15 : f32 to vector<128x128xf32>
    %38 = arith.select %7, %36, %37 : vector<128x128xi1>, vector<128x128xf32>
    %cst_16 = arith.constant dense<0xFF800000> : vector<128xf32>
    %39 = vector.multi_reduction <maximumf>, %38, %cst_16 [1] : vector<128x128xf32> to vector<128xf32>
    %40 = vector.shape_cast %39 : vector<128xf32> to vector<128x1xf32>
    %41 = vector.broadcast %40 : vector<128x1xf32> to vector<128x128xf32>
    %42 = arith.subf %38, %41 : vector<128x128xf32>
    %43 = math.exp %42 : vector<128x128xf32>
    %cst_17 = arith.constant dense<0.000000e+00> : vector<128xf32>
    %44 = vector.multi_reduction <add>, %43, %cst_17 [1] : vector<128x128xf32> to vector<128xf32>
    %45 = vector.shape_cast %44 : vector<128xf32> to vector<128x1xf32>
    %46 = arith.truncf %43 : vector<128x128xf32> to vector<128x128xbf16>
    %cst_18 = arith.constant dense<0.000000e+00> : vector<128x64xf32>
    %47 = tpu.matmul %46, %35, %cst_18 {dimension_numbers = #tpu.dot_dimension_numbers<[1], [0], [0], [1], [0, 0, 1, 1], [], []>} : vector<128x128xbf16>, vector<128x64xbf16>, vector<128x64xf32> -> vector<128x64xf32>
    %48 = tpu.reciprocal %45 {approx = true} : vector<128x1xf32> -> vector<128x1xf32>
    %49 = vector.broadcast %48 : vector<128x1xf32> to vector<128x64xf32>
    %50 = arith.mulf %47, %49 : vector<128x64xf32>
    %51 = arith.truncf %50 : vector<128x64xf32> to vector<128x64xbf16>
    %c64 = arith.constant 64 : index
    %c0_19 = arith.constant 0 : index
    %52 = vector.load %arg3[%c64, %c0_19] : memref<384x384xbf16, #tpu.memory_space<vmem>>, vector<64x384xbf16>
    %cst_20 = arith.constant dense<0.000000e+00> : vector<128x384xf32>
    %53 = tpu.matmul %51, %52, %cst_20 {dimension_numbers = #tpu.dot_dimension_numbers<[1], [0], [0], [1], [0, 0, 1, 1], [], []>} : vector<128x64xbf16>, vector<64x384xbf16>, vector<128x384xf32> -> vector<128x384xf32>
    %54 = arith.addf %32, %53 : vector<128x384xf32>
    %55 = vector.extract_strided_slice %4 {offsets = [0, 128], sizes = [128, 64], strides = [1, 1]} : vector<256x1152xbf16> to vector<128x64xbf16>
    %56 = vector.extract_strided_slice %4 {offsets = [0, 512], sizes = [128, 64], strides = [1, 1]} : vector<256x1152xbf16> to vector<128x64xbf16>
    %57 = vector.extract_strided_slice %4 {offsets = [0, 896], sizes = [128, 64], strides = [1, 1]} : vector<256x1152xbf16> to vector<128x64xbf16>
    %cst_21 = arith.constant dense<0.000000e+00> : vector<128x128xf32>
    %58 = tpu.matmul %55, %56, %cst_21 {dimension_numbers = #tpu.dot_dimension_numbers<[1], [1], [0], [0], [0, 0, 1, 0], [], []>} : vector<128x64xbf16>, vector<128x64xbf16>, vector<128x128xf32> -> vector<128x128xf32>
    %cst_22 = arith.constant -1.000000e+30 : f32
    %59 = vector.broadcast %cst_22 : f32 to vector<128x128xf32>
    %60 = arith.select %7, %58, %59 : vector<128x128xi1>, vector<128x128xf32>
    %cst_23 = arith.constant dense<0xFF800000> : vector<128xf32>
    %61 = vector.multi_reduction <maximumf>, %60, %cst_23 [1] : vector<128x128xf32> to vector<128xf32>
    %62 = vector.shape_cast %61 : vector<128xf32> to vector<128x1xf32>
    %63 = vector.broadcast %62 : vector<128x1xf32> to vector<128x128xf32>
    %64 = arith.subf %60, %63 : vector<128x128xf32>
    %65 = math.exp %64 : vector<128x128xf32>
    %cst_24 = arith.constant dense<0.000000e+00> : vector<128xf32>
    %66 = vector.multi_reduction <add>, %65, %cst_24 [1] : vector<128x128xf32> to vector<128xf32>
    %67 = vector.shape_cast %66 : vector<128xf32> to vector<128x1xf32>
    %68 = arith.truncf %65 : vector<128x128xf32> to vector<128x128xbf16>
    %cst_25 = arith.constant dense<0.000000e+00> : vector<128x64xf32>
    %69 = tpu.matmul %68, %57, %cst_25 {dimension_numbers = #tpu.dot_dimension_numbers<[1], [0], [0], [1], [0, 0, 1, 1], [], []>} : vector<128x128xbf16>, vector<128x64xbf16>, vector<128x64xf32> -> vector<128x64xf32>
    %70 = tpu.reciprocal %67 {approx = true} : vector<128x1xf32> -> vector<128x1xf32>
    %71 = vector.broadcast %70 : vector<128x1xf32> to vector<128x64xf32>
    %72 = arith.mulf %69, %71 : vector<128x64xf32>
    %73 = arith.truncf %72 : vector<128x64xf32> to vector<128x64xbf16>
    %c128 = arith.constant 128 : index
    %c0_26 = arith.constant 0 : index
    %74 = vector.load %arg3[%c128, %c0_26] : memref<384x384xbf16, #tpu.memory_space<vmem>>, vector<64x384xbf16>
    %cst_27 = arith.constant dense<0.000000e+00> : vector<128x384xf32>
    %75 = tpu.matmul %73, %74, %cst_27 {dimension_numbers = #tpu.dot_dimension_numbers<[1], [0], [0], [1], [0, 0, 1, 1], [], []>} : vector<128x64xbf16>, vector<64x384xbf16>, vector<128x384xf32> -> vector<128x384xf32>
    %76 = arith.addf %54, %75 : vector<128x384xf32>
    %77 = vector.extract_strided_slice %4 {offsets = [0, 192], sizes = [128, 64], strides = [1, 1]} : vector<256x1152xbf16> to vector<128x64xbf16>
    %78 = vector.extract_strided_slice %4 {offsets = [0, 576], sizes = [128, 64], strides = [1, 1]} : vector<256x1152xbf16> to vector<128x64xbf16>
    %79 = vector.extract_strided_slice %4 {offsets = [0, 960], sizes = [128, 64], strides = [1, 1]} : vector<256x1152xbf16> to vector<128x64xbf16>
    %cst_28 = arith.constant dense<0.000000e+00> : vector<128x128xf32>
    %80 = tpu.matmul %77, %78, %cst_28 {dimension_numbers = #tpu.dot_dimension_numbers<[1], [1], [0], [0], [0, 0, 1, 0], [], []>} : vector<128x64xbf16>, vector<128x64xbf16>, vector<128x128xf32> -> vector<128x128xf32>
    %cst_29 = arith.constant -1.000000e+30 : f32
    %81 = vector.broadcast %cst_29 : f32 to vector<128x128xf32>
    %82 = arith.select %7, %80, %81 : vector<128x128xi1>, vector<128x128xf32>
    %cst_30 = arith.constant dense<0xFF800000> : vector<128xf32>
    %83 = vector.multi_reduction <maximumf>, %82, %cst_30 [1] : vector<128x128xf32> to vector<128xf32>
    %84 = vector.shape_cast %83 : vector<128xf32> to vector<128x1xf32>
    %85 = vector.broadcast %84 : vector<128x1xf32> to vector<128x128xf32>
    %86 = arith.subf %82, %85 : vector<128x128xf32>
    %87 = math.exp %86 : vector<128x128xf32>
    %cst_31 = arith.constant dense<0.000000e+00> : vector<128xf32>
    %88 = vector.multi_reduction <add>, %87, %cst_31 [1] : vector<128x128xf32> to vector<128xf32>
    %89 = vector.shape_cast %88 : vector<128xf32> to vector<128x1xf32>
    %90 = arith.truncf %87 : vector<128x128xf32> to vector<128x128xbf16>
    %cst_32 = arith.constant dense<0.000000e+00> : vector<128x64xf32>
    %91 = tpu.matmul %90, %79, %cst_32 {dimension_numbers = #tpu.dot_dimension_numbers<[1], [0], [0], [1], [0, 0, 1, 1], [], []>} : vector<128x128xbf16>, vector<128x64xbf16>, vector<128x64xf32> -> vector<128x64xf32>
    %92 = tpu.reciprocal %89 {approx = true} : vector<128x1xf32> -> vector<128x1xf32>
    %93 = vector.broadcast %92 : vector<128x1xf32> to vector<128x64xf32>
    %94 = arith.mulf %91, %93 : vector<128x64xf32>
    %95 = arith.truncf %94 : vector<128x64xf32> to vector<128x64xbf16>
    %c192 = arith.constant 192 : index
    %c0_33 = arith.constant 0 : index
    %96 = vector.load %arg3[%c192, %c0_33] : memref<384x384xbf16, #tpu.memory_space<vmem>>, vector<64x384xbf16>
    %cst_34 = arith.constant dense<0.000000e+00> : vector<128x384xf32>
    %97 = tpu.matmul %95, %96, %cst_34 {dimension_numbers = #tpu.dot_dimension_numbers<[1], [0], [0], [1], [0, 0, 1, 1], [], []>} : vector<128x64xbf16>, vector<64x384xbf16>, vector<128x384xf32> -> vector<128x384xf32>
    %98 = arith.addf %76, %97 : vector<128x384xf32>
    %99 = vector.extract_strided_slice %4 {offsets = [0, 256], sizes = [128, 64], strides = [1, 1]} : vector<256x1152xbf16> to vector<128x64xbf16>
    %100 = vector.extract_strided_slice %4 {offsets = [0, 640], sizes = [128, 64], strides = [1, 1]} : vector<256x1152xbf16> to vector<128x64xbf16>
    %101 = vector.extract_strided_slice %4 {offsets = [0, 1024], sizes = [128, 64], strides = [1, 1]} : vector<256x1152xbf16> to vector<128x64xbf16>
    %cst_35 = arith.constant dense<0.000000e+00> : vector<128x128xf32>
    %102 = tpu.matmul %99, %100, %cst_35 {dimension_numbers = #tpu.dot_dimension_numbers<[1], [1], [0], [0], [0, 0, 1, 0], [], []>} : vector<128x64xbf16>, vector<128x64xbf16>, vector<128x128xf32> -> vector<128x128xf32>
    %cst_36 = arith.constant -1.000000e+30 : f32
    %103 = vector.broadcast %cst_36 : f32 to vector<128x128xf32>
    %104 = arith.select %7, %102, %103 : vector<128x128xi1>, vector<128x128xf32>
    %cst_37 = arith.constant dense<0xFF800000> : vector<128xf32>
    %105 = vector.multi_reduction <maximumf>, %104, %cst_37 [1] : vector<128x128xf32> to vector<128xf32>
    %106 = vector.shape_cast %105 : vector<128xf32> to vector<128x1xf32>
    %107 = vector.broadcast %106 : vector<128x1xf32> to vector<128x128xf32>
    %108 = arith.subf %104, %107 : vector<128x128xf32>
    %109 = math.exp %108 : vector<128x128xf32>
    %cst_38 = arith.constant dense<0.000000e+00> : vector<128xf32>
    %110 = vector.multi_reduction <add>, %109, %cst_38 [1] : vector<128x128xf32> to vector<128xf32>
    %111 = vector.shape_cast %110 : vector<128xf32> to vector<128x1xf32>
    %112 = arith.truncf %109 : vector<128x128xf32> to vector<128x128xbf16>
    %cst_39 = arith.constant dense<0.000000e+00> : vector<128x64xf32>
    %113 = tpu.matmul %112, %101, %cst_39 {dimension_numbers = #tpu.dot_dimension_numbers<[1], [0], [0], [1], [0, 0, 1, 1], [], []>} : vector<128x128xbf16>, vector<128x64xbf16>, vector<128x64xf32> -> vector<128x64xf32>
    %114 = tpu.reciprocal %111 {approx = true} : vector<128x1xf32> -> vector<128x1xf32>
    %115 = vector.broadcast %114 : vector<128x1xf32> to vector<128x64xf32>
    %116 = arith.mulf %113, %115 : vector<128x64xf32>
    %117 = arith.truncf %116 : vector<128x64xf32> to vector<128x64xbf16>
    %c256 = arith.constant 256 : index
    %c0_40 = arith.constant 0 : index
    %118 = vector.load %arg3[%c256, %c0_40] : memref<384x384xbf16, #tpu.memory_space<vmem>>, vector<64x384xbf16>
    %cst_41 = arith.constant dense<0.000000e+00> : vector<128x384xf32>
    %119 = tpu.matmul %117, %118, %cst_41 {dimension_numbers = #tpu.dot_dimension_numbers<[1], [0], [0], [1], [0, 0, 1, 1], [], []>} : vector<128x64xbf16>, vector<64x384xbf16>, vector<128x384xf32> -> vector<128x384xf32>
    %120 = arith.addf %98, %119 : vector<128x384xf32>
    %121 = vector.extract_strided_slice %4 {offsets = [0, 320], sizes = [128, 64], strides = [1, 1]} : vector<256x1152xbf16> to vector<128x64xbf16>
    %122 = vector.extract_strided_slice %4 {offsets = [0, 704], sizes = [128, 64], strides = [1, 1]} : vector<256x1152xbf16> to vector<128x64xbf16>
    %123 = vector.extract_strided_slice %4 {offsets = [0, 1088], sizes = [128, 64], strides = [1, 1]} : vector<256x1152xbf16> to vector<128x64xbf16>
    %cst_42 = arith.constant dense<0.000000e+00> : vector<128x128xf32>
    %124 = tpu.matmul %121, %122, %cst_42 {dimension_numbers = #tpu.dot_dimension_numbers<[1], [1], [0], [0], [0, 0, 1, 0], [], []>} : vector<128x64xbf16>, vector<128x64xbf16>, vector<128x128xf32> -> vector<128x128xf32>
    %cst_43 = arith.constant -1.000000e+30 : f32
    %125 = vector.broadcast %cst_43 : f32 to vector<128x128xf32>
    %126 = arith.select %7, %124, %125 : vector<128x128xi1>, vector<128x128xf32>
    %cst_44 = arith.constant dense<0xFF800000> : vector<128xf32>
    %127 = vector.multi_reduction <maximumf>, %126, %cst_44 [1] : vector<128x128xf32> to vector<128xf32>
    %128 = vector.shape_cast %127 : vector<128xf32> to vector<128x1xf32>
    %129 = vector.broadcast %128 : vector<128x1xf32> to vector<128x128xf32>
    %130 = arith.subf %126, %129 : vector<128x128xf32>
    %131 = math.exp %130 : vector<128x128xf32>
    %cst_45 = arith.constant dense<0.000000e+00> : vector<128xf32>
    %132 = vector.multi_reduction <add>, %131, %cst_45 [1] : vector<128x128xf32> to vector<128xf32>
    %133 = vector.shape_cast %132 : vector<128xf32> to vector<128x1xf32>
    %134 = arith.truncf %131 : vector<128x128xf32> to vector<128x128xbf16>
    %cst_46 = arith.constant dense<0.000000e+00> : vector<128x64xf32>
    %135 = tpu.matmul %134, %123, %cst_46 {dimension_numbers = #tpu.dot_dimension_numbers<[1], [0], [0], [1], [0, 0, 1, 1], [], []>} : vector<128x128xbf16>, vector<128x64xbf16>, vector<128x64xf32> -> vector<128x64xf32>
    %136 = tpu.reciprocal %133 {approx = true} : vector<128x1xf32> -> vector<128x1xf32>
    %137 = vector.broadcast %136 : vector<128x1xf32> to vector<128x64xf32>
    %138 = arith.mulf %135, %137 : vector<128x64xf32>
    %139 = arith.truncf %138 : vector<128x64xf32> to vector<128x64xbf16>
    %c320 = arith.constant 320 : index
    %c0_47 = arith.constant 0 : index
    %140 = vector.load %arg3[%c320, %c0_47] : memref<384x384xbf16, #tpu.memory_space<vmem>>, vector<64x384xbf16>
    %cst_48 = arith.constant dense<0.000000e+00> : vector<128x384xf32>
    %141 = tpu.matmul %139, %140, %cst_48 {dimension_numbers = #tpu.dot_dimension_numbers<[1], [0], [0], [1], [0, 0, 1, 1], [], []>} : vector<128x64xbf16>, vector<64x384xbf16>, vector<128x384xf32> -> vector<128x384xf32>
    %142 = arith.addf %120, %141 : vector<128x384xf32>
    %143 = arith.truncf %142 : vector<128x384xf32> to vector<128x384xbf16>
    %c0_49 = arith.constant 0 : index
    %c0_50 = arith.constant 0 : index
    %c0_51 = arith.constant 0 : index
    %144 = vector.load %arg5[%c0_49, %c0_50, %c0_51] : memref<2x128x384xbf16, #tpu.memory_space<vmem>>, vector<1x128x384xbf16>
    %145 = vector.shape_cast %144 : vector<1x128x384xbf16> to vector<128x384xbf16>
    %146 = vector.shape_cast %143 : vector<128x384xbf16> to vector<1x128x384xbf16>
    tpu.vector_store %arg5[%c0_49, %c0_50, %c0_51], %146 {strides = array<i32>} : memref<2x128x384xbf16, #tpu.memory_space<vmem>>, vector<1x128x384xbf16>,
    %c0_52 = arith.constant 0 : index
    %c0_53 = arith.constant 0 : index
    %147 = vector.load %arg4[%c0_52, %c0_53] : memref<1x384xf32, #tpu.memory_space<vmem>>, vector<1x384xf32>
    %148 = vector.shape_cast %147 : vector<1x384xf32> to vector<1x384xf32>
    %149 = vector.broadcast %148 : vector<1x384xf32> to vector<128x384xf32>
    %150 = vector.extract_strided_slice %4 {offsets = [128, 0], sizes = [128, 64], strides = [1, 1]} : vector<256x1152xbf16> to vector<128x64xbf16>
    %151 = vector.extract_strided_slice %4 {offsets = [128, 384], sizes = [128, 64], strides = [1, 1]} : vector<256x1152xbf16> to vector<128x64xbf16>
    %152 = vector.extract_strided_slice %4 {offsets = [128, 768], sizes = [128, 64], strides = [1, 1]} : vector<256x1152xbf16> to vector<128x64xbf16>
    %cst_54 = arith.constant dense<0.000000e+00> : vector<128x128xf32>
    %153 = tpu.matmul %150, %151, %cst_54 {dimension_numbers = #tpu.dot_dimension_numbers<[1], [1], [0], [0], [0, 0, 1, 0], [], []>} : vector<128x64xbf16>, vector<128x64xbf16>, vector<128x128xf32> -> vector<128x128xf32>
    %cst_55 = arith.constant -1.000000e+30 : f32
    %154 = vector.broadcast %cst_55 : f32 to vector<128x128xf32>
    %155 = arith.select %7, %153, %154 : vector<128x128xi1>, vector<128x128xf32>
    %cst_56 = arith.constant dense<0xFF800000> : vector<128xf32>
    %156 = vector.multi_reduction <maximumf>, %155, %cst_56 [1] : vector<128x128xf32> to vector<128xf32>
    %157 = vector.shape_cast %156 : vector<128xf32> to vector<128x1xf32>
    %158 = vector.broadcast %157 : vector<128x1xf32> to vector<128x128xf32>
    %159 = arith.subf %155, %158 : vector<128x128xf32>
    %160 = math.exp %159 : vector<128x128xf32>
    %cst_57 = arith.constant dense<0.000000e+00> : vector<128xf32>
    %161 = vector.multi_reduction <add>, %160, %cst_57 [1] : vector<128x128xf32> to vector<128xf32>
    %162 = vector.shape_cast %161 : vector<128xf32> to vector<128x1xf32>
    %163 = arith.truncf %160 : vector<128x128xf32> to vector<128x128xbf16>
    %cst_58 = arith.constant dense<0.000000e+00> : vector<128x64xf32>
    %164 = tpu.matmul %163, %152, %cst_58 {dimension_numbers = #tpu.dot_dimension_numbers<[1], [0], [0], [1], [0, 0, 1, 1], [], []>} : vector<128x128xbf16>, vector<128x64xbf16>, vector<128x64xf32> -> vector<128x64xf32>
    %165 = tpu.reciprocal %162 {approx = true} : vector<128x1xf32> -> vector<128x1xf32>
    %166 = vector.broadcast %165 : vector<128x1xf32> to vector<128x64xf32>
    %167 = arith.mulf %164, %166 : vector<128x64xf32>
    %168 = arith.truncf %167 : vector<128x64xf32> to vector<128x64xbf16>
    %c0_59 = arith.constant 0 : index
    %c0_60 = arith.constant 0 : index
    %169 = vector.load %arg3[%c0_59, %c0_60] : memref<384x384xbf16, #tpu.memory_space<vmem>>, vector<64x384xbf16>
    %cst_61 = arith.constant dense<0.000000e+00> : vector<128x384xf32>
    %170 = tpu.matmul %168, %169, %cst_61 {dimension_numbers = #tpu.dot_dimension_numbers<[1], [0], [0], [1], [0, 0, 1, 1], [], []>} : vector<128x64xbf16>, vector<64x384xbf16>, vector<128x384xf32> -> vector<128x384xf32>
    %171 = arith.addf %149, %170 : vector<128x384xf32>
    %172 = vector.extract_strided_slice %4 {offsets = [128, 64], sizes = [128, 64], strides = [1, 1]} : vector<256x1152xbf16> to vector<128x64xbf16>
    %173 = vector.extract_strided_slice %4 {offsets = [128, 448], sizes = [128, 64], strides = [1, 1]} : vector<256x1152xbf16> to vector<128x64xbf16>
    %174 = vector.extract_strided_slice %4 {offsets = [128, 832], sizes = [128, 64], strides = [1, 1]} : vector<256x1152xbf16> to vector<128x64xbf16>
    %cst_62 = arith.constant dense<0.000000e+00> : vector<128x128xf32>
    %175 = tpu.matmul %172, %173, %cst_62 {dimension_numbers = #tpu.dot_dimension_numbers<[1], [1], [0], [0], [0, 0, 1, 0], [], []>} : vector<128x64xbf16>, vector<128x64xbf16>, vector<128x128xf32> -> vector<128x128xf32>
    %cst_63 = arith.constant -1.000000e+30 : f32
    %176 = vector.broadcast %cst_63 : f32 to vector<128x128xf32>
    %177 = arith.select %7, %175, %176 : vector<128x128xi1>, vector<128x128xf32>
    %cst_64 = arith.constant dense<0xFF800000> : vector<128xf32>
    %178 = vector.multi_reduction <maximumf>, %177, %cst_64 [1] : vector<128x128xf32> to vector<128xf32>
    %179 = vector.shape_cast %178 : vector<128xf32> to vector<128x1xf32>
    %180 = vector.broadcast %179 : vector<128x1xf32> to vector<128x128xf32>
    %181 = arith.subf %177, %180 : vector<128x128xf32>
    %182 = math.exp %181 : vector<128x128xf32>
    %cst_65 = arith.constant dense<0.000000e+00> : vector<128xf32>
    %183 = vector.multi_reduction <add>, %182, %cst_65 [1] : vector<128x128xf32> to vector<128xf32>
    %184 = vector.shape_cast %183 : vector<128xf32> to vector<128x1xf32>
    %185 = arith.truncf %182 : vector<128x128xf32> to vector<128x128xbf16>
    %cst_66 = arith.constant dense<0.000000e+00> : vector<128x64xf32>
    %186 = tpu.matmul %185, %174, %cst_66 {dimension_numbers = #tpu.dot_dimension_numbers<[1], [0], [0], [1], [0, 0, 1, 1], [], []>} : vector<128x128xbf16>, vector<128x64xbf16>, vector<128x64xf32> -> vector<128x64xf32>
    %187 = tpu.reciprocal %184 {approx = true} : vector<128x1xf32> -> vector<128x1xf32>
    %188 = vector.broadcast %187 : vector<128x1xf32> to vector<128x64xf32>
    %189 = arith.mulf %186, %188 : vector<128x64xf32>
    %190 = arith.truncf %189 : vector<128x64xf32> to vector<128x64xbf16>
    %c64_67 = arith.constant 64 : index
    %c0_68 = arith.constant 0 : index
    %191 = vector.load %arg3[%c64_67, %c0_68] : memref<384x384xbf16, #tpu.memory_space<vmem>>, vector<64x384xbf16>
    %cst_69 = arith.constant dense<0.000000e+00> : vector<128x384xf32>
    %192 = tpu.matmul %190, %191, %cst_69 {dimension_numbers = #tpu.dot_dimension_numbers<[1], [0], [0], [1], [0, 0, 1, 1], [], []>} : vector<128x64xbf16>, vector<64x384xbf16>, vector<128x384xf32> -> vector<128x384xf32>
    %193 = arith.addf %171, %192 : vector<128x384xf32>
    %194 = vector.extract_strided_slice %4 {offsets = [128, 128], sizes = [128, 64], strides = [1, 1]} : vector<256x1152xbf16> to vector<128x64xbf16>
    %195 = vector.extract_strided_slice %4 {offsets = [128, 512], sizes = [128, 64], strides = [1, 1]} : vector<256x1152xbf16> to vector<128x64xbf16>
    %196 = vector.extract_strided_slice %4 {offsets = [128, 896], sizes = [128, 64], strides = [1, 1]} : vector<256x1152xbf16> to vector<128x64xbf16>
    %cst_70 = arith.constant dense<0.000000e+00> : vector<128x128xf32>
    %197 = tpu.matmul %194, %195, %cst_70 {dimension_numbers = #tpu.dot_dimension_numbers<[1], [1], [0], [0], [0, 0, 1, 0], [], []>} : vector<128x64xbf16>, vector<128x64xbf16>, vector<128x128xf32> -> vector<128x128xf32>
    %cst_71 = arith.constant -1.000000e+30 : f32
    %198 = vector.broadcast %cst_71 : f32 to vector<128x128xf32>
    %199 = arith.select %7, %197, %198 : vector<128x128xi1>, vector<128x128xf32>
    %cst_72 = arith.constant dense<0xFF800000> : vector<128xf32>
    %200 = vector.multi_reduction <maximumf>, %199, %cst_72 [1] : vector<128x128xf32> to vector<128xf32>
    %201 = vector.shape_cast %200 : vector<128xf32> to vector<128x1xf32>
    %202 = vector.broadcast %201 : vector<128x1xf32> to vector<128x128xf32>
    %203 = arith.subf %199, %202 : vector<128x128xf32>
    %204 = math.exp %203 : vector<128x128xf32>
    %cst_73 = arith.constant dense<0.000000e+00> : vector<128xf32>
    %205 = vector.multi_reduction <add>, %204, %cst_73 [1] : vector<128x128xf32> to vector<128xf32>
    %206 = vector.shape_cast %205 : vector<128xf32> to vector<128x1xf32>
    %207 = arith.truncf %204 : vector<128x128xf32> to vector<128x128xbf16>
    %cst_74 = arith.constant dense<0.000000e+00> : vector<128x64xf32>
    %208 = tpu.matmul %207, %196, %cst_74 {dimension_numbers = #tpu.dot_dimension_numbers<[1], [0], [0], [1], [0, 0, 1, 1], [], []>} : vector<128x128xbf16>, vector<128x64xbf16>, vector<128x64xf32> -> vector<128x64xf32>
    %209 = tpu.reciprocal %206 {approx = true} : vector<128x1xf32> -> vector<128x1xf32>
    %210 = vector.broadcast %209 : vector<128x1xf32> to vector<128x64xf32>
    %211 = arith.mulf %208, %210 : vector<128x64xf32>
    %212 = arith.truncf %211 : vector<128x64xf32> to vector<128x64xbf16>
    %c128_75 = arith.constant 128 : index
    %c0_76 = arith.constant 0 : index
    %213 = vector.load %arg3[%c128_75, %c0_76] : memref<384x384xbf16, #tpu.memory_space<vmem>>, vector<64x384xbf16>
    %cst_77 = arith.constant dense<0.000000e+00> : vector<128x384xf32>
    %214 = tpu.matmul %212, %213, %cst_77 {dimension_numbers = #tpu.dot_dimension_numbers<[1], [0], [0], [1], [0, 0, 1, 1], [], []>} : vector<128x64xbf16>, vector<64x384xbf16>, vector<128x384xf32> -> vector<128x384xf32>
    %215 = arith.addf %193, %214 : vector<128x384xf32>
    %216 = vector.extract_strided_slice %4 {offsets = [128, 192], sizes = [128, 64], strides = [1, 1]} : vector<256x1152xbf16> to vector<128x64xbf16>
    %217 = vector.extract_strided_slice %4 {offsets = [128, 576], sizes = [128, 64], strides = [1, 1]} : vector<256x1152xbf16> to vector<128x64xbf16>
    %218 = vector.extract_strided_slice %4 {offsets = [128, 960], sizes = [128, 64], strides = [1, 1]} : vector<256x1152xbf16> to vector<128x64xbf16>
    %cst_78 = arith.constant dense<0.000000e+00> : vector<128x128xf32>
    %219 = tpu.matmul %216, %217, %cst_78 {dimension_numbers = #tpu.dot_dimension_numbers<[1], [1], [0], [0], [0, 0, 1, 0], [], []>} : vector<128x64xbf16>, vector<128x64xbf16>, vector<128x128xf32> -> vector<128x128xf32>
    %cst_79 = arith.constant -1.000000e+30 : f32
    %220 = vector.broadcast %cst_79 : f32 to vector<128x128xf32>
    %221 = arith.select %7, %219, %220 : vector<128x128xi1>, vector<128x128xf32>
    %cst_80 = arith.constant dense<0xFF800000> : vector<128xf32>
    %222 = vector.multi_reduction <maximumf>, %221, %cst_80 [1] : vector<128x128xf32> to vector<128xf32>
    %223 = vector.shape_cast %222 : vector<128xf32> to vector<128x1xf32>
    %224 = vector.broadcast %223 : vector<128x1xf32> to vector<128x128xf32>
    %225 = arith.subf %221, %224 : vector<128x128xf32>
    %226 = math.exp %225 : vector<128x128xf32>
    %cst_81 = arith.constant dense<0.000000e+00> : vector<128xf32>
    %227 = vector.multi_reduction <add>, %226, %cst_81 [1] : vector<128x128xf32> to vector<128xf32>
    %228 = vector.shape_cast %227 : vector<128xf32> to vector<128x1xf32>
    %229 = arith.truncf %226 : vector<128x128xf32> to vector<128x128xbf16>
    %cst_82 = arith.constant dense<0.000000e+00> : vector<128x64xf32>
    %230 = tpu.matmul %229, %218, %cst_82 {dimension_numbers = #tpu.dot_dimension_numbers<[1], [0], [0], [1], [0, 0, 1, 1], [], []>} : vector<128x128xbf16>, vector<128x64xbf16>, vector<128x64xf32> -> vector<128x64xf32>
    %231 = tpu.reciprocal %228 {approx = true} : vector<128x1xf32> -> vector<128x1xf32>
    %232 = vector.broadcast %231 : vector<128x1xf32> to vector<128x64xf32>
    %233 = arith.mulf %230, %232 : vector<128x64xf32>
    %234 = arith.truncf %233 : vector<128x64xf32> to vector<128x64xbf16>
    %c192_83 = arith.constant 192 : index
    %c0_84 = arith.constant 0 : index
    %235 = vector.load %arg3[%c192_83, %c0_84] : memref<384x384xbf16, #tpu.memory_space<vmem>>, vector<64x384xbf16>
    %cst_85 = arith.constant dense<0.000000e+00> : vector<128x384xf32>
    %236 = tpu.matmul %234, %235, %cst_85 {dimension_numbers = #tpu.dot_dimension_numbers<[1], [0], [0], [1], [0, 0, 1, 1], [], []>} : vector<128x64xbf16>, vector<64x384xbf16>, vector<128x384xf32> -> vector<128x384xf32>
    %237 = arith.addf %215, %236 : vector<128x384xf32>
    %238 = vector.extract_strided_slice %4 {offsets = [128, 256], sizes = [128, 64], strides = [1, 1]} : vector<256x1152xbf16> to vector<128x64xbf16>
    %239 = vector.extract_strided_slice %4 {offsets = [128, 640], sizes = [128, 64], strides = [1, 1]} : vector<256x1152xbf16> to vector<128x64xbf16>
    %240 = vector.extract_strided_slice %4 {offsets = [128, 1024], sizes = [128, 64], strides = [1, 1]} : vector<256x1152xbf16> to vector<128x64xbf16>
    %cst_86 = arith.constant dense<0.000000e+00> : vector<128x128xf32>
    %241 = tpu.matmul %238, %239, %cst_86 {dimension_numbers = #tpu.dot_dimension_numbers<[1], [1], [0], [0], [0, 0, 1, 0], [], []>} : vector<128x64xbf16>, vector<128x64xbf16>, vector<128x128xf32> -> vector<128x128xf32>
    %cst_87 = arith.constant -1.000000e+30 : f32
    %242 = vector.broadcast %cst_87 : f32 to vector<128x128xf32>
    %243 = arith.select %7, %241, %242 : vector<128x128xi1>, vector<128x128xf32>
    %cst_88 = arith.constant dense<0xFF800000> : vector<128xf32>
    %244 = vector.multi_reduction <maximumf>, %243, %cst_88 [1] : vector<128x128xf32> to vector<128xf32>
    %245 = vector.shape_cast %244 : vector<128xf32> to vector<128x1xf32>
    %246 = vector.broadcast %245 : vector<128x1xf32> to vector<128x128xf32>
    %247 = arith.subf %243, %246 : vector<128x128xf32>
    %248 = math.exp %247 : vector<128x128xf32>
    %cst_89 = arith.constant dense<0.000000e+00> : vector<128xf32>
    %249 = vector.multi_reduction <add>, %248, %cst_89 [1] : vector<128x128xf32> to vector<128xf32>
    %250 = vector.shape_cast %249 : vector<128xf32> to vector<128x1xf32>
    %251 = arith.truncf %248 : vector<128x128xf32> to vector<128x128xbf16>
    %cst_90 = arith.constant dense<0.000000e+00> : vector<128x64xf32>
    %252 = tpu.matmul %251, %240, %cst_90 {dimension_numbers = #tpu.dot_dimension_numbers<[1], [0], [0], [1], [0, 0, 1, 1], [], []>} : vector<128x128xbf16>, vector<128x64xbf16>, vector<128x64xf32> -> vector<128x64xf32>
    %253 = tpu.reciprocal %250 {approx = true} : vector<128x1xf32> -> vector<128x1xf32>
    %254 = vector.broadcast %253 : vector<128x1xf32> to vector<128x64xf32>
    %255 = arith.mulf %252, %254 : vector<128x64xf32>
    %256 = arith.truncf %255 : vector<128x64xf32> to vector<128x64xbf16>
    %c256_91 = arith.constant 256 : index
    %c0_92 = arith.constant 0 : index
    %257 = vector.load %arg3[%c256_91, %c0_92] : memref<384x384xbf16, #tpu.memory_space<vmem>>, vector<64x384xbf16>
    %cst_93 = arith.constant dense<0.000000e+00> : vector<128x384xf32>
    %258 = tpu.matmul %256, %257, %cst_93 {dimension_numbers = #tpu.dot_dimension_numbers<[1], [0], [0], [1], [0, 0, 1, 1], [], []>} : vector<128x64xbf16>, vector<64x384xbf16>, vector<128x384xf32> -> vector<128x384xf32>
    %259 = arith.addf %237, %258 : vector<128x384xf32>
    %260 = vector.extract_strided_slice %4 {offsets = [128, 320], sizes = [128, 64], strides = [1, 1]} : vector<256x1152xbf16> to vector<128x64xbf16>
    %261 = vector.extract_strided_slice %4 {offsets = [128, 704], sizes = [128, 64], strides = [1, 1]} : vector<256x1152xbf16> to vector<128x64xbf16>
    %262 = vector.extract_strided_slice %4 {offsets = [128, 1088], sizes = [128, 64], strides = [1, 1]} : vector<256x1152xbf16> to vector<128x64xbf16>
    %cst_94 = arith.constant dense<0.000000e+00> : vector<128x128xf32>
    %263 = tpu.matmul %260, %261, %cst_94 {dimension_numbers = #tpu.dot_dimension_numbers<[1], [1], [0], [0], [0, 0, 1, 0], [], []>} : vector<128x64xbf16>, vector<128x64xbf16>, vector<128x128xf32> -> vector<128x128xf32>
    %cst_95 = arith.constant -1.000000e+30 : f32
    %264 = vector.broadcast %cst_95 : f32 to vector<128x128xf32>
    %265 = arith.select %7, %263, %264 : vector<128x128xi1>, vector<128x128xf32>
    %cst_96 = arith.constant dense<0xFF800000> : vector<128xf32>
    %266 = vector.multi_reduction <maximumf>, %265, %cst_96 [1] : vector<128x128xf32> to vector<128xf32>
    %267 = vector.shape_cast %266 : vector<128xf32> to vector<128x1xf32>
    %268 = vector.broadcast %267 : vector<128x1xf32> to vector<128x128xf32>
    %269 = arith.subf %265, %268 : vector<128x128xf32>
    %270 = math.exp %269 : vector<128x128xf32>
    %cst_97 = arith.constant dense<0.000000e+00> : vector<128xf32>
    %271 = vector.multi_reduction <add>, %270, %cst_97 [1] : vector<128x128xf32> to vector<128xf32>
    %272 = vector.shape_cast %271 : vector<128xf32> to vector<128x1xf32>
    %273 = arith.truncf %270 : vector<128x128xf32> to vector<128x128xbf16>
    %cst_98 = arith.constant dense<0.000000e+00> : vector<128x64xf32>
    %274 = tpu.matmul %273, %262, %cst_98 {dimension_numbers = #tpu.dot_dimension_numbers<[1], [0], [0], [1], [0, 0, 1, 1], [], []>} : vector<128x128xbf16>, vector<128x64xbf16>, vector<128x64xf32> -> vector<128x64xf32>
    %275 = tpu.reciprocal %272 {approx = true} : vector<128x1xf32> -> vector<128x1xf32>
    %276 = vector.broadcast %275 : vector<128x1xf32> to vector<128x64xf32>
    %277 = arith.mulf %274, %276 : vector<128x64xf32>
    %278 = arith.truncf %277 : vector<128x64xf32> to vector<128x64xbf16>
    %c320_99 = arith.constant 320 : index
    %c0_100 = arith.constant 0 : index
    %279 = vector.load %arg3[%c320_99, %c0_100] : memref<384x384xbf16, #tpu.memory_space<vmem>>, vector<64x384xbf16>
    %cst_101 = arith.constant dense<0.000000e+00> : vector<128x384xf32>
    %280 = tpu.matmul %278, %279, %cst_101 {dimension_numbers = #tpu.dot_dimension_numbers<[1], [0], [0], [1], [0, 0, 1, 1], [], []>} : vector<128x64xbf16>, vector<64x384xbf16>, vector<128x384xf32> -> vector<128x384xf32>
    %281 = arith.addf %259, %280 : vector<128x384xf32>
    %282 = arith.truncf %281 : vector<128x384xf32> to vector<128x384xbf16>
    %c1 = arith.constant 1 : index
    %c0_102 = arith.constant 0 : index
    %c0_103 = arith.constant 0 : index
    %283 = vector.load %arg5[%c1, %c0_102, %c0_103] : memref<2x128x384xbf16, #tpu.memory_space<vmem>>, vector<1x128x384xbf16>
    %284 = vector.shape_cast %283 : vector<1x128x384xbf16> to vector<128x384xbf16>
    %285 = vector.shape_cast %282 : vector<128x384xbf16> to vector<1x128x384xbf16>
    tpu.vector_store %arg5[%c1, %c0_102, %c0_103], %285 {strides = array<i32>} : memref<2x128x384xbf16, #tpu.memory_space<vmem>>, vector<1x128x384xbf16>,
    return
  }
  func.func @transform_0(%arg0: i32) -> (i32, i32, i32) {
    %c0_i32 = arith.constant 0 : i32
    %c0_i32_0 = arith.constant 0 : i32
    %c0_i32_1 = arith.constant 0 : i32
    return %arg0, %c0_i32, %c0_i32_0 : i32, i32, i32
  }
  func.func @transform_1(%arg0: i32) -> (i32, i32) {
    %c0_i32 = arith.constant 0 : i32
    %c0_i32_0 = arith.constant 0 : i32
    %c0_i32_1 = arith.constant 0 : i32
    return %c0_i32, %c0_i32_0 : i32, i32
  }
  func.func @transform_2(%arg0: i32) -> (i32, i32) {
    %c0_i32 = arith.constant 0 : i32
    %c0_i32_0 = arith.constant 0 : i32
    %c0_i32_1 = arith.constant 0 : i32
    return %c0_i32, %c0_i32_0 : i32, i32
  }
  func.func @transform_3(%arg0: i32) -> (i32, i32) {
    %c0_i32 = arith.constant 0 : i32
    %c0_i32_0 = arith.constant 0 : i32
    %c0_i32_1 = arith.constant 0 : i32
    return %c0_i32, %c0_i32_0 : i32, i32
  }
  func.func @transform_4(%arg0: i32) -> (i32, i32, i32) {
    %c0_i32 = arith.constant 0 : i32
    %c0_i32_0 = arith.constant 0 : i32
    %c0_i32_1 = arith.constant 0 : i32
    return %arg0, %c0_i32, %c0_i32_0 : i32, i32, i32
  }
}

</mosaic_0001>

<bundles_post_ra>
// kernel: tpu_custom_call.1
= control target key start
LH: loop header
LB: loop body
LE: loop exit
PB: predicated region body
PF: predicated region fallthrough
CT: control target
= control target key end

     0   :  { %9 = vsyncpa [#allocation3], 0  ;;  %s22582_s0 = inlined_call_operand.hbm [shape: bf16[2,128,384], index: 0, kind: input, shape index: {}]   ;;  %s22583_s1 = inlined_call_operand.hbm [shape: bf16[384,1152], index: 1, kind: input, shape index: {}]   ;;  %s22584_s2 = inlined_call_operand.hbm [shape: bf16[384,384], index: 2, kind: input, shape index: {}]   ;;  %s22585_s3 = inlined_call_operand.vmem [shape: f32[1,384], index: 3, kind: input, shape index: {}]   ;;  %s22586_s4 = inlined_call_operand.hbm [shape: bf16[2,128,384], index: 4, kind: output, shape index: {}]  }
   0x1   :  { %10 = vsyncpa [#allocation6], 0 }
   0x2   :  { %11 = vsyncpa [#allocation4], 0  ;;  %s19063_s15 = smov [#allocation5]   ;;  %s18969_s19 = scalar_lea.hbm %s22583_s1, 27648 }
   0x3   :  { %s29_s16 = sshll.u32 %s19063_s15, 4  ;;  %p18970_p0 = scmp.ne.s32.totalorder %s22583_s1, %s18969_s19  ;;  %s30_s16 = int_to_ptr.vmem [resolvable:$true] %s29_s16 }
   0x4   :  { %p18973_p1 = scmp.lt.u32.totalorder %s18969_s19, %s22583_s1 }
   0x6   :  { %p18975_p2 = pnand %p18973_p1, %p18970_p0 }
   0x8   :  { %18978 = shalt.err (!%p18975_p2)
}
   0x9   :  { %s18979_s24 = scalar_lea.vmem %s30_s16, 27648  ;;  %p18984_p4 = scmp.lt.s32.totalorder %s30_s16, %s30_s16 }
   0xa   :  { %p18980_p3 = scmp.ne.s32.totalorder %s30_s16, %s18979_s24  ;;  %p18985_p5 = scmp.lt.s32.totalorder %s18979_s24, %s18979_s24 }
   0xc   :  { %p18986_p6 = por %p18985_p5, %p18984_p4 }
   0xe   :  { %p18987_p7 = pnand %p18986_p6, %p18980_p3 }
  0x10   :  { %18990 = shalt.err (!%p18987_p7)
}
  0x11   :  { %s19064_s25 = smov 576   ;;  %s19065_s26 = smov 36  }
  0x12   :  { %35 = dma.hbm_to_vmem [thread:$0]  %s22583_s1, 27648, %s30_s16, [#allocation6], %s19064_s25, %s19064_s25, %s19065_s26  }
  0x13   :  { %s19066_s29 = smov [#allocation2]   ;;  %s18991_s7 = scalar_lea.hbm %s22582_s0, 6144 }
  0x14   :  { %s17_s30 = sshll.u32 %s19066_s29, 4  ;;  %p18992_p8 = scmp.ne.s32.totalorder %s22582_s0, %s18991_s7  ;;  %s18_s30 = int_to_ptr.vmem [resolvable:$true] %s17_s30 }
  0x15   :  { %p18995_p9 = scmp.lt.u32.totalorder %s18991_s7, %s22582_s0 }
  0x17   :  { %p18997_p10 = pnand %p18995_p9, %p18992_p8 }
  0x19   :  { %19000 = shalt.err (!%p18997_p10)
}
  0x1a   :  { %s19001_s12 = scalar_lea.vmem %s18_s30, 6144  ;;  %p19006_p12 = scmp.lt.s32.totalorder %s18_s30, %s18_s30 }
  0x1b   :  { %p19002_p11 = scmp.ne.s32.totalorder %s18_s30, %s19001_s12  ;;  %p19007_p13 = scmp.lt.s32.totalorder %s19001_s12, %s19001_s12 }
  0x1d   :  { %p19008_p0 = por %p19007_p13, %p19006_p12 }
  0x1f   :  { %p19009_p1 = pnand %p19008_p0, %p19002_p11 }
  0x21   :  { %19012 = shalt.err (!%p19009_p1)
}
  0x22   :  { %s19067_s1 = smov 192   ;;  %s19068_s13 = smov 12  }
  0x23   :  { %23 = dma.hbm_to_vmem [thread:$0]  %s22582_s0, 6144, %s18_s30, [#allocation3], %s19067_s1, %s19067_s1, %s19068_s13  }
  0x24   :  { %s19069_s16 = smov [#allocation7]   ;;  %s19013_s20 = scalar_lea.hbm %s22584_s2, 9216 }
  0x25   :  { %s41_s17 = sshll.u32 %s19069_s16, 4  ;;  %p19014_p2 = scmp.ne.s32.totalorder %s22584_s2, %s19013_s20  ;;  %s42_s17 = int_to_ptr.vmem [resolvable:$true] %s41_s17 }
  0x26   :  { %p19017_p3 = scmp.lt.u32.totalorder %s19013_s20, %s22584_s2 }
  0x28   :  { %p19019_p4 = pnand %p19017_p3, %p19014_p2 }
  0x2a   :  { %19022 = shalt.err (!%p19019_p4)
}
  0x2b   :  { %s19023_s25 = scalar_lea.vmem %s42_s17, 9216  ;;  %p19028_p6 = scmp.lt.s32.totalorder %s42_s17, %s42_s17 }
  0x2c   :  { %p19024_p5 = scmp.ne.s32.totalorder %s42_s17, %s19023_s25  ;;  %p19029_p7 = scmp.lt.s32.totalorder %s19023_s25, %s19023_s25 }
  0x2e   :  { %p19030_p8 = por %p19029_p7, %p19028_p6 }
  0x30   :  { %p19031_p9 = pnand %p19030_p8, %p19024_p5 }
  0x32   :  { %19034 = shalt.err (!%p19031_p9)
}
  0x33   :  { %47 = dma.hbm_to_vmem [thread:$0]  %s22584_s2, 9216, %s42_s17, [#allocation6], %s19067_s1, %s19067_s1, %s19068_s13  }
  0x34   :  { %19057 = dma.done.wait [#allocation3], 6144  }
  0x35   :  { %19058 = vsyncadd [#allocation3], 4294961152 }
  0x36   :  { %19059 = dma.done.wait [#allocation6], 36864  }
  0x37   :  { %19060 = vsyncadd [#allocation6], 4294930432  ;;  %v17593_v0 = vld [vmem:[#allocation5 + $0x4] ss:$36 sps:$4 sm:$0xff]   ;;  %v17595_v1 = vld [vmem:[#allocation5 + $0xc] ss:$36 sps:$4 sm:$0xff]  }
  0x38   :  { %1724 = vmatprep.subr.bf16.mxu0 %v17593_v0  ;;  %v17597_v2 = vld [vmem:[#allocation5] ss:$36 sps:$4 sm:$0xff]   ;;  %v17598_v3 = vld [vmem:[#allocation5 + $0x8] ss:$36 sps:$4 sm:$0xff]   ;;  %2110 = vmatprep.subr.bf16.mxu1 %v17595_v1  ;;  %v17601_v5 = vld [vmem:[#allocation5 + $0x54] ss:$36 sps:$4 sm:$0xff]  }
  0x39   :  { %v17599_v4 = vld [vmem:[#allocation5 + $0x4c] ss:$36 sps:$4 sm:$0xff]   ;;  %1725 = vmatpush1.bf16.msra.mxu0 %v17597_v2  ;;  %2111 = vmatpush1.bf16.msra.mxu1 %v17598_v3  ;;  %v17605_v8 = vld [vmem:[#allocation5 + $0x94] ss:$36 sps:$4 sm:$0xff]   ;;  %v17607_v9 = vld [vmem:[#allocation5 + $0x9c] ss:$36 sps:$4 sm:$0xff]  }
  0x3a   :  { %v17603_v6 = vld [vmem:[#allocation5 + $0x48] ss:$36 sps:$4 sm:$0xff]   ;;  %1726 = vmatprep.subr.bf16.mxu0 %v17599_v4  ;;  %v17604_v7 = vld [vmem:[#allocation5 + $0x50] ss:$36 sps:$4 sm:$0xff]   ;;  %2112 = vmatprep.subr.bf16.mxu1 %v17601_v5  ;;  %v17610_v11 = vld [vmem:[#allocation5 + $0x98] ss:$36 sps:$4 sm:$0xff]  }
  0x3b   :  { %v17609_v10 = vld [vmem:[#allocation5 + $0x90] ss:$36 sps:$4 sm:$0xff]   ;;  %v17611_v12 = vld [vmem:[#allocation5 + $0xdc] ss:$36 sps:$4 sm:$0xff]   ;;  %v17613_v13 = vld [vmem:[#allocation5 + $0xe4] ss:$36 sps:$4 sm:$0xff]  }
  0x3c   :  { %v17615_v14 = vld [vmem:[#allocation5 + $0xd8] ss:$36 sps:$4 sm:$0xff]   ;;  %v17616_v15 = vld [vmem:[#allocation5 + $0xe0] ss:$36 sps:$4 sm:$0xff]   ;;  %v17619_v17 = vld [vmem:[#allocation5 + $0x12c] ss:$36 sps:$4 sm:$0xff]  }
  0x3d   :  { %1727 = vmatpush1.bf16.msra.mxu0 %v17603_v6  ;;  %2113 = vmatpush1.bf16.msra.mxu1 %v17604_v7  ;;  %v17617_v16 = vld [vmem:[#allocation5 + $0x124] ss:$36 sps:$4 sm:$0xff]   ;;  %v17623_v20 = vld [vmem:[#allocation5 + $0x16c] ss:$36 sps:$4 sm:$0xff]   ;;  %v17625_v21 = vld [vmem:[#allocation5 + $0x174] ss:$36 sps:$4 sm:$0xff]  }
  0x3e   :  { %1728 = vmatprep.subr.bf16.mxu0 %v17605_v8  ;;  %2114 = vmatprep.subr.bf16.mxu1 %v17607_v9  ;;  %v17621_v18 = vld [vmem:[#allocation5 + $0x120] ss:$36 sps:$4 sm:$0xff]   ;;  %v17622_v19 = vld [vmem:[#allocation5 + $0x128] ss:$36 sps:$4 sm:$0xff]   ;;  %v17628_v23 = vld [vmem:[#allocation5 + $0x170] ss:$36 sps:$4 sm:$0xff]  }
  0x3f   :  { %v17627_v22 = vld [vmem:[#allocation5 + $0x168] ss:$36 sps:$4 sm:$0xff]   ;;  %v17629_v24 = vld [vmem:[#allocation5 + $0x1b4] ss:$36 sps:$4 sm:$0xff]   ;;  %v17631_v25 = vld [vmem:[#allocation5 + $0x1bc] ss:$36 sps:$4 sm:$0xff]  }
  0x40   :  { %v17633_v26 = vld [vmem:[#allocation5 + $0x1b0] ss:$36 sps:$4 sm:$0xff]   ;;  %v17634_v27 = vld [vmem:[#allocation5 + $0x1b8] ss:$36 sps:$4 sm:$0xff]   ;;  %v17637_v29 = vld [vmem:[#allocation5 + $0x204] ss:$36 sps:$4 sm:$0xff]  }
  0x41   :  { %1729 = vmatpush1.bf16.msra.mxu0 %v17609_v10  ;;  %2115 = vmatpush1.bf16.msra.mxu1 %v17610_v11  ;;  %v17635_v28 = vld [vmem:[#allocation5 + $0x1fc] ss:$36 sps:$4 sm:$0xff]   ;;  %v17641_v32 = vld [vmem:[#allocation5 + $0x244] ss:$36 sps:$4 sm:$0xff]   ;;  %v17643_v33 = vld [vmem:[#allocation5 + $0x24c] ss:$36 sps:$4 sm:$0xff]  }
  0x42   :  { %1730 = vmatprep.subr.bf16.mxu0 %v17611_v12  ;;  %2116 = vmatprep.subr.bf16.mxu1 %v17613_v13  ;;  %v17639_v30 = vld [vmem:[#allocation5 + $0x1f8] ss:$36 sps:$4 sm:$0xff]   ;;  %v17640_v31 = vld [vmem:[#allocation5 + $0x200] ss:$36 sps:$4 sm:$0xff]   ;;  %v17646_v35 = vld [vmem:[#allocation5 + $0x248] ss:$36 sps:$4 sm:$0xff]  }
  0x43   :  { %v17645_v34 = vld [vmem:[#allocation5 + $0x240] ss:$36 sps:$4 sm:$0xff]   ;;  %v17647_v36 = vld [vmem:[#allocation5 + $0x28c] ss:$36 sps:$4 sm:$0xff]   ;;  %v17649_v37 = vld [vmem:[#allocation5 + $0x294] ss:$36 sps:$4 sm:$0xff]  }
  0x44   :  { %v17651_v38 = vld [vmem:[#allocation5 + $0x288] ss:$36 sps:$4 sm:$0xff]   ;;  %v17652_v39 = vld [vmem:[#allocation5 + $0x290] ss:$36 sps:$4 sm:$0xff]   ;;  %v17655_v41 = vld [vmem:[#allocation5 + $0x2dc] ss:$36 sps:$4 sm:$0xff]  }
  0x45   :  { %1731 = vmatpush1.bf16.msra.mxu0 %v17615_v14  ;;  %2117 = vmatpush1.bf16.msra.mxu1 %v17616_v15  ;;  %v17653_v40 = vld [vmem:[#allocation5 + $0x2d4] ss:$36 sps:$4 sm:$0xff]   ;;  %v17659_v44 = vld [vmem:[#allocation5 + $0x31c] ss:$36 sps:$4 sm:$0xff]   ;;  %v17661_v45 = vld [vmem:[#allocation5 + $0x324] ss:$36 sps:$4 sm:$0xff]  }
  0x46   :  { %1732 = vmatprep.subr.bf16.mxu0 %v17617_v16  ;;  %2118 = vmatprep.subr.bf16.mxu1 %v17619_v17  ;;  %v17657_v42 = vld [vmem:[#allocation5 + $0x2d0] ss:$36 sps:$4 sm:$0xff]   ;;  %v17658_v43 = vld [vmem:[#allocation5 + $0x2d8] ss:$36 sps:$4 sm:$0xff]   ;;  %v17664_v47 = vld [vmem:[#allocation5 + $0x320] ss:$36 sps:$4 sm:$0xff]  }
  0x47   :  { %v17663_v46 = vld [vmem:[#allocation5 + $0x318] ss:$36 sps:$4 sm:$0xff]   ;;  %v17689_v48 = vld [vmem:[#allocation2 + $0x4] ss:$12 sps:$4 sm:$0xff]   ;;  %v17670_v52 = vld [vmem:[#allocation5 + $0x368] ss:$36 sps:$4 sm:$0xff]  }
  0x48   :  { %v17665_v49 = vld [vmem:[#allocation5 + $0x364] ss:$36 sps:$4 sm:$0xff]   ;;  %v17667_v50 = vld [vmem:[#allocation5 + $0x36c] ss:$36 sps:$4 sm:$0xff]   ;;  %1756 = vmatprep.mubr.bf16.mxu0 %v17689_v48  ;;  %2142 = vmatprep.mubr.bf16.mxu1 %v17689_v48  ;;  %v17673_v54 = vld [vmem:[#allocation5 + $0x3b4] ss:$36 sps:$4 sm:$0xff]  }
  0x49   :  { %1733 = vmatpush1.bf16.msra.mxu0 %v17621_v18  ;;  %2119 = vmatpush1.bf16.msra.mxu1 %v17622_v19  ;;  %v17669_v51 = vld [vmem:[#allocation5 + $0x360] ss:$36 sps:$4 sm:$0xff]   ;;  %v17671_v53 = vld [vmem:[#allocation5 + $0x3ac] ss:$36 sps:$4 sm:$0xff]   ;;  %v17677_v57 = vld [vmem:[#allocation5 + $0x3f4] ss:$36 sps:$4 sm:$0xff]  }
  0x4a   :  { %1734 = vmatprep.subr.bf16.mxu0 %v17623_v20  ;;  %2120 = vmatprep.subr.bf16.mxu1 %v17625_v21  ;;  %v17675_v55 = vld [vmem:[#allocation5 + $0x3a8] ss:$36 sps:$4 sm:$0xff]   ;;  %v17676_v56 = vld [vmem:[#allocation5 + $0x3b0] ss:$36 sps:$4 sm:$0xff]   ;;  %v17679_v58 = vld [vmem:[#allocation5 + $0x3fc] ss:$36 sps:$4 sm:$0xff]  }
  0x4b   :  { %v17681_v59 = vld [vmem:[#allocation5 + $0x3f0] ss:$36 sps:$4 sm:$0xff]   ;;  %v17682_v60 = vld [vmem:[#allocation5 + $0x3f8] ss:$36 sps:$4 sm:$0xff]   ;;  %v17685_v62 = vld [vmem:[#allocation5 + $0x444] ss:$36 sps:$4 sm:$0xff]  }
  0x4c   :  { %v17683_v61 = vld [vmem:[#allocation5 + $0x43c] ss:$36 sps:$4 sm:$0xff]   ;;  %v17694_v1 = vld [vmem:[#allocation5 + $0x48c] ss:$36 sps:$4 sm:$0xff]   ;;  %v17703_v5 = vld [vmem:[#allocation5 + $0x4d4] ss:$36 sps:$4 sm:$0xff]  }
  0x4d   :  { %1735 = vmatpush1.bf16.msra.mxu0 %v17627_v22  ;;  %2121 = vmatpush1.bf16.msra.mxu1 %v17628_v23  ;;  %v17687_v63 = vld [vmem:[#allocation5 + $0x438] ss:$36 sps:$4 sm:$0xff]   ;;  %v17688_v0 = vld [vmem:[#allocation5 + $0x440] ss:$36 sps:$4 sm:$0xff]   ;;  %v17692_v3 = vld [vmem:[#allocation5 + $0x488] ss:$36 sps:$4 sm:$0xff]  }
  0x4e   :  { %1736 = vmatprep.subr.bf16.mxu0 %v17629_v24  ;;  %2122 = vmatprep.subr.bf16.mxu1 %v17631_v25  ;;  %v17691_v2 = vld [vmem:[#allocation2] ss:$12 sps:$4 sm:$0xff]   ;;  %v17695_v4 = vld [vmem:[#allocation2 + $0x1c] ss:$12 sps:$4 sm:$0xff]   ;;  %v17701_v6 = vld [vmem:[#allocation5 + $0x4d0] ss:$36 sps:$4 sm:$0xff]  }
  0x4f   :  { %v17712_v7 = vld [vmem:[#allocation5 + $0x51c] ss:$36 sps:$4 sm:$0xff]   ;;  %v17748_v9 = vld [vmem:[#allocation5 + $0x484] ss:$36 sps:$4 sm:$0xff]   ;;  %v17754_v12 = vld [vmem:[#allocation5 + $0x4cc] ss:$36 sps:$4 sm:$0xff]  }
  0x50   :  { %v17746_v8 = vld [vmem:[#allocation5 + $0x480] ss:$36 sps:$4 sm:$0xff]   ;;  %v17710_v13 = vld [vmem:[#allocation5 + $0x518] ss:$36 sps:$4 sm:$0xff]   ;;  %v17752_v14 = vld [vmem:[#allocation5 + $0x4c8] ss:$36 sps:$4 sm:$0xff]  }
  0x51   :  { %1737 = vmatpush1.bf16.msra.mxu0 %v17633_v26  ;;  %2123 = vmatpush1.bf16.msra.mxu1 %v17634_v27  ;;  %v17697_v10 = vld [vmem:[#allocation2 + $0x18] ss:$12 sps:$4 sm:$0xff]   ;;  %v17698_v11 = vld [vmem:[#allocation2 + $0x34] ss:$12 sps:$4 sm:$0xff]   ;;  %v17730_v19 = vld [vmem:[#allocation5 + $0x5ac] ss:$36 sps:$4 sm:$0xff]  }
  0x52   :  { %1738 = vmatprep.subr.bf16.mxu0 %v17635_v28  ;;  %2124 = vmatprep.subr.bf16.mxu1 %v17637_v29  ;;  %v17721_v15 = vld [vmem:[#allocation5 + $0x564] ss:$36 sps:$4 sm:$0xff]   ;;  %v17760_v16 = vld [vmem:[#allocation5 + $0x514] ss:$36 sps:$4 sm:$0xff]   ;;  %v17763_v20 = vld [vmem:[#allocation5 + $0x55c] ss:$36 sps:$4 sm:$0xff]  }
  0x53   :  { %v17719_v17 = vld [vmem:[#allocation5 + $0x560] ss:$36 sps:$4 sm:$0xff]   ;;  %v17758_v18 = vld [vmem:[#allocation5 + $0x510] ss:$36 sps:$4 sm:$0xff]   ;;  %v17704_v22 = vld [vmem:[#allocation2 + $0x4c] ss:$12 sps:$4 sm:$0xff]  }
  0x54   :  { %v17700_v21 = vld [vmem:[#allocation2 + $0x30] ss:$12 sps:$4 sm:$0xff]   ;;  %v17728_v23 = vld [vmem:[#allocation5 + $0x5a8] ss:$36 sps:$4 sm:$0xff]   ;;  %v17739_v25 = vld [vmem:[#allocation5 + $0x5f4] ss:$36 sps:$4 sm:$0xff]  }
  0x55   :  { %1739 = vmatpush1.bf16.msra.mxu0 %v17639_v30  ;;  %2125 = vmatpush1.bf16.msra.mxu1 %v17640_v31  ;;  %v17761_v24 = vld [vmem:[#allocation5 + $0x558] ss:$36 sps:$4 sm:$0xff]   ;;  %v17769_v26 = vld [vmem:[#allocation5 + $0x5a4] ss:$36 sps:$4 sm:$0xff]   ;;  %v17737_v27 = vld [vmem:[#allocation5 + $0x5f0] ss:$36 sps:$4 sm:$0xff]  }
  0x56   :  { %1740 = vmatprep.subr.bf16.mxu0 %v17641_v32  ;;  %2126 = vmatprep.subr.bf16.mxu1 %v17643_v33  ;;  %v17751_v28 = vld [vmem:[#allocation5 + $0x63c] ss:$36 sps:$4 sm:$0xff]   ;;  %v17775_v30 = vld [vmem:[#allocation5 + $0x5ec] ss:$36 sps:$4 sm:$0xff]   ;;  %v17706_v31 = vld [vmem:[#allocation2 + $0x48] ss:$12 sps:$4 sm:$0xff]  }
  0x57   :  { %v17767_v29 = vld [vmem:[#allocation5 + $0x5a0] ss:$36 sps:$4 sm:$0xff]   ;;  %v17749_v33 = vld [vmem:[#allocation5 + $0x638] ss:$36 sps:$4 sm:$0xff]   ;;  %v17724_v48 = vld [vmem:[#allocation2 + $0xa8] ss:$12 sps:$4 sm:$0xff]  }
  0x58   :  { %v17707_v32 = vld [vmem:[#allocation2 + $0x64] ss:$12 sps:$4 sm:$0xff]   ;;  %vm22749_vm0 = vcmask 523264   ;;  %s19071_s2 = smov 64  }
  0x59   :  { %1741 = vmatpush1.bf16.msra.mxu0 %v17645_v34  ;;  %2127 = vmatpush1.bf16.msra.mxu1 %v17646_v35  ;;  %v17772_v34 = vld [vmem:[#allocation5 + $0x684] ss:$36 sps:$4 sm:$0xff]  }
  0x5a   :  { %1742 = vmatprep.subr.bf16.mxu0 %v17647_v36  ;;  %2128 = vmatprep.subr.bf16.mxu1 %v17649_v37  ;;  %v17773_v35 = vld [vmem:[#allocation5 + $0x5e8] ss:$36 sps:$4 sm:$0xff]   ;;  %v17781_v36 = vld [vmem:[#allocation5 + $0x634] ss:$36 sps:$4 sm:$0xff]   ;;  %v17770_v37 = vld [vmem:[#allocation5 + $0x680] ss:$36 sps:$4 sm:$0xff]  }
  0x5d   :  { %1743 = vmatpush1.bf16.msra.mxu0 %v17651_v38  ;;  %2129 = vmatpush1.bf16.msra.mxu1 %v17652_v39  ;;  %v17709_v38 = vld [vmem:[#allocation2 + $0x60] ss:$12 sps:$4 sm:$0xff]   ;;  %v17779_v39 = vld [vmem:[#allocation5 + $0x630] ss:$36 sps:$4 sm:$0xff]  }
  0x5e   :  { %1744 = vmatprep.subr.bf16.mxu0 %v17653_v40  ;;  %2130 = vmatprep.subr.bf16.mxu1 %v17655_v41  ;;  %v17713_v40 = vld [vmem:[#allocation2 + $0x7c] ss:$12 sps:$4 sm:$0xff]  }
  0x5f   :  { %v17784_v41 = vld [vmem:[#allocation5 + $0x67c] ss:$36 sps:$4 sm:$0xff]  }
  0x61   :  { %1745 = vmatpush1.bf16.msra.mxu0 %v17657_v42  ;;  %2131 = vmatpush1.bf16.msra.mxu1 %v17658_v43  ;;  %v17788_v42 = vld [vmem:[#allocation5 + $0x1c] ss:$36 sps:$4 sm:$0xff]  }
  0x62   :  { %1746 = vmatprep.subr.bf16.mxu0 %v17659_v44  ;;  %2132 = vmatprep.subr.bf16.mxu1 %v17661_v45  ;;  %v17782_v43 = vld [vmem:[#allocation5 + $0x678] ss:$36 sps:$4 sm:$0xff]   ;;  %v17716_v45 = vld [vmem:[#allocation2 + $0x94] ss:$12 sps:$4 sm:$0xff]  }
  0x63   :  { %v17715_v44 = vld [vmem:[#allocation2 + $0x78] ss:$12 sps:$4 sm:$0xff]  }
  0x65   :  { %1747 = vmatpush1.bf16.msra.mxu0 %v17663_v46  ;;  %2133 = vmatpush1.bf16.msra.mxu1 %v17664_v47  ;;  %v17718_v46 = vld [vmem:[#allocation2 + $0x90] ss:$12 sps:$4 sm:$0xff]   ;;  %v17722_v47 = vld [vmem:[#allocation2 + $0xac] ss:$12 sps:$4 sm:$0xff]  }
  0x66   :  { %1748 = vmatprep.subr.bf16.mxu0 %v17665_v49  ;;  %2134 = vmatprep.subr.bf16.mxu1 %v17667_v50  ;;  %v17725_v49 = vld [vmem:[#allocation2 + $0xc4] ss:$12 sps:$4 sm:$0xff]   ;;  %v17727_v50 = vld [vmem:[#allocation2 + $0xc0] ss:$12 sps:$4 sm:$0xff]  }
  0x69   :  { %1749 = vmatpush1.bf16.msra.mxu0 %v17669_v51  ;;  %2135 = vmatpush1.bf16.msra.mxu1 %v17670_v52  ;;  %v17731_v51 = vld [vmem:[#allocation2 + $0xdc] ss:$12 sps:$4 sm:$0xff]   ;;  %v17820_v52 = vld [vmem:[#allocation5 + $0x14] ss:$36 sps:$4 sm:$0xff]  }
  0x6a   :  { %1750 = vmatprep.subr.bf16.mxu0 %v17671_v53  ;;  %2136 = vmatprep.subr.bf16.mxu1 %v17673_v54  ;;  %v17733_v53 = vld [vmem:[#allocation2 + $0xd8] ss:$12 sps:$4 sm:$0xff]   ;;  %v17734_v54 = vld [vmem:[#allocation2 + $0xf4] ss:$12 sps:$4 sm:$0xff]  }
  0x6d   :  { %1751 = vmatpush1.bf16.msra.mxu0 %v17675_v55  ;;  %2137 = vmatpush1.bf16.msra.mxu1 %v17676_v56  ;;  %v17736_v55 = vld [vmem:[#allocation2 + $0xf0] ss:$12 sps:$4 sm:$0xff]   ;;  %v17740_v56 = vld [vmem:[#allocation2 + $0x10c] ss:$12 sps:$4 sm:$0xff]  }
  0x6e   :  { %1752 = vmatprep.subr.bf16.mxu0 %v17677_v57  ;;  %2138 = vmatprep.subr.bf16.mxu1 %v17679_v58  ;;  %v17742_v57 = vld [vmem:[#allocation2 + $0x108] ss:$12 sps:$4 sm:$0xff]   ;;  %v17743_v58 = vld [vmem:[#allocation2 + $0x124] ss:$12 sps:$4 sm:$0xff]  }
  0x71   :  { %1753 = vmatpush1.bf16.msra.mxu0 %v17681_v59  ;;  %2139 = vmatpush1.bf16.msra.mxu1 %v17682_v60  ;;  %v17745_v59 = vld [vmem:[#allocation2 + $0x120] ss:$12 sps:$4 sm:$0xff]   ;;  %v17755_v60 = vld [vmem:[#allocation2 + $0x13c] ss:$12 sps:$4 sm:$0xff]  }
  0x72   :  { %1754 = vmatprep.subr.bf16.mxu0 %v17683_v61  ;;  %2140 = vmatprep.subr.bf16.mxu1 %v17685_v62  ;;  %v17757_v61 = vld [vmem:[#allocation2 + $0x138] ss:$12 sps:$4 sm:$0xff]   ;;  %v17764_v62 = vld [vmem:[#allocation2 + $0x154] ss:$12 sps:$4 sm:$0xff]  }
  0x75   :  { %1755 = vmatpush1.bf16.msra.mxu0 %v17687_v63  ;;  %2141 = vmatpush1.bf16.msra.mxu1 %v17688_v0  ;;  %v17766_v63 = vld [vmem:[#allocation2 + $0x150] ss:$12 sps:$4 sm:$0xff]   ;;  %v17776_v0 = vld [vmem:[#allocation2 + $0x16c] ss:$12 sps:$4 sm:$0xff]  }
  0x76   :  { %2303 = vmatprep.subr.bf16.mxu1 %v17694_v1  ;;  %1917 = vmatprep.subr.bf16.mxu0 %v17748_v9  ;;  %v17778_v1 = vld [vmem:[#allocation2 + $0x168] ss:$12 sps:$4 sm:$0xff]   ;;  %v17826_v9 = vld [vmem:[#allocation5 + $0x5c] ss:$36 sps:$4 sm:$0xff]  }
  0x78   :  { %1757 = vmatmul.mubr.bf16.vlgmr.msra.gmra.mrb[0].mxu0 %v17691_v2  ;;  %2143 = vmatmul.mubr.bf16.vlgmr.msra.gmra.mrb[0].mxu1 %v17691_v2  ;;  %v22587_v2 = vmov 0  }
  0x79   :  { %2304 = vmatpush1.bf16.msra.mxu1 %v17692_v3  ;;  %1766 = vmatprep.mubr.bf16.mxu0 %v17695_v4  ;;  %v17785_v3 = vld [vmem:[#allocation2 + $0x8] ss:$12 sps:$4 sm:$0xff]  }
  0x7a   :  { %2152 = vmatprep.mubr.bf16.mxu1 %v17695_v4  ;;  %2305 = vmatprep.subr.bf16.mxu1 %v17703_v5  ;;  %v17786_v4 = vld [vmem:[#allocation5 + $0x18] ss:$36 sps:$4 sm:$0xff]   ;;  %v17792_v5 = vld [vmem:[#allocation5 + $0x64] ss:$36 sps:$4 sm:$0xff]  }
  0x7b   :  { %1918 = vmatpush1.bf16.msra.mxu0 %v17746_v8  ;;  %v17796_v8 = vld [vmem:[#allocation5 + $0xac] ss:$36 sps:$4 sm:$0xff]  }
  0x7c   :  { %1919 = vmatprep.subr.bf16.mxu0 %v17754_v12  ;;  %v17794_v12 = vld [vmem:[#allocation5 + $0xa8] ss:$36 sps:$4 sm:$0xff]  }
  0x7d   :  { %2306 = vmatpush1.bf16.msra.mxu1 %v17701_v6  ;;  %v17818_v6 = vld [vmem:[#allocation5 + $0x10] ss:$36 sps:$4 sm:$0xff]  }
  0x7e   :  { %2307 = vmatprep.subr.bf16.mxu1 %v17712_v7  ;;  %v17790_v7 = vld [vmem:[#allocation5 + $0x60] ss:$36 sps:$4 sm:$0xff]  }
  0x7f   :  { %1920 = vmatpush1.bf16.msra.mxu0 %v17752_v14  ;;  %v17800_v14 = vld [vmem:[#allocation5 + $0xf4] ss:$36 sps:$4 sm:$0xff]  }
  0x80   :  { %1767 = vmatmul.mubr.bf16.gmra.mrb[4].mxu0 %v17697_v10  ;;  %2153 = vmatmul.mubr.bf16.gmra.mrb[4].mxu1 %v17697_v10  ;;  %v17824_v10 = vld [vmem:[#allocation5 + $0x58] ss:$36 sps:$4 sm:$0xff]  }
  0x81   :  { %1776 = vmatprep.mubr.bf16.mxu0 %v17698_v11  ;;  %2162 = vmatprep.mubr.bf16.mxu1 %v17698_v11  ;;  %v17789_v11 = vld [vmem:[#allocation2 + $0x20] ss:$12 sps:$4 sm:$0xff]  }
  0x82   :  { %2308 = vmatpush1.bf16.msra.mxu1 %v17710_v13  ;;  %1921 = vmatprep.subr.bf16.mxu0 %v17760_v16  ;;  %v17830_v13 = vld [vmem:[#allocation5 + $0xa4] ss:$36 sps:$4 sm:$0xff]   ;;  %v17836_v16 = vld [vmem:[#allocation5 + $0xec] ss:$36 sps:$4 sm:$0xff]  }
  0x83   :  { %2309 = vmatprep.subr.bf16.mxu1 %v17721_v15  ;;  %1922 = vmatpush1.bf16.msra.mxu0 %v17758_v18  ;;  %v17828_v15 = vld [vmem:[#allocation5 + $0xa0] ss:$36 sps:$4 sm:$0xff]  }
  0x84   :  { %1923 = vmatprep.subr.bf16.mxu0 %v17763_v20  ;;  %v17804_v18 = vld [vmem:[#allocation5 + $0x13c] ss:$36 sps:$4 sm:$0xff]   ;;  %v17793_v20 = vld [vmem:[#allocation2 + $0x38] ss:$12 sps:$4 sm:$0xff]  }
  0x86   :  { %2310 = vmatpush1.bf16.msra.mxu1 %v17719_v17  ;;  %v17798_v17 = vld [vmem:[#allocation5 + $0xf0] ss:$36 sps:$4 sm:$0xff]  }
  0x87   :  { %2311 = vmatprep.subr.bf16.mxu1 %v17730_v19  ;;  %1924 = vmatpush1.bf16.msra.mxu0 %v17761_v24  ;;  %v17834_v19 = vld [vmem:[#allocation5 + $0xe8] ss:$36 sps:$4 sm:$0xff]   ;;  %v17838_v24 = vld [vmem:[#allocation5 + $0x130] ss:$36 sps:$4 sm:$0xff]  }
  0x88   :  { %1777 = vmatmul.mubr.bf16.gmra.mrb[8].mxu0 %v17700_v21  ;;  %2163 = vmatmul.mubr.bf16.gmra.mrb[8].mxu1 %v17700_v21  ;;  %v17802_v21 = vld [vmem:[#allocation5 + $0x138] ss:$36 sps:$4 sm:$0xff]  }
  0x89   :  { %1786 = vmatprep.mubr.bf16.mxu0 %v17704_v22  ;;  %2172 = vmatprep.mubr.bf16.mxu1 %v17704_v22  ;;  %v17840_v22 = vld [vmem:[#allocation5 + $0x134] ss:$36 sps:$4 sm:$0xff]  }
  0x8a   :  { %2312 = vmatpush1.bf16.msra.mxu1 %v17728_v23  ;;  %1925 = vmatprep.subr.bf16.mxu0 %v17769_v26  ;;  %v17808_v23 = vld [vmem:[#allocation5 + $0x184] ss:$36 sps:$4 sm:$0xff]   ;;  %v17846_v26 = vld [vmem:[#allocation5 + $0x17c] ss:$36 sps:$4 sm:$0xff]  }
  0x8b   :  { %2313 = vmatprep.subr.bf16.mxu1 %v17739_v25  ;;  %1926 = vmatpush1.bf16.msra.mxu0 %v17767_v29  ;;  %v17806_v25 = vld [vmem:[#allocation5 + $0x180] ss:$36 sps:$4 sm:$0xff]   ;;  %v19148_v29 = vld [vmem:[#allocation2 + $0x50] ss:$12 sps:$4 sm:$0xff]  }
  0x8c   :  { %1927 = vmatprep.subr.bf16.mxu0 %v17775_v30  ;;  %v17810_v30 = vld [vmem:[#allocation5 + $0x1c8] ss:$36 sps:$4 sm:$0xff]  }
  0x8e   :  { %2314 = vmatpush1.bf16.msra.mxu1 %v17737_v27  ;;  %v17812_v27 = vld [vmem:[#allocation5 + $0x1cc] ss:$36 sps:$4 sm:$0xff]  }
  0x8f   :  { %2315 = vmatprep.subr.bf16.mxu1 %v17751_v28  ;;  %1928 = vmatpush1.bf16.msra.mxu0 %v17773_v35  ;;  %v17844_v28 = vld [vmem:[#allocation5 + $0x178] ss:$36 sps:$4 sm:$0xff]   ;;  %v17814_v35 = vld [vmem:[#allocation5 + $0x210] ss:$36 sps:$4 sm:$0xff]  }
  0x90   :  { %1787 = vmatmul.mubr.bf16.gmra.mrb[12].mxu0 %v17706_v31  ;;  %2173 = vmatmul.mubr.bf16.gmra.mrb[12].mxu1 %v17706_v31  ;;  %v17850_v31 = vld [vmem:[#allocation5 + $0x1c4] ss:$36 sps:$4 sm:$0xff]  }
  0x91   :  { %1796 = vmatprep.mubr.bf16.mxu0 %v17707_v32  ;;  %2182 = vmatprep.mubr.bf16.mxu1 %v17707_v32  ;;  %v17816_v32 = vld [vmem:[#allocation5 + $0x214] ss:$36 sps:$4 sm:$0xff]  }
  0x92   :  { %2316 = vmatpush1.bf16.msra.mxu1 %v17749_v33  ;;  %1929 = vmatprep.subr.bf16.mxu0 %v17781_v36  ;;  %v17848_v33 = vld [vmem:[#allocation5 + $0x1c0] ss:$36 sps:$4 sm:$0xff]  }
  0x93   :  { %2317 = vmatprep.subr.bf16.mxu1 %v17772_v34  ;;  %1930 = vmatpush1.bf16.msra.mxu0 %v17779_v39  ;;  %v17856_v34 = vld [vmem:[#allocation5 + $0x20c] ss:$36 sps:$4 sm:$0xff]   ;;  %v17823_v36 = vld [vmem:[#allocation5 + $0x25c] ss:$36 sps:$4 sm:$0xff]  }
  0x94   :  { %1931 = vmatprep.subr.bf16.mxu0 %v17784_v41  ;;  %v17821_v39 = vld [vmem:[#allocation5 + $0x258] ss:$36 sps:$4 sm:$0xff]   ;;  %v17833_v41 = vld [vmem:[#allocation5 + $0x2a4] ss:$36 sps:$4 sm:$0xff]  }
  0x96   :  { %2318 = vmatpush1.bf16.msra.mxu1 %v17770_v37  ;;  %v17854_v37 = vld [vmem:[#allocation5 + $0x208] ss:$36 sps:$4 sm:$0xff]  }
  0x97   :  { %2882 = vmatprep.subr.bf16.mxu1 %v17788_v42  ;;  %1932 = vmatpush1.bf16.msra.mxu0 %v17782_v43  ;;  %v17858_v42 = vld [vmem:[#allocation5 + $0x250] ss:$36 sps:$4 sm:$0xff]   ;;  %v17831_v43 = vld [vmem:[#allocation5 + $0x2a0] ss:$36 sps:$4 sm:$0xff]  }
  0x98   :  { %1797 = vmatmul.mubr.bf16.gmra.mrb[16].mxu0 %v17709_v38  ;;  %2183 = vmatmul.mubr.bf16.gmra.mrb[16].mxu1 %v17709_v38  ;;  %v19154_v38 = vld [vmem:[#allocation2 + $0x68] ss:$12 sps:$4 sm:$0xff]  }
  0x99   :  { %1806 = vmatprep.mubr.bf16.mxu0 %v17713_v40  ;;  %2192 = vmatprep.mubr.bf16.mxu1 %v17713_v40  ;;  %v17860_v40 = vld [vmem:[#allocation5 + $0x254] ss:$36 sps:$4 sm:$0xff]  }
  0x9a   :  { %2496 = vmatprep.subr.bf16.mxu0 %v17820_v52  ;;  %v17876_v52 = vld [vmem:[#allocation5 + $0x32c] ss:$36 sps:$4 sm:$0xff]  }
  0xa0   :  { %1807 = vmatmul.mubr.bf16.gmra.mrb[20].mxu0 %v17715_v44  ;;  %2193 = vmatmul.mubr.bf16.gmra.mrb[20].mxu1 %v17715_v44  ;;  %v17866_v44 = vld [vmem:[#allocation5 + $0x29c] ss:$36 sps:$4 sm:$0xff]  }
  0xa1   :  { %1816 = vmatprep.mubr.bf16.mxu0 %v17716_v45  ;;  %2202 = vmatprep.mubr.bf16.mxu1 %v17716_v45  ;;  %v17843_v45 = vld [vmem:[#allocation5 + $0x2ec] ss:$36 sps:$4 sm:$0xff]  }
  0xa8   :  { %1817 = vmatmul.mubr.bf16.gmra.mrb[24].mxu0 %v17718_v46  ;;  %2203 = vmatmul.mubr.bf16.gmra.mrb[24].mxu1 %v17718_v46  ;;  %v17864_v46 = vld [vmem:[#allocation5 + $0x298] ss:$36 sps:$4 sm:$0xff]  }
  0xa9   :  { %1826 = vmatprep.mubr.bf16.mxu0 %v17722_v47  ;;  %2212 = vmatprep.mubr.bf16.mxu1 %v17722_v47  ;;  %v19160_v47 = vld [vmem:[#allocation2 + $0x80] ss:$12 sps:$4 sm:$0xff]  }
  0xb0   :  { %1827 = vmatmul.mubr.bf16.gmra.mrb[28].mxu0 %v17724_v48  ;;  %2213 = vmatmul.mubr.bf16.gmra.mrb[28].mxu1 %v17724_v48  ;;  %v17841_v48 = vld [vmem:[#allocation5 + $0x2e8] ss:$36 sps:$4 sm:$0xff]  }
  0xb1   :  { %1836 = vmatprep.mubr.bf16.mxu0 %v17725_v49  ;;  %2222 = vmatprep.mubr.bf16.mxu1 %v17725_v49  ;;  %v17870_v49 = vld [vmem:[#allocation5 + $0x2e4] ss:$36 sps:$4 sm:$0xff]  }
  0xb8   :  { %1837 = vmatmul.mubr.bf16.gmra.mrb[32].mxu0 %v17727_v50  ;;  %2223 = vmatmul.mubr.bf16.gmra.mrb[32].mxu1 %v17727_v50  ;;  %v17853_v50 = vld [vmem:[#allocation5 + $0x334] ss:$36 sps:$4 sm:$0xff]  }
  0xb9   :  { %1846 = vmatprep.mubr.bf16.mxu0 %v17731_v51  ;;  %2232 = vmatprep.mubr.bf16.mxu1 %v17731_v51  ;;  %v17868_v51 = vld [vmem:[#allocation5 + $0x2e0] ss:$36 sps:$4 sm:$0xff]  }
  0xc0   :  { %1847 = vmatmul.mubr.bf16.gmra.mrb[36].mxu0 %v17733_v53  ;;  %2233 = vmatmul.mubr.bf16.gmra.mrb[36].mxu1 %v17733_v53  ;;  %v17851_v53 = vld [vmem:[#allocation5 + $0x330] ss:$36 sps:$4 sm:$0xff]  }
  0xc1   :  { %1856 = vmatprep.mubr.bf16.mxu0 %v17734_v54  ;;  %2242 = vmatprep.mubr.bf16.mxu1 %v17734_v54  ;;  %v17863_v54 = vld [vmem:[#allocation5 + $0x37c] ss:$36 sps:$4 sm:$0xff]  }
  0xc8   :  { %1857 = vmatmul.mubr.bf16.gmra.mrb[40].mxu0 %v17736_v55  ;;  %2243 = vmatmul.mubr.bf16.gmra.mrb[40].mxu1 %v17736_v55  ;;  %v17874_v55 = vld [vmem:[#allocation5 + $0x328] ss:$36 sps:$4 sm:$0xff]  }
  0xc9   :  { %1866 = vmatprep.mubr.bf16.mxu0 %v17740_v56  ;;  %2252 = vmatprep.mubr.bf16.mxu1 %v17740_v56  ;;  %v19166_v56 = vld [vmem:[#allocation2 + $0x98] ss:$12 sps:$4 sm:$0xff]  }
  0xd0   :  { %1867 = vmatmul.mubr.bf16.gmra.mrb[44].mxu0 %v17742_v57  ;;  %2253 = vmatmul.mubr.bf16.gmra.mrb[44].mxu1 %v17742_v57  ;;  %v17861_v57 = vld [vmem:[#allocation5 + $0x378] ss:$36 sps:$4 sm:$0xff]  }
  0xd1   :  { %1876 = vmatprep.mubr.bf16.mxu0 %v17743_v58  ;;  %2262 = vmatprep.mubr.bf16.mxu1 %v17743_v58  ;;  %v17880_v58 = vld [vmem:[#allocation5 + $0x374] ss:$36 sps:$4 sm:$0xff]  }
  0xd8   :  { %1877 = vmatmul.mubr.bf16.gmra.mrb[48].mxu0 %v17745_v59  ;;  %2263 = vmatmul.mubr.bf16.gmra.mrb[48].mxu1 %v17745_v59  ;;  %v17873_v59 = vld [vmem:[#allocation5 + $0x3c4] ss:$36 sps:$4 sm:$0xff]  }
  0xd9   :  { %1886 = vmatprep.mubr.bf16.mxu0 %v17755_v60  ;;  %2272 = vmatprep.mubr.bf16.mxu1 %v17755_v60  ;;  %v17878_v60 = vld [vmem:[#allocation5 + $0x370] ss:$36 sps:$4 sm:$0xff]  }
  0xe0   :  { %1887 = vmatmul.mubr.bf16.gmra.mrb[52].mxu0 %v17757_v61  ;;  %2273 = vmatmul.mubr.bf16.gmra.mrb[52].mxu1 %v17757_v61  ;;  %v17886_v61 = vld [vmem:[#allocation5 + $0x3bc] ss:$36 sps:$4 sm:$0xff]  }
  0xe1   :  { %1896 = vmatprep.mubr.bf16.mxu0 %v17764_v62  ;;  %2282 = vmatprep.mubr.bf16.mxu1 %v17764_v62  ;;  %v17871_v62 = vld [vmem:[#allocation5 + $0x3c0] ss:$36 sps:$4 sm:$0xff]  }
  0xe8   :  { %1897 = vmatmul.mubr.bf16.gmra.mrb[56].mxu0 %v17766_v63  ;;  %2283 = vmatmul.mubr.bf16.gmra.mrb[56].mxu1 %v17766_v63  ;;  %v17883_v63 = vld [vmem:[#allocation5 + $0x40c] ss:$36 sps:$4 sm:$0xff]  }
  0xe9   :  { %1906 = vmatprep.mubr.bf16.mxu0 %v17776_v0  ;;  %2292 = vmatprep.mubr.bf16.mxu1 %v17776_v0  ;;  %v17884_v0 = vld [vmem:[#allocation5 + $0x3b8] ss:$36 sps:$4 sm:$0xff]  }
  0xf0   :  { %1907 = vmatmul.mubr.bf16.gmra.mrb[60].mxu0 %v17778_v1  ;;  %2293 = vmatmul.mubr.bf16.gmra.mrb[60].mxu1 %v17778_v1  ;;  %v19172_v1 = vld [vmem:[#allocation2 + $0xb0] ss:$12 sps:$4 sm:$0xff]  }
  0xf1   :  { %1949 = vmatprep.mubr.bf16.mxu0 %v22587_v2  ;;  %2335 = vmatprep.mubr.bf16.mxu1 %v22587_v2 }
  0xf8   :  { %1950 = vmatmul.mubr.bf16.vlgmr.msra.gmra.mrb[0].mxu0 %v17785_v3  ;;  %2336 = vmatmul.mubr.bf16.vlgmr.msra.gmra.mrb[0].mxu1 %v17785_v3  ;;  %v17881_v3 = vld [vmem:[#allocation5 + $0x408] ss:$36 sps:$4 sm:$0xff]  }
  0xf9   :  { %2883 = vmatpush1.bf16.msra.mxu1 %v17786_v4  ;;  %1959 = vmatprep.mubr.bf16.mxu0 %v22587_v2  ;;  %v17890_v4 = vld [vmem:[#allocation5 + $0x404] ss:$36 sps:$4 sm:$0xff]  }
  0xfa   :  { %2345 = vmatprep.mubr.bf16.mxu1 %v22587_v2  ;;  %2884 = vmatprep.subr.bf16.mxu1 %v17792_v5  ;;  %v17888_v5 = vld [vmem:[#allocation5 + $0x400] ss:$36 sps:$4 sm:$0xff]  }
  0xfb   :  { %2497 = vmatpush1.bf16.msra.mxu0 %v17818_v6  ;;  %v17893_v6 = vld [vmem:[#allocation5 + $0x454] ss:$36 sps:$4 sm:$0xff]  }
  0xfc   :  { %2498 = vmatprep.subr.bf16.mxu0 %v17826_v9  ;;  %v17894_v9 = vld [vmem:[#allocation5 + $0x448] ss:$36 sps:$4 sm:$0xff]  }
  0xfd   :  { %2885 = vmatpush1.bf16.msra.mxu1 %v17790_v7  ;;  %v17896_v7 = vld [vmem:[#allocation5 + $0x44c] ss:$36 sps:$4 sm:$0xff]  }
  0xfe   :  { %2886 = vmatprep.subr.bf16.mxu1 %v17796_v8  ;;  %v17891_v8 = vld [vmem:[#allocation5 + $0x450] ss:$36 sps:$4 sm:$0xff]  }
  0xff   :  { %2499 = vmatpush1.bf16.msra.mxu0 %v17824_v10  ;;  %v17899_v10 = vld [vmem:[#allocation5 + $0x49c] ss:$36 sps:$4 sm:$0xff]  }
 0x100   :  { %1960 = vmatmul.mubr.bf16.gmra.mrb[4].mxu0 %v17789_v11  ;;  %2346 = vmatmul.mubr.bf16.gmra.mrb[4].mxu1 %v17789_v11  ;;  %v19178_v11 = vld [vmem:[#allocation2 + $0xc8] ss:$12 sps:$4 sm:$0xff]  }
 0x101   :  { %1969 = vmatprep.mubr.bf16.mxu0 %v22587_v2  ;;  %2355 = vmatprep.mubr.bf16.mxu1 %v22587_v2 }
 0x102   :  { %2887 = vmatpush1.bf16.msra.mxu1 %v17794_v12  ;;  %2500 = vmatprep.subr.bf16.mxu0 %v17830_v13  ;;  %v19184_v12 = vld [vmem:[#allocation2 + $0xe0] ss:$12 sps:$4 sm:$0xff]   ;;  %v19190_v13 = vld [vmem:[#allocation2 + $0xf8] ss:$12 sps:$4 sm:$0xff]  }
 0x103   :  { %2888 = vmatprep.subr.bf16.mxu1 %v17800_v14  ;;  %2501 = vmatpush1.bf16.msra.mxu0 %v17828_v15  ;;  %v19196_v14 = vld [vmem:[#allocation2 + $0x110] ss:$12 sps:$4 sm:$0xff]   ;;  %v19202_v15 = vld [vmem:[#allocation2 + $0x128] ss:$12 sps:$4 sm:$0xff]  }
 0x104   :  { %2502 = vmatprep.subr.bf16.mxu0 %v17836_v16  ;;  %v17917_v16 = vld [vmem:[#allocation5 + $0x494] ss:$36 sps:$4 sm:$0xff]  }
 0x106   :  { %2889 = vmatpush1.bf16.msra.mxu1 %v17798_v17  ;;  %v19208_v17 = vld [vmem:[#allocation2 + $0x140] ss:$12 sps:$4 sm:$0xff]  }
 0x107   :  { %2890 = vmatprep.subr.bf16.mxu1 %v17804_v18  ;;  %2503 = vmatpush1.bf16.msra.mxu0 %v17834_v19  ;;  %v19214_v18 = vld [vmem:[#allocation2 + $0x158] ss:$12 sps:$4 sm:$0xff]   ;;  %v19220_v19 = vld [vmem:[#allocation2 + $0x170] ss:$12 sps:$4 sm:$0xff]  }
 0x108   :  { %1970 = vmatmul.mubr.bf16.gmra.mrb[8].mxu0 %v17793_v20  ;;  %2356 = vmatmul.mubr.bf16.gmra.mrb[8].mxu1 %v17793_v20  ;;  %v19224_v20 = vld [vmem:[#allocation2 + $0x4] ss:$12 sps:$4 sm:$0xff]  }
 0x109   :  { %1979 = vmatprep.mubr.bf16.mxu0 %v22587_v2  ;;  %2365 = vmatprep.mubr.bf16.mxu1 %v22587_v2 }
 0x10a   :  { %2891 = vmatpush1.bf16.msra.mxu1 %v17802_v21  ;;  %2504 = vmatprep.subr.bf16.mxu0 %v17840_v22  ;;  %v17897_v21 = vld [vmem:[#allocation5 + $0x498] ss:$36 sps:$4 sm:$0xff]   ;;  %v17902_v22 = vld [vmem:[#allocation5 + $0x4e4] ss:$36 sps:$4 sm:$0xff]  }
 0x10b   :  { %2892 = vmatprep.subr.bf16.mxu1 %v17808_v23  ;;  %2505 = vmatpush1.bf16.msra.mxu0 %v17838_v24  ;;  %v17915_v23 = vld [vmem:[#allocation5 + $0x490] ss:$36 sps:$4 sm:$0xff]   ;;  %v19228_v24 = vld [vmem:[#allocation2] ss:$12 sps:$4 sm:$0xff]  }
 0x10c   :  { %2506 = vmatprep.subr.bf16.mxu0 %v17846_v26  ;;  %v19232_v26 = vld [vmem:[#allocation2 + $0x1c] ss:$12 sps:$4 sm:$0xff]  }
 0x10e   :  { %2893 = vmatpush1.bf16.msra.mxu1 %v17806_v25  ;;  %v17923_v25 = vld [vmem:[#allocation5 + $0x4dc] ss:$36 sps:$4 sm:$0xff]  }
 0x10f   :  { %2894 = vmatprep.subr.bf16.mxu1 %v17812_v27  ;;  %2507 = vmatpush1.bf16.msra.mxu0 %v17844_v28  ;;  %v17900_v27 = vld [vmem:[#allocation5 + $0x4e0] ss:$36 sps:$4 sm:$0xff]   ;;  %v17905_v28 = vld [vmem:[#allocation5 + $0x52c] ss:$36 sps:$4 sm:$0xff]  }
 0x110   :  { %1980 = vmatmul.mubr.bf16.gmra.mrb[12].mxu0 %v19148_v29  ;;  %2366 = vmatmul.mubr.bf16.gmra.mrb[12].mxu1 %v19148_v29 }
 0x111   :  { %1989 = vmatprep.mubr.bf16.mxu0 %v22587_v2  ;;  %2375 = vmatprep.mubr.bf16.mxu1 %v22587_v2 }
 0x112   :  { %2895 = vmatpush1.bf16.msra.mxu1 %v17810_v30  ;;  %2508 = vmatprep.subr.bf16.mxu0 %v17850_v31  ;;  %v17921_v30 = vld [vmem:[#allocation5 + $0x4d8] ss:$36 sps:$4 sm:$0xff]   ;;  %v17903_v31 = vld [vmem:[#allocation5 + $0x528] ss:$36 sps:$4 sm:$0xff]  }
 0x113   :  { %2896 = vmatprep.subr.bf16.mxu1 %v17816_v32  ;;  %2509 = vmatpush1.bf16.msra.mxu0 %v17848_v33  ;;  %v17926_v32 = vld [vmem:[#allocation5 + $0x524] ss:$36 sps:$4 sm:$0xff]   ;;  %v17908_v33 = vld [vmem:[#allocation5 + $0x574] ss:$36 sps:$4 sm:$0xff]  }
 0x114   :  { %2510 = vmatprep.subr.bf16.mxu0 %v17856_v34  ;;  %v17924_v34 = vld [vmem:[#allocation5 + $0x520] ss:$36 sps:$4 sm:$0xff]  }
 0x116   :  { %2897 = vmatpush1.bf16.msra.mxu1 %v17814_v35  ;;  %v19236_v35 = vld [vmem:[#allocation2 + $0x18] ss:$12 sps:$4 sm:$0xff]  }
 0x117   :  { %2898 = vmatprep.subr.bf16.mxu1 %v17823_v36  ;;  %2511 = vmatpush1.bf16.msra.mxu0 %v17854_v37  ;;  %v17929_v36 = vld [vmem:[#allocation5 + $0x56c] ss:$36 sps:$4 sm:$0xff]   ;;  %v19240_v37 = vld [vmem:[#allocation2 + $0x34] ss:$12 sps:$4 sm:$0xff]  }
 0x118   :  { %1990 = vmatmul.mubr.bf16.gmra.mrb[16].mxu0 %v19154_v38  ;;  %2376 = vmatmul.mubr.bf16.gmra.mrb[16].mxu1 %v19154_v38 }
 0x119   :  { %1999 = vmatprep.mubr.bf16.mxu0 %v22587_v2  ;;  %2385 = vmatprep.mubr.bf16.mxu1 %v22587_v2 }
 0x11a   :  { %2899 = vmatpush1.bf16.msra.mxu1 %v17821_v39  ;;  %2512 = vmatprep.subr.bf16.mxu0 %v17860_v40  ;;  %v17906_v39 = vld [vmem:[#allocation5 + $0x570] ss:$36 sps:$4 sm:$0xff]   ;;  %v17911_v40 = vld [vmem:[#allocation5 + $0x5bc] ss:$36 sps:$4 sm:$0xff]  }
 0x11b   :  { %2900 = vmatprep.subr.bf16.mxu1 %v17833_v41  ;;  %2513 = vmatpush1.bf16.msra.mxu0 %v17858_v42  ;;  %v17927_v41 = vld [vmem:[#allocation5 + $0x568] ss:$36 sps:$4 sm:$0xff]   ;;  %v17909_v42 = vld [vmem:[#allocation5 + $0x5b8] ss:$36 sps:$4 sm:$0xff]  }
 0x11c   :  { %2514 = vmatprep.subr.bf16.mxu0 %v17866_v44  ;;  %v17914_v44 = vld [vmem:[#allocation5 + $0x604] ss:$36 sps:$4 sm:$0xff]  }
 0x11e   :  { %2901 = vmatpush1.bf16.msra.mxu1 %v17831_v43  ;;  %v17932_v43 = vld [vmem:[#allocation5 + $0x5b4] ss:$36 sps:$4 sm:$0xff]  }
 0x11f   :  { %2902 = vmatprep.subr.bf16.mxu1 %v17843_v45  ;;  %2515 = vmatpush1.bf16.msra.mxu0 %v17864_v46  ;;  %v17930_v45 = vld [vmem:[#allocation5 + $0x5b0] ss:$36 sps:$4 sm:$0xff]  }
 0x120   :  { %2000 = vmatmul.mubr.bf16.gmra.mrb[20].mxu0 %v19160_v47  ;;  %2386 = vmatmul.mubr.bf16.gmra.mrb[20].mxu1 %v19160_v47  ;;  %v19244_v46 = vld [vmem:[#allocation2 + $0x30] ss:$12 sps:$4 sm:$0xff]  }
 0x121   :  { %2009 = vmatprep.mubr.bf16.mxu0 %v22587_v2  ;;  %2395 = vmatprep.mubr.bf16.mxu1 %v22587_v2 }
 0x122   :  { %2903 = vmatpush1.bf16.msra.mxu1 %v17841_v48  ;;  %2516 = vmatprep.subr.bf16.mxu0 %v17870_v49  ;;  %v17938_v48 = vld [vmem:[#allocation5 + $0x5fc] ss:$36 sps:$4 sm:$0xff]   ;;  %v19248_v49 = vld [vmem:[#allocation2 + $0x4c] ss:$12 sps:$4 sm:$0xff]  }
 0x123   :  { %2904 = vmatprep.subr.bf16.mxu1 %v17853_v50  ;;  %2517 = vmatpush1.bf16.msra.mxu0 %v17868_v51  ;;  %v17912_v50 = vld [vmem:[#allocation5 + $0x600] ss:$36 sps:$4 sm:$0xff]   ;;  %v17920_v51 = vld [vmem:[#allocation5 + $0x64c] ss:$36 sps:$4 sm:$0xff]  }
 0x124   :  { %2518 = vmatprep.subr.bf16.mxu0 %v17876_v52  ;;  %v17936_v52 = vld [vmem:[#allocation5 + $0x5f8] ss:$36 sps:$4 sm:$0xff]  }
 0x126   :  { %2905 = vmatpush1.bf16.msra.mxu1 %v17851_v53  ;;  %v17918_v53 = vld [vmem:[#allocation5 + $0x648] ss:$36 sps:$4 sm:$0xff]  }
 0x127   :  { %2906 = vmatprep.subr.bf16.mxu1 %v17863_v54  ;;  %2519 = vmatpush1.bf16.msra.mxu0 %v17874_v55  ;;  %v17941_v54 = vld [vmem:[#allocation5 + $0x644] ss:$36 sps:$4 sm:$0xff]   ;;  %v17935_v55 = vld [vmem:[#allocation5 + $0x694] ss:$36 sps:$4 sm:$0xff]  }
 0x128   :  { %2010 = vmatmul.mubr.bf16.gmra.mrb[24].mxu0 %v19166_v56  ;;  %2396 = vmatmul.mubr.bf16.gmra.mrb[24].mxu1 %v19166_v56 }
 0x129   :  { %2019 = vmatprep.mubr.bf16.mxu0 %v22587_v2  ;;  %2405 = vmatprep.mubr.bf16.mxu1 %v22587_v2 }
 0x12a   :  { %2907 = vmatpush1.bf16.msra.mxu1 %v17861_v57  ;;  %2520 = vmatprep.subr.bf16.mxu0 %v17880_v58  ;;  %v17939_v57 = vld [vmem:[#allocation5 + $0x640] ss:$36 sps:$4 sm:$0xff]   ;;  %v19252_v58 = vld [vmem:[#allocation2 + $0x48] ss:$12 sps:$4 sm:$0xff]  }
 0x12b   :  { %2908 = vmatprep.subr.bf16.mxu1 %v17873_v59  ;;  %2521 = vmatpush1.bf16.msra.mxu0 %v17878_v60  ;;  %v17944_v59 = vld [vmem:[#allocation5 + $0x68c] ss:$36 sps:$4 sm:$0xff]  }
 0x12c   :  { %2522 = vmatprep.subr.bf16.mxu0 %v17886_v61  ;;  %v19256_v60 = vld [vmem:[#allocation2 + $0x64] ss:$12 sps:$4 sm:$0xff]  }
 0x12d   :  { %v17933_v61 = vld [vmem:[#allocation5 + $0x690] ss:$36 sps:$4 sm:$0xff]  }
 0x12e   :  { %2909 = vmatpush1.bf16.msra.mxu1 %v17871_v62  ;;  %v17942_v62 = vld [vmem:[#allocation5 + $0x688] ss:$36 sps:$4 sm:$0xff]  }
 0x12f   :  { %2910 = vmatprep.subr.bf16.mxu1 %v17883_v63  ;;  %2523 = vmatpush1.bf16.msra.mxu0 %v17884_v0  ;;  %v19260_v63 = vld [vmem:[#allocation5 + $0x4a0] ss:$36 sps:$4 sm:$0xff]  }
 0x130   :  { %2020 = vmatmul.mubr.bf16.gmra.mrb[28].mxu0 %v19172_v1  ;;  %2406 = vmatmul.mubr.bf16.gmra.mrb[28].mxu1 %v19172_v1  ;;  %v19263_v0 = vld [vmem:[#allocation2 + $0x60] ss:$12 sps:$4 sm:$0xff]  }
 0x131   :  { %2029 = vmatprep.mubr.bf16.mxu0 %v22587_v2  ;;  %2415 = vmatprep.mubr.bf16.mxu1 %v22587_v2 }
 0x132   :  { %2911 = vmatpush1.bf16.msra.mxu1 %v17881_v3  ;;  %2524 = vmatprep.subr.bf16.mxu0 %v17890_v4  ;;  %v19267_v3 = vld [vmem:[#allocation2 + $0x7c] ss:$12 sps:$4 sm:$0xff]   ;;  %v19271_v4 = vld [vmem:[#allocation2 + $0x78] ss:$12 sps:$4 sm:$0xff]  }
 0x133   :  { %2912 = vmatprep.subr.bf16.mxu1 %v17893_v6  ;;  %2525 = vmatpush1.bf16.msra.mxu0 %v17888_v5  ;;  %v19275_v5 = vld [vmem:[#allocation2 + $0x94] ss:$12 sps:$4 sm:$0xff]   ;;  %v19279_v6 = vld [vmem:[#allocation2 + $0x90] ss:$12 sps:$4 sm:$0xff]  }
 0x134   :  { %2526 = vmatprep.subr.bf16.mxu0 %v17896_v7  ;;  %v19283_v7 = vld [vmem:[#allocation2 + $0xac] ss:$12 sps:$4 sm:$0xff]  }
 0x136   :  { %2913 = vmatpush1.bf16.msra.mxu1 %v17891_v8  ;;  %v19287_v8 = vld [vmem:[#allocation2 + $0xa8] ss:$12 sps:$4 sm:$0xff]  }
 0x137   :  { %2527 = vmatpush1.bf16.msra.mxu0 %v17894_v9  ;;  %3075 = vmatprep.subr.bf16.mxu1 %v17899_v10  ;;  %v19291_v9 = vld [vmem:[#allocation2 + $0xc4] ss:$12 sps:$4 sm:$0xff]   ;;  %v19295_v10 = vld [vmem:[#allocation2 + $0xc0] ss:$12 sps:$4 sm:$0xff]  }
 0x138   :  { %2030 = vmatmul.mubr.bf16.gmra.mrb[32].mxu0 %v19178_v11  ;;  %2416 = vmatmul.mubr.bf16.gmra.mrb[32].mxu1 %v19178_v11 }
 0x139   :  { %2039 = vmatprep.mubr.bf16.mxu0 %v22587_v2  ;;  %2425 = vmatprep.mubr.bf16.mxu1 %v22587_v2 }
 0x13a   :  { %2689 = vmatprep.subr.bf16.mxu0 %v17917_v16  ;;  %v19299_v16 = vld [vmem:[#allocation2 + $0xdc] ss:$12 sps:$4 sm:$0xff]  }
 0x13b   :  { %22805 = vst [vmem:[#allocation12_spill] sm:$0xff] %v19299_v16 }
 0x140   :  { %2040 = vmatmul.mubr.bf16.gmra.mrb[36].mxu0 %v19184_v12  ;;  %2426 = vmatmul.mubr.bf16.gmra.mrb[36].mxu1 %v19184_v12 }
 0x141   :  { %2049 = vmatprep.mubr.bf16.mxu0 %v22587_v2  ;;  %2435 = vmatprep.mubr.bf16.mxu1 %v22587_v2 }
 0x148   :  { %2050 = vmatmul.mubr.bf16.gmra.mrb[40].mxu0 %v19190_v13  ;;  %2436 = vmatmul.mubr.bf16.gmra.mrb[40].mxu1 %v19190_v13 }
 0x149   :  { %2059 = vmatprep.mubr.bf16.mxu0 %v22587_v2  ;;  %2445 = vmatprep.mubr.bf16.mxu1 %v22587_v2 }
 0x150   :  { %2060 = vmatmul.mubr.bf16.gmra.mrb[44].mxu0 %v19196_v14  ;;  %2446 = vmatmul.mubr.bf16.gmra.mrb[44].mxu1 %v19196_v14 }
 0x151   :  { %2069 = vmatprep.mubr.bf16.mxu0 %v22587_v2  ;;  %2455 = vmatprep.mubr.bf16.mxu1 %v22587_v2 }
 0x158   :  { %2070 = vmatmul.mubr.bf16.gmra.mrb[48].mxu0 %v19202_v15  ;;  %2456 = vmatmul.mubr.bf16.gmra.mrb[48].mxu1 %v19202_v15 }
 0x159   :  { %2079 = vmatprep.mubr.bf16.mxu0 %v22587_v2  ;;  %2465 = vmatprep.mubr.bf16.mxu1 %v22587_v2 }
 0x160   :  { %2080 = vmatmul.mubr.bf16.gmra.mrb[52].mxu0 %v19208_v17  ;;  %2466 = vmatmul.mubr.bf16.gmra.mrb[52].mxu1 %v19208_v17 }
 0x161   :  { %2089 = vmatprep.mubr.bf16.mxu0 %v22587_v2  ;;  %2475 = vmatprep.mubr.bf16.mxu1 %v22587_v2 }
 0x168   :  { %2090 = vmatmul.mubr.bf16.gmra.mrb[56].mxu0 %v19214_v18  ;;  %2476 = vmatmul.mubr.bf16.gmra.mrb[56].mxu1 %v19214_v18 }
 0x169   :  { %2099 = vmatprep.mubr.bf16.mxu0 %v22587_v2  ;;  %2485 = vmatprep.mubr.bf16.mxu1 %v22587_v2 }
 0x170   :  { %2100 = vmatmul.mubr.bf16.gmra.mrb[60].mxu0 %v19220_v19  ;;  %2486 = vmatmul.mubr.bf16.gmra.mrb[60].mxu1 %v19220_v19 }
 0x171   :  { %2528 = vmatprep.mubr.bf16.mxu0 %v19224_v20  ;;  %2914 = vmatprep.mubr.bf16.mxu1 %v19224_v20 }
 0x178   :  { %2529 = vmatmul.mubr.bf16.vlgmr.msra.gmra.mrb[64].mxu0 %v19228_v24  ;;  %2915 = vmatmul.mubr.bf16.vlgmr.msra.gmra.mrb[64].mxu1 %v19228_v24 }
 0x179   :  { %3076 = vmatpush1.bf16.msra.mxu1 %v17897_v21  ;;  %2538 = vmatprep.mubr.bf16.mxu0 %v19232_v26  ;;  %v19303_v21 = vld [vmem:[#allocation2 + $0xd8] ss:$12 sps:$4 sm:$0xff]  }
 0x17a   :  { %2924 = vmatprep.mubr.bf16.mxu1 %v19232_v26  ;;  %3077 = vmatprep.subr.bf16.mxu1 %v17902_v22  ;;  %22806 = vst [vmem:[#allocation13_spill] sm:$0xff] %v19303_v21  ;;  %v19307_v22 = vld [vmem:[#allocation2 + $0xf4] ss:$12 sps:$4 sm:$0xff]  }
 0x17b   :  { %2690 = vmatpush1.bf16.msra.mxu0 %v17915_v23  ;;  %22807 = vst [vmem:[#allocation14_spill] sm:$0xff] %v19307_v22  ;;  %v19311_v23 = vld [vmem:[#allocation2 + $0xf0] ss:$12 sps:$4 sm:$0xff]  }
 0x17c   :  { %2691 = vmatprep.subr.bf16.mxu0 %v17923_v25  ;;  %22808 = vst [vmem:[#allocation15_spill] sm:$0xff] %v19311_v23  ;;  %v19315_v25 = vld [vmem:[#allocation2 + $0x10c] ss:$12 sps:$4 sm:$0xff]  }
 0x17d   :  { %3078 = vmatpush1.bf16.msra.mxu1 %v17900_v27  ;;  %22809 = vst [vmem:[#allocation16_spill] sm:$0xff] %v19315_v25 }
 0x17e   :  { %3079 = vmatprep.subr.bf16.mxu1 %v17905_v28 }
 0x17f   :  { %2692 = vmatpush1.bf16.msra.mxu0 %v17921_v30 }
 0x180   :  { %2539 = vmatmul.mubr.bf16.gmra.mrb[68].mxu0 %v19236_v35  ;;  %2925 = vmatmul.mubr.bf16.gmra.mrb[68].mxu1 %v19236_v35 }
 0x181   :  { %2548 = vmatprep.mubr.bf16.mxu0 %v19240_v37  ;;  %2934 = vmatprep.mubr.bf16.mxu1 %v19240_v37 }
 0x182   :  { %3080 = vmatpush1.bf16.msra.mxu1 %v17903_v31  ;;  %2693 = vmatprep.subr.bf16.mxu0 %v17926_v32 }
 0x183   :  { %3081 = vmatprep.subr.bf16.mxu1 %v17908_v33  ;;  %2694 = vmatpush1.bf16.msra.mxu0 %v17924_v34 }
 0x184   :  { %2695 = vmatprep.subr.bf16.mxu0 %v17929_v36 }
 0x186   :  { %3082 = vmatpush1.bf16.msra.mxu1 %v17906_v39 }
 0x187   :  { %3083 = vmatprep.subr.bf16.mxu1 %v17911_v40  ;;  %2696 = vmatpush1.bf16.msra.mxu0 %v17927_v41 }
 0x188   :  { %2549 = vmatmul.mubr.bf16.gmra.mrb[72].mxu0 %v19244_v46  ;;  %2935 = vmatmul.mubr.bf16.gmra.mrb[72].mxu1 %v19244_v46 }
 0x189   :  { %2558 = vmatprep.mubr.bf16.mxu0 %v19248_v49  ;;  %2944 = vmatprep.mubr.bf16.mxu1 %v19248_v49 }
 0x18a   :  { %3084 = vmatpush1.bf16.msra.mxu1 %v17909_v42  ;;  %2697 = vmatprep.subr.bf16.mxu0 %v17932_v43  ;;  %v19327_v43 = vld [vmem:[#allocation2 + $0x108] ss:$12 sps:$4 sm:$0xff]  }
 0x18b   :  { %3085 = vmatprep.subr.bf16.mxu1 %v17914_v44  ;;  %2698 = vmatpush1.bf16.msra.mxu0 %v17930_v45  ;;  %22812 = vst [vmem:[#allocation19_spill] sm:$0xff] %v19327_v43  ;;  %v19331_v44 = vld [vmem:[#allocation2 + $0x124] ss:$12 sps:$4 sm:$0xff]  }
 0x18c   :  { %2699 = vmatprep.subr.bf16.mxu0 %v17938_v48  ;;  %22813 = vst [vmem:[#allocation20_spill] sm:$0xff] %v19331_v44 }
 0x18e   :  { %3086 = vmatpush1.bf16.msra.mxu1 %v17912_v50 }
 0x18f   :  { %3087 = vmatprep.subr.bf16.mxu1 %v17920_v51  ;;  %2700 = vmatpush1.bf16.msra.mxu0 %v17936_v52 }
 0x190   :  { %2559 = vmatmul.mubr.bf16.gmra.mrb[76].mxu0 %v19252_v58  ;;  %2945 = vmatmul.mubr.bf16.gmra.mrb[76].mxu1 %v19252_v58 }
 0x191   :  { %2568 = vmatprep.mubr.bf16.mxu0 %v19256_v60  ;;  %2954 = vmatprep.mubr.bf16.mxu1 %v19256_v60 }
 0x192   :  { %3088 = vmatpush1.bf16.msra.mxu1 %v17918_v53  ;;  %2701 = vmatprep.subr.bf16.mxu0 %v17941_v54 }
 0x193   :  { %3089 = vmatprep.subr.bf16.mxu1 %v17935_v55  ;;  %2702 = vmatpush1.bf16.msra.mxu0 %v17939_v57 }
 0x194   :  { %2703 = vmatprep.subr.bf16.mxu0 %v17944_v59 }
 0x196   :  { %3090 = vmatpush1.bf16.msra.mxu1 %v17933_v61 }
 0x197   :  { %2704 = vmatpush1.bf16.msra.mxu0 %v17942_v62  ;;  %15535 = vmatprep.subr.bf16.mxu1 %v19260_v63 }
 0x198   :  { %2569 = vmatmul.mubr.bf16.gmra.mrb[80].mxu0 %v19263_v0  ;;  %2955 = vmatmul.mubr.bf16.gmra.mrb[80].mxu1 %v19263_v0 }
 0x199   :  { %2578 = vmatprep.mubr.bf16.mxu0 %v19267_v3  ;;  %2964 = vmatprep.mubr.bf16.mxu1 %v19267_v3 }
 0x1a0   :  { %2579 = vmatmul.mubr.bf16.gmra.mrb[84].mxu0 %v19271_v4  ;;  %2965 = vmatmul.mubr.bf16.gmra.mrb[84].mxu1 %v19271_v4 }
 0x1a1   :  { %2588 = vmatprep.mubr.bf16.mxu0 %v19275_v5  ;;  %2974 = vmatprep.mubr.bf16.mxu1 %v19275_v5 }
 0x1a8   :  { %2589 = vmatmul.mubr.bf16.gmra.mrb[88].mxu0 %v19279_v6  ;;  %2975 = vmatmul.mubr.bf16.gmra.mrb[88].mxu1 %v19279_v6 }
 0x1a9   :  { %2598 = vmatprep.mubr.bf16.mxu0 %v19283_v7  ;;  %2984 = vmatprep.mubr.bf16.mxu1 %v19283_v7 }
 0x1b0   :  { %2599 = vmatmul.mubr.bf16.gmra.mrb[92].mxu0 %v19287_v8  ;;  %2985 = vmatmul.mubr.bf16.gmra.mrb[92].mxu1 %v19287_v8 }
 0x1b1   :  { %2608 = vmatprep.mubr.bf16.mxu0 %v19291_v9  ;;  %2994 = vmatprep.mubr.bf16.mxu1 %v19291_v9 }
 0x1b8   :  { %2609 = vmatmul.mubr.bf16.gmra.mrb[96].mxu0 %v19295_v10  ;;  %2995 = vmatmul.mubr.bf16.gmra.mrb[96].mxu1 %v19295_v10 }
 0x1b9   :  { %2618 = vmatprep.mubr.bf16.mxu0 %v19299_v16  ;;  %3004 = vmatprep.mubr.bf16.mxu1 %v19299_v16  ;;  %v17963_v16 = vld [vmem:[#allocation5 + $0x3c8] ss:$36 sps:$4 sm:$0xff]  }
 0x1c0   :  { %2619 = vmatmul.mubr.bf16.gmra.mrb[100].mxu0 %v19303_v21  ;;  %3005 = vmatmul.mubr.bf16.gmra.mrb[100].mxu1 %v19303_v21  ;;  %v19434_v21 = vld [vmem:[#allocation2 + $0x38] ss:$12 sps:$4 sm:$0xff]  }
 0x1c1   :  { %2628 = vmatprep.mubr.bf16.mxu0 %v19307_v22  ;;  %3014 = vmatprep.mubr.bf16.mxu1 %v19307_v22 }
 0x1c8   :  { %2629 = vmatmul.mubr.bf16.gmra.mrb[104].mxu0 %v19311_v23  ;;  %3015 = vmatmul.mubr.bf16.gmra.mrb[104].mxu1 %v19311_v23 }
 0x1c9   :  { %2638 = vmatprep.mubr.bf16.mxu0 %v19315_v25  ;;  %3024 = vmatprep.mubr.bf16.mxu1 %v19315_v25 }
 0x1cb   :  { %v2337_v27 = vpop.f32.mrb[0].mxu1  ;;  %v1951_v28 = vpop.f32.mrb[0].mxu0 }
 0x1cc   :  { %v2339_v30 = vpop.f32.mrb[1].mxu1  ;;  %v1953_v31 = vpop.f32.mrb[1].mxu0 }
 0x1cd   :  { %v2341_v32 = vpop.f32.mrb[2].mxu1  ;;  %v1955_v33 = vpop.f32.mrb[2].mxu0 }
 0x1ce   :  { %v19319_v34 = vpack.c.bf16 %v2341_v32, %v2337_v27  ;;  %v2343_v36 = vpop.f32.mrb[3].mxu1  ;;  %v19321_v39 = vpack.c.bf16 %v1955_v33, %v1951_v28  ;;  %v1957_v40 = vpop.f32.mrb[3].mxu0  ;;  %v17953_v27 = vld [vmem:[#allocation5 + $0x260] ss:$36 sps:$4 sm:$0xff]  }
 0x1cf   :  { %v19323_v41 = vpack.c.bf16 %v2343_v36, %v2339_v30  ;;  %v19325_v42 = vpack.c.bf16 %v1957_v40, %v1953_v31  ;;  %v19343_v28 = vld [vmem:[#allocation2 + $0x120] ss:$12 sps:$4 sm:$0xff]   ;;  %v19347_v30 = vld [vmem:[#allocation2 + $0x13c] ss:$12 sps:$4 sm:$0xff]   ;;  %14871 = vmatprep.subr.bf16.mxu0 %v17953_v27 }
 0x1d0   :  { %22810 = vst [vmem:[#allocation17_spill] sm:$0xff] %v19319_v34  ;;  %2639 = vmatmul.mubr.bf16.gmra.mrb[108].mxu0 %v19327_v43  ;;  %3025 = vmatmul.mubr.bf16.gmra.mrb[108].mxu1 %v19327_v43  ;;  %22816 = vst [vmem:[#allocation23_spill] sm:$0xff] %v19343_v28  ;;  %v19363_v27 = vld [vmem:[#allocation2 + $0x154] ss:$12 sps:$4 sm:$0xff]   ;;  %v17955_v43 = vld [vmem:[#allocation5 + $0x2a8] ss:$36 sps:$4 sm:$0xff]  }
 0x1d1   :  { %22811 = vst [vmem:[#allocation18_spill] sm:$0xff] %v19325_v42  ;;  %2648 = vmatprep.mubr.bf16.mxu0 %v19331_v44  ;;  %3034 = vmatprep.mubr.bf16.mxu1 %v19331_v44  ;;  %22817 = vst [vmem:[#allocation24_spill] sm:$0xff] %v19347_v30  ;;  %v19405_v44 = vld [vmem:[#allocation2 + $0x8] ss:$12 sps:$4 sm:$0xff]  }
 0x1d2   :  { %22821 = vst [vmem:[#allocation28_spill] sm:$0xff] %v19363_v27 }
 0x1d3   :  { %v2347_v45 = vpop.f32.mrb[4].mxu1  ;;  %v1961_v48 = vpop.f32.mrb[4].mxu0 }
 0x1d4   :  { %v2349_v50 = vpop.f32.mrb[5].mxu1  ;;  %v1963_v51 = vpop.f32.mrb[5].mxu0 }
 0x1d5   :  { %v2351_v52 = vpop.f32.mrb[6].mxu1  ;;  %v1965_v53 = vpop.f32.mrb[6].mxu0 }
 0x1d6   :  { %v19335_v54 = vpack.c.bf16 %v2351_v52, %v2347_v45  ;;  %v2353_v55 = vpop.f32.mrb[7].mxu1  ;;  %v19337_v57 = vpack.c.bf16 %v1965_v53, %v1961_v48  ;;  %v1967_v59 = vpop.f32.mrb[7].mxu0 }
 0x1d7   :  { %v19339_v61 = vpack.c.bf16 %v2353_v55, %v2349_v50  ;;  %v19341_v62 = vpack.c.bf16 %v1967_v59, %v1963_v51  ;;  %v19359_v59 = vld [vmem:[#allocation2 + $0x138] ss:$12 sps:$4 sm:$0xff]  }
 0x1d8   :  { %22814 = vst [vmem:[#allocation21_spill] sm:$0xff] %v19335_v54  ;;  %2649 = vmatmul.mubr.bf16.gmra.mrb[112].mxu0 %v19343_v28  ;;  %3035 = vmatmul.mubr.bf16.gmra.mrb[112].mxu1 %v19343_v28  ;;  %22820 = vst [vmem:[#allocation27_spill] sm:$0xff] %v19359_v59  ;;  %v17954_v28 = vld [vmem:[#allocation5 + $0x20] ss:$36 sps:$4 sm:$0xff]  }
 0x1d9   :  { %22815 = vst [vmem:[#allocation22_spill] sm:$0xff] %v19341_v62  ;;  %2658 = vmatprep.mubr.bf16.mxu0 %v19347_v30  ;;  %3044 = vmatprep.mubr.bf16.mxu1 %v19347_v30  ;;  %v19379_v62 = vld [vmem:[#allocation2 + $0x16c] ss:$12 sps:$4 sm:$0xff]  }
 0x1da   :  { %22826 = vst [vmem:[#allocation33_spill] sm:$0xff] %v19379_v62 }
 0x1db   :  { %v2357_v31 = vpop.f32.mrb[8].mxu1  ;;  %v1971_v32 = vpop.f32.mrb[8].mxu0 }
 0x1dc   :  { %v2359_v33 = vpop.f32.mrb[9].mxu1  ;;  %v1973_v36 = vpop.f32.mrb[9].mxu0 }
 0x1dd   :  { %v2361_v40 = vpop.f32.mrb[10].mxu1  ;;  %v1975_v45 = vpop.f32.mrb[10].mxu0 }
 0x1de   :  { %v19351_v48 = vpack.c.bf16 %v2361_v40, %v2357_v31  ;;  %v2363_v50 = vpop.f32.mrb[11].mxu1  ;;  %v19353_v51 = vpack.c.bf16 %v1975_v45, %v1971_v32  ;;  %v1977_v52 = vpop.f32.mrb[11].mxu0 }
 0x1df   :  { %v19355_v53 = vpack.c.bf16 %v2363_v50, %v2359_v33  ;;  %v19357_v55 = vpack.c.bf16 %v1977_v52, %v1973_v36 }
 0x1e0   :  { %22818 = vst [vmem:[#allocation25_spill] sm:$0xff] %v19351_v48  ;;  %2659 = vmatmul.mubr.bf16.gmra.mrb[116].mxu0 %v19359_v59  ;;  %3045 = vmatmul.mubr.bf16.gmra.mrb[116].mxu1 %v19359_v59 }
 0x1e1   :  { %22819 = vst [vmem:[#allocation26_spill] sm:$0xff] %v19357_v55  ;;  %2668 = vmatprep.mubr.bf16.mxu0 %v19363_v27  ;;  %3054 = vmatprep.mubr.bf16.mxu1 %v19363_v27  ;;  %v19375_v55 = vld [vmem:[#allocation2 + $0x150] ss:$12 sps:$4 sm:$0xff]   ;;  %v19391_v27 = vld [vmem:[#allocation2 + $0x168] ss:$12 sps:$4 sm:$0xff]  }
 0x1e2   :  { %22825 = vst [vmem:[#allocation32_spill] sm:$0xff] %v19375_v55  ;;  %22830 = vst [vmem:[#allocation37_spill] sm:$0xff] %v19391_v27 }
 0x1e3   :  { %v2367_v31 = vpop.f32.mrb[12].mxu1  ;;  %v1981_v32 = vpop.f32.mrb[12].mxu0 }
 0x1e4   :  { %v2369_v40 = vpop.f32.mrb[13].mxu1  ;;  %v1983_v45 = vpop.f32.mrb[13].mxu0 }
 0x1e5   :  { %v2371_v33 = vpop.f32.mrb[14].mxu1  ;;  %v1985_v50 = vpop.f32.mrb[14].mxu0 }
 0x1e6   :  { %v19367_v36 = vpack.c.bf16 %v2371_v33, %v2367_v31  ;;  %v2373_v52 = vpop.f32.mrb[15].mxu1  ;;  %v19369_v2 = vpack.c.bf16 %v1985_v50, %v1981_v32  ;;  %v1987_v48 = vpop.f32.mrb[15].mxu0 }
 0x1e7   :  { %v19371_v54 = vpack.c.bf16 %v2373_v52, %v2369_v40  ;;  %v19373_v34 = vpack.c.bf16 %v1987_v48, %v1983_v45 }
 0x1e8   :  { %22822 = vst [vmem:[#allocation29_spill] sm:$0xff] %v19367_v36  ;;  %22823 = vst [vmem:[#allocation30_spill] sm:$0xff] %v19369_v2  ;;  %2669 = vmatmul.mubr.bf16.gmra.mrb[120].mxu0 %v19375_v55  ;;  %3055 = vmatmul.mubr.bf16.gmra.mrb[120].mxu1 %v19375_v55 }
 0x1e9   :  { %22824 = vst [vmem:[#allocation31_spill] sm:$0xff] %v19373_v34  ;;  %2678 = vmatprep.mubr.bf16.mxu0 %v19379_v62  ;;  %3064 = vmatprep.mubr.bf16.mxu1 %v19379_v62  ;;  %v22831_v62 = vmov 0  }
 0x1eb   :  { %v2377_v31 = vpop.f32.mrb[16].mxu1  ;;  %v1991_v32 = vpop.f32.mrb[16].mxu0 }
 0x1ec   :  { %v2379_v33 = vpop.f32.mrb[17].mxu1  ;;  %v1993_v50 = vpop.f32.mrb[17].mxu0 }
 0x1ed   :  { %v2381_v40 = vpop.f32.mrb[18].mxu1  ;;  %v1995_v52 = vpop.f32.mrb[18].mxu0 }
 0x1ee   :  { %v19383_v48 = vpack.c.bf16 %v2381_v40, %v2377_v31  ;;  %v2383_v45 = vpop.f32.mrb[19].mxu1  ;;  %v19385_v36 = vpack.c.bf16 %v1995_v52, %v1991_v32  ;;  %v1997_v34 = vpop.f32.mrb[19].mxu0 }
 0x1ef   :  { %v19387_v42 = vpack.c.bf16 %v2383_v45, %v2379_v33  ;;  %v19389_v55 = vpack.c.bf16 %v1997_v34, %v1993_v50  ;;  %v17946_v50 = vld [vmem:[#allocation5 + $0x4e8] ss:$36 sps:$4 sm:$0xff]  }
 0x1f0   :  { %22827 = vst [vmem:[#allocation34_spill] sm:$0xff] %v19383_v48  ;;  %22828 = vst [vmem:[#allocation35_spill] sm:$0xff] %v19385_v36  ;;  %2679 = vmatmul.mubr.bf16.gmra.mrb[124].mxu0 %v19391_v27  ;;  %3065 = vmatmul.mubr.bf16.gmra.mrb[124].mxu1 %v19391_v27  ;;  %v19420_v36 = vld [vmem:[#allocation2 + $0x20] ss:$12 sps:$4 sm:$0xff]  }
 0x1f1   :  { %22829 = vst [vmem:[#allocation36_spill] sm:$0xff] %v19389_v55  ;;  %2721 = vmatprep.mubr.bf16.mxu0 %v22831_v62  ;;  %3107 = vmatprep.mubr.bf16.mxu1 %v22831_v62 }
 0x1f3   :  { %v2387_v31 = vpop.f32.mrb[20].mxu1  ;;  %v2001_v40 = vpop.f32.mrb[20].mxu0 }
 0x1f4   :  { %v2389_v48 = vpop.f32.mrb[21].mxu1  ;;  %v2003_v32 = vpop.f32.mrb[21].mxu0 }
 0x1f5   :  { %v2391_v52 = vpop.f32.mrb[22].mxu1  ;;  %v2005_v59 = vpop.f32.mrb[22].mxu0 }
 0x1f6   :  { %v19397_v33 = vpack.c.bf16 %v2391_v52, %v2387_v31  ;;  %v2393_v34 = vpop.f32.mrb[23].mxu1  ;;  %v19399_v45 = vpack.c.bf16 %v2005_v59, %v2001_v40  ;;  %v2007_v55 = vpop.f32.mrb[23].mxu0  ;;  %v17947_v59 = vld [vmem:[#allocation5 + $0x530] ss:$36 sps:$4 sm:$0xff]  }
 0x1f7   :  { %v19401_v30 = vpack.c.bf16 %v2393_v34, %v2389_v48  ;;  %v19403_v27 = vpack.c.bf16 %v2007_v55, %v2003_v32  ;;  %v17956_v55 = vld [vmem:[#allocation5 + $0x68] ss:$36 sps:$4 sm:$0xff]  }
 0x1f8   :  { %22832 = vst [vmem:[#allocation38_spill] sm:$0xff] %v19397_v33  ;;  %22833 = vst [vmem:[#allocation39_spill] sm:$0xff] %v19399_v45  ;;  %2722 = vmatmul.mubr.bf16.vlgmr.msra.gmra.mrb[64].mxu0 %v19405_v44  ;;  %3108 = vmatmul.mubr.bf16.vlgmr.msra.gmra.mrb[64].mxu1 %v19405_v44 }
 0x1f9   :  { %22834 = vst [vmem:[#allocation40_spill] sm:$0xff] %v19403_v27  ;;  %15536 = vmatpush3.bf16.msra.mxu1 %v19260_v63  ;;  %2731 = vmatprep.mubr.bf16.mxu0 %v22831_v62  ;;  %v17948_v63 = vld [vmem:[#allocation5 + $0x578] ss:$36 sps:$4 sm:$0xff]  }
 0x1fa   :  { %15537 = vmatprep.subr.bf16.mxu1 %v17946_v50  ;;  %3117 = vmatprep.mubr.bf16.mxu1 %v22831_v62 }
 0x1fb   :  { %v2397_v48 = vpop.f32.mrb[24].mxu1  ;;  %v2011_v31 = vpop.f32.mrb[24].mxu0  ;;  %14872 = vmatpush3.bf16.msra.mxu0 %v17954_v28  ;;  %v17957_v28 = vld [vmem:[#allocation5 + $0x2f0] ss:$36 sps:$4 sm:$0xff]  }
 0x1fc   :  { %v2399_v40 = vpop.f32.mrb[25].mxu1  ;;  %v2013_v32 = vpop.f32.mrb[25].mxu0  ;;  %14873 = vmatprep.subr.bf16.mxu0 %v17955_v43  ;;  %v17958_v43 = vld [vmem:[#allocation5 + $0xb0] ss:$36 sps:$4 sm:$0xff]  }
 0x1fd   :  { %15538 = vmatpush3.bf16.msra.mxu1 %v17946_v50  ;;  %v2401_v52 = vpop.f32.mrb[26].mxu1  ;;  %v2015_v34 = vpop.f32.mrb[26].mxu0  ;;  %v17959_v50 = vld [vmem:[#allocation5 + $0x338] ss:$36 sps:$4 sm:$0xff]  }
 0x1fe   :  { %v19412_v33 = vpack.c.bf16 %v2401_v52, %v2397_v48  ;;  %v2403_v27 = vpop.f32.mrb[27].mxu1  ;;  %15539 = vmatprep.subr.bf16.mxu1 %v17947_v59  ;;  %v19414_v25 = vpack.c.bf16 %v2015_v34, %v2011_v31  ;;  %v2017_v45 = vpop.f32.mrb[27].mxu0  ;;  %v17950_v34 = vld [vmem:[#allocation5 + $0x608] ss:$36 sps:$4 sm:$0xff]  }
 0x1ff   :  { %v19416_v23 = vpack.c.bf16 %v2403_v27, %v2399_v40  ;;  %v19418_v22 = vpack.c.bf16 %v2017_v45, %v2013_v32  ;;  %14874 = vmatpush3.bf16.msra.mxu0 %v17956_v55  ;;  %v17949_v27 = vld [vmem:[#allocation5 + $0x5c0] ss:$36 sps:$4 sm:$0xff]  }
 0x200   :  { %22835 = vst [vmem:[#allocation41_spill] sm:$0xff] %v19412_v33  ;;  %22836 = vst [vmem:[#allocation42_spill] sm:$0xff] %v19414_v25  ;;  %2732 = vmatmul.mubr.bf16.gmra.mrb[68].mxu0 %v19420_v36  ;;  %3118 = vmatmul.mubr.bf16.gmra.mrb[68].mxu1 %v19420_v36 }
 0x201   :  { %22837 = vst [vmem:[#allocation43_spill] sm:$0xff] %v19418_v22  ;;  %15540 = vmatpush3.bf16.msra.mxu1 %v17947_v59  ;;  %2741 = vmatprep.mubr.bf16.mxu0 %v22831_v62 }
 0x202   :  { %15541 = vmatprep.subr.bf16.mxu1 %v17948_v63  ;;  %3127 = vmatprep.mubr.bf16.mxu1 %v22831_v62 }
 0x203   :  { %v2407_v48 = vpop.f32.mrb[28].mxu1  ;;  %v2021_v45 = vpop.f32.mrb[28].mxu0  ;;  %14875 = vmatprep.subr.bf16.mxu0 %v17957_v28  ;;  %v17960_v28 = vld [vmem:[#allocation5 + $0xf8] ss:$36 sps:$4 sm:$0xff]  }
 0x204   :  { %v2409_v31 = vpop.f32.mrb[29].mxu1  ;;  %v2023_v55 = vpop.f32.mrb[29].mxu0  ;;  %14876 = vmatpush3.bf16.msra.mxu0 %v17958_v43  ;;  %v17951_v43 = vld [vmem:[#allocation5 + $0x650] ss:$36 sps:$4 sm:$0xff]  }
 0x205   :  { %15542 = vmatpush3.bf16.msra.mxu1 %v17948_v63  ;;  %v2411_v40 = vpop.f32.mrb[30].mxu1  ;;  %v2025_v32 = vpop.f32.mrb[30].mxu0  ;;  %14877 = vmatprep.subr.bf16.mxu0 %v17959_v50  ;;  %v17961_v63 = vld [vmem:[#allocation5 + $0x380] ss:$36 sps:$4 sm:$0xff]  }
 0x206   :  { %v19426_v52 = vpack.c.bf16 %v2411_v40, %v2407_v48  ;;  %v2413_v59 = vpop.f32.mrb[31].mxu1  ;;  %15543 = vmatprep.subr.bf16.mxu1 %v17949_v27  ;;  %v19428_v33 = vpack.c.bf16 %v2025_v32, %v2021_v45  ;;  %v2027_v22 = vpop.f32.mrb[31].mxu0 }
 0x207   :  { %v19430_v25 = vpack.c.bf16 %v2413_v59, %v2409_v31  ;;  %v19432_v2 = vpack.c.bf16 %v2027_v22, %v2023_v55  ;;  %v17962_v22 = vld [vmem:[#allocation5 + $0x140] ss:$36 sps:$4 sm:$0xff]  }
 0x208   :  { %22838 = vst [vmem:[#allocation44_spill] sm:$0xff] %v19426_v52  ;;  %22839 = vst [vmem:[#allocation45_spill] sm:$0xff] %v19428_v33  ;;  %2742 = vmatmul.mubr.bf16.gmra.mrb[72].mxu0 %v19434_v21  ;;  %3128 = vmatmul.mubr.bf16.gmra.mrb[72].mxu1 %v19434_v21 }
 0x209   :  { %22840 = vst [vmem:[#allocation46_spill] sm:$0xff] %v19432_v2  ;;  %15544 = vmatpush3.bf16.msra.mxu1 %v17949_v27  ;;  %2751 = vmatprep.mubr.bf16.mxu0 %v22831_v62  ;;  %v17952_v27 = vld [vmem:[#allocation5 + $0x698] ss:$36 sps:$4 sm:$0xff]  }
 0x20a   :  { %15545 = vmatprep.subr.bf16.mxu1 %v17950_v34  ;;  %3137 = vmatprep.mubr.bf16.mxu1 %v22831_v62 }
 0x20b   :  { %v2417_v50 = vpop.f32.mrb[32].mxu1  ;;  %14878 = vmatpush3.bf16.msra.mxu0 %v17960_v28  ;;  %v2031_v48 = vpop.f32.mrb[32].mxu0 }
 0x20c   :  { %v2419_v45 = vpop.f32.mrb[33].mxu1  ;;  %14879 = vmatprep.subr.bf16.mxu0 %v17961_v63  ;;  %v2033_v31 = vpop.f32.mrb[33].mxu0  ;;  %v17965_v63 = vld [vmem:[#allocation5 + $0x410] ss:$36 sps:$4 sm:$0xff]  }
 0x20d   :  { %15546 = vmatpush3.bf16.msra.mxu1 %v17950_v34  ;;  %v2421_v55 = vpop.f32.mrb[34].mxu1  ;;  %v2035_v40 = vpop.f32.mrb[34].mxu0  ;;  %v17964_v34 = vld [vmem:[#allocation5 + $0x188] ss:$36 sps:$4 sm:$0xff]  }
 0x20e   :  { %v19440_v32 = vpack.c.bf16 %v2421_v55, %v2417_v50  ;;  %v2423_v59 = vpop.f32.mrb[35].mxu1  ;;  %15547 = vmatprep.subr.bf16.mxu1 %v17951_v43  ;;  %v19442_v52 = vpack.c.bf16 %v2035_v40, %v2031_v48  ;;  %v2037_v2 = vpop.f32.mrb[35].mxu0  ;;  %v17966_v55 = vld [vmem:[#allocation5 + $0x1d0] ss:$36 sps:$4 sm:$0xff]  }
 0x20f   :  { %v19444_v33 = vpack.c.bf16 %v2423_v59, %v2419_v45  ;;  %14880 = vmatpush3.bf16.msra.mxu0 %v17962_v22  ;;  %v19446_v28 = vpack.c.bf16 %v2037_v2, %v2033_v31 }
 0x210   :  { %22841 = vst [vmem:[#allocation47_spill] sm:$0xff] %v19440_v32  ;;  %22842 = vst [vmem:[#allocation48_spill] sm:$0xff] %v19442_v52  ;;  %2752 = vmatmul.mubr.bf16.gmra.mrb[76].mxu0 %v19148_v29  ;;  %3138 = vmatmul.mubr.bf16.gmra.mrb[76].mxu1 %v19148_v29 }
 0x211   :  { %22843 = vst [vmem:[#allocation49_spill] sm:$0xff] %v19444_v33  ;;  %22844 = vst [vmem:[#allocation50_spill] sm:$0xff] %v19446_v28  ;;  %15548 = vmatpush3.bf16.msra.mxu1 %v17951_v43  ;;  %2761 = vmatprep.mubr.bf16.mxu0 %v22831_v62 }
 0x212   :  { %15549 = vmatprep.subr.bf16.mxu1 %v17952_v27  ;;  %3147 = vmatprep.mubr.bf16.mxu1 %v22831_v62 }
 0x213   :  { %v2427_v50 = vpop.f32.mrb[36].mxu1  ;;  %14881 = vmatprep.subr.bf16.mxu0 %v17963_v16  ;;  %v2041_v48 = vpop.f32.mrb[36].mxu0 }
 0x214   :  { %v2429_v45 = vpop.f32.mrb[37].mxu1  ;;  %14882 = vmatpush3.bf16.msra.mxu0 %v17964_v34  ;;  %v2043_v2 = vpop.f32.mrb[37].mxu0  ;;  %v17967_v34 = vld [vmem:[#allocation5 + $0x458] ss:$36 sps:$4 sm:$0xff]  }
 0x215   :  { %15550 = vmatpush3.bf16.msra.mxu1 %v17952_v27  ;;  %v2431_v22 = vpop.f32.mrb[38].mxu1  ;;  %14883 = vmatprep.subr.bf16.mxu0 %v17965_v63  ;;  %v2045_v31 = vpop.f32.mrb[38].mxu0  ;;  %v17968_v27 = vld [vmem:[#allocation5 + $0x218] ss:$36 sps:$4 sm:$0xff]  }
 0x216   :  { %v19452_v29 = vpack.c.bf16 %v2431_v22, %v2427_v50  ;;  %17487 = vmatprep.subr.msk.bf16.mxu1 %vm22749_vm0, %v19323_v41  ;;  %v2433_v43 = vpop.f32.mrb[39].mxu1  ;;  %v19456_v40 = vpack.c.bf16 %v2045_v31, %v2041_v48  ;;  %v2047_v59 = vpop.f32.mrb[39].mxu0 }
 0x217   :  { %v19458_v16 = vpack.c.bf16 %v2433_v43, %v2429_v45  ;;  %v19460_v32 = vpack.c.bf16 %v2047_v59, %v2043_v2 }
 0x218   :  { %22845 = vst [vmem:[#allocation51_spill] sm:$0xff] %v19452_v29  ;;  %22846 = vst [vmem:[#allocation52_spill] sm:$0xff] %v19456_v40  ;;  %2762 = vmatmul.mubr.bf16.gmra.mrb[80].mxu0 %v19154_v38  ;;  %3148 = vmatmul.mubr.bf16.gmra.mrb[80].mxu1 %v19154_v38 }
 0x219   :  { %22847 = vst [vmem:[#allocation53_spill] sm:$0xff] %v19458_v16  ;;  %22848 = vst [vmem:[#allocation54_spill] sm:$0xff] %v19460_v32  ;;  %2771 = vmatprep.mubr.bf16.mxu0 %v22831_v62  ;;  %3157 = vmatprep.mubr.bf16.mxu1 %v22831_v62 }
 0x21a   :  { %14884 = vmatpush3.bf16.msra.mxu0 %v17966_v55 }
 0x21b   :  { %v2437_v63 = vpop.f32.mrb[40].mxu1  ;;  %14885 = vmatprep.subr.bf16.mxu0 %v17967_v34  ;;  %v2051_v50 = vpop.f32.mrb[40].mxu0 }
 0x21c   :  { %v2439_v48 = vpop.f32.mrb[41].mxu1  ;;  %v2053_v22 = vpop.f32.mrb[41].mxu0 }
 0x21d   :  { %v2441_v45 = vpop.f32.mrb[42].mxu1  ;;  %v2055_v31 = vpop.f32.mrb[42].mxu0 }
 0x21e   :  { %v2443_v2 = vpop.f32.mrb[43].mxu1  ;;  %14886 = vmatpush3.bf16.msra.mxu0 %v17968_v27  ;;  %v19466_v43 = vpack.c.bf16 %v2055_v31, %v2051_v50  ;;  %v2057_v59 = vpop.f32.mrb[43].mxu0  ;;  %v19468_v29 = vpack.c.bf16 %v2441_v45, %v2437_v63 }
 0x21f   :  { %v19470_v38 = vpack.c.bf16 %v2057_v59, %v2053_v22  ;;  %v19472_v32 = vpack.c.bf16 %v2443_v2, %v2439_v48 }
 0x220   :  { %22849 = vst [vmem:[#allocation55_spill] sm:$0xff] %v19466_v43  ;;  %22850 = vst [vmem:[#allocation56_spill] sm:$0xff] %v19468_v29  ;;  %2772 = vmatmul.mubr.bf16.gmra.mrb[84].mxu0 %v19160_v47  ;;  %3158 = vmatmul.mubr.bf16.gmra.mrb[84].mxu1 %v19160_v47 }
 0x221   :  { %22851 = vst [vmem:[#allocation57_spill] sm:$0xff] %v19470_v38  ;;  %22852 = vst [vmem:[#allocation58_spill] sm:$0xff] %v19472_v32  ;;  %2781 = vmatprep.mubr.bf16.mxu0 %v22831_v62  ;;  %3167 = vmatprep.mubr.bf16.mxu1 %v22831_v62 }
 0x223   :  { %v2447_v55 = vpop.f32.mrb[44].mxu1  ;;  %v2061_v34 = vpop.f32.mrb[44].mxu0 }
 0x224   :  { %v2449_v27 = vpop.f32.mrb[45].mxu1  ;;  %v2063_v50 = vpop.f32.mrb[45].mxu0 }
 0x225   :  { %v2451_v31 = vpop.f32.mrb[46].mxu1  ;;  %v2065_v28 = vpop.f32.mrb[46].mxu0 }
 0x226   :  { %v19478_v63 = vpack.c.bf16 %v2451_v31, %v2447_v55  ;;  %v2453_v22 = vpop.f32.mrb[47].mxu1  ;;  %v19480_v45 = vpack.c.bf16 %v2065_v28, %v2061_v34  ;;  %v2067_v48 = vpop.f32.mrb[47].mxu0 }
 0x227   :  { %v19482_v2 = vpack.c.bf16 %v2067_v48, %v2063_v50  ;;  %v19484_v59 = vpack.c.bf16 %v2453_v22, %v2449_v27 }
 0x228   :  { %22853 = vst [vmem:[#allocation59_spill] sm:$0xff] %v19478_v63  ;;  %22854 = vst [vmem:[#allocation60_spill] sm:$0xff] %v19480_v45  ;;  %2782 = vmatmul.mubr.bf16.gmra.mrb[88].mxu0 %v19166_v56  ;;  %3168 = vmatmul.mubr.bf16.gmra.mrb[88].mxu1 %v19166_v56 }
 0x229   :  { %22855 = vst [vmem:[#allocation61_spill] sm:$0xff] %v19482_v2  ;;  %22856 = vst [vmem:[#allocation62_spill] sm:$0xff] %v19484_v59  ;;  %2791 = vmatprep.mubr.bf16.mxu0 %v22831_v62  ;;  %3177 = vmatprep.mubr.bf16.mxu1 %v22831_v62 }
 0x22b   :  { %v2457_v47 = vpop.f32.mrb[48].mxu1  ;;  %v2071_v29 = vpop.f32.mrb[48].mxu0 }
 0x22c   :  { %v2459_v55 = vpop.f32.mrb[49].mxu1  ;;  %v2073_v31 = vpop.f32.mrb[49].mxu0 }
 0x22d   :  { %v2461_v63 = vpop.f32.mrb[50].mxu1  ;;  %v2075_v28 = vpop.f32.mrb[50].mxu0 }
 0x22e   :  { %v2463_v34 = vpop.f32.mrb[51].mxu1  ;;  %v19490_v38 = vpack.c.bf16 %v2075_v28, %v2071_v29  ;;  %v2077_v50 = vpop.f32.mrb[51].mxu0  ;;  %v19492_v27 = vpack.c.bf16 %v2461_v63, %v2457_v47 }
 0x22f   :  { %v19494_v22 = vpack.c.bf16 %v2077_v50, %v2073_v31  ;;  %v19496_v48 = vpack.c.bf16 %v2463_v34, %v2459_v55 }
 0x230   :  { %22857 = vst [vmem:[#allocation63_spill] sm:$0xff] %v19490_v38  ;;  %22858 = vst [vmem:[#allocation64_spill] sm:$0xff] %v19492_v27  ;;  %2792 = vmatmul.mubr.bf16.gmra.mrb[92].mxu0 %v19172_v1  ;;  %3178 = vmatmul.mubr.bf16.gmra.mrb[92].mxu1 %v19172_v1 }
 0x231   :  { %22859 = vst [vmem:[#allocation65_spill] sm:$0xff] %v19494_v22  ;;  %22860 = vst [vmem:[#allocation66_spill] sm:$0xff] %v19496_v48  ;;  %2801 = vmatprep.mubr.bf16.mxu0 %v22831_v62  ;;  %3187 = vmatprep.mubr.bf16.mxu1 %v22831_v62 }
 0x233   :  { %v2467_v56 = vpop.f32.mrb[52].mxu1  ;;  %v2081_v2 = vpop.f32.mrb[52].mxu0 }
 0x234   :  { %v2469_v45 = vpop.f32.mrb[53].mxu1  ;;  %v2083_v29 = vpop.f32.mrb[53].mxu0 }
 0x235   :  { %v2471_v28 = vpop.f32.mrb[54].mxu1  ;;  %v2085_v38 = vpop.f32.mrb[54].mxu0 }
 0x236   :  { %v19502_v63 = vpack.c.bf16 %v2471_v28, %v2467_v56  ;;  %v2473_v47 = vpop.f32.mrb[55].mxu1  ;;  %v19504_v31 = vpack.c.bf16 %v2085_v38, %v2081_v2  ;;  %v2087_v55 = vpop.f32.mrb[55].mxu0 }
 0x237   :  { %v19506_v34 = vpack.c.bf16 %v2087_v55, %v2083_v29  ;;  %v19508_v50 = vpack.c.bf16 %v2473_v47, %v2469_v45 }
 0x238   :  { %22861 = vst [vmem:[#allocation67_spill] sm:$0xff] %v19502_v63  ;;  %22862 = vst [vmem:[#allocation68_spill] sm:$0xff] %v19504_v31  ;;  %2802 = vmatmul.mubr.bf16.gmra.mrb[96].mxu0 %v19178_v11  ;;  %3188 = vmatmul.mubr.bf16.gmra.mrb[96].mxu1 %v19178_v11 }
 0x239   :  { %22863 = vst [vmem:[#allocation69_spill] sm:$0xff] %v19506_v34  ;;  %22864 = vst [vmem:[#allocation70_spill] sm:$0xff] %v19508_v50  ;;  %2811 = vmatprep.mubr.bf16.mxu0 %v22831_v62  ;;  %3197 = vmatprep.mubr.bf16.mxu1 %v22831_v62 }
 0x23b   :  { %v2477_v1 = vpop.f32.mrb[56].mxu1  ;;  %v2091_v27 = vpop.f32.mrb[56].mxu0 }
 0x23c   :  { %v2479_v56 = vpop.f32.mrb[57].mxu1  ;;  %v2093_v28 = vpop.f32.mrb[57].mxu0 }
 0x23d   :  { %v2481_v63 = vpop.f32.mrb[58].mxu1  ;;  %v2095_v38 = vpop.f32.mrb[58].mxu0 }
 0x23e   :  { %v2483_v2 = vpop.f32.mrb[59].mxu1  ;;  %v19514_v22 = vpack.c.bf16 %v2095_v38, %v2091_v27  ;;  %v2097_v29 = vpop.f32.mrb[59].mxu0  ;;  %v19516_v45 = vpack.c.bf16 %v2481_v63, %v2477_v1 }
 0x23f   :  { %v19518_v47 = vpack.c.bf16 %v2097_v29, %v2093_v28  ;;  %v19520_v55 = vpack.c.bf16 %v2483_v2, %v2479_v56 }
 0x240   :  { %22865 = vst [vmem:[#allocation71_spill] sm:$0xff] %v19514_v22  ;;  %22866 = vst [vmem:[#allocation72_spill] sm:$0xff] %v19516_v45  ;;  %2812 = vmatmul.mubr.bf16.gmra.mrb[100].mxu0 %v19184_v12  ;;  %3198 = vmatmul.mubr.bf16.gmra.mrb[100].mxu1 %v19184_v12 }
 0x241   :  { %22867 = vst [vmem:[#allocation73_spill] sm:$0xff] %v19518_v47  ;;  %22868 = vst [vmem:[#allocation74_spill] sm:$0xff] %v19520_v55  ;;  %2821 = vmatprep.mubr.bf16.mxu0 %v22831_v62  ;;  %3207 = vmatprep.mubr.bf16.mxu1 %v22831_v62 }
 0x243   :  { %v2487_v34 = vpop.f32.mrb[60].mxu1  ;;  %v2101_v31 = vpop.f32.mrb[60].mxu0 }
 0x244   :  { %v2489_v43 = vpop.f32.mrb[61].mxu1  ;;  %v2103_v27 = vpop.f32.mrb[61].mxu0 }
 0x245   :  { %v2491_v38 = vpop.f32.mrb[62].mxu1  ;;  %v2105_v22 = vpop.f32.mrb[62].mxu0 }
 0x246   :  { %v19526_v63 = vpack.c.bf16 %v2491_v38, %v2487_v34  ;;  %v2493_v1 = vpop.f32.mrb[63].mxu1  ;;  %v19528_v28 = vpack.c.bf16 %v2105_v22, %v2101_v31  ;;  %v2107_v56 = vpop.f32.mrb[63].mxu0  ;;  %v22885_v38 = vld [vmem:[#allocation19_spill] sm:$0xff] }
 0x247   :  { %v19530_v2 = vpack.c.bf16 %v2107_v56, %v2103_v27  ;;  %v19532_v29 = vpack.c.bf16 %v2493_v1, %v2489_v43  ;;  %v3812_v43 = vsel %vm22749_vm0, %v19323_v41, 0  ;;  %v22886_v1 = vld [vmem:[#allocation45_spill] sm:$0xff] }
 0x248   :  { %22869 = vst [vmem:[#allocation75_spill] sm:$0xff] %v19526_v63  ;;  %22870 = vst [vmem:[#allocation76_spill] sm:$0xff] %v19528_v28  ;;  %2822 = vmatmul.mubr.bf16.gmra.mrb[104].mxu0 %v19190_v13  ;;  %3208 = vmatmul.mubr.bf16.gmra.mrb[104].mxu1 %v19190_v13 }
 0x249   :  { %22871 = vst [vmem:[#allocation77_spill] sm:$0xff] %v19530_v2  ;;  %22872 = vst [vmem:[#allocation78_spill] sm:$0xff] %v19532_v29  ;;  %2831 = vmatprep.mubr.bf16.mxu0 %v22831_v62  ;;  %3217 = vmatprep.mubr.bf16.mxu1 %v22831_v62 }
 0x250   :  { %2832 = vmatmul.mubr.bf16.gmra.mrb[108].mxu0 %v19196_v14  ;;  %3218 = vmatmul.mubr.bf16.gmra.mrb[108].mxu1 %v19196_v14 }
 0x251   :  { %2841 = vmatprep.mubr.bf16.mxu0 %v22831_v62  ;;  %3227 = vmatprep.mubr.bf16.mxu1 %v22831_v62 }
 0x258   :  { %2842 = vmatmul.mubr.bf16.gmra.mrb[112].mxu0 %v19202_v15  ;;  %3228 = vmatmul.mubr.bf16.gmra.mrb[112].mxu1 %v19202_v15 }
 0x259   :  { %2851 = vmatprep.mubr.bf16.mxu0 %v22831_v62  ;;  %3237 = vmatprep.mubr.bf16.mxu1 %v22831_v62 }
 0x260   :  { %2852 = vmatmul.mubr.bf16.gmra.mrb[116].mxu0 %v19208_v17  ;;  %3238 = vmatmul.mubr.bf16.gmra.mrb[116].mxu1 %v19208_v17 }
 0x261   :  { %2861 = vmatprep.mubr.bf16.mxu0 %v22831_v62  ;;  %3247 = vmatprep.mubr.bf16.mxu1 %v22831_v62 }
 0x268   :  { %2862 = vmatmul.mubr.bf16.gmra.mrb[120].mxu0 %v19214_v18  ;;  %3248 = vmatmul.mubr.bf16.gmra.mrb[120].mxu1 %v19214_v18 }
 0x269   :  { %2871 = vmatprep.mubr.bf16.mxu0 %v22831_v62  ;;  %3257 = vmatprep.mubr.bf16.mxu1 %v22831_v62 }
 0x270   :  { %2872 = vmatmul.mubr.bf16.gmra.mrb[124].mxu0 %v19220_v19  ;;  %3258 = vmatmul.mubr.bf16.gmra.mrb[124].mxu1 %v19220_v19 }
 0x271   :  { %3300 = vmatprep.mubr.bf16.mxu0 %v19224_v20  ;;  %15551 = vmatprep.mubr.bf16.mxu1 %v19405_v44  ;;  %v18964_v20 = vld [vmem:[#allocation2 + $0x50] ss:$12 sps:$4 sm:$0xff]   ;;  %v18965_v44 = vld [vmem:[#allocation2 + $0x68] ss:$12 sps:$4 sm:$0xff]  }
 0x278   :  { %3301 = vmatmul.mubr.bf16.vlgmr.msra.gmra.mrb[128].mxu0 %v19228_v24  ;;  %15552 = vmatmul.mubr.bf16.vlgmr.msra.gmra.mrb[128].mxu1 %v19420_v36  ;;  %v3815_v24 = vsel %vm22749_vm0, %v19339_v61, 0 }
 0x279   :  { %15584 = vmatpush3.bf16.xpose.msra.mxu1 %v3812_v43  ;;  %3308 = vmatprep.mubr.bf16.mxu0 %v19232_v26  ;;  %v18966_v26 = vld [vmem:[#allocation2 + $0x80] ss:$12 sps:$4 sm:$0xff]  }
 0x27a   :  { %17488 = vmatprep.subr.msk.bf16.mxu1 %vm22749_vm0, %v19339_v61  ;;  %15555 = vmatprep.mubr.bf16.mxu1 %v19434_v21  ;;  %v18967_v21 = vld [vmem:[#allocation2 + $0x98] ss:$12 sps:$4 sm:$0xff]  }
 0x27b   :  { %v22887_v43 = vld [vmem:[#allocation20_spill] sm:$0xff] }
 0x280   :  { %3309 = vmatmul.mubr.bf16.gmra.mrb[132].mxu0 %v19236_v35  ;;  %15556 = vmatmul.mubr.bf16.gmra.mrb[132].mxu1 %v18964_v20  ;;  %v3818_v35 = vsel %vm22749_vm0, %v19355_v53, 0 }
 0x281   :  { %15586 = vmatpush3.bf16.xpose.msra.mxu1 %v3815_v24  ;;  %3316 = vmatprep.mubr.bf16.mxu0 %v19240_v37  ;;  %v18968_v37 = vld [vmem:[#allocation2 + $0xb0] ss:$12 sps:$4 sm:$0xff]  }
 0x282   :  { %17489 = vmatprep.subr.msk.bf16.mxu1 %vm22749_vm0, %v19355_v53  ;;  %15559 = vmatprep.mubr.bf16.mxu1 %v18965_v44 }
 0x288   :  { %3317 = vmatmul.mubr.bf16.gmra.mrb[136].mxu0 %v19244_v46  ;;  %15560 = vmatmul.mubr.bf16.gmra.mrb[136].mxu1 %v18966_v26  ;;  %v3821_v46 = vsel %vm22749_vm0, %v19371_v54, 0 }
 0x289   :  { %15588 = vmatpush3.bf16.xpose.msra.mxu1 %v3818_v35  ;;  %3324 = vmatprep.mubr.bf16.mxu0 %v19248_v49  ;;  %v3824_v49 = vsel %vm22749_vm0, %v19387_v42, 0 }
 0x28a   :  { %17490 = vmatprep.subr.msk.bf16.mxu1 %vm22749_vm0, %v19371_v54  ;;  %15563 = vmatprep.mubr.bf16.mxu1 %v18967_v21 }
 0x290   :  { %3325 = vmatmul.mubr.bf16.gmra.mrb[140].mxu0 %v19252_v58  ;;  %15564 = vmatmul.mubr.bf16.gmra.mrb[140].mxu1 %v18968_v37  ;;  %v22878_v58 = vld [vmem:[#allocation15_spill] sm:$0xff] }
 0x291   :  { %15590 = vmatpush3.bf16.xpose.msra.mxu1 %v3821_v46  ;;  %3332 = vmatprep.mubr.bf16.mxu0 %v19256_v60  ;;  %v22879_v60 = vld [vmem:[#allocation39_spill] sm:$0xff] }
 0x292   :  { %17491 = vmatprep.subr.msk.bf16.mxu1 %vm22749_vm0, %v19387_v42  ;;  %15567 = vmatprep.mubr.bf16.mxu1 %v19178_v11  ;;  %v3827_v11 = vsel %vm22749_vm0, %v19401_v30, 0 }
 0x298   :  { %3333 = vmatmul.mubr.bf16.gmra.mrb[144].mxu0 %v19263_v0  ;;  %15568 = vmatmul.mubr.bf16.gmra.mrb[144].mxu1 %v19184_v12  ;;  %v3830_v12 = vsel %vm22749_vm0, %v19416_v23, 0  ;;  %v22880_v0 = vld [vmem:[#allocation42_spill] sm:$0xff] }
 0x299   :  { %15592 = vmatpush3.bf16.xpose.msra.mxu1 %v3824_v49  ;;  %3340 = vmatprep.mubr.bf16.mxu0 %v19267_v3  ;;  %v22881_v3 = vld [vmem:[#allocation16_spill] sm:$0xff] }
 0x29a   :  { %17492 = vmatprep.subr.msk.bf16.mxu1 %vm22749_vm0, %v19401_v30  ;;  %15571 = vmatprep.mubr.bf16.mxu1 %v19190_v13  ;;  %v3833_v13 = vsel %vm22749_vm0, %v19430_v25, 0 }
 0x2a0   :  { %3341 = vmatmul.mubr.bf16.gmra.mrb[148].mxu0 %v19271_v4  ;;  %15572 = vmatmul.mubr.bf16.gmra.mrb[148].mxu1 %v19196_v14  ;;  %v22873_v14 = vld [vmem:[#allocation12_spill] sm:$0xff] }
 0x2a1   :  { %15594 = vmatpush3.bf16.xpose.msra.mxu1 %v3827_v11  ;;  %3348 = vmatprep.mubr.bf16.mxu0 %v19275_v5 }
 0x2a2   :  { %17493 = vmatprep.subr.msk.bf16.mxu1 %vm22749_vm0, %v19416_v23  ;;  %15575 = vmatprep.mubr.bf16.mxu1 %v19202_v15  ;;  %v22874_v15 = vld [vmem:[#allocation13_spill] sm:$0xff] }
 0x2a8   :  { %3349 = vmatmul.mubr.bf16.gmra.mrb[152].mxu0 %v19279_v6  ;;  %15576 = vmatmul.mubr.bf16.gmra.mrb[152].mxu1 %v19208_v17  ;;  %v22875_v17 = vld [vmem:[#allocation30_spill] sm:$0xff] }
 0x2a9   :  { %15596 = vmatpush3.bf16.xpose.msra.mxu1 %v3830_v12  ;;  %3356 = vmatprep.mubr.bf16.mxu0 %v19283_v7 }
 0x2aa   :  { %17494 = vmatprep.subr.msk.bf16.mxu1 %vm22749_vm0, %v19430_v25  ;;  %15579 = vmatprep.mubr.bf16.mxu1 %v19214_v18  ;;  %v22876_v18 = vld [vmem:[#allocation35_spill] sm:$0xff] }
 0x2b0   :  { %3357 = vmatmul.mubr.bf16.gmra.mrb[156].mxu0 %v19287_v8  ;;  %15580 = vmatmul.mubr.bf16.gmra.mrb[156].mxu1 %v19220_v19  ;;  %v22877_v19 = vld [vmem:[#allocation14_spill] sm:$0xff] }
 0x2b1   :  { %15598 = vmatpush3.bf16.xpose.msra.mxu1 %v3833_v13  ;;  %15599 = vmatprep.mubr.msk.bf16.mxu1 %vm22749_vm0, %v19321_v39  ;;  %v22891_v13 = vld [vmem:[#allocation23_spill] sm:$0xff] }
 0x2b2   :  { %3364 = vmatprep.mubr.bf16.mxu0 %v19291_v9 }
 0x2b8   :  { %3365 = vmatmul.mubr.bf16.gmra.mrb[160].mxu0 %v19295_v10  ;;  %15600 = vmatmul.mubr.msk.bf16.vlgmr.msra.gmra.mrb[160].mxu1 %vm22749_vm0, %v19337_v57 }
 0x2b9   :  { %15603 = vmatprep.mubr.msk.bf16.mxu1 %vm22749_vm0, %v19353_v51  ;;  %3372 = vmatprep.mubr.bf16.mxu0 %v22873_v14  ;;  %v22892_v14 = vld [vmem:[#allocation24_spill] sm:$0xff] }
 0x2c0   :  { %3373 = vmatmul.mubr.bf16.gmra.mrb[164].mxu0 %v22874_v15  ;;  %15604 = vmatmul.mubr.msk.bf16.gmra.mrb[164].mxu1 %vm22749_vm0, %v22875_v17 }
 0x2c1   :  { %15607 = vmatprep.mubr.msk.bf16.mxu1 %vm22749_vm0, %v22876_v18  ;;  %3380 = vmatprep.mubr.bf16.mxu0 %v22877_v19 }
 0x2c8   :  { %3381 = vmatmul.mubr.bf16.gmra.mrb[168].mxu0 %v22878_v58  ;;  %15608 = vmatmul.mubr.msk.bf16.gmra.mrb[168].mxu1 %vm22749_vm0, %v22879_v60 }
 0x2c9   :  { %15611 = vmatprep.mubr.msk.bf16.mxu1 %vm22749_vm0, %v22880_v0  ;;  %3388 = vmatprep.mubr.bf16.mxu0 %v22881_v3 }
 0x2cb   :  { %v3109_v4 = vpop.f32.mrb[64].mxu1  ;;  %v2723_v5 = vpop.f32.mrb[64].mxu0 }
 0x2cc   :  { %v3111_v6 = vpop.f32.mrb[65].mxu1  ;;  %v2725_v7 = vpop.f32.mrb[65].mxu0 }
 0x2cd   :  { %v3113_v8 = vpop.f32.mrb[66].mxu1  ;;  %v2727_v9 = vpop.f32.mrb[66].mxu0 }
 0x2ce   :  { %v3115_v10 = vpop.f32.mrb[67].mxu1  ;;  %v19634_v36 = vpack.c.bf16 %v3113_v8, %v3109_v4  ;;  %v19636_v22 = vpack.c.bf16 %v2727_v9, %v2723_v5  ;;  %v2729_v31 = vpop.f32.mrb[67].mxu0 }
 0x2cf   :  { %v19638_v34 = vpack.c.bf16 %v2729_v31, %v2725_v7  ;;  %v19640_v27 = vpack.c.bf16 %v3115_v10, %v3111_v6  ;;  %v22894_v10 = vld [vmem:[#allocation27_spill] sm:$0xff]  ;;  %v22895_v31 = vld [vmem:[#allocation28_spill] sm:$0xff] }
 0x2d0   :  { %22882 = vst [vmem:[#allocation12_spill] sm:$0xff] %v19636_v22  ;;  %3389 = vmatmul.mubr.bf16.gmra.mrb[172].mxu0 %v22885_v38  ;;  %15612 = vmatmul.mubr.msk.bf16.gmra.mrb[172].mxu1 %vm22749_vm0, %v22886_v1 }
 0x2d1   :  { %22883 = vst [vmem:[#allocation13_spill] sm:$0xff] %v19638_v34  ;;  %22884 = vst [vmem:[#allocation30_spill] sm:$0xff] %v19640_v27  ;;  %15615 = vmatprep.subr.bf16.mxu0 %v19634_v36  ;;  %16639 = vmatprep.subr.bf16.mxu1 %v19634_v36 }
 0x2d2   :  { %15616 = vmatpush3.bf16.msra.mxu0 %v19634_v36  ;;  %16647 = vmatpush3.bf16.msra.mxu1 %v19634_v36 }
 0x2d3   :  { %v3119_v56 = vpop.f32.mrb[68].mxu1  ;;  %3396 = vmatprep.mubr.bf16.mxu0 %v22887_v43  ;;  %v2733_v20 = vpop.f32.mrb[68].mxu0 }
 0x2d4   :  { %v3121_v24 = vpop.f32.mrb[69].mxu1  ;;  %v2735_v44 = vpop.f32.mrb[69].mxu0 }
 0x2d5   :  { %v3123_v26 = vpop.f32.mrb[70].mxu1  ;;  %v2737_v35 = vpop.f32.mrb[70].mxu0 }
 0x2d6   :  { %v3125_v21 = vpop.f32.mrb[71].mxu1  ;;  %v19650_v37 = vpack.c.bf16 %v3123_v26, %v3119_v56  ;;  %v19652_v46 = vpack.c.bf16 %v2737_v35, %v2733_v20  ;;  %v2739_v49 = vpop.f32.mrb[71].mxu0 }
 0x2d7   :  { %v19654_v11 = vpack.c.bf16 %v2739_v49, %v2735_v44  ;;  %v19656_v12 = vpack.c.bf16 %v3125_v21, %v3121_v24 }
 0x2d8   :  { %22888 = vst [vmem:[#allocation35_spill] sm:$0xff] %v19652_v46  ;;  %3397 = vmatmul.mubr.bf16.gmra.mrb[176].mxu0 %v22891_v13  ;;  %15617 = vmatprep.subr.bf16.mxu0 %v19650_v37  ;;  %v22897_v13 = vld [vmem:[#allocation32_spill] sm:$0xff] }
 0x2d9   :  { %22889 = vst [vmem:[#allocation14_spill] sm:$0xff] %v19654_v11  ;;  %22890 = vst [vmem:[#allocation15_spill] sm:$0xff] %v19656_v12  ;;  %16640 = vmatprep.subr.bf16.mxu1 %v19650_v37  ;;  %15618 = vmatpush3.bf16.msra.mxu0 %v19650_v37 }
 0x2da   :  { %16648 = vmatpush3.bf16.msra.mxu1 %v19650_v37  ;;  %3404 = vmatprep.mubr.bf16.mxu0 %v22892_v14  ;;  %v22898_v14 = vld [vmem:[#allocation33_spill] sm:$0xff] }
 0x2db   :  { %v3129_v15 = vpop.f32.mrb[72].mxu1  ;;  %v19664_v19 = vpop.f32.mrb[72].mxu0 }
 0x2dc   :  { %v3131_v58 = vpop.f32.mrb[73].mxu1  ;;  %v19666_v3 = vpop.f32.mrb[73].mxu0 }
 0x2dd   :  { %v3133_v4 = vpop.f32.mrb[74].mxu1  ;;  %v19668_v5 = vpop.f32.mrb[74].mxu0 }
 0x2de   :  { %v19670_v6 = vpack.c.bf16 %v3133_v4, %v3129_v15  ;;  %v3135_v7 = vpop.f32.mrb[75].mxu1  ;;  %v19672_v8 = vpop.f32.mrb[75].mxu0 }
 0x2df   :  { %v19674_v9 = vpack.c.bf16 %v3135_v7, %v3131_v58 }
 0x2e0   :  { %3405 = vmatmul.mubr.bf16.gmra.mrb[180].mxu0 %v22894_v10  ;;  %15619 = vmatprep.subr.bf16.mxu0 %v19670_v6 }
 0x2e1   :  { %22893 = vst [vmem:[#allocation39_spill] sm:$0xff] %v19674_v9  ;;  %16641 = vmatprep.subr.bf16.mxu1 %v19670_v6  ;;  %15620 = vmatpush3.bf16.msra.mxu0 %v19670_v6 }
 0x2e2   :  { %16649 = vmatpush3.bf16.msra.mxu1 %v19670_v6  ;;  %3412 = vmatprep.mubr.bf16.mxu0 %v22895_v31 }
 0x2e3   :  { %v3139_v38 = vpop.f32.mrb[76].mxu1  ;;  %v19682_v56 = vpop.f32.mrb[76].mxu0 }
 0x2e4   :  { %v3141_v43 = vpop.f32.mrb[77].mxu1  ;;  %v19684_v20 = vpop.f32.mrb[77].mxu0 }
 0x2e5   :  { %v3143_v24 = vpop.f32.mrb[78].mxu1  ;;  %v19686_v44 = vpop.f32.mrb[78].mxu0 }
 0x2e6   :  { %v19688_v26 = vpack.c.bf16 %v3143_v24, %v3139_v38  ;;  %v3145_v35 = vpop.f32.mrb[79].mxu1  ;;  %v19690_v21 = vpop.f32.mrb[79].mxu0 }
 0x2e7   :  { %v19692_v49 = vpack.c.bf16 %v3145_v35, %v3141_v43 }
 0x2e8   :  { %3413 = vmatmul.mubr.bf16.gmra.mrb[184].mxu0 %v22897_v13  ;;  %15621 = vmatprep.subr.bf16.mxu0 %v19688_v26  ;;  %v22901_v13 = vld [vmem:[#allocation37_spill] sm:$0xff] }
 0x2e9   :  { %22896 = vst [vmem:[#allocation42_spill] sm:$0xff] %v19692_v49  ;;  %16642 = vmatprep.subr.bf16.mxu1 %v19688_v26  ;;  %15622 = vmatpush3.bf16.msra.mxu0 %v19688_v26 }
 0x2ea   :  { %16650 = vmatpush3.bf16.msra.mxu1 %v19688_v26  ;;  %3420 = vmatprep.mubr.bf16.mxu0 %v22898_v14 }
 0x2eb   :  { %v3149_v15 = vpop.f32.mrb[80].mxu1  ;;  %v19700_v58 = vpop.f32.mrb[80].mxu0 }
 0x2ec   :  { %v3151_v4 = vpop.f32.mrb[81].mxu1  ;;  %v19702_v7 = vpop.f32.mrb[81].mxu0 }
 0x2ed   :  { %v3153_v10 = vpop.f32.mrb[82].mxu1  ;;  %v19704_v31 = vpop.f32.mrb[82].mxu0 }
 0x2ee   :  { %v19706_v38 = vpack.c.bf16 %v3153_v10, %v3149_v15  ;;  %v3155_v43 = vpop.f32.mrb[83].mxu1  ;;  %v19708_v24 = vpop.f32.mrb[83].mxu0 }
 0x2ef   :  { %v19710_v35 = vpack.c.bf16 %v3155_v43, %v3151_v4 }
 0x2f0   :  { %22899 = vst [vmem:[#allocation16_spill] sm:$0xff] %v19706_v38  ;;  %3421 = vmatmul.mubr.bf16.gmra.mrb[188].mxu0 %v22901_v13  ;;  %15623 = vmatprep.subr.bf16.mxu0 %v19706_v38 }
 0x2f1   :  { %22900 = vst [vmem:[#allocation19_spill] sm:$0xff] %v19710_v35  ;;  %16643 = vmatprep.subr.bf16.mxu1 %v19706_v38  ;;  %15624 = vmatpush3.bf16.msra.mxu0 %v19706_v38 }
 0x2f2   :  { %16651 = vmatpush3.bf16.msra.mxu1 %v19706_v38 }
 0x2f3   :  { %v3159_v14 = vpop.f32.mrb[84].mxu1  ;;  %v19717_v63 = vpop.f32.mrb[84].mxu0 }
 0x2f4   :  { %v3161_v15 = vpop.f32.mrb[85].mxu1  ;;  %v19719_v10 = vpop.f32.mrb[85].mxu0 }
 0x2f5   :  { %v3163_v45 = vpop.f32.mrb[86].mxu1  ;;  %v19721_v2 = vpop.f32.mrb[86].mxu0 }
 0x2f6   :  { %v19723_v4 = vpack.c.bf16 %v3163_v45, %v3159_v14  ;;  %v3165_v43 = vpop.f32.mrb[87].mxu1  ;;  %v19725_v13 = vpop.f32.mrb[87].mxu0 }
 0x2f7   :  { %v19727_v47 = vpack.c.bf16 %v3165_v43, %v3161_v15 }
 0x2f8   :  { %15625 = vmatprep.subr.bf16.mxu0 %v19723_v4  ;;  %16644 = vmatprep.subr.bf16.mxu1 %v19723_v4 }
 0x2f9   :  { %22902 = vst [vmem:[#allocation45_spill] sm:$0xff] %v19727_v47  ;;  %15626 = vmatpush3.bf16.msra.mxu0 %v19723_v4  ;;  %16652 = vmatpush3.bf16.msra.mxu1 %v19723_v4 }
 0x2fb   :  { %v3169_v28 = vpop.f32.mrb[88].mxu1  ;;  %v2783_v40 = vpop.f32.mrb[88].mxu0 }
 0x2fc   :  { %v3171_v52 = vpop.f32.mrb[89].mxu1  ;;  %v2785_v29 = vpop.f32.mrb[89].mxu0 }
 0x2fd   :  { %v3173_v55 = vpop.f32.mrb[90].mxu1  ;;  %v2787_v45 = vpop.f32.mrb[90].mxu0 }
 0x2fe   :  { %v19733_v14 = vpack.c.bf16 %v3173_v55, %v3169_v28  ;;  %v3175_v50 = vpop.f32.mrb[91].mxu1  ;;  %v19735_v48 = vpack.c.bf16 %v2787_v45, %v2783_v40  ;;  %v2789_v15 = vpop.f32.mrb[91].mxu0 }
 0x2ff   :  { %v19737_v43 = vpack.c.bf16 %v3175_v50, %v3171_v52  ;;  %v19739_v59 = vpack.c.bf16 %v2789_v15, %v2785_v29 }
 0x300   :  { %22903 = vst [vmem:[#allocation20_spill] sm:$0xff] %v19733_v14  ;;  %22904 = vst [vmem:[#allocation23_spill] sm:$0xff] %v19735_v48  ;;  %15627 = vmatprep.subr.bf16.mxu0 %v19733_v14  ;;  %16645 = vmatprep.subr.bf16.mxu1 %v19733_v14 }
 0x301   :  { %22905 = vst [vmem:[#allocation24_spill] sm:$0xff] %v19737_v43  ;;  %22906 = vst [vmem:[#allocation27_spill] sm:$0xff] %v19739_v59  ;;  %15628 = vmatpush3.bf16.msra.mxu0 %v19733_v14  ;;  %16653 = vmatpush3.bf16.msra.mxu1 %v19733_v14 }
 0x303   :  { %v3179_v32 = vpop.f32.mrb[92].mxu1  ;;  %v2793_v16 = vpop.f32.mrb[92].mxu0 }
 0x304   :  { %v3181_v55 = vpop.f32.mrb[93].mxu1  ;;  %v2795_v28 = vpop.f32.mrb[93].mxu0 }
 0x305   :  { %v3183_v33 = vpop.f32.mrb[94].mxu1  ;;  %v2797_v40 = vpop.f32.mrb[94].mxu0 }
 0x306   :  { %v19745_v45 = vpack.c.bf16 %v3183_v33, %v3179_v32  ;;  %v3185_v52 = vpop.f32.mrb[95].mxu1  ;;  %v19747_v50 = vpack.c.bf16 %v2797_v40, %v2793_v16  ;;  %v2799_v29 = vpop.f32.mrb[95].mxu0 }
 0x307   :  { %v19749_v15 = vpack.c.bf16 %v3185_v52, %v3181_v55  ;;  %v19751_v59 = vpack.c.bf16 %v2799_v29, %v2795_v28 }
 0x308   :  { %22907 = vst [vmem:[#allocation28_spill] sm:$0xff] %v19745_v45  ;;  %22908 = vst [vmem:[#allocation32_spill] sm:$0xff] %v19747_v50  ;;  %15629 = vmatprep.subr.bf16.mxu0 %v19745_v45  ;;  %16646 = vmatprep.subr.bf16.mxu1 %v19745_v45 }
 0x309   :  { %22909 = vst [vmem:[#allocation33_spill] sm:$0xff] %v19749_v15  ;;  %22910 = vst [vmem:[#allocation37_spill] sm:$0xff] %v19751_v59  ;;  %15630 = vmatpush3.bf16.msra.mxu0 %v19745_v45  ;;  %16654 = vmatpush3.bf16.msra.mxu1 %v19745_v45 }
 0x30b   :  { %v3189_v11 = vpop.f32.mrb[96].mxu1  ;;  %v2803_v34 = vpop.f32.mrb[96].mxu0 }
 0x30c   :  { %v3191_v33 = vpop.f32.mrb[97].mxu1  ;;  %v2805_v32 = vpop.f32.mrb[97].mxu0 }
 0x30d   :  { %v3193_v48 = vpop.f32.mrb[98].mxu1  ;;  %v2807_v16 = vpop.f32.mrb[98].mxu0 }
 0x30e   :  { %v19757_v40 = vpack.c.bf16 %v3193_v48, %v3189_v11  ;;  %v3195_v55 = vpop.f32.mrb[99].mxu1  ;;  %v19759_v52 = vpack.c.bf16 %v2807_v16, %v2803_v34  ;;  %v2809_v28 = vpop.f32.mrb[99].mxu0 }
 0x30f   :  { %v19761_v29 = vpack.c.bf16 %v3195_v55, %v3191_v33  ;;  %v19763_v59 = vpack.c.bf16 %v2809_v28, %v2805_v32  ;;  %v19775_v33 = vpack.c.bf16 %v19668_v5, %v19664_v19  ;;  %v19779_v32 = vpack.c.bf16 %v19672_v8, %v19666_v3 }
 0x310   :  { %22911 = vst [vmem:[#allocation79_spill] sm:$0xff] %v19757_v40  ;;  %22912 = vst [vmem:[#allocation80_spill] sm:$0xff] %v19759_v52  ;;  %v19791_v3 = vpack.c.bf16 %v19686_v44, %v19682_v56  ;;  %v19795_v5 = vpack.c.bf16 %v19690_v21, %v19684_v20  ;;  %v19807_v20 = vpack.c.bf16 %v19704_v31, %v19700_v58 }
 0x311   :  { %22913 = vst [vmem:[#allocation81_spill] sm:$0xff] %v19761_v29  ;;  %22914 = vst [vmem:[#allocation82_spill] sm:$0xff] %v19763_v59  ;;  %v19811_v44 = vpack.c.bf16 %v19708_v24, %v19702_v7  ;;  %v19823_v7 = vpack.c.bf16 %v19721_v2, %v19717_v63  ;;  %v19827_v31 = vpack.c.bf16 %v19725_v13, %v19719_v10 }
 0x312   :  { %22919 = vst [vmem:[#allocation87_spill] sm:$0xff] %v19775_v33  ;;  %22920 = vst [vmem:[#allocation88_spill] sm:$0xff] %v19779_v32  ;;  %v22976_v33 = vmov 0 }
 0x313   :  { %v3199_v50 = vpop.f32.mrb[100].mxu1  ;;  %v2813_v15 = vpop.f32.mrb[100].mxu0  ;;  %22925 = vst [vmem:[#allocation93_spill] sm:$0xff] %v19791_v3  ;;  %22926 = vst [vmem:[#allocation94_spill] sm:$0xff] %v19795_v5 }
 0x314   :  { %v3201_v43 = vpop.f32.mrb[101].mxu1  ;;  %v2815_v47 = vpop.f32.mrb[101].mxu0  ;;  %22931 = vst [vmem:[#allocation99_spill] sm:$0xff] %v19807_v20  ;;  %22932 = vst [vmem:[#allocation100_spill] sm:$0xff] %v19811_v44  ;;  %v22966_v20 = vmov 0 }
 0x315   :  { %v3203_v35 = vpop.f32.mrb[102].mxu1  ;;  %v2817_v49 = vpop.f32.mrb[102].mxu0  ;;  %22937 = vst [vmem:[#allocation105_spill] sm:$0xff] %v19823_v7  ;;  %22938 = vst [vmem:[#allocation106_spill] sm:$0xff] %v19827_v31 }
 0x316   :  { %v19765_v9 = vpack.c.bf16 %v3203_v35, %v3199_v50  ;;  %v3205_v46 = vpop.f32.mrb[103].mxu1  ;;  %v19767_v12 = vpack.c.bf16 %v2817_v49, %v2813_v15  ;;  %v2819_v48 = vpop.f32.mrb[103].mxu0 }
 0x317   :  { %v19769_v11 = vpack.c.bf16 %v3205_v46, %v3201_v43  ;;  %v19771_v34 = vpack.c.bf16 %v2819_v48, %v2815_v47 }
 0x318   :  { %22915 = vst [vmem:[#allocation83_spill] sm:$0xff] %v19765_v9  ;;  %22916 = vst [vmem:[#allocation84_spill] sm:$0xff] %v19767_v12 }
 0x319   :  { %22917 = vst [vmem:[#allocation85_spill] sm:$0xff] %v19769_v11  ;;  %22918 = vst [vmem:[#allocation86_spill] sm:$0xff] %v19771_v34 }
 0x31b   :  { %v3209_v16 = vpop.f32.mrb[104].mxu1  ;;  %v2823_v55 = vpop.f32.mrb[104].mxu0 }
 0x31c   :  { %v3211_v35 = vpop.f32.mrb[105].mxu1  ;;  %v2825_v50 = vpop.f32.mrb[105].mxu0 }
 0x31d   :  { %v3213_v28 = vpop.f32.mrb[106].mxu1  ;;  %v2827_v49 = vpop.f32.mrb[106].mxu0 }
 0x31e   :  { %v19781_v15 = vpack.c.bf16 %v3213_v28, %v3209_v16  ;;  %v3215_v46 = vpop.f32.mrb[107].mxu1  ;;  %v19783_v43 = vpack.c.bf16 %v2827_v49, %v2823_v55  ;;  %v2829_v47 = vpop.f32.mrb[107].mxu0 }
 0x31f   :  { %v19785_v48 = vpack.c.bf16 %v3215_v46, %v3211_v35  ;;  %v19787_v19 = vpack.c.bf16 %v2829_v47, %v2825_v50 }
 0x320   :  { %22921 = vst [vmem:[#allocation89_spill] sm:$0xff] %v19781_v15  ;;  %22922 = vst [vmem:[#allocation90_spill] sm:$0xff] %v19783_v43 }
 0x321   :  { %22923 = vst [vmem:[#allocation91_spill] sm:$0xff] %v19785_v48  ;;  %22924 = vst [vmem:[#allocation92_spill] sm:$0xff] %v19787_v19 }
 0x323   :  { %v3219_v8 = vpop.f32.mrb[108].mxu1  ;;  %v2833_v34 = vpop.f32.mrb[108].mxu0 }
 0x324   :  { %v3221_v16 = vpop.f32.mrb[109].mxu1  ;;  %v2835_v28 = vpop.f32.mrb[109].mxu0 }
 0x325   :  { %v3223_v59 = vpop.f32.mrb[110].mxu1  ;;  %v2837_v55 = vpop.f32.mrb[110].mxu0 }
 0x326   :  { %v19797_v49 = vpack.c.bf16 %v3223_v59, %v3219_v8  ;;  %v3225_v35 = vpop.f32.mrb[111].mxu1  ;;  %v19799_v46 = vpack.c.bf16 %v2837_v55, %v2833_v34  ;;  %v2839_v50 = vpop.f32.mrb[111].mxu0 }
 0x327   :  { %v19801_v47 = vpack.c.bf16 %v3225_v35, %v3221_v16  ;;  %v19803_v56 = vpack.c.bf16 %v2839_v50, %v2835_v28 }
 0x328   :  { %22927 = vst [vmem:[#allocation95_spill] sm:$0xff] %v19797_v49  ;;  %22928 = vst [vmem:[#allocation96_spill] sm:$0xff] %v19799_v46 }
 0x329   :  { %22929 = vst [vmem:[#allocation97_spill] sm:$0xff] %v19801_v47  ;;  %22930 = vst [vmem:[#allocation98_spill] sm:$0xff] %v19803_v56 }
 0x32b   :  { %v3229_v21 = vpop.f32.mrb[112].mxu1  ;;  %v2843_v19 = vpop.f32.mrb[112].mxu0 }
 0x32c   :  { %v3231_v59 = vpop.f32.mrb[113].mxu1  ;;  %v2845_v8 = vpop.f32.mrb[113].mxu0 }
 0x32d   :  { %v3233_v43 = vpop.f32.mrb[114].mxu1  ;;  %v2847_v34 = vpop.f32.mrb[114].mxu0 }
 0x32e   :  { %v19813_v55 = vpack.c.bf16 %v3233_v43, %v3229_v21  ;;  %v3235_v16 = vpop.f32.mrb[115].mxu1  ;;  %v19815_v35 = vpack.c.bf16 %v2847_v34, %v2843_v19  ;;  %v2849_v28 = vpop.f32.mrb[115].mxu0 }
 0x32f   :  { %v19817_v50 = vpack.c.bf16 %v3235_v16, %v3231_v59  ;;  %v19819_v58 = vpack.c.bf16 %v2849_v28, %v2845_v8 }
 0x330   :  { %22933 = vst [vmem:[#allocation101_spill] sm:$0xff] %v19813_v55  ;;  %22934 = vst [vmem:[#allocation102_spill] sm:$0xff] %v19815_v35 }
 0x331   :  { %22935 = vst [vmem:[#allocation103_spill] sm:$0xff] %v19817_v50  ;;  %22936 = vst [vmem:[#allocation104_spill] sm:$0xff] %v19819_v58 }
 0x333   :  { %v3239_v24 = vpop.f32.mrb[116].mxu1  ;;  %v2853_v56 = vpop.f32.mrb[116].mxu0 }
 0x334   :  { %v3241_v43 = vpop.f32.mrb[117].mxu1  ;;  %v2855_v21 = vpop.f32.mrb[117].mxu0 }
 0x335   :  { %v3243_v46 = vpop.f32.mrb[118].mxu1  ;;  %v2857_v19 = vpop.f32.mrb[118].mxu0 }
 0x336   :  { %v19829_v34 = vpack.c.bf16 %v3243_v46, %v3239_v24  ;;  %v3245_v59 = vpop.f32.mrb[119].mxu1  ;;  %v19831_v16 = vpack.c.bf16 %v2857_v19, %v2853_v56  ;;  %v2859_v8 = vpop.f32.mrb[119].mxu0 }
 0x337   :  { %v19833_v28 = vpack.c.bf16 %v3245_v59, %v3241_v43  ;;  %v19835_v63 = vpack.c.bf16 %v2859_v8, %v2855_v21 }
 0x338   :  { %22939 = vst [vmem:[#allocation107_spill] sm:$0xff] %v19829_v34  ;;  %22940 = vst [vmem:[#allocation108_spill] sm:$0xff] %v19831_v16 }
 0x339   :  { %22941 = vst [vmem:[#allocation109_spill] sm:$0xff] %v19833_v28  ;;  %22942 = vst [vmem:[#allocation110_spill] sm:$0xff] %v19835_v63 }
 0x33b   :  { %v3249_v2 = vpop.f32.mrb[120].mxu1  ;;  %v2863_v58 = vpop.f32.mrb[120].mxu0 }
 0x33c   :  { %v3251_v10 = vpop.f32.mrb[121].mxu1  ;;  %v2865_v13 = vpop.f32.mrb[121].mxu0 }
 0x33d   :  { %v3253_v35 = vpop.f32.mrb[122].mxu1  ;;  %v2867_v50 = vpop.f32.mrb[122].mxu0 }
 0x33e   :  { %v19837_v47 = vpack.c.bf16 %v3253_v35, %v3249_v2  ;;  %v3255_v48 = vpop.f32.mrb[123].mxu1  ;;  %v19839_v12 = vpack.c.bf16 %v2867_v50, %v2863_v58  ;;  %v2869_v46 = vpop.f32.mrb[123].mxu0 }
 0x33f   :  { %v19841_v24 = vpack.c.bf16 %v3255_v48, %v3251_v10  ;;  %v19843_v56 = vpack.c.bf16 %v2869_v46, %v2865_v13 }
 0x340   :  { %22943 = vst [vmem:[#allocation111_spill] sm:$0xff] %v19837_v47  ;;  %22944 = vst [vmem:[#allocation112_spill] sm:$0xff] %v19839_v12 }
 0x341   :  { %22945 = vst [vmem:[#allocation113_spill] sm:$0xff] %v19841_v24  ;;  %22946 = vst [vmem:[#allocation114_spill] sm:$0xff] %v19843_v56 }
 0x343   :  { %v3259_v43 = vpop.f32.mrb[124].mxu1  ;;  %v2873_v19 = vpop.f32.mrb[124].mxu0 }
 0x344   :  { %v3261_v21 = vpop.f32.mrb[125].mxu1  ;;  %v2875_v59 = vpop.f32.mrb[125].mxu0 }
 0x345   :  { %v3263_v8 = vpop.f32.mrb[126].mxu1  ;;  %v2877_v63 = vpop.f32.mrb[126].mxu0 }
 0x346   :  { %v19845_v16 = vpack.c.bf16 %v3263_v8, %v3259_v43  ;;  %v3265_v28 = vpop.f32.mrb[127].mxu1  ;;  %v19847_v11 = vpack.c.bf16 %v2877_v63, %v2873_v19  ;;  %v2879_v35 = vpop.f32.mrb[127].mxu0 }
 0x347   :  { %v19849_v2 = vpack.c.bf16 %v3265_v28, %v3261_v21  ;;  %v19851_v50 = vpack.c.bf16 %v2879_v35, %v2875_v59 }
 0x348   :  { %22947 = vst [vmem:[#allocation115_spill] sm:$0xff] %v19845_v16  ;;  %22948 = vst [vmem:[#allocation116_spill] sm:$0xff] %v19847_v11 }
 0x349   :  { %22949 = vst [vmem:[#allocation117_spill] sm:$0xff] %v19849_v2  ;;  %22950 = vst [vmem:[#allocation118_spill] sm:$0xff] %v19851_v50 }
 0x34b   :  { %v14887_v48 = vpop.f32.mrb[128].mxu0  ;;  %v15553_v58 = vpop.f32.mrb[128].mxu1 }
 0x34c   :  { %v14888_v10 = vpop.f32.mrb[129].mxu0  ;;  %v3463_v13 = vpop.f32.mrb[129].mxu1 }
 0x34d   :  { %v14889_v46 = vadd.f32 %v14888_v10, %v14887_v48  ;;  %v14890_v56 = vpop.f32.mrb[130].mxu0  ;;  %v15554_v12 = vpop.f32.mrb[130].mxu1 }
 0x34e   :  { %v14891_v24 = vpop.f32.mrb[131].mxu0  ;;  %v3466_v52 = vpop.f32.mrb[131].mxu1 }
 0x34f   :  { %v3464_v29 = vadd.f32 %v14889_v46, %v3463_v13  ;;  %v14892_v43 = vadd.f32 %v14891_v24, %v14890_v56 }
 0x351   :  { %v3467_v8 = vadd.f32 %v14892_v43, %v3466_v52 }
 0x353   :  { %v14893_v16 = vpop.f32.mrb[132].mxu0  ;;  %v15557_v63 = vpop.f32.mrb[132].mxu1  ;;  %v19853_v19 = vpack.c.bf16 %v3467_v8, %v3464_v29 }
 0x354   :  { %v14894_v28 = vpop.f32.mrb[133].mxu0  ;;  %v3479_v21 = vpop.f32.mrb[133].mxu1 }
 0x355   :  { %22951 = vst [vmem:[#allocation119_spill] sm:$0xff] %v19853_v19  ;;  %v14895_v59 = vadd.f32 %v14894_v28, %v14893_v16  ;;  %v14896_v35 = vpop.f32.mrb[134].mxu0  ;;  %v15558_v50 = vpop.f32.mrb[134].mxu1 }
 0x356   :  { %v14897_v11 = vpop.f32.mrb[135].mxu0  ;;  %v3482_v2 = vpop.f32.mrb[135].mxu1 }
 0x357   :  { %v3472_v47 = vadd.f32 %v15553_v58, %v14895_v59  ;;  %v14898_v48 = vadd.f32 %v14897_v11, %v14896_v35 }
 0x359   :  { %v3475_v10 = vadd.f32 %v15554_v12, %v14898_v48 }
 0x35b   :  { %v14899_v34 = vpop.f32.mrb[136].mxu0  ;;  %v15561_v55 = vpop.f32.mrb[136].mxu1  ;;  %v19855_v49 = vpack.c.bf16 %v3475_v10, %v3472_v47 }
 0x35c   :  { %v14900_v24 = vpop.f32.mrb[137].mxu0  ;;  %v3495_v52 = vpop.f32.mrb[137].mxu1 }
 0x35d   :  { %22952 = vst [vmem:[#allocation120_spill] sm:$0xff] %v19855_v49  ;;  %v14901_v56 = vadd.f32 %v14900_v24, %v14899_v34  ;;  %v14902_v13 = vpop.f32.mrb[138].mxu0  ;;  %v15562_v29 = vpop.f32.mrb[138].mxu1 }
 0x35e   :  { %v14903_v46 = vpop.f32.mrb[139].mxu0  ;;  %v3498_v43 = vpop.f32.mrb[139].mxu1 }
 0x35f   :  { %v3480_v8 = vadd.f32 %v14901_v56, %v3479_v21  ;;  %v14904_v16 = vadd.f32 %v14903_v46, %v14902_v13 }
 0x361   :  { %v3483_v28 = vadd.f32 %v14904_v16, %v3482_v2 }
 0x363   :  { %v14905_v15 = vpop.f32.mrb[140].mxu0  ;;  %v19857_v9 = vpop.f32.mrb[140].mxu1  ;;  %v19859_v58 = vpack.c.bf16 %v3483_v28, %v3480_v8 }
 0x364   :  { %v14906_v12 = vpop.f32.mrb[141].mxu0  ;;  %v3511_v11 = vpop.f32.mrb[141].mxu1 }
 0x365   :  { %22953 = vst [vmem:[#allocation121_spill] sm:$0xff] %v19859_v58  ;;  %v14907_v59 = vadd.f32 %v14906_v12, %v14905_v15  ;;  %v14908_v47 = vpop.f32.mrb[142].mxu0  ;;  %v15566_v35 = vpop.f32.mrb[142].mxu1 }
 0x366   :  { %v14909_v48 = vpop.f32.mrb[143].mxu0  ;;  %v3514_v10 = vpop.f32.mrb[143].mxu1 }
 0x367   :  { %v3488_v34 = vadd.f32 %v15557_v63, %v14907_v59  ;;  %v14910_v24 = vadd.f32 %v14909_v48, %v14908_v47 }
 0x369   :  { %v3491_v40 = vadd.f32 %v15558_v50, %v14910_v24 }
 0x36b   :  { %v14911_v31 = vpop.f32.mrb[144].mxu0  ;;  %v19861_v44 = vpop.f32.mrb[144].mxu1  ;;  %v19863_v21 = vpack.c.bf16 %v3491_v40, %v3488_v34 }
 0x36c   :  { %v14912_v2 = vpop.f32.mrb[145].mxu0  ;;  %v19865_v56 = vpop.f32.mrb[145].mxu1 }
 0x36d   :  { %22954 = vst [vmem:[#allocation122_spill] sm:$0xff] %v19863_v21  ;;  %v14913_v13 = vadd.f32 %v14912_v2, %v14911_v31  ;;  %v14914_v46 = vpop.f32.mrb[146].mxu0  ;;  %v19867_v8 = vpop.f32.mrb[146].mxu1 }
 0x36e   :  { %v14915_v15 = vpop.f32.mrb[147].mxu0  ;;  %v19869_v16 = vpop.f32.mrb[147].mxu1 }
 0x36f   :  { %v3496_v28 = vadd.f32 %v14913_v13, %v3495_v52  ;;  %v14916_v12 = vadd.f32 %v14915_v15, %v14914_v46 }
 0x371   :  { %v3499_v63 = vadd.f32 %v14916_v12, %v3498_v43 }
 0x373   :  { %v14917_v59 = vpop.f32.mrb[148].mxu0  ;;  %v19871_v50 = vpop.f32.mrb[148].mxu1  ;;  %v19873_v47 = vpack.c.bf16 %v3499_v63, %v3496_v28 }
 0x374   :  { %v14918_v40 = vpop.f32.mrb[149].mxu0  ;;  %v19875_v48 = vpop.f32.mrb[149].mxu1 }
 0x375   :  { %22955 = vst [vmem:[#allocation123_spill] sm:$0xff] %v19873_v47  ;;  %v14919_v34 = vadd.f32 %v14918_v40, %v14917_v59  ;;  %v14920_v24 = vpop.f32.mrb[150].mxu0  ;;  %v19877_v31 = vpop.f32.mrb[150].mxu1  ;;  %v3734_v40 = vlaneseq }
 0x376   :  { %v14921_v2 = vpop.f32.mrb[151].mxu0  ;;  %v19879_v5 = vpop.f32.mrb[151].mxu1 }
 0x377   :  { %v3504_v32 = vadd.f32 %v15561_v55, %v14919_v34  ;;  %v14922_v21 = vadd.f32 %v14921_v2, %v14920_v24  ;;  %v19902_v7 = vand.u32 127, %v3734_v40 }
 0x379   :  { %v3507_v52 = vadd.f32 %v15562_v29, %v14922_v21  ;;  %v19891_v29 = vshrl.u32 %v3734_v40, 7 }
 0x37b   :  { %v14923_v13 = vpop.f32.mrb[152].mxu0  ;;  %v19881_v43 = vpop.f32.mrb[152].mxu1  ;;  %v19883_v46 = vpack.c.bf16 %v3507_v52, %v3504_v32  ;;  %22957 = vst [vmem:[#allocation125_spill] sm:$0xff] %v19891_v29  ;;  %v3737_v19 = vadd.s32 16, %v19891_v29  ;;  %vm19915_vm2 = vcmp.le.s32.totalorder %v19902_v7, %v19891_v29  ;;  %v3736_v40 = vadd.s32 8, %v19891_v29 }
 0x37c   :  { %v14924_v15 = vpop.f32.mrb[153].mxu0  ;;  %v19885_v28 = vpop.f32.mrb[153].mxu1 }
 0x37d   :  { %22956 = vst [vmem:[#allocation124_spill] sm:$0xff] %v19883_v46  ;;  %v14925_v12 = vadd.f32 %v14924_v15, %v14923_v13  ;;  %v14926_v63 = vpop.f32.mrb[154].mxu0  ;;  %v19887_v59 = vpop.f32.mrb[154].mxu1  ;;  %vm19908_vm1 = vcmp.le.s32.totalorder %v19902_v7, %v3737_v19  ;;  %vm19938_vm4 = vcmp.le.s32.totalorder %v19902_v7, %v3736_v40 }
 0x37e   :  { %v14927_v47 = vpop.f32.mrb[155].mxu0  ;;  %v19889_v58 = vpop.f32.mrb[155].mxu1 }
 0x37f   :  { %v3512_v49 = vadd.f32 %v14925_v12, %v3511_v11  ;;  %v14928_v55 = vadd.f32 %v14927_v47, %v14926_v63 }
 0x381   :  { %v3515_v34 = vadd.f32 %v14928_v55, %v3514_v10  ;;  %v3738_v55 = vadd.s32 24, %v19891_v29 }
 0x383   :  { %v14929_v21 = vpop.f32.mrb[156].mxu0  ;;  %v19893_v24 = vpop.f32.mrb[156].mxu1  ;;  %v19895_v32 = vpack.c.bf16 %v3515_v34, %v3512_v49  ;;  %v22959_v49 = vmov 0  ;;  %v22962_v34 = vmov 0  ;;  %vm19932_vm3 = vcmp.le.s32.totalorder %v19902_v7, %v3738_v55 }
 0x384   :  { %v14930_v2 = vpop.f32.mrb[157].mxu0  ;;  %v19897_v52 = vpop.f32.mrb[157].mxu1  ;;  %v22960_v49 = vsel %vm19908_vm1, 4294967295, %v22959_v49  ;;  %v22963_v34 = vsel %vm19915_vm2, 4294967295, %v22962_v34  ;;  %v22967_v20 = vsel %vm19932_vm3, 4294967295, %v22966_v20 }
 0x385   :  { %22958 = vst [vmem:[#allocation126_spill] sm:$0xff] %v19895_v32  ;;  %v14931_v13 = vadd.f32 %v14930_v2, %v14929_v21  ;;  %v14932_v15 = vpop.f32.mrb[158].mxu0  ;;  %v19899_v46 = vpop.f32.mrb[158].mxu1  ;;  %22961 = vst [vmem:[#allocation127_spill] sm:$0xff] %v22960_v49 }
 0x386   :  { %v14933_v11 = vpop.f32.mrb[159].mxu0  ;;  %v19904_v10 = vpop.f32.mrb[159].mxu1  ;;  %22964 = vst [vmem:[#allocation128_spill] sm:$0xff] %v22963_v34  ;;  %22968 = vst [vmem:[#allocation130_spill] sm:$0xff] %v22967_v20 }
 0x387   :  { %v3520_v47 = vadd.f32 %v19857_v9, %v14931_v13  ;;  %v14934_v12 = vadd.f32 %v14933_v11, %v14932_v15 }
 0x389   :  { %v3523_v63 = vadd.f32 %v15566_v35, %v14934_v12 }
 0x38b   :  { %v14935_v21 = vpop.f32.mrb[160].mxu0  ;;  %v15601_v2 = vpop.f32.mrb[160].mxu1  ;;  %v19920_v9 = vpack.c.bf16 %v3523_v63, %v3520_v47 }
 0x38c   :  { %v14936_v35 = vpop.f32.mrb[161].mxu0  ;;  %v3869_v13 = vpop.f32.mrb[161].mxu1  ;;  %v19924_v19 = vsel %vm19908_vm1, %v15601_v2, -1e+30  ;;  %v3739_v2 = vadd.s32 32, %v19891_v29 }
 0x38d   :  { %22965 = vst [vmem:[#allocation129_spill] sm:$0xff] %v19920_v9  ;;  %v14937_v15 = vadd.f32 %v14936_v35, %v14935_v21  ;;  %3952 = vmax.xlane.f32.xlu1 %v19924_v19  ;;  %v14938_v11 = vpop.f32.mrb[162].mxu0  ;;  %v15602_v12 = vpop.f32.mrb[162].mxu1  ;;  %v19929_v32 = vsel %vm19915_vm2, %v3869_v13, -1e+30  ;;  %v22969_v21 = vmov 0 }
 0x38e   :  { %3948 = vmax.xlane.f32.xlu0 %v19929_v32  ;;  %v14939_v47 = vpop.f32.mrb[163].mxu0  ;;  %v3872_v63 = vpop.f32.mrb[163].mxu1  ;;  %v22970_v21 = vsel %vm19938_vm4, 4294967295, %v22969_v21  ;;  %v19946_v55 = vsel %vm19932_vm3, %v15602_v12, -1e+30  ;;  %v3740_v9 = vadd.s32 40, %v19891_v29  ;;  %vm19957_vm5 = vcmp.le.s32.totalorder %v19902_v7, %v3739_v2 }
 0x38f   :  { %22971 = vst [vmem:[#allocation131_spill] sm:$0xff] %v22970_v21  ;;  %v3528_v35 = vadd.f32 %v14937_v15, %v19865_v56  ;;  %v14940_v13 = vadd.f32 %v14939_v47, %v14938_v11  ;;  %v19953_v40 = vsel %vm19938_vm4, %v3872_v63, -1e+30  ;;  %v22972_v56 = vmov 0 }
 0x390   :  { %v22973_v56 = vsel %vm19957_vm5, 4294967295, %v22972_v56  ;;  %v3741_v15 = vadd.s32 48, %v19891_v29  ;;  %vm19965_vm6 = vcmp.le.s32.totalorder %v19902_v7, %v3740_v9  ;;  %v3742_v63 = vadd.s32 56, %v19891_v29 }
 0x391   :  { %v3531_v3 = vadd.f32 %v14940_v13, %v19869_v16  ;;  %3954 = vmax.xlane.f32.xlu1 %v19946_v55  ;;  %22974 = vst [vmem:[#allocation132_spill] sm:$0xff] %v22973_v56  ;;  %v22977_v33 = vsel %vm19965_vm6, 4294967295, %v22976_v33  ;;  %v3743_v9 = vadd.s32 64, %v19891_v29 }
 0x392   :  { %3950 = vmax.xlane.f32.xlu0 %v19953_v40  ;;  %22978 = vst [vmem:[#allocation134_spill] sm:$0xff] %v22977_v33  ;;  %vm19976_vm7 = vcmp.le.s32.totalorder %v19902_v7, %v3741_v15  ;;  %vm19988_vm8 = vcmp.le.s32.totalorder %v19902_v7, %v3742_v63  ;;  %v3744_v15 = vadd.s32 72, %v19891_v29 }
 0x393   :  { %v14941_v11 = vpop.f32.mrb[164].mxu0  ;;  %v15605_v12 = vpop.f32.mrb[164].mxu1  ;;  %v19962_v47 = vpack.c.bf16 %v3531_v3, %v3528_v35  ;;  %vm20000_vm9 = vcmp.le.s32.totalorder %v19902_v7, %v3743_v9  ;;  %v22989_v9 = vmov 0 }
 0x394   :  { %v14942_v16 = vpop.f32.mrb[165].mxu0  ;;  %v3885_v13 = vpop.f32.mrb[165].mxu1  ;;  %v19996_v20 = vsel %vm19976_vm7, %v15605_v12, -1e+30  ;;  %vm20013_vm10 = vcmp.le.s32.totalorder %v19902_v7, %v3744_v15  ;;  %v3747_v15 = vadd.s32 96, %v19891_v29 }
 0x395   :  { %22975 = vst [vmem:[#allocation133_spill] sm:$0xff] %v19962_v47  ;;  %v14943_v22 = vadd.f32 %v14942_v16, %v14941_v11  ;;  %v14944_v2 = vpop.f32.mrb[166].mxu0  ;;  %v15606_v45 = vpop.f32.mrb[166].mxu1  ;;  %v19972_v14 = vsel %vm19957_vm5, %v3885_v13, -1e+30  ;;  %v22979_v47 = vmov 0 }
 0x396   :  { %3956 = vmax.xlane.f32.xlu0 %v19972_v14  ;;  %v14945_v3 = vpop.f32.mrb[167].mxu0  ;;  %v3888_v35 = vpop.f32.mrb[167].mxu1  ;;  %v22980_v47 = vsel %vm19976_vm7, 4294967295, %v22979_v47  ;;  %v22982_v13 = vmov 0  ;;  %v22990_v9 = vsel %vm20013_vm10, 4294967295, %v22989_v9  ;;  %vm20048_vm13 = vcmp.le.s32.totalorder %v19902_v7, %v3747_v15 }
 0x397   :  { %22981 = vst [vmem:[#allocation135_spill] sm:$0xff] %v22980_v47  ;;  %v3536_v21 = vadd.f32 %v19861_v44, %v14943_v22  ;;  %v14946_v11 = vadd.f32 %v14945_v3, %v14944_v2  ;;  %v19984_v16 = vsel %vm19965_vm6, %v3888_v35, -1e+30  ;;  %v22983_v13 = vsel %vm19988_vm8, 4294967295, %v22982_v13  ;;  %22991 = vst [vmem:[#allocation139_spill] sm:$0xff] %v22990_v9 }
 0x398   :  { %3958 = vmax.xlane.f32.xlu1 %v19984_v16  ;;  %22984 = vst [vmem:[#allocation136_spill] sm:$0xff] %v22983_v13  ;;  %v22985_v22 = vmov 0  ;;  %v3745_v44 = vadd.s32 80, %v19891_v29  ;;  %v20007_v3 = vsel %vm19988_vm8, %v15606_v45, -1e+30  ;;  %v23002_v15 = vmov 0 }
 0x399   :  { %v3539_v56 = vadd.f32 %v19867_v8, %v14946_v11  ;;  %v22986_v22 = vsel %vm20000_vm9, 4294967295, %v22985_v22  ;;  %v3746_v11 = vadd.s32 88, %v19891_v29 }
 0x39a   :  { %3960 = vmax.xlane.f32.xlu0 %v19996_v20  ;;  %22987 = vst [vmem:[#allocation137_spill] sm:$0xff] %v22986_v22  ;;  %vm20024_vm11 = vcmp.le.s32.totalorder %v19902_v7, %v3745_v44  ;;  %v3748_v44 = vadd.s32 104, %v19891_v29 }
 0x39b   :  { %v14947_v63 = vpop.f32.mrb[168].mxu0  ;;  %v15609_v2 = vpop.f32.mrb[168].mxu1  ;;  %v20009_v8 = vpack.c.bf16 %v3539_v56, %v3536_v21  ;;  %vm20036_vm12 = vcmp.le.s32.totalorder %v19902_v7, %v3746_v11 }
 0x39c   :  { %3962 = vmax.xlane.f32.xlu1 %v20007_v3  ;;  %v14948_v12 = vpop.f32.mrb[169].mxu0  ;;  %v3901_v35 = vpop.f32.mrb[169].mxu1  ;;  %v20044_v49 = vsel %vm20024_vm11, %v15609_v2, -1e+30  ;;  %vm20061_vm14 = vcmp.le.s32.totalorder %v19902_v7, %v3748_v44 }
 0x39d   :  { %22988 = vst [vmem:[#allocation138_spill] sm:$0xff] %v20009_v8  ;;  %v14949_v33 = vadd.f32 %v14948_v12, %v14947_v63  ;;  %v14950_v47 = vpop.f32.mrb[170].mxu0  ;;  %v15610_v34 = vpop.f32.mrb[170].mxu1  ;;  %v20020_v45 = vsel %vm20000_vm9, %v3901_v35, -1e+30  ;;  %v22992_v8 = vmov 0 }
 0x39e   :  { %3964 = vmax.xlane.f32.xlu0 %v20020_v45  ;;  %v14951_v21 = vpop.f32.mrb[171].mxu0  ;;  %v3904_v56 = vpop.f32.mrb[171].mxu1  ;;  %v22993_v8 = vsel %vm20024_vm11, 4294967295, %v22992_v8  ;;  %v22995_v35 = vmov 0  ;;  %v23003_v15 = vsel %vm20061_vm14, 4294967295, %v23002_v15 }
 0x39f   :  { %22994 = vst [vmem:[#allocation140_spill] sm:$0xff] %v22993_v8  ;;  %v3544_v13 = vadd.f32 %v14949_v33, %v19875_v48  ;;  %v14952_v63 = vadd.f32 %v14951_v21, %v14950_v47  ;;  %v20032_v12 = vsel %vm20013_vm10, %v3904_v56, -1e+30  ;;  %v22996_v35 = vsel %vm20036_vm12, 4294967295, %v22995_v35  ;;  %23004 = vst [vmem:[#allocation144_spill] sm:$0xff] %v23003_v15 }
 0x3a0   :  { %3966 = vmax.xlane.f32.xlu1 %v20032_v12  ;;  %22997 = vst [vmem:[#allocation141_spill] sm:$0xff] %v22996_v35  ;;  %v22998_v33 = vmov 0  ;;  %v3749_v48 = vadd.s32 112, %v19891_v29  ;;  %v20055_v21 = vsel %vm20036_vm12, %v15610_v34, -1e+30 }
 0x3a1   :  { %v3547_v22 = vadd.f32 %v14952_v63, %v19879_v5  ;;  %v22999_v33 = vsel %vm20048_vm13, 4294967295, %v22998_v33  ;;  %v3750_v63 = vadd.s32 120, %v19891_v29 }
 0x3a2   :  { %3968 = vmax.xlane.f32.xlu0 %v20044_v49  ;;  %23000 = vst [vmem:[#allocation142_spill] sm:$0xff] %v22999_v33  ;;  %vm20072_vm15 = vcmp.le.s32.totalorder %v19902_v7, %v3749_v48 }
 0x3a3   :  { %v14953_v47 = vpop.f32.mrb[172].mxu0  ;;  %v15613_v11 = vpop.f32.mrb[172].mxu1  ;;  %v20057_v5 = vpack.c.bf16 %v3547_v22, %v3544_v13  ;;  %vm20083_vm0 = vcmp.le.s32.totalorder %v19902_v7, %v3750_v63 }
 0x3a4   :  { %3970 = vmax.xlane.f32.xlu1 %v20055_v21  ;;  %v14954_v2 = vpop.f32.mrb[173].mxu0  ;;  %v3917_v56 = vpop.f32.mrb[173].mxu1  ;;  %v20090_v48 = vsel %vm20072_vm15, %v15613_v11, -1e+30  ;;  %v17971_v11 = vld [vmem:[#allocation7 + $0x4] ss:$12 sps:$4 sm:$0xff]  }
 0x3a5   :  { %23001 = vst [vmem:[#allocation143_spill] sm:$0xff] %v20057_v5  ;;  %v14955_v8 = vadd.f32 %v14954_v2, %v14953_v47  ;;  %v14956_v9 = vpop.f32.mrb[174].mxu0  ;;  %v15614_v27 = vpop.f32.mrb[174].mxu1  ;;  %v20068_v34 = vsel %vm20048_vm13, %v3917_v56, -1e+30  ;;  %v23005_v5 = vmov 0  ;;  %4309 = vmatprep.subr.bf16.mxu0 %v17971_v11 }
 0x3a6   :  { %3972 = vmax.xlane.f32.xlu0 %v20068_v34  ;;  %v14957_v13 = vpop.f32.mrb[175].mxu0  ;;  %v3920_v22 = vpop.f32.mrb[175].mxu1  ;;  %v23006_v5 = vsel %vm20072_vm15, 4294967295, %v23005_v5  ;;  %v23008_v2 = vmov 0  ;;  %vm23016_vm15 = vcmask 523264  }
 0x3a7   :  { %23007 = vst [vmem:[#allocation145_spill] sm:$0xff] %v23006_v5  ;;  %v3552_v44 = vadd.f32 %v19871_v50, %v14955_v8  ;;  %v14958_v35 = vadd.f32 %v14957_v13, %v14956_v9  ;;  %v20079_v47 = vsel %vm20061_vm14, %v3920_v22, -1e+30  ;;  %v23009_v2 = vsel %vm20083_vm0, 4294967295, %v23008_v2 }
 0x3a8   :  { %3974 = vmax.xlane.f32.xlu1 %v20079_v47  ;;  %23010 = vst [vmem:[#allocation146_spill] sm:$0xff] %v23009_v2  ;;  %v20095_v8 = vsel %vm20083_vm0, %v15614_v27, -1e+30  ;;  %vm23018_vm0 = vmmov %vm23016_vm15 }
 0x3a9   :  { %v3555_v56 = vadd.f32 %v19877_v31, %v14958_v35  ;;  %vm23019_vm13 = vmmov %vm23018_vm0 }
 0x3aa   :  { %3976 = vmax.xlane.f32.xlu0 %v20090_v48  ;;  %vm23020_vm14 = vmmov %vm23018_vm0 }
 0x3ab   :  { %v14959_v50 = vpop.f32.mrb[176].mxu0  ;;  %v20097_v9 = vpack.c.bf16 %v3555_v56, %v3552_v44  ;;  %vm23021_vm11 = vmmov %vm23018_vm0 }
 0x3ac   :  { %3978 = vmax.xlane.f32.xlu1 %v20095_v8  ;;  %v14960_v7 = vpop.f32.mrb[177].mxu0  ;;  %vm23042_vm12 = vmmov %vm23018_vm0 }
 0x3ad   :  { %23011 = vst [vmem:[#allocation147_spill] sm:$0xff] %v20097_v9  ;;  %v14961_v63 = vadd.f32 %v14960_v7, %v14959_v50  ;;  %v14962_v13 = vpop.f32.mrb[178].mxu0 }
 0x3ae   :  { %v14963_v22 = vpop.f32.mrb[179].mxu0 }
 0x3af   :  { %v3560_v31 = vadd.f32 %v14961_v63, %v19885_v28  ;;  %v14964_v35 = vadd.f32 %v14963_v22, %v14962_v13 }
 0x3b1   :  { %v3563_v29 = vadd.f32 %v14964_v35, %v19889_v58 }
 0x3b3   :  { %v14965_v5 = vpop.f32.mrb[180].mxu0  ;;  %v20102_v33 = vpack.c.bf16 %v3563_v29, %v3560_v31 }
 0x3b4   :  { %v14966_v27 = vpop.f32.mrb[181].mxu0 }
 0x3b5   :  { %23012 = vst [vmem:[#allocation148_spill] sm:$0xff] %v20102_v33  ;;  %v14967_v2 = vadd.f32 %v14966_v27, %v14965_v5  ;;  %v14968_v44 = vpop.f32.mrb[182].mxu0 }
 0x3b6   :  { %v14969_v56 = vpop.f32.mrb[183].mxu0 }
 0x3b7   :  { %v3568_v9 = vadd.f32 %v19881_v43, %v14967_v2  ;;  %v14970_v15 = vadd.f32 %v14969_v56, %v14968_v44 }
 0x3b9   :  { %v3571_v50 = vadd.f32 %v19887_v59, %v14970_v15 }
 0x3bb   :  { %v14971_v7 = vpop.f32.mrb[184].mxu0  ;;  %v20106_v38 = vpack.c.bf16 %v3571_v50, %v3568_v9 }
 0x3bc   :  { %v14972_v28 = vpop.f32.mrb[185].mxu0 }
 0x3bd   :  { %23013 = vst [vmem:[#allocation149_spill] sm:$0xff] %v20106_v38  ;;  %v14973_v63 = vadd.f32 %v14972_v28, %v14971_v7  ;;  %4601 = vrot.lane.b32.xlu1 %v19339_v61, %s19071_s2  ;;  %v14974_v58 = vpop.f32.mrb[186].mxu0  ;;  %v18004_v38 = vld [vmem:[#allocation7 + $0x110] ss:$12 sps:$4 sm:$0xff]  }
 0x3be   :  { %v14975_v29 = vpop.f32.mrb[187].mxu0 }
 0x3bf   :  { %v3576_v5 = vadd.f32 %v14973_v63, %v19897_v52  ;;  %v14976_v13 = vadd.f32 %v14975_v29, %v14974_v58 }
 0x3c0   :  { %4599 = vrot.lane.b32.xlu0 %v19323_v41, %s19071_s2 }
 0x3c1   :  { %v3579_v43 = vadd.f32 %v14976_v13, %v19904_v10 }
 0x3c3   :  { %v14977_v59 = vpop.f32.mrb[188].mxu0  ;;  %v20114_v15 = vpack.c.bf16 %v3579_v43, %v3576_v5 }
 0x3c4   :  { %4603 = vrot.lane.b32.xlu0 %v19355_v53, %s19071_s2  ;;  %v14978_v2 = vpop.f32.mrb[189].mxu0 }
 0x3c5   :  { %23014 = vst [vmem:[#allocation150_spill] sm:$0xff] %v20114_v15  ;;  %v14979_v9 = vadd.f32 %v14978_v2, %v14977_v59  ;;  %v14980_v22 = vpop.f32.mrb[190].mxu0  ;;  %v18002_v15 = vld [vmem:[#allocation7 + $0xe0] ss:$12 sps:$4 sm:$0xff]  }
 0x3c6   :  { %v14981_v61 = vpop.f32.mrb[191].mxu0 }
 0x3c7   :  { %v3584_v31 = vadd.f32 %v19893_v24, %v14979_v9  ;;  %v14982_v35 = vadd.f32 %v14981_v61, %v14980_v22 }
 0x3c9   :  { %v3587_v52 = vadd.f32 %v19899_v46, %v14982_v35 }
 0x3cb   :  { %v20120_v11 = vpack.c.bf16 %v3587_v52, %v3584_v31 }
 0x3cd   :  { %23015 = vst [vmem:[#allocation151_spill] sm:$0xff] %v20120_v11  ;;  %v18001_v11 = vld [vmem:[#allocation7 + $0xc8] ss:$12 sps:$4 sm:$0xff]  }
 0x41a   :  { %v3953_v41 = vpop.xlane.xlu1 %3952 }
 0x41b   :  { %v3982_v10 = vsub.f32 %v19924_v19, %v3953_v41  ;;  %v3949_v27 = vpop.xlane.xlu0 %3948 }
 0x41c   :  { %v3980_v44 = vsub.f32 %v19929_v32, %v3949_v27 }
 0x41d   :  { %v4000_v56 = vmul.f32 1.442695, %v3982_v10 }
 0x41e   :  { %v3996_v50 = vmul.f32 1.442695, %v3980_v44  ;;  %v3955_v53 = vpop.xlane.xlu1 %3954  ;;  %v17969_v44 = vld [vmem:[#allocation7] ss:$12 sps:$4 sm:$0xff]  }
 0x41f   :  { %18161 = vpow2.f32 %v4000_v56  ;;  %v3983_v7 = vsub.f32 %v19946_v55, %v3955_v53  ;;  %v3951_v28 = vpop.xlane.xlu0 %3950  ;;  %v17974_v53 = vld [vmem:[#allocation7 + $0x1c] ss:$12 sps:$4 sm:$0xff]  }
 0x420   :  { %v3981_v24 = vsub.f32 %v19953_v40, %v3951_v28  ;;  %18163 = vpow2.f32 %v3996_v50 }
 0x421   :  { %v4002_v63 = vmul.f32 1.442695, %v3983_v7 }
 0x422   :  { %v3998_v46 = vmul.f32 1.442695, %v3981_v24 }
 0x423   :  { %18165 = vpow2.f32 %v4002_v63  ;;  %v3957_v58 = vpop.xlane.xlu0 %3956  ;;  %v17972_v63 = vld [vmem:[#allocation7 + $0x18] ss:$12 sps:$4 sm:$0xff]  }
 0x424   :  { %18167 = vpow2.f32 %v3998_v46  ;;  %v3984_v19 = vsub.f32 %v19972_v14, %v3957_v58 }
 0x425   :  { %v3959_v29 = vpop.xlane.xlu1 %3958 }
 0x426   :  { %v4004_v5 = vmul.f32 1.442695, %v3984_v19  ;;  %v3985_v32 = vsub.f32 %v19984_v16, %v3959_v29  ;;  %v17977_v19 = vld [vmem:[#allocation7 + $0x34] ss:$12 sps:$4 sm:$0xff]  }
 0x427   :  { %v3961_v13 = vpop.xlane.xlu0 %3960 }
 0x428   :  { %v4006_v43 = vmul.f32 1.442695, %v3985_v32  ;;  %v3986_v59 = vsub.f32 %v19996_v20, %v3961_v13  ;;  %18169 = vpow2.f32 %v4004_v5 }
 0x429   :  { %v18162_v55 = vpop.eup %18161  ;;  %v3963_v2 = vpop.xlane.xlu1 %3962 }
 0x42a   :  { %18171 = vpow2.f32 %v4006_v43  ;;  %v4008_v40 = vmul.f32 1.442695, %v3986_v59  ;;  %v3987_v9 = vsub.f32 %v20007_v3, %v3963_v2  ;;  %4032 = vadd.xlane.f32.xlu0 %v18162_v55  ;;  %v18164_v61 = vpop.eup %18163  ;;  %v17975_v59 = vld [vmem:[#allocation7 + $0x30] ss:$12 sps:$4 sm:$0xff]  }
 0x42b   :  { %v3965_v22 = vpop.xlane.xlu0 %3964 }
 0x42c   :  { %18173 = vpow2.f32 %v4008_v40  ;;  %v4010_v14 = vmul.f32 1.442695, %v3987_v9  ;;  %v3988_v31 = vsub.f32 %v20020_v45, %v3965_v22  ;;  %v17980_v22 = vld [vmem:[#allocation7 + $0x4c] ss:$12 sps:$4 sm:$0xff]  }
 0x42d   :  { %v18166_v35 = vpop.eup %18165  ;;  %v3967_v16 = vpop.xlane.xlu1 %3966 }
 0x42e   :  { %v18168_v52 = vpop.eup %18167  ;;  %18175 = vpow2.f32 %v4010_v14  ;;  %v4012_v41 = vmul.f32 1.442695, %v3988_v31  ;;  %v3989_v20 = vsub.f32 %v20032_v12, %v3967_v16  ;;  %4028 = vadd.xlane.f32.xlu0 %v18164_v61  ;;  %4034 = vadd.xlane.f32.xlu1 %v18166_v35  ;;  %v4061_v50 = vpack.c.bf16 %v18166_v35, %v18162_v55 }
 0x42f   :  { %v3969_v10 = vpop.xlane.xlu0 %3968  ;;  %v4060_v27 = vpack.c.bf16 %v18168_v52, %v18164_v61 }
 0x430   :  { %v4014_v3 = vmul.f32 1.442695, %v3989_v20  ;;  %v3990_v56 = vsub.f32 %v20044_v49, %v3969_v10  ;;  %18177 = vpow2.f32 %v4012_v41 }
 0x431   :  { %15631 = vmatprep.mubr.bf16.mxu0 %v4060_v27  ;;  %v3971_v45 = vpop.xlane.xlu1 %3970 }
 0x432   :  { %18179 = vpow2.f32 %v4014_v3  ;;  %v4016_v7 = vmul.f32 1.442695, %v3990_v56  ;;  %v3991_v28 = vsub.f32 %v20055_v21, %v3971_v45  ;;  %15632 = vmatmul.mubr.bf16.vlgmr.msra.gmra.mrb[192].mxu0 %v4061_v50  ;;  %4030 = vadd.xlane.f32.xlu1 %v18168_v52  ;;  %v18170_v12 = vpop.eup %18169  ;;  %v17983_v45 = vld [vmem:[#allocation7 + $0x38] ss:$12 sps:$4 sm:$0xff]  }
 0x433   :  { %4310 = vmatpush1.bf16.msra.mxu0 %v17969_v44  ;;  %v3973_v24 = vpop.xlane.xlu0 %3972 }
 0x434   :  { %v18172_v46 = vpop.eup %18171  ;;  %18181 = vpow2.f32 %v4016_v7  ;;  %v4018_v58 = vmul.f32 1.442695, %v3991_v28  ;;  %v3992_v49 = vsub.f32 %v20068_v34, %v3973_v24  ;;  %4311 = vmatprep.subr.bf16.mxu0 %v17974_v53  ;;  %v17981_v53 = vld [vmem:[#allocation7 + $0x8] ss:$12 sps:$4 sm:$0xff]   ;;  %v17984_v7 = vld [vmem:[#allocation7 + $0x50] ss:$12 sps:$4 sm:$0xff]  }
 0x435   :  { %v3975_v29 = vpop.xlane.xlu1 %3974  ;;  %v4062_v5 = vpack.c.bf16 %v18172_v46, %v18170_v12  ;;  %15647 = vmatprep.subr.bf16.mxu1 %v17981_v53 }
 0x436   :  { %v18174_v32 = vpop.eup %18173  ;;  %18183 = vpow2.f32 %v4018_v58  ;;  %v4020_v13 = vmul.f32 1.442695, %v3992_v49  ;;  %v3993_v21 = vsub.f32 %v20079_v47, %v3975_v29  ;;  %v17978_v47 = vld [vmem:[#allocation7 + $0x48] ss:$12 sps:$4 sm:$0xff]  }
 0x437   :  { %4312 = vmatpush1.bf16.msra.mxu0 %v17972_v63  ;;  %15635 = vmatprep.mubr.bf16.mxu0 %v4062_v5  ;;  %v3977_v43 = vpop.xlane.xlu0 %3976 }
 0x438   :  { %v18176_v55 = vpop.eup %18175  ;;  %v4022_v2 = vmul.f32 1.442695, %v3993_v21  ;;  %4040 = vadd.xlane.f32.xlu0 %v18174_v32  ;;  %v3994_v40 = vsub.f32 %v20090_v48, %v3977_v43  ;;  %4313 = vmatprep.subr.bf16.mxu0 %v17977_v19  ;;  %18185 = vpow2.f32 %v4020_v13 }
 0x439   :  { %v3979_v34 = vpop.xlane.xlu1 %3978  ;;  %v4063_v9 = vpack.c.bf16 %v18176_v55, %v18174_v32 }
 0x43a   :  { %18187 = vpow2.f32 %v4022_v2  ;;  %v4024_v61 = vmul.f32 1.442695, %v3994_v40  ;;  %v3995_v14 = vsub.f32 %v20095_v8, %v3979_v34  ;;  %v18178_v31 = vpop.eup %18177 }
 0x43b   :  { %4314 = vmatpush1.bf16.msra.mxu0 %v17975_v59  ;;  %v20139_v41 = vpop.permute.xlu0 %4599 }
 0x43c   :  { %v18180_v35 = vpop.eup %18179  ;;  %v4026_v16 = vmul.f32 1.442695, %v3995_v14  ;;  %15636 = vmatmul.mubr.bf16.gmra.mrb[196].mxu0 %v4063_v9  ;;  %4036 = vadd.xlane.f32.xlu0 %v18170_v12  ;;  %18189 = vpow2.f32 %v4024_v61  ;;  %v4640_v9 = vsel %vm23019_vm13, %v20139_v41, 0  ;;  %vm23023_vm13 = vmmov %vm23018_vm0 }
 0x43d   :  { %4315 = vmatprep.subr.bf16.mxu0 %v17980_v22  ;;  %v4064_v52 = vpack.c.bf16 %v18180_v35, %v18178_v31  ;;  %4341 = vmatprep.mubr.bf16.mxu0 %v22831_v62 }
 0x43e   :  { %v18182_v48 = vpop.eup %18181  ;;  %18191 = vpow2.f32 %v4026_v16 }
 0x43f   :  { %4316 = vmatpush1.bf16.msra.mxu0 %v17978_v47  ;;  %15639 = vmatprep.mubr.bf16.mxu1 %v4064_v52 }
 0x440   :  { %v18184_v20 = vpop.eup %18183  ;;  %4048 = vadd.xlane.f32.xlu0 %v18182_v48  ;;  %17495 = vmatprep.subr.msk.bf16.mxu0 %vm23016_vm15, %v20139_v41 }
 0x441   :  { %v4065_v8 = vpack.c.bf16 %v18184_v20, %v18182_v48 }
 0x442   :  { %v18186_v10 = vpop.eup %18185 }
 0x443   :  { %15640 = vmatmul.mubr.bf16.vlgmr.msra.gmra.mrb[176].mxu1 %v4065_v8  ;;  %4605 = vrot.lane.b32.xlu1 %v19371_v54, %s19071_s2  ;;  %v17982_v54 = vld [vmem:[#allocation7 + $0x20] ss:$12 sps:$4 sm:$0xff]  }
 0x444   :  { %v18188_v27 = vpop.eup %18187  ;;  %15648 = vmatpush3.bf16.msra.mxu1 %v17981_v53 }
 0x445   :  { %v4066_v44 = vpack.c.bf16 %v18188_v27, %v18186_v10  ;;  %15649 = vmatprep.subr.bf16.mxu1 %v17982_v54 }
 0x446   :  { %v18190_v3 = vpop.eup %18189 }
 0x447   :  { %15643 = vmatprep.mubr.bf16.mxu1 %v4066_v44 }
 0x448   :  { %v18192_v56 = vpop.eup %18191  ;;  %15650 = vmatpush3.bf16.msra.mxu1 %v17982_v54 }
 0x449   :  { %v4067_v50 = vpack.c.bf16 %v18192_v56, %v18190_v3  ;;  %15651 = vmatprep.subr.bf16.mxu1 %v17983_v45 }
 0x44b   :  { %15644 = vmatmul.mubr.bf16.gmra.mrb[180].mxu1 %v4067_v50 }
 0x44c   :  { %15652 = vmatpush3.bf16.msra.mxu1 %v17983_v45 }
 0x44d   :  { %15653 = vmatprep.subr.bf16.mxu1 %v17984_v7 }
 0x450   :  { %15654 = vmatpush3.bf16.msra.mxu1 %v17984_v7 }
 0x456   :  { %4607 = vrot.lane.b32.xlu0 %v19387_v42, %s19071_s2 }
 0x467   :  { %4042 = vadd.xlane.f32.xlu1 %v18176_v55 }
 0x46b   :  { %4038 = vadd.xlane.f32.xlu1 %v18172_v46 }
 0x46f   :  { %4044 = vadd.xlane.f32.xlu1 %v18178_v31 }
 0x473   :  { %4050 = vadd.xlane.f32.xlu1 %v18184_v20 }
 0x475   :  { %4056 = vadd.xlane.f32.xlu0 %v18190_v3 }
 0x477   :  { %4046 = vadd.xlane.f32.xlu1 %v18180_v35 }
 0x47b   :  { %4052 = vadd.xlane.f32.xlu1 %v18186_v10 }
 0x47f   :  { %4058 = vadd.xlane.f32.xlu1 %v18192_v56 }
 0x483   :  { %4054 = vadd.xlane.f32.xlu1 %v18188_v27 }
 0x48b   :  { %4611 = vrot.lane.b32.xlu0 %v19416_v23, %s19071_s2  ;;  %v23017_v23 = vld [vmem:[#allocation16_spill] sm:$0xff] }
 0x48f   :  { %4613 = vrot.lane.b32.xlu0 %v19430_v25, %s19071_s2  ;;  %v20181_v25 = vpop.permute.xlu0 %4603 }
 0x493   :  { %4575 = vrot.lane.b32.xlu0 %v19321_v39, %s19071_s2  ;;  %v20183_v39 = vpop.permute.xlu1 %4601 }
 0x494   :  { %4609 = vrot.lane.b32.xlu1 %v19401_v30, %s19071_s2 }
 0x497   :  { %4579 = vrot.lane.b32.xlu0 %v19353_v51, %s19071_s2 }
 0x498   :  { %4577 = vrot.lane.b32.xlu1 %v19337_v57, %s19071_s2 }
 0x49b   :  { %4583 = vrot.lane.b32.xlu0 %v22876_v18, %s19071_s2 }
 0x49c   :  { %4581 = vrot.lane.b32.xlu1 %v22875_v17, %s19071_s2 }
 0x49f   :  { %4587 = vrot.lane.b32.xlu0 %v22880_v0, %s19071_s2 }
 0x4a0   :  { %4585 = vrot.lane.b32.xlu1 %v22879_v60, %s19071_s2 }
 0x4a3   :  { %4904 = vrot.lane.b32.xlu0 %v19634_v36, %s19071_s2 }
 0x4a4   :  { %4589 = vrot.lane.b32.xlu1 %v22886_v1, %s19071_s2 }
 0x4a7   :  { %4908 = vrot.lane.b32.xlu0 %v19670_v6, %s19071_s2 }
 0x4a8   :  { %4906 = vrot.lane.b32.xlu1 %v19650_v37, %s19071_s2 }
 0x4ab   :  { %4910 = vrot.lane.b32.xlu0 %v19688_v26, %s19071_s2 }
 0x4ac   :  { %4914 = vrot.lane.b32.xlu1 %v19723_v4, %s19071_s2 }
 0x4af   :  { %4912 = vrot.lane.b32.xlu0 %v23017_v23, %s19071_s2 }
 0x4b7   :  { %v4033_v42 = vpop.xlane.xlu0 %4032 }
 0x4b8   :  { %18193 = vrcp.f32 %v4033_v42 }
 0x4bb   :  { %v4035_v57 = vpop.xlane.xlu1 %4034  ;;  %v4029_v30 = vpop.xlane.xlu0 %4028 }
 0x4bc   :  { %18195 = vrcp.f32 %v4029_v30 }
 0x4bd   :  { %18197 = vrcp.f32 %v4035_v57 }
 0x4bf   :  { %v4031_v51 = vpop.xlane.xlu1 %4030 }
 0x4c0   :  { %18199 = vrcp.f32 %v4031_v51 }
 0x4c2   :  { %v18194_v12 = vpop.eup %18193 }
 0x4c3   :  { %v20185_v18 = vpop.permute.xlu1 %4605 }
 0x4c5   :  { %v4041_v17 = vpop.xlane.xlu0 %4040 }
 0x4c6   :  { %18201 = vrcp.f32 %v4041_v17  ;;  %v18196_v63 = vpop.eup %18195 }
 0x4c7   :  { %v18198_v49 = vpop.eup %18197 }
 0x4c9   :  { %v4037_v60 = vpop.xlane.xlu0 %4036 }
 0x4ca   :  { %18203 = vrcp.f32 %v4037_v60  ;;  %v18200_v29 = vpop.eup %18199 }
 0x4cd   :  { %v4049_v36 = vpop.xlane.xlu0 %4048 }
 0x4d0   :  { %v18202_v61 = vpop.eup %18201 }
 0x4d1   :  { %v20187_v6 = vpop.permute.xlu0 %4607 }
 0x4d4   :  { %v18204_v31 = vpop.eup %18203 }
 0x4f4   :  { %v4043_v0 = vpop.xlane.xlu1 %4042 }
 0x4f5   :  { %18205 = vrcp.f32 %v4043_v0 }
 0x4f8   :  { %v4039_v1 = vpop.xlane.xlu1 %4038 }
 0x4f9   :  { %18207 = vrcp.f32 %v4039_v1 }
 0x4fa   :  { %18209 = vrcp.f32 %v4049_v36 }
 0x4fc   :  { %v4045_v37 = vpop.xlane.xlu1 %4044 }
 0x4fd   :  { %18211 = vrcp.f32 %v4045_v37 }
 0x4ff   :  { %v18206_v16 = vpop.eup %18205 }
 0x500   :  { %v4051_v26 = vpop.xlane.xlu1 %4050 }
 0x501   :  { %18213 = vrcp.f32 %v4051_v26 }
 0x502   :  { %v4057_v4 = vpop.xlane.xlu0 %4056 }
 0x503   :  { %v18208_v48 = vpop.eup %18207 }
 0x504   :  { %v4047_v28 = vpop.xlane.xlu1 %4046  ;;  %v18210_v54 = vpop.eup %18209 }
 0x505   :  { %v15633_v24 = vpop.f32.mrb[192].mxu0  ;;  %18215 = vrcp.f32 %v4047_v28 }
 0x506   :  { %v20189_v46 = vpop.permute.xlu0 %4611  ;;  %v4102_v58 = vpop.f32.mrb[193].mxu0  ;;  %v4183_v5 = vmul.f32 %v18194_v12, %v15633_v24  ;;  %18217 = vrcp.f32 %v4057_v4 }
 0x507   :  { %v15634_v19 = vpop.f32.mrb[194].mxu0  ;;  %v4181_v43 = vmul.f32 %v18196_v63, %v4102_v58  ;;  %v18212_v23 = vpop.eup %18211 }
 0x508   :  { %v4184_v32 = vmul.f32 %v18198_v49, %v15634_v19  ;;  %v4053_v13 = vpop.xlane.xlu1 %4052  ;;  %v4105_v21 = vpop.f32.mrb[195].mxu0 }
 0x509   :  { %v4182_v59 = vmul.f32 %v18200_v29, %v4105_v21  ;;  %18219 = vrcp.f32 %v4053_v13 }
 0x50a   :  { %v4198_v55 = vpack.c.bf16 %v4184_v32, %v4183_v5  ;;  %v20191_v2 = vpop.permute.xlu0 %4613 }
 0x50b   :  { %v4197_v40 = vpack.c.bf16 %v4182_v59, %v4181_v43  ;;  %v18214_v57 = vpop.eup %18213 }
 0x50c   :  { %v4059_v34 = vpop.xlane.xlu1 %4058 }
 0x50d   :  { %14331 = vmatmul.mubr.msk.bf16.vlgmr.msra.gmra.mrb[200].mxu0 %vm23016_vm15, %v4197_v40  ;;  %15655 = vmatprep.mubr.msk.bf16.mxu1 %vm23018_vm0, %v4197_v40  ;;  %18221 = vrcp.f32 %v4059_v34  ;;  %vm23025_vm15 = vmmov %vm23018_vm0 }
 0x50e   :  { %v20197_v22 = vpop.permute.xlu0 %4575  ;;  %15672 = vmatpush3.bf16.xpose.msra.mxu0 %v4640_v9  ;;  %15656 = vmatmul.mubr.msk.bf16.vlgmr.msra.gmra.mrb[184].mxu1 %vm23020_vm14, %v4198_v55  ;;  %vm23024_vm14 = vmmov %vm23018_vm0 }
 0x50f   :  { %v15637_v14 = vpop.f32.mrb[196].mxu0  ;;  %17496 = vmatprep.subr.msk.bf16.mxu0 %vm23021_vm11, %v20183_v39  ;;  %4351 = vmatprep.mubr.bf16.mxu0 %v22831_v62  ;;  %vm23022_vm11 = vmmov %vm23018_vm0  ;;  %v18216_v51 = vpop.eup %18215 }
 0x510   :  { %v4118_v47 = vpop.f32.mrb[197].mxu0  ;;  %v4055_v35 = vpop.xlane.xlu1 %4054  ;;  %v4187_v41 = vmul.f32 %v18202_v61, %v15637_v14  ;;  %v4643_v53 = vsel %vm23022_vm11, %v20183_v39, 0  ;;  %vm23026_vm11 = vmmov %vm23018_vm0 }
 0x511   :  { %v15638_v52 = vpop.f32.mrb[198].mxu0  ;;  %v4185_v27 = vmul.f32 %v18204_v31, %v4118_v47  ;;  %18223 = vrcp.f32 %v4055_v35  ;;  %v4646_v12 = vsel %vm23026_vm11, %v20181_v25, 0  ;;  %v18218_v24 = vpop.eup %18217  ;;  %vm23030_vm11 = vmmov %vm23018_vm0 }
 0x512   :  { %v4188_v20 = vmul.f32 %v18206_v16, %v15638_v52  ;;  %v20203_v8 = vpop.permute.xlu0 %4579  ;;  %v4121_v10 = vpop.f32.mrb[199].mxu0  ;;  %v4649_v61 = vsel %vm23030_vm11, %v20185_v18, 0  ;;  %vm23034_vm11 = vmmov %vm23018_vm0 }
 0x513   :  { %v4186_v44 = vmul.f32 %v18208_v48, %v4121_v10  ;;  %v18220_v49 = vpop.eup %18219  ;;  %v17987_v48 = vld [vmem:[#allocation7 + $0x64] ss:$12 sps:$4 sm:$0xff]   ;;  %v17990_v10 = vld [vmem:[#allocation7 + $0x7c] ss:$12 sps:$4 sm:$0xff]  }
 0x514   :  { %v4200_v3 = vpack.c.bf16 %v4188_v20, %v4187_v41  ;;  %v20205_v56 = vpop.permute.xlu1 %4609  ;;  %v4661_v41 = vsel %vm23018_vm0, %v20191_v2, 0  ;;  %v17985_v20 = vld [vmem:[#allocation7 + $0x60] ss:$12 sps:$4 sm:$0xff]  }
 0x515   :  { %v4199_v50 = vpack.c.bf16 %v4186_v44, %v4185_v27  ;;  %14332 = vmatmul.mubr.msk.bf16.gmra.mrb[204].mxu0 %vm23018_vm0, %v4198_v55  ;;  %v17993_v27 = vld [vmem:[#allocation7 + $0x94] ss:$12 sps:$4 sm:$0xff]   ;;  %v17991_v44 = vld [vmem:[#allocation7 + $0x90] ss:$12 sps:$4 sm:$0xff]  }
 0x516   :  { %v20210_v45 = vpop.permute.xlu0 %4583  ;;  %15674 = vmatpush3.bf16.xpose.msra.mxu0 %v4643_v53  ;;  %v15641_v7 = vpop.f32.mrb[176].mxu1  ;;  %4361 = vmatprep.mubr.bf16.mxu0 %v22831_v62 }
 0x517   :  { %15659 = vmatprep.mubr.msk.bf16.mxu1 %vm23023_vm13, %v4199_v50  ;;  %17497 = vmatprep.subr.msk.bf16.mxu0 %vm23024_vm14, %v20181_v25  ;;  %v4134_v42 = vpop.f32.mrb[177].mxu1  ;;  %v4191_v17 = vmul.f32 %v18210_v54, %v15641_v7  ;;  %vm23027_vm13 = vmmov %vm23018_vm0  ;;  %v18222_v29 = vpop.eup %18221 }
 0x518   :  { %15660 = vmatmul.mubr.msk.bf16.gmra.mrb[188].mxu1 %vm23025_vm15, %v4200_v3  ;;  %v15642_v39 = vpop.f32.mrb[178].mxu1  ;;  %v20217_v30 = vpop.permute.xlu1 %4577  ;;  %v4189_v36 = vmul.f32 %v18212_v23, %v4134_v42  ;;  %vm23028_vm14 = vmmov %vm23018_vm0 }
 0x519   :  { %v4192_v60 = vmul.f32 %v18214_v57, %v15642_v39  ;;  %v4137_v0 = vpop.f32.mrb[179].mxu1  ;;  %vm23029_vm15 = vmmov %vm23018_vm0 }
 0x51a   :  { %v20219_v1 = vpop.permute.xlu0 %4587  ;;  %v4190_v37 = vmul.f32 %v18216_v51, %v4137_v0 }
 0x51b   :  { %v4202_v26 = vpack.c.bf16 %v4192_v60, %v4191_v17  ;;  %v18224_v25 = vpop.eup %18223 }
 0x51c   :  { %v4201_v4 = vpack.c.bf16 %v4190_v37, %v4189_v36  ;;  %v20221_v28 = vpop.permute.xlu1 %4581 }
 0x51d   :  { %14333 = vmatmul.mubr.msk.bf16.gmra.mrb[208].mxu0 %vm23018_vm0, %v4199_v50 }
 0x51e   :  { %v4905_v63 = vpop.permute.xlu0 %4904  ;;  %15676 = vmatpush3.bf16.xpose.msra.mxu0 %v4646_v12  ;;  %v15645_v58 = vpop.f32.mrb[180].mxu1  ;;  %15663 = vmatprep.mubr.msk.bf16.mxu1 %vm23027_vm13, %v4201_v4  ;;  %vm23031_vm13 = vmmov %vm23018_vm0 }
 0x51f   :  { %17498 = vmatprep.subr.msk.bf16.mxu0 %vm23028_vm14, %v20185_v18  ;;  %15703 = vmatprep.subr.bf16.mxu1 %v4905_v63  ;;  %v4150_v19 = vpop.f32.mrb[181].mxu1  ;;  %v4195_v13 = vmul.f32 %v18218_v24, %v15645_v58  ;;  %vm23032_vm14 = vmmov %vm23018_vm0  ;;  %v4652_v18 = vsel %vm23034_vm11, %v20187_v6, 0 }
 0x520   :  { %15664 = vmatmul.mubr.msk.bf16.gmra.mrb[192].mxu1 %vm23029_vm15, %v4202_v26  ;;  %v15646_v5 = vpop.f32.mrb[182].mxu1  ;;  %v20230_v32 = vpop.permute.xlu1 %4585  ;;  %4371 = vmatprep.mubr.bf16.mxu0 %v22831_v62  ;;  %v4193_v59 = vmul.f32 %v18220_v49, %v4150_v19  ;;  %vm23033_vm15 = vmmov %vm23018_vm0 }
 0x521   :  { %15704 = vmatpush3.bf16.msra.mxu1 %v4905_v63  ;;  %v4196_v21 = vmul.f32 %v18222_v29, %v15646_v5  ;;  %v4153_v43 = vpop.f32.mrb[183].mxu1  ;;  %vm23038_vm11 = vmmov %vm23018_vm0  ;;  %v23055_v63 = vld [vmem:[#allocation28_spill] sm:$0xff] }
 0x522   :  { %v4194_v55 = vmul.f32 %v18224_v25, %v4153_v43  ;;  %v4909_v14 = vpop.permute.xlu0 %4908  ;;  %v23060_v43 = vld [vmem:[#allocation139_spill] sm:$0xff] }
 0x523   :  { %v4204_v40 = vpack.c.bf16 %v4196_v21, %v4195_v13 }
 0x524   :  { %v4203_v34 = vpack.c.bf16 %v4194_v55, %v4193_v59  ;;  %v20233_v9 = vpop.permute.xlu1 %4589  ;;  %v23061_v55 = vld [vmem:[#allocation137_spill] sm:$0xff] }
 0x525   :  { %14334 = vmatmul.mubr.msk.bf16.gmra.mrb[212].mxu0 %vm23018_vm0, %v4200_v3  ;;  %v23047_v3 = vld [vmem:[#allocation30_spill] sm:$0xff] }
 0x526   :  { %15678 = vmatpush3.bf16.xpose.msra.mxu0 %v4649_v61  ;;  %15667 = vmatprep.mubr.msk.bf16.mxu1 %vm23031_vm13, %v4203_v34  ;;  %v4911_v47 = vpop.permute.xlu0 %4910  ;;  %vm23035_vm13 = vmmov %vm23018_vm0  ;;  %v23064_v61 = vld [vmem:[#allocation140_spill] sm:$0xff] }
 0x527   :  { %17499 = vmatprep.subr.msk.bf16.mxu0 %vm23032_vm14, %v20187_v6  ;;  %4381 = vmatprep.mubr.bf16.mxu0 %v22831_v62  ;;  %vm23036_vm14 = vmmov %vm23018_vm0 }
 0x528   :  { %15668 = vmatmul.mubr.msk.bf16.gmra.mrb[196].mxu1 %vm23033_vm15, %v4204_v40  ;;  %v4907_v31 = vpop.permute.xlu1 %4906  ;;  %vm23037_vm15 = vmmov %vm23018_vm0 }
 0x529   :  { %15705 = vmatprep.subr.bf16.mxu1 %v4907_v31  ;;  %v4655_v16 = vsel %vm23037_vm15, %v20205_v56, 0  ;;  %vm23041_vm15 = vmmov %vm23018_vm0 }
 0x52a   :  { %15706 = vmatpush3.bf16.msra.mxu1 %v4907_v31  ;;  %v4913_v35 = vpop.permute.xlu0 %4912  ;;  %v23066_v31 = vld [vmem:[#allocation144_spill] sm:$0xff] }
 0x52b   :  { %15707 = vmatprep.subr.bf16.mxu1 %v4909_v14 }
 0x52c   :  { %v4915_v52 = vpop.permute.xlu1 %4914 }
 0x52d   :  { %14335 = vmatmul.mubr.msk.bf16.gmra.mrb[216].mxu0 %vm23018_vm0, %v4201_v4 }
 0x52e   :  { %15680 = vmatpush3.bf16.xpose.msra.mxu0 %v4652_v18  ;;  %15708 = vmatpush3.bf16.msra.mxu1 %v4909_v14  ;;  %v23068_v18 = vld [vmem:[#allocation142_spill] sm:$0xff] }
 0x52f   :  { %17500 = vmatprep.subr.msk.bf16.mxu0 %vm23035_vm13, %v20205_v56  ;;  %15709 = vmatprep.subr.bf16.mxu1 %v4911_v47  ;;  %vm23039_vm13 = vmmov %vm23018_vm0 }
 0x530   :  { %4391 = vmatprep.mubr.bf16.mxu0 %v22831_v62  ;;  %v4658_v6 = vsel %vm23039_vm13, %v20189_v46, 0  ;;  %vm23044_vm13 = vmmov %vm23018_vm0 }
 0x532   :  { %15710 = vmatpush3.bf16.msra.mxu1 %v4911_v47 }
 0x533   :  { %15711 = vmatprep.subr.bf16.mxu1 %v4913_v35 }
 0x535   :  { %14336 = vmatmul.mubr.msk.bf16.gmra.mrb[220].mxu0 %vm23036_vm14, %v4202_v26  ;;  %vm23040_vm14 = vmmov %vm23018_vm0 }
 0x536   :  { %15682 = vmatpush3.bf16.xpose.msra.mxu0 %v4655_v16  ;;  %15712 = vmatpush3.bf16.msra.mxu1 %v4913_v35  ;;  %v23070_v16 = vld [vmem:[#allocation146_spill] sm:$0xff] }
 0x537   :  { %17501 = vmatprep.subr.msk.bf16.mxu0 %vm23018_vm0, %v20189_v46  ;;  %15713 = vmatprep.subr.bf16.mxu1 %v4915_v52  ;;  %v17988_v46 = vld [vmem:[#allocation7 + $0x78] ss:$12 sps:$4 sm:$0xff]  }
 0x538   :  { %4401 = vmatprep.mubr.bf16.mxu0 %v22831_v62 }
 0x53a   :  { %15714 = vmatpush3.bf16.msra.mxu1 %v4915_v52 }
 0x53d   :  { %14337 = vmatmul.mubr.msk.bf16.gmra.mrb[224].mxu0 %vm23038_vm11, %v4203_v34  ;;  %vm23043_vm11 = vmmov %vm23018_vm0  ;;  %v23062_v34 = vld [vmem:[#allocation141_spill] sm:$0xff] }
 0x53e   :  { %15684 = vmatpush3.bf16.xpose.msra.mxu0 %v4658_v6  ;;  %4411 = vmatprep.mubr.bf16.mxu0 %v22831_v62  ;;  %v23072_v6 = vld [vmem:[#allocation145_spill] sm:$0xff] }
 0x53f   :  { %17502 = vmatprep.subr.msk.bf16.mxu0 %vm23040_vm14, %v20191_v2  ;;  %v17996_v2 = vld [vmem:[#allocation7 + $0xac] ss:$12 sps:$4 sm:$0xff]   ;;  %vm23045_vm14 = vmmov %vm23018_vm0 }
 0x545   :  { %14338 = vmatmul.mubr.msk.bf16.gmra.mrb[228].mxu0 %vm23041_vm15, %v4204_v40  ;;  %vm23048_vm15 = vmmov %vm23018_vm0 }
 0x546   :  { %15686 = vmatpush3.bf16.xpose.msra.mxu0 %v4661_v41  ;;  %15687 = vmatprep.mubr.msk.bf16.mxu0 %vm23042_vm12, %v20197_v22  ;;  %vm23046_vm12 = vmmov %vm23018_vm0  ;;  %v17994_v22 = vld [vmem:[#allocation7 + $0xa8] ss:$12 sps:$4 sm:$0xff]  }
 0x547   :  { %5169 = vmatprep.subr.bf16.mxu0 %v17987_v48 }
 0x54d   :  { %15688 = vmatmul.mubr.msk.bf16.vlgmr.msra.gmra.mrb[232].mxu0 %vm23043_vm11, %v20217_v30  ;;  %vm23049_vm11 = vmmov %vm23018_vm0 }
 0x54e   :  { %5170 = vmatpush1.bf16.msra.mxu0 %v17985_v20  ;;  %15691 = vmatprep.mubr.msk.bf16.mxu0 %vm23044_vm13, %v20203_v8  ;;  %vm23063_vm13 = vnez %v23062_v34 }
 0x54f   :  { %5171 = vmatprep.subr.bf16.mxu0 %v17990_v10 }
 0x552   :  { %5172 = vmatpush1.bf16.msra.mxu0 %v17988_v46 }
 0x553   :  { %5173 = vmatprep.subr.bf16.mxu0 %v17993_v27 }
 0x555   :  { %15692 = vmatmul.mubr.msk.bf16.gmra.mrb[236].mxu0 %vm23045_vm14, %v20221_v28  ;;  %v23054_v28 = vld [vmem:[#allocation20_spill] sm:$0xff]  ;;  %vm23065_vm14 = vnez %v23064_v61 }
 0x556   :  { %5174 = vmatpush1.bf16.msra.mxu0 %v17991_v44  ;;  %15695 = vmatprep.mubr.msk.bf16.mxu0 %vm23046_vm12, %v20210_v45  ;;  %vm23067_vm12 = vnez %v23066_v31 }
 0x557   :  { %5175 = vmatprep.subr.bf16.mxu0 %v17996_v2 }
 0x55a   :  { %5176 = vmatpush1.bf16.msra.mxu0 %v17994_v22 }
 0x55b   :  { %15791 = vmatprep.subr.bf16.mxu0 %v23047_v3 }
 0x55d   :  { %15696 = vmatmul.mubr.msk.bf16.gmra.mrb[240].mxu0 %vm23048_vm15, %v20230_v32  ;;  %vm23069_vm15 = vnez %v23068_v18 }
 0x55e   :  { %15699 = vmatprep.mubr.msk.bf16.mxu0 %vm23018_vm0, %v20219_v1  ;;  %vm23071_vm0 = vnez %v23070_v16 }
 0x565   :  { %15700 = vmatmul.mubr.msk.bf16.gmra.mrb[244].mxu0 %vm23049_vm11, %v20233_v9  ;;  %vm23073_vm11 = vnez %v23072_v6 }
 0x566   :  { %5201 = vmatprep.mubr.bf16.mxu0 %v22831_v62 }
 0x620   :  { %v15689_v8 = vpop.f32.mrb[232].mxu0 }
 0x621   :  { %v4697_v56 = vpop.f32.mrb[233].mxu0  ;;  %v4762_v53 = vsel %vm19908_vm1, %v15689_v8, -1e+30 }
 0x622   :  { %4780 = vmax.xlane.f32.xlu1 %v4762_v53  ;;  %v15690_v54 = vpop.f32.mrb[234].mxu0  ;;  %v4760_v7 = vsel %vm19915_vm2, %v4697_v56, -1e+30 }
 0x623   :  { %4776 = vmax.xlane.f32.xlu0 %v4760_v7  ;;  %v4700_v23 = vpop.f32.mrb[235].mxu0  ;;  %v4763_v57 = vsel %vm19932_vm3, %v15690_v54, -1e+30 }
 0x624   :  { %v4761_v17 = vsel %vm19938_vm4, %v4700_v23, -1e+30 }
 0x626   :  { %4782 = vmax.xlane.f32.xlu1 %v4763_v57 }
 0x628   :  { %v15693_v39 = vpop.f32.mrb[236].mxu0 }
 0x629   :  { %v4713_v30 = vpop.f32.mrb[237].mxu0  ;;  %v20301_v5 = vsel %vm19976_vm7, %v15693_v39, -1e+30 }
 0x62a   :  { %4778 = vmax.xlane.f32.xlu1 %v4761_v17  ;;  %v15694_v60 = vpop.f32.mrb[238].mxu0  ;;  %v20296_v19 = vsel %vm19957_vm5, %v4713_v30, -1e+30  ;;  %v17997_v30 = vld [vmem:[#allocation7 + $0x68] ss:$12 sps:$4 sm:$0xff]  }
 0x62b   :  { %v4716_v0 = vpop.f32.mrb[239].mxu0  ;;  %v20311_v21 = vsel %vm19988_vm8, %v15694_v60, -1e+30 }
 0x62c   :  { %v20306_v25 = vsel %vm19965_vm6, %v4716_v0, -1e+30 }
 0x630   :  { %v15697_v36 = vpop.f32.mrb[240].mxu0 }
 0x631   :  { %v4729_v1 = vpop.f32.mrb[241].mxu0  ;;  %v20331_v14 = vsel %vm23065_vm14, %v15697_v36, -1e+30 }
 0x632   :  { %v15698_v37 = vpop.f32.mrb[242].mxu0  ;;  %v20321_v40 = vsel %vm20000_vm9, %v4729_v1, -1e+30 }
 0x633   :  { %v4732_v26 = vpop.f32.mrb[243].mxu0  ;;  %v20326_v9 = vsel %vm23063_vm13, %v15698_v37, -1e+30  ;;  %v17998_v37 = vld [vmem:[#allocation7 + $0x80] ss:$12 sps:$4 sm:$0xff]  }
 0x634   :  { %v20316_v59 = vsel %vm20013_vm10, %v4732_v26, -1e+30  ;;  %v18000_v26 = vld [vmem:[#allocation7 + $0xb0] ss:$12 sps:$4 sm:$0xff]  }
 0x638   :  { %v15701_v4 = vpop.f32.mrb[244].mxu0 }
 0x639   :  { %4916 = vrot.lane.b32.xlu0 %v23054_v28, %s19071_s2  ;;  %v4745_v12 = vpop.f32.mrb[245].mxu0  ;;  %v20351_v48 = vsel %vm23073_vm11, %v15701_v4, -1e+30  ;;  %v23074_v4 = vld [vmem:[#allocation12_spill] sm:$0xff] }
 0x63a   :  { %v15702_v24 = vpop.f32.mrb[246].mxu0  ;;  %v20341_v35 = vsel %vm23069_vm15, %v4745_v12, -1e+30 }
 0x63b   :  { %4918 = vrot.lane.b32.xlu1 %v23055_v63, %s19071_s2  ;;  %v4748_v58 = vpop.f32.mrb[247].mxu0  ;;  %v20346_v52 = vsel %vm23071_vm0, %v15702_v24, -1e+30  ;;  %vm23075_vm0 = vcmask 523264  }
 0x63c   :  { %v20336_v47 = vsel %vm23067_vm12, %v4748_v58, -1e+30  ;;  %vm23076_vm11 = vmmov %vm23075_vm0 }
 0x63d   :  { %vm23077_vm12 = vmmov %vm23075_vm0 }
 0x63e   :  { %vm23078_vm15 = vmmov %vm23075_vm0 }
 0x63f   :  { %vm23081_vm13 = vmmov %vm23075_vm0 }
 0x640   :  { %vm23116_vm14 = vmmov %vm23075_vm0 }
 0x641   :  { %vm23118_vm10 = vmmov %vm23075_vm0 }
 0x658   :  { %4784 = vmax.xlane.f32.xlu0 %v20296_v19 }
 0x65c   :  { %4788 = vmax.xlane.f32.xlu0 %v20301_v5 }
 0x65f   :  { %4786 = vmax.xlane.f32.xlu1 %v20306_v25 }
 0x660   :  { %4790 = vmax.xlane.f32.xlu0 %v20311_v21 }
 0x663   :  { %4794 = vmax.xlane.f32.xlu1 %v20316_v59 }
 0x664   :  { %4792 = vmax.xlane.f32.xlu0 %v20321_v40 }
 0x667   :  { %4798 = vmax.xlane.f32.xlu1 %v20326_v9 }
 0x668   :  { %4796 = vmax.xlane.f32.xlu0 %v20331_v14 }
 0x66b   :  { %4802 = vmax.xlane.f32.xlu1 %v20336_v47 }
 0x66c   :  { %4800 = vmax.xlane.f32.xlu0 %v20341_v35 }
 0x66f   :  { %4806 = vmax.xlane.f32.xlu1 %v20346_v52 }
 0x670   :  { %4804 = vmax.xlane.f32.xlu0 %v20351_v48 }
 0x6af   :  { %v4781_v41 = vpop.xlane.xlu1 %4780 }
 0x6b0   :  { %v4777_v20 = vpop.xlane.xlu0 %4776  ;;  %v4810_v10 = vsub.f32 %v4762_v53, %v4781_v41 }
 0x6b1   :  { %v4808_v46 = vsub.f32 %v4760_v7, %v4777_v20 }
 0x6b2   :  { %v4828_v8 = vmul.f32 1.442695, %v4810_v10 }
 0x6b3   :  { %v4824_v27 = vmul.f32 1.442695, %v4808_v46  ;;  %v4783_v44 = vpop.xlane.xlu1 %4782 }
 0x6b4   :  { %v4811_v2 = vsub.f32 %v4763_v57, %v4783_v44  ;;  %v4917_v22 = vpop.permute.xlu0 %4916 }
 0x6b5   :  { %18225 = vpow2.f32 %v4824_v27  ;;  %15715 = vmatprep.subr.bf16.mxu1 %v4917_v22 }
 0x6b6   :  { %15716 = vmatpush3.bf16.msra.mxu1 %v4917_v22  ;;  %v4830_v56 = vmul.f32 1.442695, %v4811_v2  ;;  %18227 = vpow2.f32 %v4828_v8 }
 0x6b7   :  { %v4779_v54 = vpop.xlane.xlu1 %4778 }
 0x6b8   :  { %v4809_v23 = vsub.f32 %v4761_v17, %v4779_v54  ;;  %18229 = vpow2.f32 %v4830_v56  ;;  %v17999_v17 = vld [vmem:[#allocation7 + $0x98] ss:$12 sps:$4 sm:$0xff]  }
 0x6ba   :  { %v4826_v39 = vmul.f32 1.442695, %v4809_v23 }
 0x6bb   :  { %v4919_v60 = vpop.permute.xlu1 %4918 }
 0x6bc   :  { %18231 = vpow2.f32 %v4826_v39  ;;  %15717 = vmatprep.subr.bf16.mxu1 %v4919_v60 }
 0x6bd   :  { %15718 = vmatpush3.bf16.msra.mxu1 %v4919_v60 }
 0x6be   :  { %15735 = vmatprep.subr.bf16.mxu1 %v17997_v30 }
 0x6bf   :  { %v18226_v53 = vpop.eup %18225 }
 0x6c0   :  { %4856 = vadd.xlane.f32.xlu0 %v18226_v53  ;;  %v18228_v7 = vpop.eup %18227 }
 0x6c2   :  { %v18230_v57 = vpop.eup %18229 }
 0x6c3   :  { %v4889_v1 = vpack.c.bf16 %v18230_v57, %v18228_v7 }
 0x6c4   :  { %4860 = vadd.xlane.f32.xlu0 %v18228_v7 }
 0x6c6   :  { %v18232_v0 = vpop.eup %18231 }
 0x6c7   :  { %4858 = vadd.xlane.f32.xlu1 %v18232_v0  ;;  %v4888_v36 = vpack.c.bf16 %v18232_v0, %v18226_v53 }
 0x6c9   :  { %15719 = vmatprep.mubr.bf16.mxu1 %v4888_v36 }
 0x6ca   :  { %15720 = vmatmul.mubr.bf16.vlgmr.msra.gmra.mrb[200].mxu1 %v4889_v1 }
 0x6cb   :  { %15736 = vmatpush3.bf16.msra.mxu1 %v17997_v30  ;;  %4862 = vadd.xlane.f32.xlu1 %v18230_v57 }
 0x6cc   :  { %15737 = vmatprep.subr.bf16.mxu1 %v17998_v37 }
 0x6cf   :  { %15738 = vmatpush3.bf16.msra.mxu1 %v17998_v37 }
 0x6d0   :  { %15739 = vmatprep.subr.bf16.mxu1 %v17999_v17 }
 0x6d3   :  { %15740 = vmatpush3.bf16.msra.mxu1 %v17999_v17 }
 0x6d4   :  { %15741 = vmatprep.subr.bf16.mxu1 %v18000_v26 }
 0x6d7   :  { %15742 = vmatpush3.bf16.msra.mxu1 %v18000_v26 }
 0x6d8   :  { %17503 = vmatprep.subr.msk.bf16.mxu1 %vm23075_vm0, %v23074_v4 }
 0x6e5   :  { %v4785_v28 = vpop.xlane.xlu0 %4784 }
 0x6e6   :  { %v4812_v12 = vsub.f32 %v20296_v19, %v4785_v28 }
 0x6e8   :  { %v4832_v24 = vmul.f32 1.442695, %v4812_v12 }
 0x6e9   :  { %v4789_v63 = vpop.xlane.xlu0 %4788 }
 0x6ea   :  { %18233 = vpow2.f32 %v4832_v24  ;;  %v4814_v58 = vsub.f32 %v20301_v5, %v4789_v63 }
 0x6ec   :  { %v4836_v41 = vmul.f32 1.442695, %v4814_v58  ;;  %v4787_v20 = vpop.xlane.xlu1 %4786 }
 0x6ed   :  { %v4813_v10 = vsub.f32 %v20306_v25, %v4787_v20  ;;  %v4791_v46 = vpop.xlane.xlu0 %4790 }
 0x6ee   :  { %18235 = vpow2.f32 %v4836_v41  ;;  %v4815_v27 = vsub.f32 %v20311_v21, %v4791_v46 }
 0x6ef   :  { %v4834_v44 = vmul.f32 1.442695, %v4813_v10 }
 0x6f0   :  { %v4838_v2 = vmul.f32 1.442695, %v4815_v27  ;;  %v4795_v22 = vpop.xlane.xlu1 %4794 }
 0x6f1   :  { %18237 = vpow2.f32 %v4834_v44  ;;  %v4817_v8 = vsub.f32 %v20316_v59, %v4795_v22  ;;  %v4793_v19 = vpop.xlane.xlu0 %4792 }
 0x6f2   :  { %18239 = vpow2.f32 %v4838_v2  ;;  %v4816_v56 = vsub.f32 %v20321_v40, %v4793_v19 }
 0x6f3   :  { %v4842_v54 = vmul.f32 1.442695, %v4817_v8 }
 0x6f4   :  { %v18234_v5 = vpop.eup %18233  ;;  %v4840_v23 = vmul.f32 1.442695, %v4816_v56  ;;  %v4799_v39 = vpop.xlane.xlu1 %4798 }
 0x6f5   :  { %18241 = vpow2.f32 %v4842_v54  ;;  %v4819_v25 = vsub.f32 %v20326_v9, %v4799_v39  ;;  %v4797_v30 = vpop.xlane.xlu0 %4796  ;;  %4864 = vadd.xlane.f32.xlu0 %v18234_v5 }
 0x6f6   :  { %18243 = vpow2.f32 %v4840_v23  ;;  %v4818_v21 = vsub.f32 %v20331_v14, %v4797_v30 }
 0x6f7   :  { %v4846_v60 = vmul.f32 1.442695, %v4819_v25 }
 0x6f8   :  { %v18236_v53 = vpop.eup %18235  ;;  %v4844_v7 = vmul.f32 1.442695, %v4818_v21  ;;  %v4803_v59 = vpop.xlane.xlu1 %4802 }
 0x6f9   :  { %18245 = vpow2.f32 %v4846_v60  ;;  %v4821_v57 = vsub.f32 %v20336_v47, %v4803_v59  ;;  %4868 = vadd.xlane.f32.xlu0 %v18236_v53  ;;  %v4801_v40 = vpop.xlane.xlu0 %4800 }
 0x6fa   :  { %18247 = vpow2.f32 %v4844_v7  ;;  %v4820_v0 = vsub.f32 %v20341_v35, %v4801_v40 }
 0x6fb   :  { %v18238_v36 = vpop.eup %18237  ;;  %v4850_v1 = vmul.f32 1.442695, %v4821_v57 }
 0x6fc   :  { %v18240_v9 = vpop.eup %18239  ;;  %v4848_v37 = vmul.f32 1.442695, %v4820_v0  ;;  %4866 = vadd.xlane.f32.xlu1 %v18238_v36  ;;  %v4807_v17 = vpop.xlane.xlu1 %4806  ;;  %v4890_v26 = vpack.c.bf16 %v18238_v36, %v18234_v5 }
 0x6fd   :  { %18249 = vpow2.f32 %v4850_v1  ;;  %v4823_v14 = vsub.f32 %v20346_v52, %v4807_v17  ;;  %v4805_v28 = vpop.xlane.xlu0 %4804  ;;  %v4891_v12 = vpack.c.bf16 %v18240_v9, %v18236_v53  ;;  %v5452_v1 = vsel %vm23078_vm15, %v23074_v4, 0  ;;  %v23082_v17 = vld [vmem:[#allocation39_spill] sm:$0xff]  ;;  %vm23089_vm15 = vmmov %vm23075_vm0 }
 0x6fe   :  { %18251 = vpow2.f32 %v4848_v37  ;;  %v4822_v47 = vsub.f32 %v20351_v48, %v4805_v28  ;;  %15723 = vmatprep.mubr.bf16.mxu1 %v4890_v26  ;;  %v23080_v37 = vld [vmem:[#allocation35_spill] sm:$0xff] }
 0x6ff   :  { %v18242_v24 = vpop.eup %18241  ;;  %v4854_v63 = vmul.f32 1.442695, %v4823_v14  ;;  %15724 = vmatmul.mubr.bf16.gmra.mrb[204].mxu1 %v4891_v12  ;;  %v23085_v14 = vld [vmem:[#allocation42_spill] sm:$0xff]  ;;  %v23086_v28 = vld [vmem:[#allocation87_spill] sm:$0xff] }
 0x700   :  { %v18244_v35 = vpop.eup %18243  ;;  %v4852_v58 = vmul.f32 1.442695, %v4822_v47  ;;  %4870 = vadd.xlane.f32.xlu1 %v18240_v9  ;;  %v23079_v9 = vld [vmem:[#allocation15_spill] sm:$0xff]  ;;  %v5458_v47 = vsel %vm23089_vm15, %v23086_v28, 0  ;;  %vm23099_vm15 = vmmov %vm23075_vm0 }
 0x701   :  { %18253 = vpow2.f32 %v4854_v63  ;;  %4872 = vadd.xlane.f32.xlu0 %v18244_v35  ;;  %v4892_v41 = vpack.c.bf16 %v18242_v24, %v18244_v35  ;;  %v23088_v12 = vld [vmem:[#allocation19_spill] sm:$0xff]  ;;  %v23091_v63 = vld [vmem:[#allocation93_spill] sm:$0xff] }
 0x702   :  { %18255 = vpow2.f32 %v4852_v58 }
 0x703   :  { %v18246_v20 = vpop.eup %18245  ;;  %15727 = vmatprep.mubr.bf16.mxu1 %v4892_v41  ;;  %v23092_v41 = vld [vmem:[#allocation24_spill] sm:$0xff] }
 0x704   :  { %v18248_v10 = vpop.eup %18247  ;;  %4874 = vadd.xlane.f32.xlu1 %v18242_v24  ;;  %v23090_v24 = vld [vmem:[#allocation45_spill] sm:$0xff] }
 0x705   :  { %4876 = vadd.xlane.f32.xlu0 %v18248_v10  ;;  %v4893_v52 = vpack.c.bf16 %v18246_v20, %v18248_v10 }
 0x707   :  { %v18250_v46 = vpop.eup %18249  ;;  %15728 = vmatmul.mubr.bf16.gmra.mrb[208].mxu1 %v4893_v52  ;;  %v23094_v52 = vld [vmem:[#allocation33_spill] sm:$0xff] }
 0x708   :  { %v18252_v48 = vpop.eup %18251  ;;  %4878 = vadd.xlane.f32.xlu1 %v18246_v20 }
 0x709   :  { %4880 = vadd.xlane.f32.xlu0 %v18252_v48  ;;  %v4894_v27 = vpack.c.bf16 %v18250_v46, %v18252_v48  ;;  %v23095_v48 = vld [vmem:[#allocation99_spill] sm:$0xff] }
 0x70b   :  { %v18254_v44 = vpop.eup %18253  ;;  %15731 = vmatprep.mubr.bf16.mxu1 %v4894_v27 }
 0x70c   :  { %v18256_v2 = vpop.eup %18255  ;;  %4882 = vadd.xlane.f32.xlu1 %v18250_v46 }
 0x70d   :  { %4884 = vadd.xlane.f32.xlu0 %v18256_v2  ;;  %v4895_v22 = vpack.c.bf16 %v18254_v44, %v18256_v2 }
 0x70f   :  { %15732 = vmatmul.mubr.bf16.gmra.mrb[212].mxu1 %v4895_v22  ;;  %v23098_v22 = vld [vmem:[#allocation105_spill] sm:$0xff] }
 0x710   :  { %4886 = vadd.xlane.f32.xlu1 %v18254_v44 }
 0x74d   :  { %v4857_v8 = vpop.xlane.xlu0 %4856 }
 0x74e   :  { %18257 = vrcp.f32 %v4857_v8 }
 0x751   :  { %v4861_v56 = vpop.xlane.xlu0 %4860 }
 0x752   :  { %18259 = vrcp.f32 %v4861_v56  ;;  %v5467_v56 = vsel %vm23075_vm0, %v23098_v22, 0 }
 0x754   :  { %v4859_v19 = vpop.xlane.xlu1 %4858 }
 0x758   :  { %v4863_v54 = vpop.xlane.xlu1 %4862  ;;  %v18258_v5 = vpop.eup %18257 }
 0x759   :  { %18261 = vrcp.f32 %v4863_v54 }
 0x75a   :  { %18263 = vrcp.f32 %v4859_v19 }
 0x75c   :  { %v18260_v39 = vpop.eup %18259 }
 0x763   :  { %v18262_v30 = vpop.eup %18261 }
 0x764   :  { %v18264_v60 = vpop.eup %18263 }
 0x782   :  { %v4865_v58 = vpop.xlane.xlu0 %4864 }
 0x783   :  { %18265 = vrcp.f32 %v4865_v58 }
 0x786   :  { %v4869_v46 = vpop.xlane.xlu0 %4868 }
 0x787   :  { %18267 = vrcp.f32 %v4869_v46 }
 0x789   :  { %v4867_v35 = vpop.xlane.xlu1 %4866 }
 0x78d   :  { %v4871_v10 = vpop.xlane.xlu1 %4870 }
 0x78e   :  { %v4873_v27 = vpop.xlane.xlu0 %4872  ;;  %18269 = vrcp.f32 %v4871_v10 }
 0x78f   :  { %18271 = vrcp.f32 %v4867_v35 }
 0x790   :  { %18273 = vrcp.f32 %v4873_v27 }
 0x791   :  { %v4875_v44 = vpop.xlane.xlu1 %4874 }
 0x792   :  { %v4877_v8 = vpop.xlane.xlu0 %4876 }
 0x793   :  { %18275 = vrcp.f32 %v4877_v8 }
 0x795   :  { %v4879_v19 = vpop.xlane.xlu1 %4878 }
 0x796   :  { %v4881_v54 = vpop.xlane.xlu0 %4880  ;;  %18277 = vrcp.f32 %v4879_v19 }
 0x797   :  { %18279 = vrcp.f32 %v4875_v44 }
 0x798   :  { %18281 = vrcp.f32 %v4881_v54 }
 0x79d   :  { %v15721_v23 = vpop.f32.mrb[200].mxu1 }
 0x79e   :  { %v4962_v25 = vpop.f32.mrb[201].mxu1  ;;  %v5043_v53 = vmul.f32 %v18260_v39, %v15721_v23  ;;  %v4883_v23 = vpop.xlane.xlu1 %4882 }
 0x79f   :  { %v15722_v21 = vpop.f32.mrb[202].mxu1  ;;  %v5041_v57 = vmul.f32 %v18258_v5, %v4962_v25  ;;  %v23100_v5 = vld [vmem:[#allocation23_spill] sm:$0xff]  ;;  %v18266_v39 = vpop.eup %18265 }
 0x7a0   :  { %v5044_v7 = vmul.f32 %v18262_v30, %v15722_v21  ;;  %v4965_v59 = vpop.f32.mrb[203].mxu1  ;;  %v18268_v30 = vpop.eup %18267 }
 0x7a1   :  { %v5042_v40 = vmul.f32 %v18264_v60, %v4965_v59  ;;  %v18270_v60 = vpop.eup %18269 }
 0x7a2   :  { %v5058_v0 = vpack.c.bf16 %v5044_v7, %v5043_v53  ;;  %v18272_v7 = vpop.eup %18271 }
 0x7a3   :  { %v5057_v36 = vpack.c.bf16 %v5042_v40, %v5041_v57  ;;  %v18274_v10 = vpop.eup %18273 }
 0x7a4   :  { %v18276_v27 = vpop.eup %18275 }
 0x7a5   :  { %14367 = vmatmul.mubr.msk.bf16.vlgmr.msra.gmra.mrb[200].mxu0 %vm23075_vm0, %v5057_v36  ;;  %15743 = vmatprep.mubr.msk.bf16.mxu1 %vm23076_vm11, %v5057_v36  ;;  %vm23083_vm11 = vmmov %vm23075_vm0 }
 0x7a6   :  { %15792 = vmatpush3.bf16.msra.mxu0 %v23047_v3  ;;  %15744 = vmatmul.mubr.msk.bf16.vlgmr.msra.gmra.mrb[184].mxu1 %vm23077_vm12, %v5058_v0  ;;  %vm23084_vm12 = vmmov %vm23075_vm0 }
 0x7a7   :  { %15760 = vmatpush3.bf16.xpose.msra.mxu1 %v5452_v1  ;;  %15793 = vmatprep.subr.bf16.mxu0 %v23079_v9  ;;  %v5455_v26 = vsel %vm23084_vm12, %v23080_v37, 0  ;;  %vm23096_vm12 = vmmov %vm23075_vm0 }
 0x7a8   :  { %17504 = vmatprep.subr.msk.bf16.mxu1 %vm23081_vm13, %v23080_v37  ;;  %5211 = vmatprep.mubr.bf16.mxu0 %v22831_v62  ;;  %vm23087_vm13 = vmmov %vm23075_vm0 }
 0x7aa   :  { %15794 = vmatpush3.bf16.msra.mxu0 %v23079_v9 }
 0x7ab   :  { %15795 = vmatprep.subr.bf16.mxu0 %v23082_v17 }
 0x7ad   :  { %14368 = vmatmul.mubr.msk.bf16.gmra.mrb[204].mxu0 %vm23083_vm11, %v5058_v0  ;;  %vm23093_vm11 = vmmov %vm23075_vm0  ;;  %v4885_v0 = vpop.xlane.xlu0 %4884 }
 0x7ae   :  { %15796 = vmatpush3.bf16.msra.mxu0 %v23082_v17  ;;  %5221 = vmatprep.mubr.bf16.mxu0 %v22831_v62  ;;  %v5461_v20 = vsel %vm23093_vm11, %v23091_v63, 0  ;;  %vm23101_vm11 = vmmov %vm23075_vm0  ;;  %18283 = vrcp.f32 %v4885_v0 }
 0x7af   :  { %15762 = vmatpush3.bf16.xpose.msra.mxu1 %v5455_v26  ;;  %15797 = vmatprep.subr.bf16.mxu0 %v23085_v14 }
 0x7b0   :  { %17505 = vmatprep.subr.msk.bf16.mxu1 %vm23087_vm13, %v23086_v28  ;;  %vm23097_vm13 = vmmov %vm23075_vm0 }
 0x7b1   :  { %v5464_v2 = vsel %vm23097_vm13, %v23095_v48, 0  ;;  %vm23104_vm13 = vmmov %vm23075_vm0 }
 0x7b2   :  { %15798 = vmatpush3.bf16.msra.mxu0 %v23085_v14 }
 0x7b3   :  { %15799 = vmatprep.subr.bf16.mxu0 %v23088_v12 }
 0x7b6   :  { %15800 = vmatpush3.bf16.msra.mxu0 %v23088_v12 }
 0x7b7   :  { %15764 = vmatpush3.bf16.xpose.msra.mxu1 %v5458_v47  ;;  %15801 = vmatprep.subr.bf16.mxu0 %v23090_v24  ;;  %v4887_v47 = vpop.xlane.xlu1 %4886 }
 0x7b8   :  { %17506 = vmatprep.subr.msk.bf16.mxu1 %vm23075_vm0, %v23091_v63  ;;  %18285 = vrcp.f32 %v4887_v47 }
 0x7b9   :  { %18287 = vrcp.f32 %v4883_v23 }
 0x7ba   :  { %15802 = vmatpush3.bf16.msra.mxu0 %v23090_v24 }
 0x7bb   :  { %15803 = vmatprep.subr.bf16.mxu0 %v23092_v41 }
 0x7be   :  { %15804 = vmatpush3.bf16.msra.mxu0 %v23092_v41 }
 0x7bf   :  { %15766 = vmatpush3.bf16.xpose.msra.mxu1 %v5461_v20  ;;  %15805 = vmatprep.subr.bf16.mxu0 %v23094_v52  ;;  %v23103_v20 = vld [vmem:[#allocation32_spill] sm:$0xff] }
 0x7c0   :  { %17507 = vmatprep.subr.msk.bf16.mxu1 %vm23096_vm12, %v23095_v48  ;;  %vm23102_vm12 = vmmov %vm23075_vm0 }
 0x7c1   :  { %v5470_v26 = vsel %vm23102_vm12, %v23100_v5, 0  ;;  %vm23107_vm12 = vmmov %vm23075_vm0 }
 0x7c2   :  { %15806 = vmatpush3.bf16.msra.mxu0 %v23094_v52 }
 0x7c7   :  { %15768 = vmatpush3.bf16.xpose.msra.mxu1 %v5464_v2  ;;  %v18278_v2 = vpop.eup %18277 }
 0x7c8   :  { %17508 = vmatprep.subr.msk.bf16.mxu1 %vm23099_vm15, %v23098_v22  ;;  %vm23105_vm15 = vmmov %vm23075_vm0  ;;  %v18280_v19 = vpop.eup %18279 }
 0x7c9   :  { %v18282_v23 = vpop.eup %18281 }
 0x7cf   :  { %15770 = vmatpush3.bf16.xpose.msra.mxu1 %v5467_v56 }
 0x7d0   :  { %17509 = vmatprep.subr.msk.bf16.mxu1 %vm23101_vm11, %v23100_v5  ;;  %vm23106_vm11 = vmmov %vm23075_vm0 }
 0x7d2   :  { %v15725_v25 = vpop.f32.mrb[204].mxu1 }
 0x7d3   :  { %v4978_v21 = vpop.f32.mrb[205].mxu1  ;;  %v5047_v59 = vmul.f32 %v18268_v30, %v15725_v25 }
 0x7d4   :  { %v15726_v53 = vpop.f32.mrb[206].mxu1  ;;  %v5045_v36 = vmul.f32 %v18266_v39, %v4978_v21  ;;  %v5473_v21 = vsel %vm23107_vm12, %v23103_v20, 0  ;;  %vm23111_vm12 = vmmov %vm23075_vm0 }
 0x7d5   :  { %v5048_v57 = vmul.f32 %v18270_v60, %v15726_v53  ;;  %v4981_v40 = vpop.f32.mrb[207].mxu1 }
 0x7d6   :  { %v5046_v1 = vmul.f32 %v18272_v7, %v4981_v40 }
 0x7d7   :  { %v5060_v35 = vpack.c.bf16 %v5048_v57, %v5047_v59  ;;  %15772 = vmatpush3.bf16.xpose.msra.mxu1 %v5470_v26  ;;  %v18284_v59 = vpop.eup %18283 }
 0x7d8   :  { %v5059_v58 = vpack.c.bf16 %v5046_v1, %v5045_v36  ;;  %17510 = vmatprep.subr.msk.bf16.mxu1 %vm23104_vm13, %v23103_v20  ;;  %vm23108_vm13 = vmmov %vm23075_vm0  ;;  %v18286_v40 = vpop.eup %18285 }
 0x7d9   :  { %v18288_v36 = vpop.eup %18287 }
 0x7da   :  { %v15729_v46 = vpop.f32.mrb[208].mxu1  ;;  %14369 = vmatmul.mubr.msk.bf16.gmra.mrb[208].mxu0 %vm23105_vm15, %v5059_v58  ;;  %15747 = vmatprep.mubr.msk.bf16.mxu1 %vm23075_vm0, %v5059_v58  ;;  %vm23109_vm15 = vmmov %vm23075_vm0 }
 0x7db   :  { %v4994_v44 = vpop.f32.mrb[209].mxu1  ;;  %15748 = vmatmul.mubr.msk.bf16.gmra.mrb[188].mxu1 %vm23106_vm11, %v5060_v35  ;;  %5231 = vmatprep.mubr.bf16.mxu0 %v22831_v62  ;;  %v5051_v56 = vmul.f32 %v18276_v27, %v15729_v46  ;;  %vm23110_vm11 = vmmov %vm23075_vm0 }
 0x7dc   :  { %v15730_v8 = vpop.f32.mrb[210].mxu1  ;;  %v5049_v25 = vmul.f32 %v18274_v10, %v4994_v44  ;;  %v23115_v44 = vld [vmem:[#allocation22_spill] sm:$0xff] }
 0x7dd   :  { %v5052_v54 = vmul.f32 %v18278_v2, %v15730_v8  ;;  %v4997_v39 = vpop.f32.mrb[211].mxu1  ;;  %v23117_v2 = vld [vmem:[#allocation26_spill] sm:$0xff]  ;;  %v23120_v8 = vld [vmem:[#allocation31_spill] sm:$0xff] }
 0x7de   :  { %v5050_v30 = vmul.f32 %v18280_v19, %v4997_v39  ;;  %v23122_v19 = vld [vmem:[#allocation36_spill] sm:$0xff]  ;;  %v23128_v39 = vld [vmem:[#allocation46_spill] sm:$0xff] }
 0x7df   :  { %v5062_v60 = vpack.c.bf16 %v5052_v54, %v5051_v56  ;;  %15774 = vmatpush3.bf16.xpose.msra.mxu1 %v5473_v21  ;;  %v23125_v56 = vld [vmem:[#allocation40_spill] sm:$0xff]  ;;  %v23126_v54 = vld [vmem:[#allocation43_spill] sm:$0xff] }
 0x7e0   :  { %v5061_v53 = vpack.c.bf16 %v5050_v30, %v5049_v25  ;;  %15823 = vmatprep.subr.bf16.mxu1 %v18001_v11 }
 0x7e2   :  { %v15733_v7 = vpop.f32.mrb[212].mxu1  ;;  %14370 = vmatmul.mubr.msk.bf16.gmra.mrb[212].mxu0 %vm23108_vm13, %v5060_v35  ;;  %15751 = vmatprep.mubr.msk.bf16.mxu1 %vm23109_vm15, %v5061_v53  ;;  %vm23112_vm13 = vmmov %vm23075_vm0  ;;  %v23113_v35 = vld [vmem:[#allocation18_spill] sm:$0xff] }
 0x7e3   :  { %v5010_v57 = vpop.f32.mrb[213].mxu1  ;;  %15752 = vmatmul.mubr.msk.bf16.gmra.mrb[192].mxu1 %vm23075_vm0, %v5062_v60  ;;  %5241 = vmatprep.mubr.bf16.mxu0 %v22831_v62  ;;  %v5055_v1 = vmul.f32 %v18284_v59, %v15733_v7  ;;  %vm23114_vm15 = vmmov %vm23075_vm0 }
 0x7e4   :  { %v15734_v0 = vpop.f32.mrb[214].mxu1  ;;  %v5053_v58 = vmul.f32 %v18282_v23, %v5010_v57 }
 0x7e5   :  { %v5056_v26 = vmul.f32 %v18286_v40, %v15734_v0  ;;  %v5013_v47 = vpop.f32.mrb[215].mxu1 }
 0x7e6   :  { %v5054_v10 = vmul.f32 %v18288_v36, %v5013_v47 }
 0x7e7   :  { %v5064_v46 = vpack.c.bf16 %v5056_v26, %v5055_v1 }
 0x7e8   :  { %v5063_v27 = vpack.c.bf16 %v5054_v10, %v5053_v58 }
 0x7ea   :  { %14371 = vmatmul.mubr.msk.bf16.gmra.mrb[216].mxu0 %vm23110_vm11, %v5061_v53  ;;  %15755 = vmatprep.mubr.msk.bf16.mxu1 %vm23111_vm12, %v5063_v27  ;;  %vm23119_vm11 = vmmov %vm23075_vm0 }
 0x7eb   :  { %15756 = vmatmul.mubr.msk.bf16.gmra.mrb[196].mxu1 %vm23112_vm13, %v5064_v46  ;;  %5251 = vmatprep.mubr.bf16.mxu0 %v22831_v62  ;;  %vm23121_vm12 = vmmov %vm23075_vm0 }
 0x7ec   :  { %15775 = vmatprep.mubr.msk.bf16.mxu1 %vm23114_vm15, %v23113_v35  ;;  %vm23123_vm13 = vmmov %vm23075_vm0 }
 0x7ed   :  { %vm23124_vm15 = vmmov %vm23075_vm0 }
 0x7f2   :  { %14372 = vmatmul.mubr.msk.bf16.gmra.mrb[220].mxu0 %vm23075_vm0, %v5062_v60 }
 0x7f3   :  { %15776 = vmatmul.mubr.msk.bf16.vlgmr.msra.gmra.mrb[216].mxu1 %vm23116_vm14, %v23115_v44  ;;  %5261 = vmatprep.mubr.bf16.mxu0 %v22831_v62  ;;  %vm23127_vm14 = vmmov %vm23075_vm0 }
 0x7f4   :  { %15779 = vmatprep.mubr.msk.bf16.mxu1 %vm23118_vm10, %v23117_v2  ;;  %vm23129_vm10 = vmmov %vm23075_vm0  ;;  %15824 = vmatpush3.bf16.msra.mxu1 %v18001_v11 }
 0x7f5   :  { %15825 = vmatprep.subr.bf16.mxu1 %v18002_v15 }
 0x7f8   :  { %15826 = vmatpush3.bf16.msra.mxu1 %v18002_v15 }
 0x7fa   :  { %14373 = vmatmul.mubr.msk.bf16.gmra.mrb[224].mxu0 %vm23119_vm11, %v5063_v27  ;;  %vm23130_vm11 = vnez %v23060_v43 }
 0x7fb   :  { %15780 = vmatmul.mubr.msk.bf16.gmra.mrb[220].mxu1 %vm23121_vm12, %v23120_v8  ;;  %5271 = vmatprep.mubr.bf16.mxu0 %v22831_v62  ;;  %vm23131_vm12 = vnez %v23064_v61 }
 0x7fc   :  { %15783 = vmatprep.mubr.msk.bf16.mxu1 %vm23123_vm13, %v23122_v19  ;;  %vm23132_vm13 = vnez %v23062_v34 }
 0x802   :  { %14374 = vmatmul.mubr.msk.bf16.gmra.mrb[228].mxu0 %vm23124_vm15, %v5064_v46  ;;  %vm23133_vm15 = vnez %v23068_v18 }
 0x803   :  { %15784 = vmatmul.mubr.msk.bf16.gmra.mrb[224].mxu1 %vm23075_vm0, %v23125_v56  ;;  %vm23134_vm0 = vnez %v23066_v31 }
 0x804   :  { %15787 = vmatprep.mubr.msk.bf16.mxu1 %vm23127_vm14, %v23126_v54  ;;  %vm23135_vm14 = vnez %v23072_v6 }
 0x80b   :  { %15788 = vmatmul.mubr.msk.bf16.gmra.mrb[228].mxu1 %vm23129_vm10, %v23128_v39  ;;  %vm23136_vm10 = vnez %v23070_v16 }
 0x8c6   :  { %v15777_v25 = vpop.f32.mrb[216].mxu1 }
 0x8c7   :  { %v5509_v30 = vpop.f32.mrb[217].mxu1  ;;  %v20464_v7 = vsel %vm19908_vm1, %v15777_v25, -1e+30 }
 0x8c8   :  { %v15778_v21 = vpop.f32.mrb[218].mxu1  ;;  %v20454_v60 = vsel %vm19915_vm2, %v5509_v30, -1e+30 }
 0x8c9   :  { %5588 = vmax.xlane.f32.xlu0 %v20454_v60  ;;  %v5512_v53 = vpop.f32.mrb[219].mxu1  ;;  %v20469_v57 = vsel %vm19932_vm3, %v15778_v21, -1e+30 }
 0x8ca   :  { %v20459_v23 = vsel %vm19938_vm4, %v5512_v53, -1e+30 }
 0x8cb   :  { %5590 = vmax.xlane.f32.xlu1 %v20459_v23 }
 0x8cd   :  { %5592 = vmax.xlane.f32.xlu0 %v20464_v7 }
 0x8ce   :  { %v15781_v59 = vpop.f32.mrb[220].mxu1 }
 0x8cf   :  { %5594 = vmax.xlane.f32.xlu1 %v20469_v57  ;;  %v5525_v40 = vpop.f32.mrb[221].mxu1  ;;  %v20484_v47 = vsel %vm19976_vm7, %v15781_v59, -1e+30 }
 0x8d0   :  { %v15782_v0 = vpop.f32.mrb[222].mxu1  ;;  %v20474_v36 = vsel %vm19957_vm5, %v5525_v40, -1e+30 }
 0x8d1   :  { %5596 = vmax.xlane.f32.xlu0 %v20474_v36  ;;  %v5528_v1 = vpop.f32.mrb[223].mxu1  ;;  %v20489_v10 = vsel %vm19988_vm8, %v15782_v0, -1e+30 }
 0x8d2   :  { %v20479_v26 = vsel %vm19965_vm6, %v5528_v1, -1e+30 }
 0x8d3   :  { %5598 = vmax.xlane.f32.xlu1 %v20479_v26 }
 0x8d5   :  { %5600 = vmax.xlane.f32.xlu0 %v20484_v47 }
 0x8d6   :  { %v15785_v58 = vpop.f32.mrb[224].mxu1 }
 0x8d7   :  { %5602 = vmax.xlane.f32.xlu1 %v20489_v10  ;;  %v5541_v46 = vpop.f32.mrb[225].mxu1  ;;  %v20504_v53 = vsel %vm23131_vm12, %v15785_v58, -1e+30 }
 0x8d8   :  { %v15786_v27 = vpop.f32.mrb[226].mxu1  ;;  %v20494_v25 = vsel %vm20000_vm9, %v5541_v46, -1e+30 }
 0x8d9   :  { %5604 = vmax.xlane.f32.xlu0 %v20494_v25  ;;  %v5544_v30 = vpop.f32.mrb[227].mxu1  ;;  %v20509_v59 = vsel %vm23132_vm13, %v15786_v27, -1e+30 }
 0x8da   :  { %v20499_v21 = vsel %vm23130_vm11, %v5544_v30, -1e+30 }
 0x8db   :  { %5606 = vmax.xlane.f32.xlu1 %v20499_v21 }
 0x8dd   :  { %5608 = vmax.xlane.f32.xlu0 %v20504_v53 }
 0x8de   :  { %v15789_v40 = vpop.f32.mrb[228].mxu1 }
 0x8df   :  { %5610 = vmax.xlane.f32.xlu1 %v20509_v59  ;;  %v5557_v0 = vpop.f32.mrb[229].mxu1  ;;  %v20524_v27 = vsel %vm23135_vm14, %v15789_v40, -1e+30  ;;  %vm23137_vm14 = vcmask 523264  }
 0x8e0   :  { %v20514_v1 = vsel %vm23133_vm15, %v5557_v0, -1e+30  ;;  %v15790_v46 = vpop.f32.mrb[230].mxu1 }
 0x8e1   :  { %5612 = vmax.xlane.f32.xlu0 %v20514_v1  ;;  %v5560_v30 = vpop.f32.mrb[231].mxu1  ;;  %v20529_v0 = vsel %vm23136_vm10, %v15790_v46, -1e+30  ;;  %vm23138_vm10 = vmmov %vm23137_vm14 }
 0x8e2   :  { %v20519_v58 = vsel %vm23134_vm0, %v5560_v30, -1e+30  ;;  %v18003_v30 = vld [vmem:[#allocation7 + $0xf8] ss:$12 sps:$4 sm:$0xff]   ;;  %vm23139_vm15 = vmmov %vm23138_vm10 }
 0x8e3   :  { %5614 = vmax.xlane.f32.xlu1 %v20519_v58  ;;  %15827 = vmatprep.subr.bf16.mxu1 %v18003_v30  ;;  %vm23140_vm0 = vmmov %vm23138_vm10 }
 0x8e4   :  { %15828 = vmatpush3.bf16.msra.mxu1 %v18003_v30  ;;  %vm23152_vm12 = vmmov %vm23140_vm0 }
 0x8e5   :  { %5616 = vmax.xlane.f32.xlu0 %v20524_v27  ;;  %15829 = vmatprep.subr.bf16.mxu1 %v18004_v38  ;;  %vm23153_vm13 = vmmov %vm23140_vm0 }
 0x8e7   :  { %5618 = vmax.xlane.f32.xlu1 %v20529_v0 }
 0x8e8   :  { %15830 = vmatpush3.bf16.msra.mxu1 %v18004_v38 }
 0x8f8   :  { %6241 = vrot.lane.b32.xlu1 %v23080_v37, %s19071_s2 }
 0x8fb   :  { %6239 = vrot.lane.b32.xlu0 %v23074_v4, %s19071_s2 }
 0x8fc   :  { %6245 = vrot.lane.b32.xlu1 %v23091_v63, %s19071_s2 }
 0x8ff   :  { %6243 = vrot.lane.b32.xlu0 %v23086_v28, %s19071_s2 }
 0x956   :  { %v5589_v11 = vpop.xlane.xlu0 %5588 }
 0x957   :  { %v5620_v15 = vsub.f32 %v20454_v60, %v5589_v11 }
 0x958   :  { %v5591_v40 = vpop.xlane.xlu1 %5590 }
 0x959   :  { %v5636_v46 = vmul.f32 1.442695, %v5620_v15  ;;  %v5621_v30 = vsub.f32 %v20459_v23, %v5591_v40 }
 0x95a   :  { %v5593_v33 = vpop.xlane.xlu0 %5592 }
 0x95b   :  { %v5638_v6 = vmul.f32 1.442695, %v5621_v30  ;;  %v5622_v38 = vsub.f32 %v20464_v7, %v5593_v33  ;;  %18289 = vpow2.f32 %v5636_v46 }
 0x95c   :  { %v5595_v37 = vpop.xlane.xlu1 %5594 }
 0x95d   :  { %18291 = vpow2.f32 %v5638_v6  ;;  %v5640_v4 = vmul.f32 1.442695, %v5622_v38  ;;  %v5623_v63 = vsub.f32 %v20469_v57, %v5595_v37 }
 0x95e   :  { %v5597_v16 = vpop.xlane.xlu0 %5596 }
 0x95f   :  { %18293 = vpow2.f32 %v5640_v4  ;;  %v5642_v28 = vmul.f32 1.442695, %v5623_v63  ;;  %v5624_v18 = vsub.f32 %v20474_v36, %v5597_v16 }
 0x960   :  { %v5599_v60 = vpop.xlane.xlu1 %5598 }
 0x961   :  { %18295 = vpow2.f32 %v5642_v28  ;;  %v5644_v11 = vmul.f32 1.442695, %v5624_v18  ;;  %v5625_v23 = vsub.f32 %v20479_v26, %v5599_v60 }
 0x962   :  { %v5601_v15 = vpop.xlane.xlu0 %5600 }
 0x963   :  { %v5646_v40 = vmul.f32 1.442695, %v5625_v23  ;;  %v5626_v33 = vsub.f32 %v20484_v47, %v5601_v15  ;;  %18297 = vpow2.f32 %v5644_v11 }
 0x964   :  { %v5603_v7 = vpop.xlane.xlu1 %5602 }
 0x965   :  { %18299 = vpow2.f32 %v5646_v40  ;;  %v5648_v6 = vmul.f32 1.442695, %v5626_v33  ;;  %v5627_v57 = vsub.f32 %v20489_v10, %v5603_v7  ;;  %v18290_v46 = vpop.eup %18289 }
 0x966   :  { %v5605_v30 = vpop.xlane.xlu0 %5604 }
 0x967   :  { %v18292_v38 = vpop.eup %18291  ;;  %v5650_v37 = vmul.f32 1.442695, %v5627_v57  ;;  %v5628_v16 = vsub.f32 %v20494_v25, %v5605_v30  ;;  %18301 = vpow2.f32 %v5648_v6 }
 0x968   :  { %v5607_v18 = vpop.xlane.xlu1 %5606  ;;  %v5700_v36 = vpack.c.bf16 %v18292_v38, %v18290_v46 }
 0x969   :  { %v18294_v26 = vpop.eup %18293  ;;  %18303 = vpow2.f32 %v5650_v37  ;;  %v5652_v4 = vmul.f32 1.442695, %v5628_v16  ;;  %v5629_v47 = vsub.f32 %v20499_v21, %v5607_v18 }
 0x96a   :  { %v5609_v63 = vpop.xlane.xlu0 %5608  ;;  %5672 = vadd.xlane.f32.xlu0 %v18294_v26  ;;  %15807 = vmatprep.mubr.bf16.mxu0 %v5700_v36 }
 0x96b   :  { %v18296_v28 = vpop.eup %18295  ;;  %v5654_v60 = vmul.f32 1.442695, %v5629_v47  ;;  %v5630_v10 = vsub.f32 %v20504_v53, %v5609_v63  ;;  %18305 = vpow2.f32 %v5652_v4 }
 0x96c   :  { %v5611_v11 = vpop.xlane.xlu1 %5610  ;;  %5674 = vadd.xlane.f32.xlu1 %v18296_v28  ;;  %v5701_v23 = vpack.c.bf16 %v18296_v28, %v18294_v26 }
 0x96d   :  { %18307 = vpow2.f32 %v5654_v60  ;;  %v5656_v25 = vmul.f32 1.442695, %v5630_v10  ;;  %v5631_v15 = vsub.f32 %v20509_v59, %v5611_v11  ;;  %v18298_v40 = vpop.eup %18297 }
 0x96e   :  { %5668 = vadd.xlane.f32.xlu0 %v18290_v46  ;;  %v5613_v33 = vpop.xlane.xlu0 %5612  ;;  %15808 = vmatmul.mubr.bf16.vlgmr.msra.gmra.mrb[248].mxu0 %v5701_v23 }
 0x96f   :  { %v18300_v21 = vpop.eup %18299  ;;  %v5658_v7 = vmul.f32 1.442695, %v5631_v15  ;;  %v5632_v6 = vsub.f32 %v20514_v1, %v5613_v33  ;;  %18309 = vpow2.f32 %v5656_v25 }
 0x970   :  { %5670 = vadd.xlane.f32.xlu1 %v18292_v38  ;;  %v5615_v57 = vpop.xlane.xlu1 %5614  ;;  %v5702_v53 = vpack.c.bf16 %v18300_v21, %v18298_v40 }
 0x971   :  { %18311 = vpow2.f32 %v5658_v7  ;;  %v5660_v30 = vmul.f32 1.442695, %v5632_v6  ;;  %v5633_v37 = vsub.f32 %v20519_v58, %v5615_v57  ;;  %v18302_v16 = vpop.eup %18301  ;;  %v18007_v6 = vld [vmem:[#allocation7 + $0xc4] ss:$12 sps:$4 sm:$0xff]   ;;  %v18010_v57 = vld [vmem:[#allocation7 + $0xdc] ss:$12 sps:$4 sm:$0xff]  }
 0x972   :  { %v5617_v18 = vpop.xlane.xlu0 %5616  ;;  %15811 = vmatprep.mubr.bf16.mxu0 %v5702_v53  ;;  %5949 = vmatprep.subr.bf16.mxu0 %v18007_v6  ;;  %v18013_v53 = vld [vmem:[#allocation7 + $0xf4] ss:$12 sps:$4 sm:$0xff]  }
 0x973   :  { %v18304_v59 = vpop.eup %18303  ;;  %v5662_v36 = vmul.f32 1.442695, %v5633_v37  ;;  %v5634_v46 = vsub.f32 %v20524_v27, %v5617_v18  ;;  %18313 = vpow2.f32 %v5660_v30  ;;  %v18014_v30 = vld [vmem:[#allocation7 + $0x108] ss:$12 sps:$4 sm:$0xff]  }
 0x974   :  { %v5619_v26 = vpop.xlane.xlu1 %5618  ;;  %v5703_v4 = vpack.c.bf16 %v18304_v59, %v18302_v16 }
 0x975   :  { %18315 = vpow2.f32 %v5662_v36  ;;  %v5664_v1 = vmul.f32 1.442695, %v5634_v46  ;;  %v5635_v38 = vsub.f32 %v20529_v0, %v5619_v26  ;;  %v18306_v47 = vpop.eup %18305 }
 0x976   :  { %v20556_v63 = vpop.permute.xlu0 %6239  ;;  %15812 = vmatmul.mubr.bf16.gmra.mrb[252].mxu0 %v5703_v4 }
 0x977   :  { %v18308_v28 = vpop.eup %18307  ;;  %v5666_v58 = vmul.f32 1.442695, %v5635_v38  ;;  %17511 = vmatprep.subr.msk.bf16.mxu1 %vm23137_vm14, %v20556_v63  ;;  %18317 = vpow2.f32 %v5664_v1 }
 0x978   :  { %v5704_v60 = vpack.c.bf16 %v18308_v28, %v18306_v47 }
 0x979   :  { %18319 = vpow2.f32 %v5666_v58  ;;  %v18310_v27 = vpop.eup %18309 }
 0x97a   :  { %15815 = vmatprep.mubr.bf16.mxu0 %v5704_v60 }
 0x97b   :  { %v18312_v10 = vpop.eup %18311 }
 0x97c   :  { %v5705_v11 = vpack.c.bf16 %v18312_v10, %v18310_v27 }
 0x97d   :  { %v18314_v23 = vpop.eup %18313 }
 0x97e   :  { %15816 = vmatmul.mubr.bf16.gmra.mrb[0].mxu0 %v5705_v11 }
 0x97f   :  { %v18316_v25 = vpop.eup %18315 }
 0x980   :  { %v5706_v0 = vpack.c.bf16 %v18316_v25, %v18314_v23 }
 0x981   :  { %6249 = vrot.lane.b32.xlu1 %v23098_v22, %s19071_s2  ;;  %v18318_v15 = vpop.eup %18317  ;;  %v18005_v22 = vld [vmem:[#allocation7 + $0xc0] ss:$12 sps:$4 sm:$0xff]  }
 0x982   :  { %15819 = vmatprep.mubr.bf16.mxu0 %v5706_v0  ;;  %5950 = vmatpush1.bf16.msra.mxu0 %v18005_v22 }
 0x983   :  { %v18320_v33 = vpop.eup %18319  ;;  %5951 = vmatprep.subr.bf16.mxu0 %v18010_v57 }
 0x984   :  { %v5707_v7 = vpack.c.bf16 %v18320_v33, %v18318_v15  ;;  %6247 = vrot.lane.b32.xlu0 %v23095_v48, %s19071_s2  ;;  %v18008_v48 = vld [vmem:[#allocation7 + $0xd8] ss:$12 sps:$4 sm:$0xff]  }
 0x986   :  { %15820 = vmatmul.mubr.bf16.gmra.mrb[4].mxu0 %v5707_v7 }
 0x987   :  { %5981 = vmatprep.mubr.bf16.mxu0 %v22831_v62  ;;  %5952 = vmatpush1.bf16.msra.mxu0 %v18008_v48  ;;  %v6280_v48 = vsel %vm23140_vm0, %v20556_v63, 0 }
 0x988   :  { %5953 = vmatprep.subr.bf16.mxu0 %v18013_v53 }
 0x9a3   :  { %5680 = vadd.xlane.f32.xlu0 %v18302_v16 }
 0x9a5   :  { %5676 = vadd.xlane.f32.xlu1 %v18298_v40  ;;  %v18011_v40 = vld [vmem:[#allocation7 + $0xf0] ss:$12 sps:$4 sm:$0xff]  }
 0x9a6   :  { %5954 = vmatpush1.bf16.msra.mxu0 %v18011_v40 }
 0x9a7   :  { %5678 = vadd.xlane.f32.xlu0 %v18300_v21  ;;  %v18016_v21 = vld [vmem:[#allocation7 + $0x10c] ss:$12 sps:$4 sm:$0xff]  }
 0x9a8   :  { %5955 = vmatprep.subr.bf16.mxu0 %v18016_v21 }
 0x9a9   :  { %5682 = vadd.xlane.f32.xlu1 %v18304_v59 }
 0x9aa   :  { %5956 = vmatpush1.bf16.msra.mxu0 %v18014_v30 }
 0x9ab   :  { %5696 = vadd.xlane.f32.xlu0 %v18318_v15 }
 0x9ad   :  { %5688 = vadd.xlane.f32.xlu1 %v18310_v27 }
 0x9af   :  { %5692 = vadd.xlane.f32.xlu0 %v18314_v23 }
 0x9b1   :  { %5684 = vadd.xlane.f32.xlu1 %v18306_v47 }
 0x9b3   :  { %5698 = vadd.xlane.f32.xlu0 %v18320_v33 }
 0x9b5   :  { %5690 = vadd.xlane.f32.xlu1 %v18312_v10 }
 0x9b9   :  { %5686 = vadd.xlane.f32.xlu1 %v18308_v28 }
 0x9bd   :  { %5694 = vadd.xlane.f32.xlu1 %v18316_v25 }
 0x9c9   :  { %6251 = vrot.lane.b32.xlu0 %v23100_v5, %s19071_s2  ;;  %v20597_v5 = vpop.permute.xlu1 %6241 }
 0x9cd   :  { %6215 = vrot.lane.b32.xlu0 %v23113_v35, %s19071_s2 }
 0x9ce   :  { %6253 = vrot.lane.b32.xlu1 %v23103_v20, %s19071_s2  ;;  %v20601_v20 = vpop.permute.xlu1 %6245 }
 0x9d1   :  { %6219 = vrot.lane.b32.xlu0 %v23117_v2, %s19071_s2 }
 0x9d2   :  { %6217 = vrot.lane.b32.xlu1 %v23115_v44, %s19071_s2 }
 0x9d5   :  { %6223 = vrot.lane.b32.xlu0 %v23122_v19, %s19071_s2 }
 0x9d6   :  { %6221 = vrot.lane.b32.xlu1 %v23120_v8, %s19071_s2 }
 0x9d9   :  { %6227 = vrot.lane.b32.xlu0 %v23126_v54, %s19071_s2 }
 0x9da   :  { %6225 = vrot.lane.b32.xlu1 %v23125_v56, %s19071_s2 }
 0x9dd   :  { %6544 = vrot.lane.b32.xlu0 %v23047_v3, %s19071_s2  ;;  %v20599_v3 = vpop.permute.xlu0 %6243 }
 0x9de   :  { %6229 = vrot.lane.b32.xlu1 %v23128_v39, %s19071_s2 }
 0x9e1   :  { %6548 = vrot.lane.b32.xlu0 %v23082_v17, %s19071_s2 }
 0x9e2   :  { %6546 = vrot.lane.b32.xlu1 %v23079_v9, %s19071_s2 }
 0x9e5   :  { %6550 = vrot.lane.b32.xlu0 %v23085_v14, %s19071_s2 }
 0x9e6   :  { %6554 = vrot.lane.b32.xlu1 %v23090_v24, %s19071_s2 }
 0x9e9   :  { %6552 = vrot.lane.b32.xlu0 %v23088_v12, %s19071_s2 }
 0x9f7   :  { %v5673_v35 = vpop.xlane.xlu0 %5672 }
 0x9f8   :  { %18321 = vrcp.f32 %v5673_v35 }
 0x9f9   :  { %v5675_v17 = vpop.xlane.xlu1 %5674 }
 0x9fa   :  { %18323 = vrcp.f32 %v5675_v17 }
 0x9fb   :  { %v5669_v44 = vpop.xlane.xlu0 %5668 }
 0x9fc   :  { %18325 = vrcp.f32 %v5669_v44 }
 0x9fd   :  { %v5671_v2 = vpop.xlane.xlu1 %5670 }
 0x9fe   :  { %18327 = vrcp.f32 %v5671_v2 }
 0x9ff   :  { %v20603_v9 = vpop.permute.xlu0 %6247 }
 0xa01   :  { %v20605_v8 = vpop.permute.xlu1 %6249 }
 0xa02   :  { %v18322_v18 = vpop.eup %18321 }
 0xa04   :  { %v18324_v36 = vpop.eup %18323 }
 0xa06   :  { %v18326_v4 = vpop.eup %18325 }
 0xa08   :  { %v18328_v38 = vpop.eup %18327 }
 0xa30   :  { %v5681_v14 = vpop.xlane.xlu0 %5680 }
 0xa31   :  { %18329 = vrcp.f32 %v5681_v14 }
 0xa32   :  { %v5677_v19 = vpop.xlane.xlu1 %5676 }
 0xa33   :  { %18331 = vrcp.f32 %v5677_v19 }
 0xa34   :  { %v5679_v24 = vpop.xlane.xlu0 %5678 }
 0xa36   :  { %v5683_v56 = vpop.xlane.xlu1 %5682 }
 0xa37   :  { %18333 = vrcp.f32 %v5683_v56 }
 0xa38   :  { %v5697_v12 = vpop.xlane.xlu0 %5696  ;;  %18335 = vrcp.f32 %v5679_v24 }
 0xa3a   :  { %v5689_v54 = vpop.xlane.xlu1 %5688 }
 0xa3b   :  { %18337 = vrcp.f32 %v5689_v54  ;;  %v18330_v15 = vpop.eup %18329 }
 0xa3c   :  { %v5693_v39 = vpop.xlane.xlu0 %5692 }
 0xa3d   :  { %v18332_v7 = vpop.eup %18331 }
 0xa3e   :  { %v5685_v37 = vpop.xlane.xlu1 %5684 }
 0xa3f   :  { %18339 = vrcp.f32 %v5685_v37 }
 0xa40   :  { %v5699_v16 = vpop.xlane.xlu0 %5698 }
 0xa41   :  { %v15809_v59 = vpop.f32.mrb[248].mxu0  ;;  %v18334_v57 = vpop.eup %18333 }
 0xa42   :  { %v5691_v46 = vpop.xlane.xlu1 %5690  ;;  %v5742_v26 = vpop.f32.mrb[249].mxu0  ;;  %v5823_v47 = vmul.f32 %v18322_v18, %v15809_v59 }
 0xa43   :  { %v15810_v1 = vpop.f32.mrb[250].mxu0  ;;  %v5821_v27 = vmul.f32 %v18326_v4, %v5742_v26  ;;  %18341 = vrcp.f32 %v5691_v46  ;;  %v18336_v40 = vpop.eup %18335 }
 0xa44   :  { %v5824_v28 = vmul.f32 %v18324_v36, %v15810_v1  ;;  %v20607_v58 = vpop.permute.xlu0 %6251  ;;  %v5745_v60 = vpop.f32.mrb[251].mxu0 }
 0xa45   :  { %v5822_v10 = vmul.f32 %v18328_v38, %v5745_v60  ;;  %v18338_v56 = vpop.eup %18337 }
 0xa46   :  { %v5838_v11 = vpack.c.bf16 %v5824_v28, %v5823_v47  ;;  %v5687_v23 = vpop.xlane.xlu1 %5686 }
 0xa47   :  { %v5837_v25 = vpack.c.bf16 %v5822_v10, %v5821_v27  ;;  %18343 = vrcp.f32 %v5687_v23 }
 0xa48   :  { %v20609_v0 = vpop.permute.xlu0 %6215  ;;  %18345 = vrcp.f32 %v5697_v12 }
 0xa49   :  { %v15813_v33 = vpop.f32.mrb[252].mxu0  ;;  %14403 = vmatmul.mubr.msk.bf16.vlgmr.msra.gmra.mrb[200].mxu0 %vm23137_vm14, %v5837_v25  ;;  %15831 = vmatprep.mubr.msk.bf16.mxu1 %vm23138_vm10, %v5837_v25  ;;  %vm23141_vm14 = vmmov %vm23140_vm0  ;;  %18347 = vrcp.f32 %v5693_v39  ;;  %v18340_v37 = vpop.eup %18339 }
 0xa4a   :  { %v5695_v22 = vpop.xlane.xlu1 %5694  ;;  %v5758_v6 = vpop.f32.mrb[253].mxu0  ;;  %15832 = vmatmul.mubr.msk.bf16.vlgmr.msra.gmra.mrb[184].mxu1 %vm23139_vm15, %v5838_v11  ;;  %5991 = vmatprep.mubr.bf16.mxu0 %v22831_v62  ;;  %v5827_v21 = vmul.f32 %v18330_v15, %v15813_v33  ;;  %18349 = vrcp.f32 %v5699_v16  ;;  %vm23142_vm15 = vmmov %vm23140_vm0 }
 0xa4b   :  { %15848 = vmatpush3.bf16.xpose.msra.mxu1 %v6280_v48  ;;  %v15814_v53 = vpop.f32.mrb[254].mxu0  ;;  %v5825_v44 = vmul.f32 %v18332_v7, %v5758_v6  ;;  %18351 = vrcp.f32 %v5695_v22  ;;  %vm23143_vm10 = vmmov %vm23140_vm0 }
 0xa4c   :  { %v5828_v30 = vmul.f32 %v18334_v57, %v15814_v53  ;;  %17512 = vmatprep.subr.msk.bf16.mxu1 %vm23141_vm14, %v20597_v5  ;;  %v20619_v35 = vpop.permute.xlu0 %6219  ;;  %v5761_v17 = vpop.f32.mrb[255].mxu0  ;;  %vm23144_vm14 = vmmov %vm23140_vm0 }
 0xa4d   :  { %v5826_v2 = vmul.f32 %v18336_v40, %v5761_v17  ;;  %v6283_v12 = vsel %vm23144_vm14, %v20597_v5, 0  ;;  %v18342_v39 = vpop.eup %18341  ;;  %vm23147_vm14 = vmmov %vm23140_vm0 }
 0xa4e   :  { %v5840_v14 = vpack.c.bf16 %v5828_v30, %v5827_v21  ;;  %v20621_v19 = vpop.permute.xlu1 %6253 }
 0xa4f   :  { %v5839_v63 = vpack.c.bf16 %v5826_v2, %v5825_v44 }
 0xa50   :  { %v20623_v24 = vpop.permute.xlu0 %6223 }
 0xa51   :  { %v15817_v54 = vpop.f32.mrb[0].mxu0  ;;  %14404 = vmatmul.mubr.msk.bf16.gmra.mrb[204].mxu0 %vm23142_vm15, %v5838_v11  ;;  %15835 = vmatprep.mubr.msk.bf16.mxu1 %vm23140_vm0, %v5839_v63  ;;  %v18344_v36 = vpop.eup %18343  ;;  %vm23145_vm15 = vmmov %vm23140_vm0 }
 0xa52   :  { %v20627_v18 = vpop.permute.xlu1 %6217  ;;  %v5774_v59 = vpop.f32.mrb[1].mxu0  ;;  %15836 = vmatmul.mubr.msk.bf16.gmra.mrb[188].mxu1 %vm23143_vm10, %v5840_v14  ;;  %6001 = vmatprep.mubr.bf16.mxu0 %v22831_v62  ;;  %v5831_v46 = vmul.f32 %v18338_v56, %v15817_v54  ;;  %vm23146_vm10 = vmmov %vm23140_vm0 }
 0xa53   :  { %15850 = vmatpush3.bf16.xpose.msra.mxu1 %v6283_v12  ;;  %v15818_v16 = vpop.f32.mrb[2].mxu0  ;;  %v5829_v38 = vmul.f32 %v18340_v37, %v5774_v59  ;;  %v18346_v10 = vpop.eup %18345  ;;  %v18017_v37 = vld [vmem:[#allocation7 + $0x128] ss:$12 sps:$4 sm:$0xff]   ;;  %v18018_v59 = vld [vmem:[#allocation7 + $0x140] ss:$12 sps:$4 sm:$0xff]  }
 0xa54   :  { %v5832_v26 = vmul.f32 %v18342_v39, %v15818_v16  ;;  %17513 = vmatprep.subr.msk.bf16.mxu1 %vm23145_vm15, %v20599_v3  ;;  %v20635_v4 = vpop.permute.xlu0 %6227  ;;  %v5777_v1 = vpop.f32.mrb[3].mxu0  ;;  %vm23148_vm15 = vmmov %vm23140_vm0  ;;  %v18020_v12 = vld [vmem:[#allocation7 + $0x170] ss:$12 sps:$4 sm:$0xff]  }
 0xa55   :  { %v5830_v47 = vmul.f32 %v18344_v36, %v5777_v1  ;;  %v18348_v23 = vpop.eup %18347  ;;  %v6286_v33 = vsel %vm23148_vm15, %v20599_v3, 0  ;;  %vm23151_vm15 = vmmov %vm23140_vm0 }
 0xa56   :  { %v5842_v28 = vpack.c.bf16 %v5832_v26, %v5831_v46  ;;  %v20637_v60 = vpop.permute.xlu1 %6221  ;;  %v18350_v7 = vpop.eup %18349 }
 0xa57   :  { %v5841_v5 = vpack.c.bf16 %v5830_v47, %v5829_v38  ;;  %v18352_v6 = vpop.eup %18351 }
 0xa58   :  { %v6545_v27 = vpop.permute.xlu0 %6544 }
 0xa59   :  { %v15821_v11 = vpop.f32.mrb[4].mxu0  ;;  %14405 = vmatmul.mubr.msk.bf16.gmra.mrb[208].mxu0 %vm23140_vm0, %v5839_v63  ;;  %15839 = vmatprep.mubr.msk.bf16.mxu1 %vm23146_vm10, %v5841_v5  ;;  %vm23149_vm10 = vmmov %vm23140_vm0  ;;  %v6289_v63 = vsel %vm23152_vm12, %v20601_v20, 0 }
 0xa5a   :  { %15879 = vmatprep.subr.bf16.mxu0 %v6545_v27  ;;  %v20641_v25 = vpop.permute.xlu1 %6225  ;;  %v5790_v15 = vpop.f32.mrb[5].mxu0  ;;  %15840 = vmatmul.mubr.msk.bf16.gmra.mrb[192].mxu1 %vm23147_vm14, %v5842_v28  ;;  %v5835_v48 = vmul.f32 %v18346_v10, %v15821_v11  ;;  %vm23150_vm14 = vmmov %vm23140_vm0 }
 0xa5b   :  { %15852 = vmatpush3.bf16.xpose.msra.mxu1 %v6286_v33  ;;  %15880 = vmatpush3.bf16.msra.mxu0 %v6545_v27  ;;  %v15822_v22 = vpop.f32.mrb[6].mxu0  ;;  %v5833_v40 = vmul.f32 %v18348_v23, %v5790_v15  ;;  %vm23156_vm12 = vmmov %vm23140_vm0 }
 0xa5c   :  { %v5836_v57 = vmul.f32 %v18350_v7, %v15822_v22  ;;  %17514 = vmatprep.subr.msk.bf16.mxu1 %vm23140_vm0, %v20601_v20  ;;  %v5793_v53 = vpop.f32.mrb[7].mxu0  ;;  %6011 = vmatprep.mubr.bf16.mxu0 %v22831_v62  ;;  %v6549_v2 = vpop.permute.xlu0 %6548 }
 0xa5d   :  { %v5834_v21 = vmul.f32 %v18352_v6, %v5793_v53  ;;  %v23174_v53 = vld [vmem:[#allocation142_spill] sm:$0xff] }
 0xa5e   :  { %v5844_v30 = vpack.c.bf16 %v5836_v57, %v5835_v48  ;;  %v6230_v17 = vpop.permute.xlu1 %6229 }
 0xa5f   :  { %v5843_v44 = vpack.c.bf16 %v5834_v21, %v5833_v40  ;;  %v23176_v21 = vld [vmem:[#allocation146_spill] sm:$0xff] }
 0xa61   :  { %14406 = vmatmul.mubr.msk.bf16.gmra.mrb[212].mxu0 %vm23149_vm10, %v5840_v14  ;;  %15843 = vmatprep.mubr.msk.bf16.mxu1 %vm23150_vm14, %v5843_v44  ;;  %v6551_v14 = vpop.permute.xlu0 %6550  ;;  %vm23154_vm10 = vmmov %vm23140_vm0 }
 0xa62   :  { %v6547_v3 = vpop.permute.xlu1 %6546  ;;  %15844 = vmatmul.mubr.msk.bf16.gmra.mrb[196].mxu1 %vm23151_vm15, %v5844_v30  ;;  %6021 = vmatprep.mubr.bf16.mxu0 %v22831_v62  ;;  %vm23155_vm14 = vmmov %vm23140_vm0 }
 0xa63   :  { %15854 = vmatpush3.bf16.xpose.msra.mxu1 %v6289_v63  ;;  %15863 = vmatprep.mubr.msk.bf16.mxu1 %vm23140_vm0, %v20609_v0  ;;  %v6292_v20 = vsel %vm23155_vm14, %v20603_v9, 0  ;;  %vm23158_vm15 = vmmov %vm23140_vm0 }
 0xa64   :  { %17515 = vmatprep.subr.msk.bf16.mxu1 %vm23153_vm13, %v20603_v9  ;;  %15881 = vmatprep.subr.bf16.mxu0 %v6547_v3  ;;  %vm23157_vm13 = vmmov %vm23140_vm0  ;;  %v6295_v54 = vsel %vm23158_vm15, %v20605_v8, 0 }
 0xa65   :  { %15882 = vmatpush3.bf16.msra.mxu0 %v6547_v3  ;;  %v6553_v0 = vpop.permute.xlu0 %6552  ;;  %vm23160_vm14 = vmmov %vm23140_vm0 }
 0xa66   :  { %15883 = vmatprep.subr.bf16.mxu0 %v6549_v2  ;;  %v6555_v56 = vpop.permute.xlu1 %6554  ;;  %v6298_v9 = vsel %vm23160_vm14, %v20607_v58, 0  ;;  %vm23163_vm15 = vmmov %vm23140_vm0 }
 0xa67   :  { %vm23165_vm14 = vmmov %vm23140_vm0 }
 0xa69   :  { %15884 = vmatpush3.bf16.msra.mxu0 %v6549_v2 }
 0xa6a   :  { %14407 = vmatmul.mubr.msk.bf16.gmra.mrb[216].mxu0 %vm23154_vm10, %v5841_v5  ;;  %15885 = vmatprep.subr.bf16.mxu0 %v6551_v14  ;;  %vm23159_vm10 = vmmov %vm23140_vm0 }
 0xa6b   :  { %15856 = vmatpush3.bf16.xpose.msra.mxu1 %v6292_v20  ;;  %6031 = vmatprep.mubr.bf16.mxu0 %v22831_v62 }
 0xa6c   :  { %17516 = vmatprep.subr.msk.bf16.mxu1 %vm23156_vm12, %v20605_v8  ;;  %vm23161_vm12 = vmmov %vm23140_vm0  ;;  %v6301_v8 = vsel %vm23163_vm15, %v20621_v19, 0 }
 0xa6d   :  { %15886 = vmatpush3.bf16.msra.mxu0 %v6551_v14  ;;  %vm23169_vm15 = vmmov %vm23140_vm0 }
 0xa6e   :  { %15887 = vmatprep.subr.bf16.mxu0 %v6553_v0 }
 0xa71   :  { %15888 = vmatpush3.bf16.msra.mxu0 %v6553_v0 }
 0xa72   :  { %14408 = vmatmul.mubr.msk.bf16.gmra.mrb[220].mxu0 %vm23157_vm13, %v5842_v28  ;;  %15889 = vmatprep.subr.bf16.mxu0 %v6555_v56  ;;  %vm23162_vm13 = vmmov %vm23140_vm0 }
 0xa73   :  { %15858 = vmatpush3.bf16.xpose.msra.mxu1 %v6295_v54  ;;  %6041 = vmatprep.mubr.bf16.mxu0 %v22831_v62 }
 0xa74   :  { %17517 = vmatprep.subr.msk.bf16.mxu1 %vm23140_vm0, %v20607_v58  ;;  %v18019_v58 = vld [vmem:[#allocation7 + $0x158] ss:$12 sps:$4 sm:$0xff]  }
 0xa75   :  { %15890 = vmatpush3.bf16.msra.mxu0 %v6555_v56 }
 0xa7a   :  { %14409 = vmatmul.mubr.msk.bf16.gmra.mrb[224].mxu0 %vm23159_vm10, %v5843_v44  ;;  %vm23164_vm10 = vmmov %vm23140_vm0 }
 0xa7b   :  { %15860 = vmatpush3.bf16.xpose.msra.mxu1 %v6298_v9  ;;  %6051 = vmatprep.mubr.bf16.mxu0 %v22831_v62 }
 0xa7c   :  { %17518 = vmatprep.subr.msk.bf16.mxu1 %vm23161_vm12, %v20621_v19  ;;  %vm23166_vm12 = vmmov %vm23140_vm0  ;;  %v23167_v19 = vld [vmem:[#allocation13_spill] sm:$0xff] }
 0xa82   :  { %14410 = vmatmul.mubr.msk.bf16.gmra.mrb[228].mxu0 %vm23162_vm13, %v5844_v30  ;;  %vm23168_vm13 = vmmov %vm23140_vm0 }
 0xa83   :  { %15862 = vmatpush3.bf16.xpose.msra.mxu1 %v6301_v8 }
 0xa84   :  { %15911 = vmatprep.subr.bf16.mxu1 %v18017_v37 }
 0xa8a   :  { %15864 = vmatmul.mubr.msk.bf16.vlgmr.msra.gmra.mrb[232].mxu1 %vm23140_vm0, %v20627_v18 }
 0xa8b   :  { %15867 = vmatprep.mubr.msk.bf16.mxu1 %vm23164_vm10, %v20619_v35  ;;  %15912 = vmatpush3.bf16.msra.mxu1 %v18017_v37  ;;  %vm23170_vm10 = vmmov %vm23140_vm0 }
 0xa8c   :  { %15913 = vmatprep.subr.bf16.mxu1 %v18018_v59 }
 0xa8f   :  { %15914 = vmatpush3.bf16.msra.mxu1 %v18018_v59 }
 0xa90   :  { %15915 = vmatprep.subr.bf16.mxu1 %v18019_v58 }
 0xa92   :  { %15868 = vmatmul.mubr.msk.bf16.gmra.mrb[236].mxu1 %vm23165_vm14, %v20637_v60  ;;  %vm23171_vm14 = vnez %v23062_v34 }
 0xa93   :  { %15871 = vmatprep.mubr.msk.bf16.mxu1 %vm23166_vm12, %v20623_v24  ;;  %15916 = vmatpush3.bf16.msra.mxu1 %v18019_v58  ;;  %vm23172_vm12 = vnez %v23064_v61 }
 0xa94   :  { %15917 = vmatprep.subr.bf16.mxu1 %v18020_v12 }
 0xa97   :  { %15918 = vmatpush3.bf16.msra.mxu1 %v18020_v12  ;;  %v18023_v12 = vld [vmem:[#allocation7 + $0x124] ss:$12 sps:$4 sm:$0xff]  }
 0xa98   :  { %17519 = vmatprep.subr.msk.bf16.mxu1 %vm23168_vm13, %v23167_v19  ;;  %vm23173_vm13 = vnez %v23066_v31 }
 0xa9a   :  { %15872 = vmatmul.mubr.msk.bf16.gmra.mrb[240].mxu1 %vm23169_vm15, %v20641_v25  ;;  %vm23175_vm15 = vnez %v23174_v53 }
 0xa9b   :  { %15875 = vmatprep.mubr.msk.bf16.mxu1 %vm23140_vm0, %v20635_v4  ;;  %vm23177_vm0 = vnez %v23176_v21 }
 0xaa2   :  { %15876 = vmatmul.mubr.msk.bf16.gmra.mrb[244].mxu1 %vm23170_vm10, %v6230_v17  ;;  %v23178_v17 = vld [vmem:[#allocation145_spill] sm:$0xff] }
 0xaa3   :  { %vm23179_vm10 = vnez %v23178_v17 }
 0xb5d   :  { %v15865_v35 = vpop.f32.mrb[232].mxu1 }
 0xb5e   :  { %v6402_v18 = vsel %vm19908_vm1, %v15865_v35, -1e+30  ;;  %v6337_v39 = vpop.f32.mrb[233].mxu1 }
 0xb5f   :  { %v6400_v24 = vsel %vm19915_vm2, %v6337_v39, -1e+30  ;;  %6420 = vmax.xlane.f32.xlu1 %v6402_v18  ;;  %v15866_v16 = vpop.f32.mrb[234].mxu1 }
 0xb60   :  { %6416 = vmax.xlane.f32.xlu0 %v6400_v24  ;;  %v6340_v36 = vpop.f32.mrb[235].mxu1  ;;  %v6403_v46 = vsel %vm19932_vm3, %v15866_v16, -1e+30 }
 0xb61   :  { %v6401_v4 = vsel %vm19938_vm4, %v6340_v36, -1e+30 }
 0xb63   :  { %6422 = vmax.xlane.f32.xlu1 %v6403_v46 }
 0xb65   :  { %v15869_v26 = vpop.f32.mrb[236].mxu1 }
 0xb66   :  { %v6353_v1 = vpop.f32.mrb[237].mxu1  ;;  %v20714_v33 = vsel %vm19976_vm7, %v15869_v26, -1e+30 }
 0xb67   :  { %6418 = vmax.xlane.f32.xlu1 %v6401_v4  ;;  %v15870_v38 = vpop.f32.mrb[238].mxu1  ;;  %v20709_v15 = vsel %vm19957_vm5, %v6353_v1, -1e+30  ;;  %v18024_v1 = vld [vmem:[#allocation7 + $0x138] ss:$12 sps:$4 sm:$0xff]  }
 0xb68   :  { %v6356_v47 = vpop.f32.mrb[239].mxu1 }
 0xb6d   :  { %v15873_v28 = vpop.f32.mrb[240].mxu1 }
 0xb6e   :  { %v6369_v60 = vpop.f32.mrb[241].mxu1  ;;  %v20743_v48 = vsel %vm23172_vm12, %v15873_v28, -1e+30  ;;  %v18032_v28 = vld [vmem:[#allocation7 + $0x16c] ss:$12 sps:$4 sm:$0xff]  }
 0xb6f   :  { %v15874_v5 = vpop.f32.mrb[242].mxu1  ;;  %v20733_v22 = vsel %vm20000_vm9, %v6369_v60, -1e+30  ;;  %v18030_v60 = vld [vmem:[#allocation7 + $0x168] ss:$12 sps:$4 sm:$0xff]  }
 0xb70   :  { %v6372_v27 = vpop.f32.mrb[243].mxu1  ;;  %v20739_v6 = vsel %vm23171_vm14, %v15874_v5, -1e+30  ;;  %v23180_v5 = vld [vmem:[#allocation119_spill] sm:$0xff] }
 0xb71   :  { %v20729_v7 = vsel %vm23130_vm11, %v6372_v27, -1e+30 }
 0xb75   :  { %v15877_v10 = vpop.f32.mrb[244].mxu1 }
 0xb76   :  { %6556 = vrot.lane.b32.xlu0 %v23092_v41, %s19071_s2  ;;  %v6385_v11 = vpop.f32.mrb[245].mxu1  ;;  %v20719_v41 = vsel %vm19965_vm6, %v6356_v47, -1e+30  ;;  %v20763_v44 = vsel %vm23179_vm10, %v15877_v10, -1e+30 }
 0xb77   :  { %v15878_v23 = vpop.f32.mrb[246].mxu1  ;;  %v20753_v40 = vsel %vm23175_vm15, %v6385_v11, -1e+30  ;;  %v18027_v47 = vld [vmem:[#allocation7 + $0x150] ss:$12 sps:$4 sm:$0xff]  }
 0xb78   :  { %6558 = vrot.lane.b32.xlu1 %v23094_v52, %s19071_s2  ;;  %v6388_v25 = vpop.f32.mrb[247].mxu1  ;;  %v20723_v52 = vsel %vm19988_vm8, %v15870_v38, -1e+30  ;;  %v20759_v30 = vsel %vm23177_vm0, %v15878_v23, -1e+30  ;;  %vm23181_vm0 = vcmask 523264  }
 0xb79   :  { %v20749_v57 = vsel %vm23173_vm13, %v6388_v25, -1e+30  ;;  %v18029_v38 = vld [vmem:[#allocation7 + $0x154] ss:$12 sps:$4 sm:$0xff]   ;;  %vm23182_vm10 = vmmov %vm23181_vm0 }
 0xb7a   :  { %vm23183_vm13 = vmmov %vm23181_vm0 }
 0xb7b   :  { %vm23184_vm15 = vmmov %vm23181_vm0 }
 0xb7c   :  { %vm23187_vm14 = vmmov %vm23181_vm0 }
 0xb7d   :  { %vm23222_vm12 = vmmov %vm23181_vm0 }
 0xb7e   :  { %vm23224_vm11 = vmmov %vm23181_vm0 }
 0xb95   :  { %6424 = vmax.xlane.f32.xlu0 %v20709_v15 }
 0xb99   :  { %6428 = vmax.xlane.f32.xlu0 %v20714_v33 }
 0xb9c   :  { %6426 = vmax.xlane.f32.xlu1 %v20719_v41 }
 0xb9d   :  { %6430 = vmax.xlane.f32.xlu0 %v20723_v52 }
 0xba0   :  { %6434 = vmax.xlane.f32.xlu1 %v20729_v7 }
 0xba1   :  { %6432 = vmax.xlane.f32.xlu0 %v20733_v22 }
 0xba4   :  { %6438 = vmax.xlane.f32.xlu1 %v20739_v6 }
 0xba5   :  { %6436 = vmax.xlane.f32.xlu0 %v20743_v48 }
 0xba8   :  { %6442 = vmax.xlane.f32.xlu1 %v20749_v57 }
 0xba9   :  { %6440 = vmax.xlane.f32.xlu0 %v20753_v40 }
 0xbac   :  { %6446 = vmax.xlane.f32.xlu1 %v20759_v30 }
 0xbad   :  { %6444 = vmax.xlane.f32.xlu0 %v20763_v44 }
 0xbec   :  { %v6421_v2 = vpop.xlane.xlu1 %6420 }
 0xbed   :  { %v6417_v3 = vpop.xlane.xlu0 %6416  ;;  %v6450_v63 = vsub.f32 %v6402_v18, %v6421_v2 }
 0xbee   :  { %v6448_v14 = vsub.f32 %v6400_v24, %v6417_v3 }
 0xbef   :  { %v6468_v9 = vmul.f32 1.442695, %v6450_v63 }
 0xbf0   :  { %v6464_v20 = vmul.f32 1.442695, %v6448_v14  ;;  %v6423_v0 = vpop.xlane.xlu1 %6422 }
 0xbf1   :  { %v6451_v56 = vsub.f32 %v6403_v46, %v6423_v0  ;;  %v6557_v54 = vpop.permute.xlu0 %6556  ;;  %v18021_v46 = vld [vmem:[#allocation7 + $0x120] ss:$12 sps:$4 sm:$0xff]  }
 0xbf2   :  { %18353 = vpow2.f32 %v6464_v20  ;;  %15891 = vmatprep.subr.bf16.mxu0 %v6557_v54 }
 0xbf3   :  { %15892 = vmatpush3.bf16.msra.mxu0 %v6557_v54  ;;  %v6470_v37 = vmul.f32 1.442695, %v6451_v56  ;;  %18355 = vpow2.f32 %v6468_v9 }
 0xbf4   :  { %v6419_v8 = vpop.xlane.xlu1 %6418 }
 0xbf5   :  { %v6449_v59 = vsub.f32 %v6401_v4, %v6419_v8  ;;  %18357 = vpow2.f32 %v6470_v37  ;;  %v18026_v4 = vld [vmem:[#allocation7 + $0x13c] ss:$12 sps:$4 sm:$0xff]  }
 0xbf7   :  { %v6466_v58 = vmul.f32 1.442695, %v6449_v59 }
 0xbf8   :  { %v6559_v35 = vpop.permute.xlu1 %6558 }
 0xbf9   :  { %18359 = vpow2.f32 %v6466_v58  ;;  %15893 = vmatprep.subr.bf16.mxu0 %v6559_v35 }
 0xbfa   :  { %15894 = vmatpush3.bf16.msra.mxu0 %v6559_v35 }
 0xbfb   :  { %6809 = vmatprep.subr.bf16.mxu0 %v18023_v12 }
 0xbfc   :  { %v18354_v18 = vpop.eup %18353 }
 0xbfd   :  { %6496 = vadd.xlane.f32.xlu0 %v18354_v18  ;;  %v18356_v39 = vpop.eup %18355 }
 0xbff   :  { %v18358_v24 = vpop.eup %18357 }
 0xc00   :  { %v6529_v26 = vpack.c.bf16 %v18358_v24, %v18356_v39 }
 0xc01   :  { %6500 = vadd.xlane.f32.xlu0 %v18356_v39 }
 0xc03   :  { %v18360_v16 = vpop.eup %18359 }
 0xc04   :  { %6498 = vadd.xlane.f32.xlu1 %v18360_v16  ;;  %v6528_v36 = vpack.c.bf16 %v18360_v16, %v18354_v18 }
 0xc06   :  { %15895 = vmatprep.mubr.bf16.mxu0 %v6528_v36 }
 0xc07   :  { %15896 = vmatmul.mubr.bf16.vlgmr.msra.gmra.mrb[8].mxu0 %v6529_v26 }
 0xc08   :  { %6810 = vmatpush1.bf16.msra.mxu0 %v18021_v46  ;;  %6502 = vadd.xlane.f32.xlu1 %v18358_v24 }
 0xc09   :  { %6811 = vmatprep.subr.bf16.mxu0 %v18026_v4 }
 0xc0c   :  { %6812 = vmatpush1.bf16.msra.mxu0 %v18024_v1 }
 0xc0d   :  { %6813 = vmatprep.subr.bf16.mxu0 %v18029_v38 }
 0xc10   :  { %6814 = vmatpush1.bf16.msra.mxu0 %v18027_v47 }
 0xc11   :  { %6815 = vmatprep.subr.bf16.mxu0 %v18032_v28 }
 0xc14   :  { %6816 = vmatpush1.bf16.msra.mxu0 %v18030_v60 }
 0xc15   :  { %15967 = vmatprep.subr.bf16.mxu0 %v23180_v5 }
 0xc22   :  { %v6425_v27 = vpop.xlane.xlu0 %6424 }
 0xc23   :  { %v6452_v10 = vsub.f32 %v20709_v15, %v6425_v27 }
 0xc25   :  { %v6472_v11 = vmul.f32 1.442695, %v6452_v10 }
 0xc26   :  { %v6429_v23 = vpop.xlane.xlu0 %6428 }
 0xc27   :  { %18361 = vpow2.f32 %v6472_v11  ;;  %v6454_v25 = vsub.f32 %v20714_v33, %v6429_v23 }
 0xc29   :  { %v6476_v2 = vmul.f32 1.442695, %v6454_v25  ;;  %v6427_v3 = vpop.xlane.xlu1 %6426 }
 0xc2a   :  { %v6453_v63 = vsub.f32 %v20719_v41, %v6427_v3  ;;  %v6431_v14 = vpop.xlane.xlu0 %6430 }
 0xc2b   :  { %18363 = vpow2.f32 %v6476_v2  ;;  %v6455_v20 = vsub.f32 %v20723_v52, %v6431_v14 }
 0xc2c   :  { %v6474_v0 = vmul.f32 1.442695, %v6453_v63 }
 0xc2d   :  { %v6478_v56 = vmul.f32 1.442695, %v6455_v20  ;;  %v6435_v54 = vpop.xlane.xlu1 %6434 }
 0xc2e   :  { %18365 = vpow2.f32 %v6474_v0  ;;  %v6457_v9 = vsub.f32 %v20729_v7, %v6435_v54  ;;  %v6433_v15 = vpop.xlane.xlu0 %6432 }
 0xc2f   :  { %18367 = vpow2.f32 %v6478_v56  ;;  %v6456_v37 = vsub.f32 %v20733_v22, %v6433_v15 }
 0xc30   :  { %v6482_v8 = vmul.f32 1.442695, %v6457_v9 }
 0xc31   :  { %v18362_v33 = vpop.eup %18361  ;;  %v6480_v59 = vmul.f32 1.442695, %v6456_v37  ;;  %v6439_v58 = vpop.xlane.xlu1 %6438 }
 0xc32   :  { %18369 = vpow2.f32 %v6482_v8  ;;  %v6459_v41 = vsub.f32 %v20739_v6, %v6439_v58  ;;  %v6437_v12 = vpop.xlane.xlu0 %6436  ;;  %6504 = vadd.xlane.f32.xlu0 %v18362_v33 }
 0xc33   :  { %18371 = vpow2.f32 %v6480_v59  ;;  %v6458_v52 = vsub.f32 %v20743_v48, %v6437_v12 }
 0xc34   :  { %v6486_v35 = vmul.f32 1.442695, %v6459_v41 }
 0xc35   :  { %v18364_v18 = vpop.eup %18363  ;;  %v6484_v39 = vmul.f32 1.442695, %v6458_v52  ;;  %v6443_v7 = vpop.xlane.xlu1 %6442 }
 0xc36   :  { %18373 = vpow2.f32 %v6486_v35  ;;  %v6461_v24 = vsub.f32 %v20749_v57, %v6443_v7  ;;  %6508 = vadd.xlane.f32.xlu0 %v18364_v18  ;;  %v6441_v22 = vpop.xlane.xlu0 %6440 }
 0xc37   :  { %18375 = vpow2.f32 %v6484_v39  ;;  %v6460_v16 = vsub.f32 %v20753_v40, %v6441_v22  ;;  %v23185_v22 = vld [vmem:[#allocation120_spill] sm:$0xff] }
 0xc38   :  { %v18366_v36 = vpop.eup %18365  ;;  %v6490_v46 = vmul.f32 1.442695, %v6461_v24  ;;  %v7092_v24 = vsel %vm23184_vm15, %v23167_v19, 0  ;;  %vm23194_vm15 = vmmov %vm23181_vm0 }
 0xc39   :  { %v18368_v6 = vpop.eup %18367  ;;  %v6488_v26 = vmul.f32 1.442695, %v6460_v16  ;;  %6506 = vadd.xlane.f32.xlu1 %v18366_v36  ;;  %v6447_v4 = vpop.xlane.xlu1 %6446  ;;  %v6530_v1 = vpack.c.bf16 %v18366_v36, %v18362_v33  ;;  %v23186_v16 = vld [vmem:[#allocation14_spill] sm:$0xff]  ;;  %v23188_v36 = vld [vmem:[#allocation121_spill] sm:$0xff] }
 0xc3a   :  { %v6531_v48 = vpack.c.bf16 %v18368_v6, %v18364_v18  ;;  %18377 = vpow2.f32 %v6490_v46  ;;  %v6463_v38 = vsub.f32 %v20759_v30, %v6447_v4  ;;  %v6445_v47 = vpop.xlane.xlu0 %6444  ;;  %v23193_v4 = vld [vmem:[#allocation123_spill] sm:$0xff] }
 0xc3b   :  { %18379 = vpow2.f32 %v6488_v26  ;;  %v6462_v57 = vsub.f32 %v20763_v44, %v6445_v47  ;;  %15899 = vmatprep.mubr.bf16.mxu0 %v6530_v1  ;;  %v23191_v26 = vld [vmem:[#allocation88_spill] sm:$0xff] }
 0xc3c   :  { %v18370_v28 = vpop.eup %18369  ;;  %v6494_v60 = vmul.f32 1.442695, %v6463_v38  ;;  %15900 = vmatmul.mubr.bf16.gmra.mrb[12].mxu0 %v6531_v48  ;;  %v7098_v1 = vsel %vm23194_vm15, %v23191_v26, 0  ;;  %v23195_v48 = vld [vmem:[#allocation124_spill] sm:$0xff]  ;;  %v23196_v38 = vld [vmem:[#allocation94_spill] sm:$0xff]  ;;  %vm23204_vm15 = vmmov %vm23181_vm0 }
 0xc3d   :  { %v18372_v40 = vpop.eup %18371  ;;  %v6492_v27 = vmul.f32 1.442695, %v6462_v57  ;;  %6510 = vadd.xlane.f32.xlu1 %v18368_v6  ;;  %v23190_v6 = vld [vmem:[#allocation122_spill] sm:$0xff] }
 0xc3e   :  { %18381 = vpow2.f32 %v6494_v60  ;;  %6512 = vadd.xlane.f32.xlu0 %v18372_v40  ;;  %v6532_v10 = vpack.c.bf16 %v18370_v28, %v18372_v40  ;;  %v7101_v60 = vsel %vm23181_vm0, %v23196_v38, 0 }
 0xc3f   :  { %18383 = vpow2.f32 %v6492_v27  ;;  %v23199_v27 = vld [vmem:[#allocation129_spill] sm:$0xff] }
 0xc40   :  { %v18374_v11 = vpop.eup %18373  ;;  %15903 = vmatprep.mubr.bf16.mxu0 %v6532_v10 }
 0xc41   :  { %v18376_v23 = vpop.eup %18375  ;;  %6514 = vadd.xlane.f32.xlu1 %v18370_v28  ;;  %v23198_v28 = vld [vmem:[#allocation126_spill] sm:$0xff] }
 0xc42   :  { %v6533_v30 = vpack.c.bf16 %v18374_v11, %v18376_v23  ;;  %6516 = vadd.xlane.f32.xlu0 %v18376_v23 }
 0xc44   :  { %v18378_v25 = vpop.eup %18377  ;;  %15904 = vmatmul.mubr.bf16.gmra.mrb[16].mxu0 %v6533_v30 }
 0xc45   :  { %v18380_v44 = vpop.eup %18379  ;;  %6518 = vadd.xlane.f32.xlu1 %v18374_v11  ;;  %v23200_v11 = vld [vmem:[#allocation100_spill] sm:$0xff] }
 0xc46   :  { %6520 = vadd.xlane.f32.xlu0 %v18380_v44  ;;  %v6534_v2 = vpack.c.bf16 %v18378_v25, %v18380_v44  ;;  %v23203_v44 = vld [vmem:[#allocation106_spill] sm:$0xff] }
 0xc48   :  { %v18382_v3 = vpop.eup %18381  ;;  %15907 = vmatprep.mubr.bf16.mxu0 %v6534_v2 }
 0xc49   :  { %v18384_v63 = vpop.eup %18383  ;;  %6522 = vadd.xlane.f32.xlu1 %v18378_v25 }
 0xc4a   :  { %v6535_v14 = vpack.c.bf16 %v18382_v3, %v18384_v63  ;;  %6524 = vadd.xlane.f32.xlu0 %v18384_v63 }
 0xc4c   :  { %15908 = vmatmul.mubr.bf16.gmra.mrb[20].mxu0 %v6535_v14 }
 0xc4d   :  { %6526 = vadd.xlane.f32.xlu1 %v18382_v3  ;;  %6841 = vmatprep.mubr.bf16.mxu0 %v22831_v62 }
 0xc8a   :  { %v6497_v20 = vpop.xlane.xlu0 %6496 }
 0xc8b   :  { %18385 = vrcp.f32 %v6497_v20  ;;  %v23206_v20 = vld [vmem:[#allocation27_spill] sm:$0xff] }
 0xc8e   :  { %v6501_v56 = vpop.xlane.xlu0 %6500 }
 0xc8f   :  { %18387 = vrcp.f32 %v6501_v56 }
 0xc91   :  { %v6499_v0 = vpop.xlane.xlu1 %6498 }
 0xc95   :  { %v6503_v54 = vpop.xlane.xlu1 %6502  ;;  %v18386_v9 = vpop.eup %18385 }
 0xc96   :  { %18389 = vrcp.f32 %v6503_v54 }
 0xc97   :  { %18391 = vrcp.f32 %v6499_v0 }
 0xc99   :  { %v18388_v37 = vpop.eup %18387 }
 0xca0   :  { %v18390_v33 = vpop.eup %18389 }
 0xca1   :  { %v18392_v58 = vpop.eup %18391 }
 0xcbf   :  { %v6505_v57 = vpop.xlane.xlu0 %6504 }
 0xcc0   :  { %18393 = vrcp.f32 %v6505_v57 }
 0xcc3   :  { %v6509_v10 = vpop.xlane.xlu0 %6508 }
 0xcc4   :  { %18395 = vrcp.f32 %v6509_v10 }
 0xcc6   :  { %v6507_v47 = vpop.xlane.xlu1 %6506 }
 0xcca   :  { %v6511_v40 = vpop.xlane.xlu1 %6510  ;;  %v18394_v56 = vpop.eup %18393 }
 0xccb   :  { %v6513_v23 = vpop.xlane.xlu0 %6512  ;;  %18397 = vrcp.f32 %v6511_v40 }
 0xccc   :  { %18399 = vrcp.f32 %v6507_v47 }
 0xccd   :  { %18401 = vrcp.f32 %v6513_v23 }
 0xcce   :  { %v6515_v30 = vpop.xlane.xlu1 %6514 }
 0xccf   :  { %v6517_v2 = vpop.xlane.xlu0 %6516 }
 0xcd0   :  { %18403 = vrcp.f32 %v6517_v2 }
 0xcd2   :  { %v6519_v3 = vpop.xlane.xlu1 %6518 }
 0xcd3   :  { %v6521_v14 = vpop.xlane.xlu0 %6520  ;;  %18405 = vrcp.f32 %v6519_v3 }
 0xcd4   :  { %18407 = vrcp.f32 %v6515_v30 }
 0xcd5   :  { %18409 = vrcp.f32 %v6521_v14 }
 0xcd6   :  { %v6523_v0 = vpop.xlane.xlu1 %6522 }
 0xcda   :  { %v15897_v15 = vpop.f32.mrb[8].mxu0 }
 0xcdb   :  { %v6602_v8 = vpop.f32.mrb[9].mxu0  ;;  %v6683_v41 = vmul.f32 %v18388_v37, %v15897_v15 }
 0xcdc   :  { %v15898_v59 = vpop.f32.mrb[10].mxu0  ;;  %v6681_v35 = vmul.f32 %v18386_v9, %v6602_v8  ;;  %v18396_v9 = vpop.eup %18395 }
 0xcdd   :  { %v6684_v12 = vmul.f32 %v18390_v33, %v15898_v59  ;;  %v6605_v52 = vpop.f32.mrb[11].mxu0  ;;  %v18398_v37 = vpop.eup %18397 }
 0xcde   :  { %v6682_v18 = vmul.f32 %v18392_v58, %v6605_v52  ;;  %v18400_v33 = vpop.eup %18399 }
 0xcdf   :  { %v6698_v39 = vpack.c.bf16 %v6684_v12, %v6683_v41  ;;  %v6525_v12 = vpop.xlane.xlu0 %6524 }
 0xce0   :  { %v6697_v7 = vpack.c.bf16 %v6682_v18, %v6681_v35  ;;  %18411 = vrcp.f32 %v6525_v12 }
 0xce2   :  { %14439 = vmatmul.mubr.msk.bf16.vlgmr.msra.gmra.mrb[200].mxu0 %vm23181_vm0, %v6697_v7  ;;  %15919 = vmatprep.mubr.msk.bf16.mxu1 %vm23182_vm10, %v6697_v7  ;;  %vm23197_vm10 = vmmov %vm23181_vm0 }
 0xce3   :  { %15968 = vmatpush3.bf16.msra.mxu0 %v23180_v5  ;;  %15920 = vmatmul.mubr.msk.bf16.vlgmr.msra.gmra.mrb[184].mxu1 %vm23183_vm13, %v6698_v39  ;;  %vm23189_vm13 = vmmov %vm23181_vm0 }
 0xce4   :  { %15936 = vmatpush3.bf16.xpose.msra.mxu1 %v7092_v24  ;;  %15969 = vmatprep.subr.bf16.mxu0 %v23185_v22  ;;  %v7095_v46 = vsel %vm23189_vm13, %v23186_v16, 0  ;;  %vm23201_vm13 = vmmov %vm23181_vm0 }
 0xce5   :  { %17520 = vmatprep.subr.msk.bf16.mxu1 %vm23187_vm14, %v23186_v16  ;;  %6851 = vmatprep.mubr.bf16.mxu0 %v22831_v62  ;;  %vm23192_vm14 = vmmov %vm23181_vm0 }
 0xce7   :  { %15970 = vmatpush3.bf16.msra.mxu0 %v23185_v22 }
 0xce8   :  { %15971 = vmatprep.subr.bf16.mxu0 %v23188_v36 }
 0xcea   :  { %14440 = vmatmul.mubr.msk.bf16.gmra.mrb[204].mxu0 %vm23181_vm0, %v6698_v39  ;;  %v6527_v39 = vpop.xlane.xlu1 %6526 }
 0xceb   :  { %15972 = vmatpush3.bf16.msra.mxu0 %v23188_v36  ;;  %6861 = vmatprep.mubr.bf16.mxu0 %v22831_v62  ;;  %18413 = vrcp.f32 %v6527_v39 }
 0xcec   :  { %15938 = vmatpush3.bf16.xpose.msra.mxu1 %v7095_v46  ;;  %15973 = vmatprep.subr.bf16.mxu0 %v23190_v6  ;;  %v23208_v46 = vld [vmem:[#allocation37_spill] sm:$0xff]  ;;  %18415 = vrcp.f32 %v6523_v0 }
 0xced   :  { %17521 = vmatprep.subr.msk.bf16.mxu1 %vm23192_vm14, %v23191_v26  ;;  %vm23202_vm14 = vmmov %vm23181_vm0 }
 0xcee   :  { %v7104_v25 = vsel %vm23202_vm14, %v23200_v11, 0  ;;  %vm23209_vm14 = vmmov %vm23181_vm0 }
 0xcef   :  { %15974 = vmatpush3.bf16.msra.mxu0 %v23190_v6 }
 0xcf0   :  { %15975 = vmatprep.subr.bf16.mxu0 %v23193_v4 }
 0xcf3   :  { %15976 = vmatpush3.bf16.msra.mxu0 %v23193_v4 }
 0xcf4   :  { %15940 = vmatpush3.bf16.xpose.msra.mxu1 %v7098_v1  ;;  %15977 = vmatprep.subr.bf16.mxu0 %v23195_v48  ;;  %v18402_v1 = vpop.eup %18401 }
 0xcf5   :  { %17522 = vmatprep.subr.msk.bf16.mxu1 %vm23197_vm10, %v23196_v38  ;;  %vm23205_vm10 = vmmov %vm23181_vm0  ;;  %v18404_v57 = vpop.eup %18403 }
 0xcf6   :  { %v7107_v63 = vsel %vm23205_vm10, %v23203_v44, 0  ;;  %vm23211_vm10 = vmmov %vm23181_vm0  ;;  %v18406_v40 = vpop.eup %18405 }
 0xcf7   :  { %15978 = vmatpush3.bf16.msra.mxu0 %v23195_v48  ;;  %v18408_v23 = vpop.eup %18407 }
 0xcf8   :  { %15979 = vmatprep.subr.bf16.mxu0 %v23198_v28  ;;  %v18410_v0 = vpop.eup %18409 }
 0xcfb   :  { %15980 = vmatpush3.bf16.msra.mxu0 %v23198_v28 }
 0xcfc   :  { %15942 = vmatpush3.bf16.xpose.msra.mxu1 %v7101_v60  ;;  %15981 = vmatprep.subr.bf16.mxu0 %v23199_v27 }
 0xcfd   :  { %17523 = vmatprep.subr.msk.bf16.mxu1 %vm23201_vm13, %v23200_v11  ;;  %vm23207_vm13 = vmmov %vm23181_vm0 }
 0xcfe   :  { %v7110_v18 = vsel %vm23207_vm13, %v23206_v20, 0  ;;  %vm23212_vm13 = vmmov %vm23181_vm0 }
 0xcff   :  { %15982 = vmatpush3.bf16.msra.mxu0 %v23199_v27  ;;  %v7113_v14 = vsel %vm23212_vm13, %v23208_v46, 0  ;;  %vm23216_vm13 = vmmov %vm23181_vm0 }
 0xd04   :  { %15944 = vmatpush3.bf16.xpose.msra.mxu1 %v7104_v25 }
 0xd05   :  { %17524 = vmatprep.subr.msk.bf16.mxu1 %vm23204_vm15, %v23203_v44  ;;  %vm23210_vm15 = vmmov %vm23181_vm0 }
 0xd0c   :  { %15946 = vmatpush3.bf16.xpose.msra.mxu1 %v7107_v63 }
 0xd0d   :  { %17525 = vmatprep.subr.msk.bf16.mxu1 %vm23181_vm0, %v23206_v20 }
 0xd0f   :  { %v15901_v54 = vpop.f32.mrb[12].mxu0 }
 0xd10   :  { %v6618_v15 = vpop.f32.mrb[13].mxu0  ;;  %v6687_v59 = vmul.f32 %v18396_v9, %v15901_v54 }
 0xd11   :  { %v15902_v8 = vpop.f32.mrb[14].mxu0  ;;  %v6685_v52 = vmul.f32 %v18394_v56, %v6618_v15  ;;  %v18412_v15 = vpop.eup %18411 }
 0xd12   :  { %v6688_v58 = vmul.f32 %v18398_v37, %v15902_v8  ;;  %v6621_v41 = vpop.f32.mrb[15].mxu0  ;;  %v18414_v8 = vpop.eup %18413 }
 0xd13   :  { %v6686_v35 = vmul.f32 %v18400_v33, %v6621_v41 }
 0xd14   :  { %v6700_v7 = vpack.c.bf16 %v6688_v58, %v6687_v59  ;;  %15948 = vmatpush3.bf16.xpose.msra.mxu1 %v7110_v18  ;;  %v18416_v59 = vpop.eup %18415 }
 0xd15   :  { %v6699_v24 = vpack.c.bf16 %v6686_v35, %v6685_v52  ;;  %17526 = vmatprep.subr.msk.bf16.mxu1 %vm23209_vm14, %v23208_v46  ;;  %vm23213_vm14 = vmmov %vm23181_vm0 }
 0xd17   :  { %v15905_v47 = vpop.f32.mrb[16].mxu0  ;;  %14441 = vmatmul.mubr.msk.bf16.gmra.mrb[208].mxu0 %vm23210_vm15, %v6699_v24  ;;  %15923 = vmatprep.mubr.msk.bf16.mxu1 %vm23211_vm10, %v6699_v24  ;;  %vm23214_vm15 = vmmov %vm23181_vm0  ;;  %v23221_v24 = vld [vmem:[#allocation21_spill] sm:$0xff] }
 0xd18   :  { %v6634_v60 = vpop.f32.mrb[17].mxu0  ;;  %15924 = vmatmul.mubr.msk.bf16.gmra.mrb[188].mxu1 %vm23181_vm0, %v6700_v7  ;;  %6871 = vmatprep.mubr.bf16.mxu0 %v22831_v62  ;;  %v6691_v30 = vmul.f32 %v18404_v57, %v15905_v47  ;;  %vm23215_vm10 = vmmov %vm23181_vm0  ;;  %v23225_v47 = vld [vmem:[#allocation29_spill] sm:$0xff]  ;;  %v23227_v57 = vld [vmem:[#allocation34_spill] sm:$0xff] }
 0xd19   :  { %v15906_v10 = vpop.f32.mrb[18].mxu0  ;;  %v6689_v3 = vmul.f32 %v18402_v1, %v6634_v60  ;;  %v23223_v1 = vld [vmem:[#allocation25_spill] sm:$0xff]  ;;  %v23230_v60 = vld [vmem:[#allocation38_spill] sm:$0xff] }
 0xd1a   :  { %v6692_v25 = vmul.f32 %v18406_v40, %v15906_v10  ;;  %v6637_v2 = vpop.f32.mrb[19].mxu0  ;;  %v23232_v40 = vld [vmem:[#allocation41_spill] sm:$0xff]  ;;  %v23234_v10 = vld [vmem:[#allocation44_spill] sm:$0xff] }
 0xd1b   :  { %v6690_v63 = vmul.f32 %v18408_v23, %v6637_v2 }
 0xd1c   :  { %v6702_v56 = vpack.c.bf16 %v6692_v25, %v6691_v30  ;;  %15950 = vmatpush3.bf16.xpose.msra.mxu1 %v7113_v14 }
 0xd1d   :  { %v6701_v54 = vpack.c.bf16 %v6690_v63, %v6689_v3 }
 0xd1f   :  { %v15909_v9 = vpop.f32.mrb[20].mxu0  ;;  %14442 = vmatmul.mubr.msk.bf16.gmra.mrb[212].mxu0 %vm23213_vm14, %v6700_v7  ;;  %15927 = vmatprep.mubr.msk.bf16.mxu1 %vm23214_vm15, %v6701_v54  ;;  %vm23217_vm14 = vmmov %vm23181_vm0  ;;  %v23218_v7 = vld [vmem:[#allocation17_spill] sm:$0xff] }
 0xd20   :  { %v6650_v37 = vpop.f32.mrb[21].mxu0  ;;  %15928 = vmatmul.mubr.msk.bf16.gmra.mrb[192].mxu1 %vm23215_vm10, %v6702_v56  ;;  %6881 = vmatprep.mubr.bf16.mxu0 %v22831_v62  ;;  %v6695_v58 = vmul.f32 %v18412_v15, %v15909_v9  ;;  %vm23219_vm15 = vmmov %vm23181_vm0 }
 0xd21   :  { %v15910_v33 = vpop.f32.mrb[22].mxu0  ;;  %v6693_v52 = vmul.f32 %v18410_v0, %v6650_v37  ;;  %vm23220_vm10 = vmmov %vm23181_vm0 }
 0xd22   :  { %v6696_v41 = vmul.f32 %v18414_v8, %v15910_v33  ;;  %v6653_v12 = vpop.f32.mrb[23].mxu0 }
 0xd23   :  { %v6694_v35 = vmul.f32 %v18416_v59, %v6653_v12 }
 0xd24   :  { %v6704_v18 = vpack.c.bf16 %v6696_v41, %v6695_v58 }
 0xd25   :  { %v6703_v39 = vpack.c.bf16 %v6694_v35, %v6693_v52 }
 0xd27   :  { %14443 = vmatmul.mubr.msk.bf16.gmra.mrb[216].mxu0 %vm23181_vm0, %v6701_v54  ;;  %15931 = vmatprep.mubr.msk.bf16.mxu1 %vm23216_vm13, %v6703_v39  ;;  %vm23226_vm13 = vmmov %vm23181_vm0 }
 0xd28   :  { %15932 = vmatmul.mubr.msk.bf16.gmra.mrb[196].mxu1 %vm23217_vm14, %v6704_v18  ;;  %6891 = vmatprep.mubr.bf16.mxu0 %v22831_v62  ;;  %vm23228_vm14 = vmmov %vm23181_vm0 }
 0xd29   :  { %15951 = vmatprep.mubr.msk.bf16.mxu1 %vm23219_vm15, %v23218_v7  ;;  %vm23229_vm15 = vmmov %vm23181_vm0 }
 0xd2f   :  { %14444 = vmatmul.mubr.msk.bf16.gmra.mrb[220].mxu0 %vm23220_vm10, %v6702_v56  ;;  %vm23231_vm10 = vmmov %vm23181_vm0 }
 0xd30   :  { %15952 = vmatmul.mubr.msk.bf16.vlgmr.msra.gmra.mrb[248].mxu1 %vm23222_vm12, %v23221_v24  ;;  %6901 = vmatprep.mubr.bf16.mxu0 %v22831_v62  ;;  %vm23233_vm12 = vmmov %vm23181_vm0 }
 0xd31   :  { %15955 = vmatprep.mubr.msk.bf16.mxu1 %vm23224_vm11, %v23223_v1  ;;  %vm23235_vm11 = vmmov %vm23181_vm0 }
 0xd37   :  { %14445 = vmatmul.mubr.msk.bf16.gmra.mrb[224].mxu0 %vm23181_vm0, %v6703_v39  ;;  %vm23236_vm0 = vnez %v23060_v43 }
 0xd38   :  { %15956 = vmatmul.mubr.msk.bf16.gmra.mrb[252].mxu1 %vm23226_vm13, %v23225_v47  ;;  %6911 = vmatprep.mubr.bf16.mxu0 %v22831_v62  ;;  %vm23237_vm13 = vnez %v23064_v61 }
 0xd39   :  { %15959 = vmatprep.mubr.msk.bf16.mxu1 %vm23228_vm14, %v23227_v57  ;;  %vm23238_vm14 = vnez %v23062_v34 }
 0xd3f   :  { %14446 = vmatmul.mubr.msk.bf16.gmra.mrb[228].mxu0 %vm23229_vm15, %v6704_v18  ;;  %vm23239_vm15 = vnez %v23174_v53 }
 0xd40   :  { %15960 = vmatmul.mubr.msk.bf16.gmra.mrb[0].mxu1 %vm23231_vm10, %v23230_v60  ;;  %vm23240_vm10 = vnez %v23066_v31 }
 0xd41   :  { %15963 = vmatprep.mubr.msk.bf16.mxu1 %vm23233_vm12, %v23232_v40  ;;  %vm23241_vm12 = vnez %v23178_v17 }
 0xd48   :  { %15964 = vmatmul.mubr.msk.bf16.gmra.mrb[4].mxu1 %vm23235_vm11, %v23234_v10  ;;  %vm23242_vm11 = vnez %v23176_v21 }
 0xe03   :  { %v15953_v23 = vpop.f32.mrb[248].mxu1 }
 0xe04   :  { %v7149_v30 = vpop.f32.mrb[249].mxu1  ;;  %v20877_v14 = vsel %vm19908_vm1, %v15953_v23, -1e+30 }
 0xe05   :  { %v20867_v25 = vsel %vm19915_vm2, %v7149_v30, -1e+30  ;;  %v15954_v2 = vpop.f32.mrb[250].mxu1 }
 0xe06   :  { %7228 = vmax.xlane.f32.xlu0 %v20867_v25  ;;  %v7152_v3 = vpop.f32.mrb[251].mxu1  ;;  %v20882_v56 = vsel %vm19932_vm3, %v15954_v2, -1e+30 }
 0xe07   :  { %v20872_v63 = vsel %vm19938_vm4, %v7152_v3, -1e+30 }
 0xe08   :  { %7230 = vmax.xlane.f32.xlu1 %v20872_v63 }
 0xe0a   :  { %7232 = vmax.xlane.f32.xlu0 %v20877_v14 }
 0xe0b   :  { %v15957_v54 = vpop.f32.mrb[252].mxu1 }
 0xe0c   :  { %7234 = vmax.xlane.f32.xlu1 %v20882_v56  ;;  %v7165_v0 = vpop.f32.mrb[253].mxu1  ;;  %v20897_v33 = vsel %vm19976_vm7, %v15957_v54, -1e+30 }
 0xe0d   :  { %v20887_v9 = vsel %vm19957_vm5, %v7165_v0, -1e+30  ;;  %v15958_v15 = vpop.f32.mrb[254].mxu1 }
 0xe0e   :  { %7236 = vmax.xlane.f32.xlu0 %v20887_v9  ;;  %v7168_v37 = vpop.f32.mrb[255].mxu1  ;;  %v20902_v59 = vsel %vm19988_vm8, %v15958_v15, -1e+30 }
 0xe0f   :  { %v20892_v8 = vsel %vm19965_vm6, %v7168_v37, -1e+30 }
 0xe10   :  { %7238 = vmax.xlane.f32.xlu1 %v20892_v8 }
 0xe12   :  { %7240 = vmax.xlane.f32.xlu0 %v20897_v33 }
 0xe13   :  { %v15961_v58 = vpop.f32.mrb[0].mxu1 }
 0xe14   :  { %7242 = vmax.xlane.f32.xlu1 %v20902_v59  ;;  %v7181_v41 = vpop.f32.mrb[1].mxu1  ;;  %v20917_v39 = vsel %vm23237_vm13, %v15961_v58, -1e+30 }
 0xe15   :  { %v20907_v12 = vsel %vm20000_vm9, %v7181_v41, -1e+30  ;;  %v15962_v52 = vpop.f32.mrb[2].mxu1  ;;  %v18033_v41 = vld [vmem:[#allocation7 + $0x188] ss:$12 sps:$4 sm:$0xff]  }
 0xe16   :  { %7244 = vmax.xlane.f32.xlu0 %v20907_v12  ;;  %v7184_v35 = vpop.f32.mrb[3].mxu1  ;;  %v20922_v23 = vsel %vm23238_vm14, %v15962_v52, -1e+30  ;;  %15999 = vmatprep.subr.bf16.mxu1 %v18033_v41  ;;  %v18034_v52 = vld [vmem:[#allocation7 + $0x1a0] ss:$12 sps:$4 sm:$0xff]  }
 0xe17   :  { %v20912_v18 = vsel %vm23236_vm0, %v7184_v35, -1e+30  ;;  %16000 = vmatpush3.bf16.msra.mxu1 %v18033_v41  ;;  %v18035_v35 = vld [vmem:[#allocation7 + $0x1b8] ss:$12 sps:$4 sm:$0xff]  }
 0xe18   :  { %7246 = vmax.xlane.f32.xlu1 %v20912_v18  ;;  %16001 = vmatprep.subr.bf16.mxu1 %v18034_v52 }
 0xe1a   :  { %7248 = vmax.xlane.f32.xlu0 %v20917_v39 }
 0xe1b   :  { %v15965_v30 = vpop.f32.mrb[4].mxu1  ;;  %16002 = vmatpush3.bf16.msra.mxu1 %v18034_v52 }
 0xe1c   :  { %7250 = vmax.xlane.f32.xlu1 %v20922_v23  ;;  %v7197_v2 = vpop.f32.mrb[5].mxu1  ;;  %v20937_v37 = vsel %vm23241_vm12, %v15965_v30, -1e+30  ;;  %16003 = vmatprep.subr.bf16.mxu1 %v18035_v35  ;;  %vm23243_vm12 = vcmask 523264  }
 0xe1d   :  { %v20927_v3 = vsel %vm23239_vm15, %v7197_v2, -1e+30  ;;  %v15966_v54 = vpop.f32.mrb[6].mxu1  ;;  %v18036_v2 = vld [vmem:[#allocation7 + $0x1d0] ss:$12 sps:$4 sm:$0xff]  }
 0xe1e   :  { %7252 = vmax.xlane.f32.xlu0 %v20927_v3  ;;  %v7200_v0 = vpop.f32.mrb[7].mxu1  ;;  %v20942_v58 = vsel %vm23242_vm11, %v15966_v54, -1e+30  ;;  %vm23244_vm11 = vmmov %vm23243_vm12 }
 0xe1f   :  { %v20932_v15 = vsel %vm23240_vm10, %v7200_v0, -1e+30  ;;  %16004 = vmatpush3.bf16.msra.mxu1 %v18035_v35  ;;  %vm23245_vm15 = vmmov %vm23244_vm11 }
 0xe20   :  { %7254 = vmax.xlane.f32.xlu1 %v20932_v15  ;;  %16005 = vmatprep.subr.bf16.mxu1 %v18036_v2  ;;  %vm23246_vm10 = vmmov %vm23244_vm11 }
 0xe21   :  { %vm23258_vm13 = vmmov %vm23246_vm10 }
 0xe22   :  { %7256 = vmax.xlane.f32.xlu0 %v20937_v37  ;;  %vm23259_vm14 = vmmov %vm23246_vm10 }
 0xe23   :  { %16006 = vmatpush3.bf16.msra.mxu1 %v18036_v2 }
 0xe24   :  { %7258 = vmax.xlane.f32.xlu1 %v20942_v58 }
 0xe35   :  { %7881 = vrot.lane.b32.xlu1 %v23186_v16, %s19071_s2 }
 0xe38   :  { %7879 = vrot.lane.b32.xlu0 %v23167_v19, %s19071_s2 }
 0xe39   :  { %7885 = vrot.lane.b32.xlu1 %v23196_v38, %s19071_s2 }
 0xe3c   :  { %7883 = vrot.lane.b32.xlu0 %v23191_v26, %s19071_s2 }
 0xe93   :  { %v7229_v30 = vpop.xlane.xlu0 %7228 }
 0xe94   :  { %v7260_v54 = vsub.f32 %v20867_v25, %v7229_v30 }
 0xe95   :  { %v7231_v0 = vpop.xlane.xlu1 %7230 }
 0xe96   :  { %v7276_v41 = vmul.f32 1.442695, %v7260_v54  ;;  %v7261_v52 = vsub.f32 %v20872_v63, %v7231_v0 }
 0xe97   :  { %v7233_v35 = vpop.xlane.xlu0 %7232 }
 0xe98   :  { %v7278_v2 = vmul.f32 1.442695, %v7261_v52  ;;  %v7262_v16 = vsub.f32 %v20877_v14, %v7233_v35  ;;  %18417 = vpow2.f32 %v7276_v41 }
 0xe99   :  { %v7235_v17 = vpop.xlane.xlu1 %7234 }
 0xe9a   :  { %18419 = vpow2.f32 %v7278_v2  ;;  %v7280_v19 = vmul.f32 1.442695, %v7262_v16  ;;  %v7263_v38 = vsub.f32 %v20882_v56, %v7235_v17 }
 0xe9b   :  { %v7237_v21 = vpop.xlane.xlu0 %7236 }
 0xe9c   :  { %18421 = vpow2.f32 %v7280_v19  ;;  %v7282_v26 = vmul.f32 1.442695, %v7263_v38  ;;  %v7264_v53 = vsub.f32 %v20887_v9, %v7237_v21 }
 0xe9d   :  { %v7239_v25 = vpop.xlane.xlu1 %7238 }
 0xe9e   :  { %18423 = vpow2.f32 %v7282_v26  ;;  %v7284_v30 = vmul.f32 1.442695, %v7264_v53  ;;  %v7265_v63 = vsub.f32 %v20892_v8, %v7239_v25 }
 0xe9f   :  { %v7241_v54 = vpop.xlane.xlu0 %7240 }
 0xea0   :  { %v7286_v0 = vmul.f32 1.442695, %v7265_v63  ;;  %v7266_v14 = vsub.f32 %v20897_v33, %v7241_v54  ;;  %18425 = vpow2.f32 %v7284_v30 }
 0xea1   :  { %v7243_v41 = vpop.xlane.xlu1 %7242 }
 0xea2   :  { %18427 = vpow2.f32 %v7286_v0  ;;  %v7288_v52 = vmul.f32 1.442695, %v7266_v14  ;;  %v7267_v17 = vsub.f32 %v20902_v59, %v7243_v41  ;;  %v18418_v56 = vpop.eup %18417 }
 0xea3   :  { %v7245_v35 = vpop.xlane.xlu0 %7244 }
 0xea4   :  { %v18420_v2 = vpop.eup %18419  ;;  %v7290_v16 = vmul.f32 1.442695, %v7267_v17  ;;  %v7268_v21 = vsub.f32 %v20907_v12, %v7245_v35  ;;  %18429 = vpow2.f32 %v7288_v52 }
 0xea5   :  { %v7247_v53 = vpop.xlane.xlu1 %7246  ;;  %v7340_v9 = vpack.c.bf16 %v18420_v2, %v18418_v56 }
 0xea6   :  { %v18422_v8 = vpop.eup %18421  ;;  %18431 = vpow2.f32 %v7290_v16  ;;  %v7292_v19 = vmul.f32 1.442695, %v7268_v21  ;;  %v7269_v33 = vsub.f32 %v20912_v18, %v7247_v53 }
 0xea7   :  { %v7249_v38 = vpop.xlane.xlu0 %7248  ;;  %7312 = vadd.xlane.f32.xlu0 %v18422_v8  ;;  %15983 = vmatprep.mubr.bf16.mxu0 %v7340_v9 }
 0xea8   :  { %v18424_v26 = vpop.eup %18423  ;;  %v7294_v25 = vmul.f32 1.442695, %v7269_v33  ;;  %v7270_v59 = vsub.f32 %v20917_v39, %v7249_v38  ;;  %18433 = vpow2.f32 %v7292_v19 }
 0xea9   :  { %v7341_v30 = vpack.c.bf16 %v18424_v26, %v18422_v8  ;;  %v7251_v63 = vpop.xlane.xlu1 %7250  ;;  %7314 = vadd.xlane.f32.xlu1 %v18424_v26 }
 0xeaa   :  { %18435 = vpow2.f32 %v7294_v25  ;;  %v7296_v12 = vmul.f32 1.442695, %v7270_v59  ;;  %v7271_v54 = vsub.f32 %v20922_v23, %v7251_v63  ;;  %v18426_v0 = vpop.eup %18425 }
 0xeab   :  { %7308 = vadd.xlane.f32.xlu0 %v18418_v56  ;;  %v7253_v14 = vpop.xlane.xlu0 %7252  ;;  %15984 = vmatmul.mubr.bf16.vlgmr.msra.gmra.mrb[24].mxu0 %v7341_v30 }
 0xeac   :  { %v18428_v18 = vpop.eup %18427  ;;  %v7298_v41 = vmul.f32 1.442695, %v7271_v54  ;;  %v7272_v52 = vsub.f32 %v20927_v3, %v7253_v14  ;;  %18437 = vpow2.f32 %v7296_v12 }
 0xead   :  { %7310 = vadd.xlane.f32.xlu1 %v18420_v2  ;;  %v7255_v17 = vpop.xlane.xlu1 %7254  ;;  %v7342_v39 = vpack.c.bf16 %v18428_v18, %v18426_v0 }
 0xeae   :  { %18439 = vpow2.f32 %v7298_v41  ;;  %v7300_v35 = vmul.f32 1.442695, %v7272_v52  ;;  %v7273_v16 = vsub.f32 %v20932_v15, %v7255_v17  ;;  %v18430_v21 = vpop.eup %18429  ;;  %v18037_v52 = vld [vmem:[#allocation7 + $0x180] ss:$12 sps:$4 sm:$0xff]   ;;  %v18042_v17 = vld [vmem:[#allocation7 + $0x19c] ss:$12 sps:$4 sm:$0xff]  }
 0xeaf   :  { %v7257_v53 = vpop.xlane.xlu0 %7256  ;;  %15987 = vmatprep.mubr.bf16.mxu0 %v7342_v39  ;;  %v18045_v39 = vld [vmem:[#allocation7 + $0x1b4] ss:$12 sps:$4 sm:$0xff]  }
 0xeb0   :  { %v18432_v23 = vpop.eup %18431  ;;  %v7302_v9 = vmul.f32 1.442695, %v7273_v16  ;;  %v7274_v56 = vsub.f32 %v20937_v37, %v7257_v53  ;;  %18441 = vpow2.f32 %v7300_v35  ;;  %v18046_v35 = vld [vmem:[#allocation7 + $0x1c8] ss:$12 sps:$4 sm:$0xff]  }
 0xeb1   :  { %v7343_v8 = vpack.c.bf16 %v18432_v23, %v18430_v21  ;;  %v7259_v19 = vpop.xlane.xlu1 %7258 }
 0xeb2   :  { %18443 = vpow2.f32 %v7302_v9  ;;  %v7304_v3 = vmul.f32 1.442695, %v7274_v56  ;;  %v7275_v2 = vsub.f32 %v20942_v58, %v7259_v19  ;;  %v18434_v33 = vpop.eup %18433 }
 0xeb3   :  { %v20969_v38 = vpop.permute.xlu0 %7879  ;;  %15988 = vmatmul.mubr.bf16.gmra.mrb[28].mxu0 %v7343_v8 }
 0xeb4   :  { %v18436_v26 = vpop.eup %18435  ;;  %v7306_v15 = vmul.f32 1.442695, %v7275_v2  ;;  %17527 = vmatprep.subr.msk.bf16.mxu1 %vm23243_vm12, %v20969_v38  ;;  %18445 = vpow2.f32 %v7304_v3 }
 0xeb5   :  { %v7344_v25 = vpack.c.bf16 %v18436_v26, %v18434_v33 }
 0xeb6   :  { %18447 = vpow2.f32 %v7306_v15  ;;  %v18438_v37 = vpop.eup %18437 }
 0xeb7   :  { %15991 = vmatprep.mubr.bf16.mxu0 %v7344_v25 }
 0xeb8   :  { %v18440_v59 = vpop.eup %18439 }
 0xeb9   :  { %v7345_v30 = vpack.c.bf16 %v18440_v59, %v18438_v37 }
 0xeba   :  { %v18442_v63 = vpop.eup %18441 }
 0xebb   :  { %15992 = vmatmul.mubr.bf16.gmra.mrb[32].mxu0 %v7345_v30 }
 0xebc   :  { %v18444_v12 = vpop.eup %18443 }
 0xebd   :  { %v7346_v58 = vpack.c.bf16 %v18444_v12, %v18442_v63 }
 0xebe   :  { %7889 = vrot.lane.b32.xlu1 %v23203_v44, %s19071_s2  ;;  %v18446_v54 = vpop.eup %18445  ;;  %v18039_v44 = vld [vmem:[#allocation7 + $0x184] ss:$12 sps:$4 sm:$0xff]  }
 0xebf   :  { %15995 = vmatprep.mubr.bf16.mxu0 %v7346_v58  ;;  %7589 = vmatprep.subr.bf16.mxu0 %v18039_v44 }
 0xec0   :  { %v18448_v14 = vpop.eup %18447  ;;  %7590 = vmatpush1.bf16.msra.mxu0 %v18037_v52 }
 0xec1   :  { %v7347_v41 = vpack.c.bf16 %v18448_v14, %v18446_v54  ;;  %7887 = vrot.lane.b32.xlu0 %v23200_v11, %s19071_s2  ;;  %v18040_v11 = vld [vmem:[#allocation7 + $0x198] ss:$12 sps:$4 sm:$0xff]   ;;  %7591 = vmatprep.subr.bf16.mxu0 %v18042_v17  ;;  %v7920_v17 = vsel %vm23246_vm10, %v20969_v38, 0 }
 0xec3   :  { %15996 = vmatmul.mubr.bf16.gmra.mrb[36].mxu0 %v7347_v41 }
 0xec4   :  { %7621 = vmatprep.mubr.bf16.mxu0 %v22831_v62  ;;  %7592 = vmatpush1.bf16.msra.mxu0 %v18040_v11 }
 0xec5   :  { %7593 = vmatprep.subr.bf16.mxu0 %v18045_v39 }
 0xee0   :  { %7320 = vadd.xlane.f32.xlu0 %v18430_v21 }
 0xee2   :  { %7316 = vadd.xlane.f32.xlu1 %v18426_v0  ;;  %v18043_v0 = vld [vmem:[#allocation7 + $0x1b0] ss:$12 sps:$4 sm:$0xff]  }
 0xee3   :  { %7594 = vmatpush1.bf16.msra.mxu0 %v18043_v0 }
 0xee4   :  { %7318 = vadd.xlane.f32.xlu0 %v18428_v18  ;;  %v18048_v18 = vld [vmem:[#allocation7 + $0x1cc] ss:$12 sps:$4 sm:$0xff]  }
 0xee5   :  { %7595 = vmatprep.subr.bf16.mxu0 %v18048_v18 }
 0xee6   :  { %7322 = vadd.xlane.f32.xlu1 %v18432_v23 }
 0xee7   :  { %7596 = vmatpush1.bf16.msra.mxu0 %v18046_v35 }
 0xee8   :  { %7336 = vadd.xlane.f32.xlu0 %v18446_v54 }
 0xeea   :  { %7328 = vadd.xlane.f32.xlu1 %v18438_v37 }
 0xeec   :  { %7332 = vadd.xlane.f32.xlu0 %v18442_v63 }
 0xeee   :  { %7324 = vadd.xlane.f32.xlu1 %v18434_v33 }
 0xef0   :  { %7338 = vadd.xlane.f32.xlu0 %v18448_v14 }
 0xef2   :  { %7330 = vadd.xlane.f32.xlu1 %v18440_v59 }
 0xef6   :  { %7326 = vadd.xlane.f32.xlu1 %v18436_v26 }
 0xefa   :  { %7334 = vadd.xlane.f32.xlu1 %v18444_v12 }
 0xf06   :  { %7891 = vrot.lane.b32.xlu0 %v23206_v20, %s19071_s2  ;;  %v21010_v20 = vpop.permute.xlu1 %7881 }
 0xf0a   :  { %7855 = vrot.lane.b32.xlu0 %v23218_v7, %s19071_s2 }
 0xf0b   :  { %7893 = vrot.lane.b32.xlu1 %v23208_v46, %s19071_s2  ;;  %v21014_v46 = vpop.permute.xlu1 %7885 }
 0xf0e   :  { %7859 = vrot.lane.b32.xlu0 %v23223_v1, %s19071_s2 }
 0xf0f   :  { %7857 = vrot.lane.b32.xlu1 %v23221_v24, %s19071_s2 }
 0xf12   :  { %7863 = vrot.lane.b32.xlu0 %v23227_v57, %s19071_s2 }
 0xf13   :  { %7861 = vrot.lane.b32.xlu1 %v23225_v47, %s19071_s2 }
 0xf16   :  { %7867 = vrot.lane.b32.xlu0 %v23232_v40, %s19071_s2 }
 0xf17   :  { %7865 = vrot.lane.b32.xlu1 %v23230_v60, %s19071_s2 }
 0xf1a   :  { %8184 = vrot.lane.b32.xlu0 %v23180_v5, %s19071_s2  ;;  %v21012_v5 = vpop.permute.xlu0 %7883 }
 0xf1b   :  { %7869 = vrot.lane.b32.xlu1 %v23234_v10, %s19071_s2 }
 0xf1e   :  { %8188 = vrot.lane.b32.xlu0 %v23188_v36, %s19071_s2 }
 0xf1f   :  { %8186 = vrot.lane.b32.xlu1 %v23185_v22, %s19071_s2 }
 0xf22   :  { %8190 = vrot.lane.b32.xlu0 %v23190_v6, %s19071_s2 }
 0xf23   :  { %8194 = vrot.lane.b32.xlu1 %v23195_v48, %s19071_s2 }
 0xf26   :  { %8192 = vrot.lane.b32.xlu0 %v23193_v4, %s19071_s2 }
 0xf34   :  { %v7313_v7 = vpop.xlane.xlu0 %7312 }
 0xf35   :  { %18449 = vrcp.f32 %v7313_v7 }
 0xf36   :  { %v7315_v36 = vpop.xlane.xlu1 %7314 }
 0xf37   :  { %18451 = vrcp.f32 %v7315_v36 }
 0xf38   :  { %v7309_v24 = vpop.xlane.xlu0 %7308 }
 0xf39   :  { %18453 = vrcp.f32 %v7309_v24 }
 0xf3a   :  { %v7311_v1 = vpop.xlane.xlu1 %7310 }
 0xf3b   :  { %18455 = vrcp.f32 %v7311_v1 }
 0xf3c   :  { %v21016_v22 = vpop.permute.xlu0 %7887 }
 0xf3e   :  { %v21018_v47 = vpop.permute.xlu1 %7889 }
 0xf3f   :  { %v18450_v53 = vpop.eup %18449 }
 0xf41   :  { %v18452_v9 = vpop.eup %18451 }
 0xf43   :  { %v18454_v19 = vpop.eup %18453 }
 0xf45   :  { %v18456_v2 = vpop.eup %18455 }
 0xf6d   :  { %v7321_v6 = vpop.xlane.xlu0 %7320 }
 0xf6e   :  { %18457 = vrcp.f32 %v7321_v6 }
 0xf6f   :  { %v7317_v57 = vpop.xlane.xlu1 %7316 }
 0xf70   :  { %18459 = vrcp.f32 %v7317_v57 }
 0xf71   :  { %v7319_v48 = vpop.xlane.xlu0 %7318 }
 0xf73   :  { %v7323_v60 = vpop.xlane.xlu1 %7322 }
 0xf74   :  { %18461 = vrcp.f32 %v7323_v60 }
 0xf75   :  { %v7337_v4 = vpop.xlane.xlu0 %7336  ;;  %18463 = vrcp.f32 %v7319_v48 }
 0xf77   :  { %v7329_v40 = vpop.xlane.xlu1 %7328 }
 0xf78   :  { %18465 = vrcp.f32 %v7329_v40  ;;  %v18458_v54 = vpop.eup %18457 }
 0xf79   :  { %v7333_v10 = vpop.xlane.xlu0 %7332 }
 0xf7a   :  { %v18460_v41 = vpop.eup %18459 }
 0xf7b   :  { %v7325_v16 = vpop.xlane.xlu1 %7324 }
 0xf7c   :  { %18467 = vrcp.f32 %v7325_v16 }
 0xf7d   :  { %v7339_v21 = vpop.xlane.xlu0 %7338 }
 0xf7e   :  { %v15985_v23 = vpop.f32.mrb[24].mxu0  ;;  %v18462_v11 = vpop.eup %18461 }
 0xf7f   :  { %v7331_v56 = vpop.xlane.xlu1 %7330  ;;  %v7382_v8 = vpop.f32.mrb[25].mxu0  ;;  %v7463_v33 = vmul.f32 %v18450_v53, %v15985_v23 }
 0xf80   :  { %v15986_v3 = vpop.f32.mrb[26].mxu0  ;;  %v7461_v37 = vmul.f32 %v18454_v19, %v7382_v8  ;;  %18469 = vrcp.f32 %v7331_v56  ;;  %v18464_v0 = vpop.eup %18463 }
 0xf81   :  { %v7464_v26 = vmul.f32 %v18452_v9, %v15986_v3  ;;  %v21020_v15 = vpop.permute.xlu0 %7891  ;;  %v7385_v25 = vpop.f32.mrb[27].mxu0 }
 0xf82   :  { %v7462_v59 = vmul.f32 %v18456_v2, %v7385_v25  ;;  %v18466_v60 = vpop.eup %18465 }
 0xf83   :  { %v7478_v30 = vpack.c.bf16 %v7464_v26, %v7463_v33  ;;  %v7327_v63 = vpop.xlane.xlu1 %7326 }
 0xf84   :  { %v7477_v12 = vpack.c.bf16 %v7462_v59, %v7461_v37  ;;  %18471 = vrcp.f32 %v7327_v63 }
 0xf85   :  { %v21022_v58 = vpop.permute.xlu0 %7855  ;;  %18473 = vrcp.f32 %v7337_v4 }
 0xf86   :  { %v15989_v14 = vpop.f32.mrb[28].mxu0  ;;  %14475 = vmatmul.mubr.msk.bf16.vlgmr.msra.gmra.mrb[200].mxu0 %vm23243_vm12, %v7477_v12  ;;  %16007 = vmatprep.mubr.msk.bf16.mxu1 %vm23244_vm11, %v7477_v12  ;;  %vm23247_vm12 = vmmov %vm23246_vm10  ;;  %18475 = vrcp.f32 %v7333_v10  ;;  %v18468_v16 = vpop.eup %18467 }
 0xf87   :  { %v7335_v44 = vpop.xlane.xlu1 %7334  ;;  %v7398_v52 = vpop.f32.mrb[29].mxu0  ;;  %16008 = vmatmul.mubr.msk.bf16.vlgmr.msra.gmra.mrb[184].mxu1 %vm23245_vm15, %v7478_v30  ;;  %7631 = vmatprep.mubr.bf16.mxu0 %v22831_v62  ;;  %v7467_v18 = vmul.f32 %v18458_v54, %v15989_v14  ;;  %18477 = vrcp.f32 %v7339_v21  ;;  %vm23248_vm15 = vmmov %vm23246_vm10 }
 0xf88   :  { %16024 = vmatpush3.bf16.xpose.msra.mxu1 %v7920_v17  ;;  %v15990_v39 = vpop.f32.mrb[30].mxu0  ;;  %v7465_v24 = vmul.f32 %v18460_v41, %v7398_v52  ;;  %18479 = vrcp.f32 %v7335_v44  ;;  %vm23249_vm11 = vmmov %vm23246_vm10 }
 0xf89   :  { %v7468_v35 = vmul.f32 %v18462_v11, %v15990_v39  ;;  %17528 = vmatprep.subr.msk.bf16.mxu1 %vm23247_vm12, %v21010_v20  ;;  %v21032_v7 = vpop.permute.xlu0 %7859  ;;  %v7401_v36 = vpop.f32.mrb[31].mxu0  ;;  %vm23250_vm12 = vmmov %vm23246_vm10 }
 0xf8a   :  { %v7466_v1 = vmul.f32 %v18464_v0, %v7401_v36  ;;  %v7923_v4 = vsel %vm23250_vm12, %v21010_v20, 0  ;;  %v18470_v10 = vpop.eup %18469  ;;  %vm23253_vm12 = vmmov %vm23246_vm10 }
 0xf8b   :  { %v7480_v6 = vpack.c.bf16 %v7468_v35, %v7467_v18  ;;  %v21034_v57 = vpop.permute.xlu1 %7893 }
 0xf8c   :  { %v7479_v38 = vpack.c.bf16 %v7466_v1, %v7465_v24 }
 0xf8d   :  { %v21036_v48 = vpop.permute.xlu0 %7863 }
 0xf8e   :  { %v15993_v40 = vpop.f32.mrb[32].mxu0  ;;  %14476 = vmatmul.mubr.msk.bf16.gmra.mrb[204].mxu0 %vm23248_vm15, %v7478_v30  ;;  %16011 = vmatprep.mubr.msk.bf16.mxu1 %vm23246_vm10, %v7479_v38  ;;  %v18472_v9 = vpop.eup %18471  ;;  %vm23251_vm15 = vmmov %vm23246_vm10 }
 0xf8f   :  { %v21040_v53 = vpop.permute.xlu1 %7857  ;;  %v7414_v23 = vpop.f32.mrb[33].mxu0  ;;  %16012 = vmatmul.mubr.msk.bf16.gmra.mrb[188].mxu1 %vm23249_vm11, %v7480_v6  ;;  %7641 = vmatprep.mubr.bf16.mxu0 %v22831_v62  ;;  %v7471_v56 = vmul.f32 %v18466_v60, %v15993_v40  ;;  %vm23252_vm11 = vmmov %vm23246_vm10 }
 0xf90   :  { %16026 = vmatpush3.bf16.xpose.msra.mxu1 %v7923_v4  ;;  %v15994_v21 = vpop.f32.mrb[34].mxu0  ;;  %v7469_v2 = vmul.f32 %v18468_v16, %v7414_v23  ;;  %v18474_v59 = vpop.eup %18473  ;;  %v18049_v16 = vld [vmem:[#allocation7 + $0x1e8] ss:$12 sps:$4 sm:$0xff]   ;;  %v18050_v23 = vld [vmem:[#allocation7 + $0x200] ss:$12 sps:$4 sm:$0xff]  }
 0xf91   :  { %v7472_v8 = vmul.f32 %v18470_v10, %v15994_v21  ;;  %17529 = vmatprep.subr.msk.bf16.mxu1 %vm23251_vm15, %v21012_v5  ;;  %v21048_v19 = vpop.permute.xlu0 %7867  ;;  %v7417_v3 = vpop.f32.mrb[35].mxu0  ;;  %vm23254_vm15 = vmmov %vm23246_vm10  ;;  %v18052_v4 = vld [vmem:[#allocation7 + $0x230] ss:$12 sps:$4 sm:$0xff]  }
 0xf92   :  { %v7470_v33 = vmul.f32 %v18472_v9, %v7417_v3  ;;  %v18476_v63 = vpop.eup %18475  ;;  %v7926_v14 = vsel %vm23254_vm15, %v21012_v5, 0  ;;  %vm23257_vm15 = vmmov %vm23246_vm10 }
 0xf93   :  { %v7482_v26 = vpack.c.bf16 %v7472_v8, %v7471_v56  ;;  %v21050_v25 = vpop.permute.xlu1 %7861  ;;  %v18478_v41 = vpop.eup %18477 }
 0xf94   :  { %v7481_v20 = vpack.c.bf16 %v7470_v33, %v7469_v2  ;;  %v18480_v52 = vpop.eup %18479 }
 0xf95   :  { %v8185_v37 = vpop.permute.xlu0 %8184 }
 0xf96   :  { %v15997_v30 = vpop.f32.mrb[36].mxu0  ;;  %14477 = vmatmul.mubr.msk.bf16.gmra.mrb[208].mxu0 %vm23246_vm10, %v7479_v38  ;;  %16015 = vmatprep.mubr.msk.bf16.mxu1 %vm23252_vm11, %v7481_v20  ;;  %vm23255_vm11 = vmmov %vm23246_vm10  ;;  %v7929_v38 = vsel %vm23258_vm13, %v21014_v46, 0 }
 0xf97   :  { %16055 = vmatprep.subr.bf16.mxu0 %v8185_v37  ;;  %v21054_v12 = vpop.permute.xlu1 %7865  ;;  %v7430_v54 = vpop.f32.mrb[37].mxu0  ;;  %16016 = vmatmul.mubr.msk.bf16.gmra.mrb[192].mxu1 %vm23253_vm12, %v7482_v26  ;;  %v7475_v17 = vmul.f32 %v18474_v59, %v15997_v30  ;;  %vm23256_vm12 = vmmov %vm23246_vm10 }
 0xf98   :  { %16028 = vmatpush3.bf16.xpose.msra.mxu1 %v7926_v14  ;;  %16056 = vmatpush3.bf16.msra.mxu0 %v8185_v37  ;;  %v15998_v44 = vpop.f32.mrb[38].mxu0  ;;  %v7473_v0 = vmul.f32 %v18476_v63, %v7430_v54  ;;  %vm23262_vm13 = vmmov %vm23246_vm10 }
 0xf99   :  { %v7476_v11 = vmul.f32 %v18478_v41, %v15998_v44  ;;  %17530 = vmatprep.subr.msk.bf16.mxu1 %vm23246_vm10, %v21014_v46  ;;  %v7433_v39 = vpop.f32.mrb[39].mxu0  ;;  %7651 = vmatprep.mubr.bf16.mxu0 %v22831_v62  ;;  %v8189_v1 = vpop.permute.xlu0 %8188 }
 0xf9a   :  { %v7474_v18 = vmul.f32 %v18480_v52, %v7433_v39  ;;  %v23280_v39 = vld [vmem:[#allocation142_spill] sm:$0xff] }
 0xf9b   :  { %v7484_v35 = vpack.c.bf16 %v7476_v11, %v7475_v17  ;;  %v7870_v36 = vpop.permute.xlu1 %7869 }
 0xf9c   :  { %v7483_v24 = vpack.c.bf16 %v7474_v18, %v7473_v0  ;;  %v23282_v18 = vld [vmem:[#allocation146_spill] sm:$0xff] }
 0xf9e   :  { %14478 = vmatmul.mubr.msk.bf16.gmra.mrb[212].mxu0 %vm23255_vm11, %v7480_v6  ;;  %16019 = vmatprep.mubr.msk.bf16.mxu1 %vm23256_vm12, %v7483_v24  ;;  %v8191_v6 = vpop.permute.xlu0 %8190  ;;  %vm23260_vm11 = vmmov %vm23246_vm10 }
 0xf9f   :  { %v8187_v5 = vpop.permute.xlu1 %8186  ;;  %16020 = vmatmul.mubr.msk.bf16.gmra.mrb[196].mxu1 %vm23257_vm15, %v7484_v35  ;;  %7661 = vmatprep.mubr.bf16.mxu0 %v22831_v62  ;;  %vm23261_vm12 = vmmov %vm23246_vm10 }
 0xfa0   :  { %16030 = vmatpush3.bf16.xpose.msra.mxu1 %v7929_v38  ;;  %16039 = vmatprep.mubr.msk.bf16.mxu1 %vm23246_vm10, %v21022_v58  ;;  %v7932_v46 = vsel %vm23261_vm12, %v21016_v22, 0  ;;  %vm23264_vm15 = vmmov %vm23246_vm10 }
 0xfa1   :  { %17531 = vmatprep.subr.msk.bf16.mxu1 %vm23259_vm14, %v21016_v22  ;;  %16057 = vmatprep.subr.bf16.mxu0 %v8187_v5  ;;  %vm23263_vm14 = vmmov %vm23246_vm10  ;;  %v7935_v40 = vsel %vm23264_vm15, %v21018_v47, 0 }
 0xfa2   :  { %16058 = vmatpush3.bf16.msra.mxu0 %v8187_v5  ;;  %v8193_v58 = vpop.permute.xlu0 %8192  ;;  %vm23266_vm12 = vmmov %vm23246_vm10 }
 0xfa3   :  { %16059 = vmatprep.subr.bf16.mxu0 %v8189_v1  ;;  %v8195_v60 = vpop.permute.xlu1 %8194  ;;  %v7938_v22 = vsel %vm23266_vm12, %v21020_v15, 0  ;;  %vm23269_vm15 = vmmov %vm23246_vm10 }
 0xfa4   :  { %vm23271_vm12 = vmmov %vm23246_vm10 }
 0xfa6   :  { %16060 = vmatpush3.bf16.msra.mxu0 %v8189_v1 }
 0xfa7   :  { %14479 = vmatmul.mubr.msk.bf16.gmra.mrb[216].mxu0 %vm23260_vm11, %v7481_v20  ;;  %16061 = vmatprep.subr.bf16.mxu0 %v8191_v6  ;;  %vm23265_vm11 = vmmov %vm23246_vm10 }
 0xfa8   :  { %16032 = vmatpush3.bf16.xpose.msra.mxu1 %v7932_v46  ;;  %7671 = vmatprep.mubr.bf16.mxu0 %v22831_v62 }
 0xfa9   :  { %17532 = vmatprep.subr.msk.bf16.mxu1 %vm23262_vm13, %v21018_v47  ;;  %vm23267_vm13 = vmmov %vm23246_vm10  ;;  %v7941_v47 = vsel %vm23269_vm15, %v21034_v57, 0 }
 0xfaa   :  { %16062 = vmatpush3.bf16.msra.mxu0 %v8191_v6  ;;  %vm23275_vm15 = vmmov %vm23246_vm10 }
 0xfab   :  { %16063 = vmatprep.subr.bf16.mxu0 %v8193_v58 }
 0xfae   :  { %16064 = vmatpush3.bf16.msra.mxu0 %v8193_v58 }
 0xfaf   :  { %14480 = vmatmul.mubr.msk.bf16.gmra.mrb[220].mxu0 %vm23263_vm14, %v7482_v26  ;;  %16065 = vmatprep.subr.bf16.mxu0 %v8195_v60  ;;  %vm23268_vm14 = vmmov %vm23246_vm10 }
 0xfb0   :  { %16034 = vmatpush3.bf16.xpose.msra.mxu1 %v7935_v40  ;;  %7681 = vmatprep.mubr.bf16.mxu0 %v22831_v62 }
 0xfb1   :  { %17533 = vmatprep.subr.msk.bf16.mxu1 %vm23246_vm10, %v21020_v15  ;;  %v18051_v15 = vld [vmem:[#allocation7 + $0x218] ss:$12 sps:$4 sm:$0xff]  }
 0xfb2   :  { %16066 = vmatpush3.bf16.msra.mxu0 %v8195_v60 }
 0xfb7   :  { %14481 = vmatmul.mubr.msk.bf16.gmra.mrb[224].mxu0 %vm23265_vm11, %v7483_v24  ;;  %vm23270_vm11 = vmmov %vm23246_vm10 }
 0xfb8   :  { %16036 = vmatpush3.bf16.xpose.msra.mxu1 %v7938_v22  ;;  %7691 = vmatprep.mubr.bf16.mxu0 %v22831_v62 }
 0xfb9   :  { %17534 = vmatprep.subr.msk.bf16.mxu1 %vm23267_vm13, %v21034_v57  ;;  %vm23272_vm13 = vmmov %vm23246_vm10  ;;  %v23273_v57 = vld [vmem:[#allocation49_spill] sm:$0xff] }
 0xfbf   :  { %14482 = vmatmul.mubr.msk.bf16.gmra.mrb[228].mxu0 %vm23268_vm14, %v7484_v35  ;;  %vm23274_vm14 = vmmov %vm23246_vm10 }
 0xfc0   :  { %16038 = vmatpush3.bf16.xpose.msra.mxu1 %v7941_v47 }
 0xfc1   :  { %16087 = vmatprep.subr.bf16.mxu1 %v18049_v16 }
 0xfc7   :  { %16040 = vmatmul.mubr.msk.bf16.vlgmr.msra.gmra.mrb[8].mxu1 %vm23246_vm10, %v21040_v53 }
 0xfc8   :  { %16043 = vmatprep.mubr.msk.bf16.mxu1 %vm23270_vm11, %v21032_v7  ;;  %16088 = vmatpush3.bf16.msra.mxu1 %v18049_v16  ;;  %vm23276_vm11 = vmmov %vm23246_vm10 }
 0xfc9   :  { %16089 = vmatprep.subr.bf16.mxu1 %v18050_v23 }
 0xfcc   :  { %16090 = vmatpush3.bf16.msra.mxu1 %v18050_v23 }
 0xfcd   :  { %16091 = vmatprep.subr.bf16.mxu1 %v18051_v15 }
 0xfcf   :  { %16044 = vmatmul.mubr.msk.bf16.gmra.mrb[12].mxu1 %vm23271_vm12, %v21050_v25  ;;  %vm23277_vm12 = vnez %v23062_v34 }
 0xfd0   :  { %16047 = vmatprep.mubr.msk.bf16.mxu1 %vm23272_vm13, %v21036_v48  ;;  %16092 = vmatpush3.bf16.msra.mxu1 %v18051_v15  ;;  %vm23278_vm13 = vnez %v23064_v61 }
 0xfd1   :  { %16093 = vmatprep.subr.bf16.mxu1 %v18052_v4 }
 0xfd4   :  { %16094 = vmatpush3.bf16.msra.mxu1 %v18052_v4  ;;  %v18055_v4 = vld [vmem:[#allocation7 + $0x1e4] ss:$12 sps:$4 sm:$0xff]  }
 0xfd5   :  { %17535 = vmatprep.subr.msk.bf16.mxu1 %vm23274_vm14, %v23273_v57  ;;  %vm23279_vm14 = vnez %v23066_v31 }
 0xfd7   :  { %16048 = vmatmul.mubr.msk.bf16.gmra.mrb[16].mxu1 %vm23275_vm15, %v21054_v12  ;;  %vm23281_vm15 = vnez %v23280_v39 }
 0xfd8   :  { %16051 = vmatprep.mubr.msk.bf16.mxu1 %vm23246_vm10, %v21048_v19  ;;  %vm23283_vm10 = vnez %v23282_v18 }
 0xfdf   :  { %16052 = vmatmul.mubr.msk.bf16.gmra.mrb[20].mxu1 %vm23276_vm11, %v7870_v36  ;;  %v23284_v36 = vld [vmem:[#allocation145_spill] sm:$0xff] }
 0xfe0   :  { %vm23285_vm11 = vnez %v23284_v36 }
0x109a   :  { %v16041_v7 = vpop.f32.mrb[8].mxu1 }
0x109b   :  { %v8042_v53 = vsel %vm19908_vm1, %v16041_v7, -1e+30  ;;  %v7977_v10 = vpop.f32.mrb[9].mxu1 }
0x109c   :  { %v8040_v48 = vsel %vm19915_vm2, %v7977_v10, -1e+30  ;;  %8060 = vmax.xlane.f32.xlu1 %v8042_v53  ;;  %v16042_v21 = vpop.f32.mrb[10].mxu1 }
0x109d   :  { %8056 = vmax.xlane.f32.xlu0 %v8040_v48  ;;  %v7980_v9 = vpop.f32.mrb[11].mxu1  ;;  %v8043_v56 = vsel %vm19932_vm3, %v16042_v21, -1e+30 }
0x109e   :  { %v8041_v19 = vsel %vm19938_vm4, %v7980_v9, -1e+30 }
0x10a0   :  { %8062 = vmax.xlane.f32.xlu1 %v8043_v56 }
0x10a2   :  { %v16045_v8 = vpop.f32.mrb[12].mxu1 }
0x10a3   :  { %v7993_v3 = vpop.f32.mrb[13].mxu1  ;;  %v21127_v14 = vsel %vm19976_vm7, %v16045_v8, -1e+30 }
0x10a4   :  { %8058 = vmax.xlane.f32.xlu1 %v8041_v19  ;;  %v16046_v2 = vpop.f32.mrb[14].mxu1  ;;  %v21122_v54 = vsel %vm19957_vm5, %v7993_v3, -1e+30  ;;  %v18056_v3 = vld [vmem:[#allocation7 + $0x1f8] ss:$12 sps:$4 sm:$0xff]  }
0x10a5   :  { %v7996_v33 = vpop.f32.mrb[15].mxu1 }
0x10aa   :  { %v16049_v26 = vpop.f32.mrb[16].mxu1 }
0x10ab   :  { %v8009_v25 = vpop.f32.mrb[17].mxu1  ;;  %v21156_v17 = vsel %vm23278_vm13, %v16049_v26, -1e+30  ;;  %v18064_v26 = vld [vmem:[#allocation7 + $0x22c] ss:$12 sps:$4 sm:$0xff]  }
0x10ac   :  { %v16050_v20 = vpop.f32.mrb[18].mxu1  ;;  %v21146_v44 = vsel %vm20000_vm9, %v8009_v25, -1e+30  ;;  %v18062_v25 = vld [vmem:[#allocation7 + $0x228] ss:$12 sps:$4 sm:$0xff]  }
0x10ad   :  { %v8012_v37 = vpop.f32.mrb[19].mxu1  ;;  %v21152_v52 = vsel %vm23277_vm12, %v16050_v20, -1e+30  ;;  %v23286_v20 = vld [vmem:[#allocation79_spill] sm:$0xff] }
0x10ae   :  { %v21142_v41 = vsel %vm23236_vm0, %v8012_v37, -1e+30 }
0x10b2   :  { %v16053_v59 = vpop.f32.mrb[20].mxu1 }
0x10b3   :  { %8196 = vrot.lane.b32.xlu0 %v23198_v28, %s19071_s2  ;;  %v8025_v30 = vpop.f32.mrb[21].mxu1  ;;  %v21132_v28 = vsel %vm19965_vm6, %v7996_v33, -1e+30  ;;  %v21176_v24 = vsel %vm23285_vm11, %v16053_v59, -1e+30 }
0x10b4   :  { %v16054_v63 = vpop.f32.mrb[22].mxu1  ;;  %v21166_v0 = vsel %vm23281_vm15, %v8025_v30, -1e+30  ;;  %v18059_v33 = vld [vmem:[#allocation7 + $0x210] ss:$12 sps:$4 sm:$0xff]  }
0x10b5   :  { %8198 = vrot.lane.b32.xlu1 %v23199_v27, %s19071_s2  ;;  %v8028_v12 = vpop.f32.mrb[23].mxu1  ;;  %v21136_v27 = vsel %vm19988_vm8, %v16046_v2, -1e+30  ;;  %v21172_v35 = vsel %vm23283_vm10, %v16054_v63, -1e+30  ;;  %vm23287_vm10 = vcmask 523264  }
0x10b6   :  { %v21162_v11 = vsel %vm23279_vm14, %v8028_v12, -1e+30  ;;  %v18061_v2 = vld [vmem:[#allocation7 + $0x214] ss:$12 sps:$4 sm:$0xff]   ;;  %vm23288_vm11 = vmmov %vm23287_vm10 }
0x10b7   :  { %vm23289_vm14 = vmmov %vm23287_vm10 }
0x10b8   :  { %vm23290_vm15 = vmmov %vm23287_vm10 }
0x10b9   :  { %vm23293_vm12 = vmmov %vm23287_vm10 }
0x10ba   :  { %vm23328_vm13 = vmmov %vm23287_vm10 }
0x10bb   :  { %vm23330_vm0 = vmmov %vm23287_vm10 }
0x10d2   :  { %8064 = vmax.xlane.f32.xlu0 %v21122_v54 }
0x10d6   :  { %8068 = vmax.xlane.f32.xlu0 %v21127_v14 }
0x10d9   :  { %8066 = vmax.xlane.f32.xlu1 %v21132_v28 }
0x10da   :  { %8070 = vmax.xlane.f32.xlu0 %v21136_v27 }
0x10dd   :  { %8074 = vmax.xlane.f32.xlu1 %v21142_v41 }
0x10de   :  { %8072 = vmax.xlane.f32.xlu0 %v21146_v44 }
0x10e1   :  { %8078 = vmax.xlane.f32.xlu1 %v21152_v52 }
0x10e2   :  { %8076 = vmax.xlane.f32.xlu0 %v21156_v17 }
0x10e5   :  { %8082 = vmax.xlane.f32.xlu1 %v21162_v11 }
0x10e6   :  { %8080 = vmax.xlane.f32.xlu0 %v21166_v0 }
0x10e9   :  { %8086 = vmax.xlane.f32.xlu1 %v21172_v35 }
0x10ea   :  { %8084 = vmax.xlane.f32.xlu0 %v21176_v24 }
0x1129   :  { %v8061_v1 = vpop.xlane.xlu1 %8060 }
0x112a   :  { %v8057_v5 = vpop.xlane.xlu0 %8056  ;;  %v8090_v38 = vsub.f32 %v8042_v53, %v8061_v1 }
0x112b   :  { %v8088_v6 = vsub.f32 %v8040_v48, %v8057_v5 }
0x112c   :  { %v8108_v22 = vmul.f32 1.442695, %v8090_v38 }
0x112d   :  { %v8104_v46 = vmul.f32 1.442695, %v8088_v6  ;;  %v8063_v58 = vpop.xlane.xlu1 %8062 }
0x112e   :  { %v8091_v60 = vsub.f32 %v8043_v56, %v8063_v58  ;;  %v8197_v40 = vpop.permute.xlu0 %8196  ;;  %v18053_v56 = vld [vmem:[#allocation7 + $0x1e0] ss:$12 sps:$4 sm:$0xff]  }
0x112f   :  { %18481 = vpow2.f32 %v8104_v46  ;;  %16067 = vmatprep.subr.bf16.mxu0 %v8197_v40 }
0x1130   :  { %16068 = vmatpush3.bf16.msra.mxu0 %v8197_v40  ;;  %v8110_v16 = vmul.f32 1.442695, %v8091_v60  ;;  %18483 = vpow2.f32 %v8108_v22 }
0x1131   :  { %v8059_v47 = vpop.xlane.xlu1 %8058 }
0x1132   :  { %v8089_v23 = vsub.f32 %v8041_v19, %v8059_v47  ;;  %18485 = vpow2.f32 %v8110_v16  ;;  %v18058_v19 = vld [vmem:[#allocation7 + $0x1fc] ss:$12 sps:$4 sm:$0xff]  }
0x1134   :  { %v8106_v15 = vmul.f32 1.442695, %v8089_v23 }
0x1135   :  { %v8199_v7 = vpop.permute.xlu1 %8198 }
0x1136   :  { %18487 = vpow2.f32 %v8106_v15  ;;  %16069 = vmatprep.subr.bf16.mxu0 %v8199_v7 }
0x1137   :  { %16070 = vmatpush3.bf16.msra.mxu0 %v8199_v7 }
0x1138   :  { %8449 = vmatprep.subr.bf16.mxu0 %v18055_v4 }
0x1139   :  { %v18482_v53 = vpop.eup %18481 }
0x113a   :  { %8136 = vadd.xlane.f32.xlu0 %v18482_v53  ;;  %v18484_v10 = vpop.eup %18483 }
0x113c   :  { %v18486_v48 = vpop.eup %18485 }
0x113d   :  { %v8169_v8 = vpack.c.bf16 %v18486_v48, %v18484_v10 }
0x113e   :  { %8140 = vadd.xlane.f32.xlu0 %v18484_v10 }
0x1140   :  { %v18488_v21 = vpop.eup %18487 }
0x1141   :  { %8138 = vadd.xlane.f32.xlu1 %v18488_v21  ;;  %v8168_v9 = vpack.c.bf16 %v18488_v21, %v18482_v53 }
0x1143   :  { %16071 = vmatprep.mubr.bf16.mxu0 %v8168_v9 }
0x1144   :  { %16072 = vmatmul.mubr.bf16.vlgmr.msra.gmra.mrb[40].mxu0 %v8169_v8 }
0x1145   :  { %8450 = vmatpush1.bf16.msra.mxu0 %v18053_v56  ;;  %8142 = vadd.xlane.f32.xlu1 %v18486_v48 }
0x1146   :  { %8451 = vmatprep.subr.bf16.mxu0 %v18058_v19 }
0x1149   :  { %8452 = vmatpush1.bf16.msra.mxu0 %v18056_v3 }
0x114a   :  { %8453 = vmatprep.subr.bf16.mxu0 %v18061_v2 }
0x114d   :  { %8454 = vmatpush1.bf16.msra.mxu0 %v18059_v33 }
0x114e   :  { %8455 = vmatprep.subr.bf16.mxu0 %v18064_v26 }
0x1151   :  { %8456 = vmatpush1.bf16.msra.mxu0 %v18062_v25 }
0x1152   :  { %16143 = vmatprep.subr.bf16.mxu0 %v23286_v20 }
0x115f   :  { %v8065_v37 = vpop.xlane.xlu0 %8064 }
0x1160   :  { %v8092_v59 = vsub.f32 %v21122_v54, %v8065_v37 }
0x1162   :  { %v8112_v30 = vmul.f32 1.442695, %v8092_v59 }
0x1163   :  { %v8069_v63 = vpop.xlane.xlu0 %8068 }
0x1164   :  { %18489 = vpow2.f32 %v8112_v30  ;;  %v8094_v12 = vsub.f32 %v21127_v14, %v8069_v63 }
0x1166   :  { %v8116_v1 = vmul.f32 1.442695, %v8094_v12  ;;  %v8067_v5 = vpop.xlane.xlu1 %8066 }
0x1167   :  { %v8093_v38 = vsub.f32 %v21132_v28, %v8067_v5  ;;  %v8071_v6 = vpop.xlane.xlu0 %8070 }
0x1168   :  { %18491 = vpow2.f32 %v8116_v1  ;;  %v8095_v46 = vsub.f32 %v21136_v27, %v8071_v6 }
0x1169   :  { %v8114_v58 = vmul.f32 1.442695, %v8093_v38 }
0x116a   :  { %v8118_v60 = vmul.f32 1.442695, %v8095_v46  ;;  %v8075_v40 = vpop.xlane.xlu1 %8074 }
0x116b   :  { %18493 = vpow2.f32 %v8114_v58  ;;  %v8097_v22 = vsub.f32 %v21142_v41, %v8075_v40  ;;  %v8073_v54 = vpop.xlane.xlu0 %8072 }
0x116c   :  { %18495 = vpow2.f32 %v8118_v60  ;;  %v8096_v16 = vsub.f32 %v21146_v44, %v8073_v54 }
0x116d   :  { %v8122_v47 = vmul.f32 1.442695, %v8097_v22 }
0x116e   :  { %v18490_v14 = vpop.eup %18489  ;;  %v8120_v23 = vmul.f32 1.442695, %v8096_v16  ;;  %v8079_v15 = vpop.xlane.xlu1 %8078 }
0x116f   :  { %18497 = vpow2.f32 %v8122_v47  ;;  %v8099_v28 = vsub.f32 %v21152_v52, %v8079_v15  ;;  %v8077_v4 = vpop.xlane.xlu0 %8076  ;;  %8144 = vadd.xlane.f32.xlu0 %v18490_v14 }
0x1170   :  { %18499 = vpow2.f32 %v8120_v23  ;;  %v8098_v27 = vsub.f32 %v21156_v17, %v8077_v4 }
0x1171   :  { %v8126_v7 = vmul.f32 1.442695, %v8099_v28 }
0x1172   :  { %v18492_v53 = vpop.eup %18491  ;;  %v8124_v10 = vmul.f32 1.442695, %v8098_v27  ;;  %v8083_v41 = vpop.xlane.xlu1 %8082 }
0x1173   :  { %18501 = vpow2.f32 %v8126_v7  ;;  %v8101_v48 = vsub.f32 %v21162_v11, %v8083_v41  ;;  %8148 = vadd.xlane.f32.xlu0 %v18492_v53  ;;  %v8081_v44 = vpop.xlane.xlu0 %8080 }
0x1174   :  { %18503 = vpow2.f32 %v8124_v10  ;;  %v8100_v21 = vsub.f32 %v21166_v0, %v8081_v44  ;;  %v23291_v44 = vld [vmem:[#allocation83_spill] sm:$0xff] }
0x1175   :  { %v18494_v9 = vpop.eup %18493  ;;  %v8130_v56 = vmul.f32 1.442695, %v8101_v48  ;;  %v8941_v48 = vsel %vm23290_vm15, %v23273_v57, 0  ;;  %vm23300_vm15 = vmmov %vm23287_vm10 }
0x1176   :  { %v18496_v52 = vpop.eup %18495  ;;  %v8128_v8 = vmul.f32 1.442695, %v8100_v21  ;;  %8146 = vadd.xlane.f32.xlu1 %v18494_v9  ;;  %v8087_v19 = vpop.xlane.xlu1 %8086  ;;  %v8170_v3 = vpack.c.bf16 %v18494_v9, %v18490_v14  ;;  %v23292_v21 = vld [vmem:[#allocation53_spill] sm:$0xff] }
0x1177   :  { %v8171_v17 = vpack.c.bf16 %v18496_v52, %v18492_v53  ;;  %18505 = vpow2.f32 %v8130_v56  ;;  %v8103_v2 = vsub.f32 %v21172_v35, %v8087_v19  ;;  %v8085_v33 = vpop.xlane.xlu0 %8084  ;;  %v23294_v9 = vld [vmem:[#allocation89_spill] sm:$0xff] }
0x1178   :  { %18507 = vpow2.f32 %v8128_v8  ;;  %v8102_v11 = vsub.f32 %v21176_v24, %v8085_v33  ;;  %16075 = vmatprep.mubr.bf16.mxu0 %v8170_v3  ;;  %v23297_v8 = vld [vmem:[#allocation58_spill] sm:$0xff]  ;;  %v23299_v19 = vld [vmem:[#allocation101_spill] sm:$0xff] }
0x1179   :  { %v18498_v26 = vpop.eup %18497  ;;  %v8134_v25 = vmul.f32 1.442695, %v8103_v2  ;;  %16076 = vmatmul.mubr.bf16.gmra.mrb[44].mxu0 %v8171_v17  ;;  %v8947_v3 = vsel %vm23300_vm15, %v23297_v8, 0  ;;  %v23301_v17 = vld [vmem:[#allocation107_spill] sm:$0xff]  ;;  %v23302_v2 = vld [vmem:[#allocation62_spill] sm:$0xff]  ;;  %vm23310_vm15 = vmmov %vm23287_vm10 }
0x117a   :  { %v18500_v0 = vpop.eup %18499  ;;  %v8132_v37 = vmul.f32 1.442695, %v8102_v11  ;;  %8150 = vadd.xlane.f32.xlu1 %v18496_v52  ;;  %v23296_v52 = vld [vmem:[#allocation95_spill] sm:$0xff] }
0x117b   :  { %18509 = vpow2.f32 %v8134_v25  ;;  %8152 = vadd.xlane.f32.xlu0 %v18500_v0  ;;  %v8172_v59 = vpack.c.bf16 %v18498_v26, %v18500_v0  ;;  %v8950_v25 = vsel %vm23287_vm10, %v23302_v2, 0 }
0x117c   :  { %18511 = vpow2.f32 %v8132_v37  ;;  %v23305_v37 = vld [vmem:[#allocation115_spill] sm:$0xff] }
0x117d   :  { %v18502_v30 = vpop.eup %18501  ;;  %16079 = vmatprep.mubr.bf16.mxu0 %v8172_v59 }
0x117e   :  { %v18504_v63 = vpop.eup %18503  ;;  %8154 = vadd.xlane.f32.xlu1 %v18498_v26  ;;  %v23304_v26 = vld [vmem:[#allocation111_spill] sm:$0xff] }
0x117f   :  { %v8173_v35 = vpack.c.bf16 %v18502_v30, %v18504_v63  ;;  %8156 = vadd.xlane.f32.xlu0 %v18504_v63 }
0x1181   :  { %v18506_v12 = vpop.eup %18505  ;;  %16080 = vmatmul.mubr.bf16.gmra.mrb[48].mxu0 %v8173_v35 }
0x1182   :  { %v18508_v24 = vpop.eup %18507  ;;  %8158 = vadd.xlane.f32.xlu1 %v18502_v30  ;;  %v23306_v30 = vld [vmem:[#allocation66_spill] sm:$0xff] }
0x1183   :  { %8160 = vadd.xlane.f32.xlu0 %v18508_v24  ;;  %v8174_v1 = vpack.c.bf16 %v18506_v12, %v18508_v24  ;;  %v23309_v24 = vld [vmem:[#allocation70_spill] sm:$0xff] }
0x1185   :  { %v18510_v5 = vpop.eup %18509  ;;  %16083 = vmatprep.mubr.bf16.mxu0 %v8174_v1 }
0x1186   :  { %v18512_v38 = vpop.eup %18511  ;;  %8162 = vadd.xlane.f32.xlu1 %v18506_v12 }
0x1187   :  { %v8175_v6 = vpack.c.bf16 %v18510_v5, %v18512_v38  ;;  %8164 = vadd.xlane.f32.xlu0 %v18512_v38 }
0x1189   :  { %16084 = vmatmul.mubr.bf16.gmra.mrb[52].mxu0 %v8175_v6 }
0x118a   :  { %8166 = vadd.xlane.f32.xlu1 %v18510_v5  ;;  %8481 = vmatprep.mubr.bf16.mxu0 %v22831_v62 }
0x11c7   :  { %v8137_v46 = vpop.xlane.xlu0 %8136 }
0x11c8   :  { %18513 = vrcp.f32 %v8137_v46  ;;  %v23312_v46 = vld [vmem:[#allocation74_spill] sm:$0xff] }
0x11cb   :  { %v8141_v60 = vpop.xlane.xlu0 %8140 }
0x11cc   :  { %18515 = vrcp.f32 %v8141_v60 }
0x11ce   :  { %v8139_v58 = vpop.xlane.xlu1 %8138 }
0x11d2   :  { %v8143_v40 = vpop.xlane.xlu1 %8142  ;;  %v18514_v22 = vpop.eup %18513 }
0x11d3   :  { %18517 = vrcp.f32 %v8143_v40 }
0x11d4   :  { %18519 = vrcp.f32 %v8139_v58 }
0x11d6   :  { %v18516_v16 = vpop.eup %18515 }
0x11dd   :  { %v18518_v14 = vpop.eup %18517 }
0x11de   :  { %v18520_v15 = vpop.eup %18519 }
0x11fc   :  { %v8145_v11 = vpop.xlane.xlu0 %8144 }
0x11fd   :  { %18521 = vrcp.f32 %v8145_v11 }
0x1200   :  { %v8149_v59 = vpop.xlane.xlu0 %8148 }
0x1201   :  { %18523 = vrcp.f32 %v8149_v59 }
0x1203   :  { %v8147_v33 = vpop.xlane.xlu1 %8146 }
0x1207   :  { %v8151_v0 = vpop.xlane.xlu1 %8150  ;;  %v18522_v60 = vpop.eup %18521 }
0x1208   :  { %v8153_v63 = vpop.xlane.xlu0 %8152  ;;  %18525 = vrcp.f32 %v8151_v0 }
0x1209   :  { %18527 = vrcp.f32 %v8147_v33 }
0x120a   :  { %18529 = vrcp.f32 %v8153_v63 }
0x120b   :  { %v8155_v35 = vpop.xlane.xlu1 %8154 }
0x120c   :  { %v8157_v1 = vpop.xlane.xlu0 %8156 }
0x120d   :  { %18531 = vrcp.f32 %v8157_v1 }
0x120f   :  { %v8159_v5 = vpop.xlane.xlu1 %8158 }
0x1210   :  { %v8161_v6 = vpop.xlane.xlu0 %8160  ;;  %18533 = vrcp.f32 %v8159_v5 }
0x1211   :  { %18535 = vrcp.f32 %v8155_v35 }
0x1212   :  { %18537 = vrcp.f32 %v8161_v6 }
0x1213   :  { %v8163_v58 = vpop.xlane.xlu1 %8162 }
0x1217   :  { %v16073_v54 = vpop.f32.mrb[40].mxu0 }
0x1218   :  { %v8242_v47 = vpop.f32.mrb[41].mxu0  ;;  %v8323_v28 = vmul.f32 %v18516_v16, %v16073_v54 }
0x1219   :  { %v16074_v23 = vpop.f32.mrb[42].mxu0  ;;  %v8321_v7 = vmul.f32 %v18514_v22, %v8242_v47  ;;  %v18524_v22 = vpop.eup %18523 }
0x121a   :  { %v8324_v4 = vmul.f32 %v18518_v14, %v16074_v23  ;;  %v8245_v27 = vpop.f32.mrb[43].mxu0  ;;  %v18526_v16 = vpop.eup %18525 }
0x121b   :  { %v8322_v53 = vmul.f32 %v18520_v15, %v8245_v27  ;;  %v18528_v14 = vpop.eup %18527 }
0x121c   :  { %v8338_v10 = vpack.c.bf16 %v8324_v4, %v8323_v28  ;;  %v8165_v4 = vpop.xlane.xlu0 %8164 }
0x121d   :  { %v8337_v41 = vpack.c.bf16 %v8322_v53, %v8321_v7  ;;  %18539 = vrcp.f32 %v8165_v4 }
0x121f   :  { %14511 = vmatmul.mubr.msk.bf16.vlgmr.msra.gmra.mrb[200].mxu0 %vm23287_vm10, %v8337_v41  ;;  %16095 = vmatprep.mubr.msk.bf16.mxu1 %vm23288_vm11, %v8337_v41  ;;  %vm23303_vm11 = vmmov %vm23287_vm10 }
0x1220   :  { %16144 = vmatpush3.bf16.msra.mxu0 %v23286_v20  ;;  %16096 = vmatmul.mubr.msk.bf16.vlgmr.msra.gmra.mrb[184].mxu1 %vm23289_vm14, %v8338_v10  ;;  %vm23295_vm14 = vmmov %vm23287_vm10 }
0x1221   :  { %16112 = vmatpush3.bf16.xpose.msra.mxu1 %v8941_v48  ;;  %16145 = vmatprep.subr.bf16.mxu0 %v23291_v44  ;;  %v8944_v56 = vsel %vm23295_vm14, %v23292_v21, 0  ;;  %vm23307_vm14 = vmmov %vm23287_vm10 }
0x1222   :  { %17536 = vmatprep.subr.msk.bf16.mxu1 %vm23293_vm12, %v23292_v21  ;;  %8491 = vmatprep.mubr.bf16.mxu0 %v22831_v62  ;;  %vm23298_vm12 = vmmov %vm23287_vm10 }
0x1224   :  { %16146 = vmatpush3.bf16.msra.mxu0 %v23291_v44 }
0x1225   :  { %16147 = vmatprep.subr.bf16.mxu0 %v23294_v9 }
0x1227   :  { %14512 = vmatmul.mubr.msk.bf16.gmra.mrb[204].mxu0 %vm23287_vm10, %v8338_v10  ;;  %v8167_v10 = vpop.xlane.xlu1 %8166 }
0x1228   :  { %16148 = vmatpush3.bf16.msra.mxu0 %v23294_v9  ;;  %8501 = vmatprep.mubr.bf16.mxu0 %v22831_v62  ;;  %18541 = vrcp.f32 %v8167_v10 }
0x1229   :  { %16114 = vmatpush3.bf16.xpose.msra.mxu1 %v8944_v56  ;;  %16149 = vmatprep.subr.bf16.mxu0 %v23296_v52  ;;  %v23314_v56 = vld [vmem:[#allocation78_spill] sm:$0xff]  ;;  %18543 = vrcp.f32 %v8163_v58 }
0x122a   :  { %17537 = vmatprep.subr.msk.bf16.mxu1 %vm23298_vm12, %v23297_v8  ;;  %vm23308_vm12 = vmmov %vm23287_vm10 }
0x122b   :  { %v8953_v12 = vsel %vm23308_vm12, %v23306_v30, 0  ;;  %vm23315_vm12 = vmmov %vm23287_vm10 }
0x122c   :  { %16150 = vmatpush3.bf16.msra.mxu0 %v23296_v52 }
0x122d   :  { %16151 = vmatprep.subr.bf16.mxu0 %v23299_v19 }
0x1230   :  { %16152 = vmatpush3.bf16.msra.mxu0 %v23299_v19 }
0x1231   :  { %16116 = vmatpush3.bf16.xpose.msra.mxu1 %v8947_v3  ;;  %16153 = vmatprep.subr.bf16.mxu0 %v23301_v17  ;;  %v18530_v3 = vpop.eup %18529 }
0x1232   :  { %17538 = vmatprep.subr.msk.bf16.mxu1 %vm23303_vm11, %v23302_v2  ;;  %vm23311_vm11 = vmmov %vm23287_vm10  ;;  %v18532_v11 = vpop.eup %18531 }
0x1233   :  { %v8956_v38 = vsel %vm23311_vm11, %v23309_v24, 0  ;;  %vm23317_vm11 = vmmov %vm23287_vm10  ;;  %v18534_v0 = vpop.eup %18533 }
0x1234   :  { %16154 = vmatpush3.bf16.msra.mxu0 %v23301_v17  ;;  %v18536_v63 = vpop.eup %18535 }
0x1235   :  { %16155 = vmatprep.subr.bf16.mxu0 %v23304_v26  ;;  %v18538_v58 = vpop.eup %18537 }
0x1238   :  { %16156 = vmatpush3.bf16.msra.mxu0 %v23304_v26 }
0x1239   :  { %16118 = vmatpush3.bf16.xpose.msra.mxu1 %v8950_v25  ;;  %16157 = vmatprep.subr.bf16.mxu0 %v23305_v37 }
0x123a   :  { %17539 = vmatprep.subr.msk.bf16.mxu1 %vm23307_vm14, %v23306_v30  ;;  %vm23313_vm14 = vmmov %vm23287_vm10 }
0x123b   :  { %v8959_v53 = vsel %vm23313_vm14, %v23312_v46, 0  ;;  %vm23318_vm14 = vmmov %vm23287_vm10 }
0x123c   :  { %16158 = vmatpush3.bf16.msra.mxu0 %v23305_v37  ;;  %v8962_v6 = vsel %vm23318_vm14, %v23314_v56, 0  ;;  %vm23322_vm14 = vmmov %vm23287_vm10 }
0x1241   :  { %16120 = vmatpush3.bf16.xpose.msra.mxu1 %v8953_v12 }
0x1242   :  { %17540 = vmatprep.subr.msk.bf16.mxu1 %vm23310_vm15, %v23309_v24  ;;  %vm23316_vm15 = vmmov %vm23287_vm10 }
0x1249   :  { %16122 = vmatpush3.bf16.xpose.msra.mxu1 %v8956_v38 }
0x124a   :  { %17541 = vmatprep.subr.msk.bf16.mxu1 %vm23287_vm10, %v23312_v46 }
0x124c   :  { %v16077_v40 = vpop.f32.mrb[44].mxu0 }
0x124d   :  { %v8258_v54 = vpop.f32.mrb[45].mxu0  ;;  %v8327_v23 = vmul.f32 %v18524_v22, %v16077_v40 }
0x124e   :  { %v16078_v47 = vpop.f32.mrb[46].mxu0  ;;  %v8325_v27 = vmul.f32 %v18522_v60, %v8258_v54  ;;  %v18540_v54 = vpop.eup %18539 }
0x124f   :  { %v8328_v15 = vmul.f32 %v18526_v16, %v16078_v47  ;;  %v8261_v28 = vpop.f32.mrb[47].mxu0  ;;  %v18542_v47 = vpop.eup %18541 }
0x1250   :  { %v8326_v7 = vmul.f32 %v18528_v14, %v8261_v28 }
0x1251   :  { %v8340_v41 = vpack.c.bf16 %v8328_v15, %v8327_v23  ;;  %16124 = vmatpush3.bf16.xpose.msra.mxu1 %v8959_v53  ;;  %v18544_v23 = vpop.eup %18543 }
0x1252   :  { %v8339_v48 = vpack.c.bf16 %v8326_v7, %v8325_v27  ;;  %17542 = vmatprep.subr.msk.bf16.mxu1 %vm23315_vm12, %v23314_v56  ;;  %vm23319_vm12 = vmmov %vm23287_vm10 }
0x1254   :  { %v16081_v33 = vpop.f32.mrb[48].mxu0  ;;  %14513 = vmatmul.mubr.msk.bf16.gmra.mrb[208].mxu0 %vm23316_vm15, %v8339_v48  ;;  %16099 = vmatprep.mubr.msk.bf16.mxu1 %vm23317_vm11, %v8339_v48  ;;  %vm23320_vm15 = vmmov %vm23287_vm10  ;;  %v23327_v48 = vld [vmem:[#allocation52_spill] sm:$0xff] }
0x1255   :  { %v8274_v25 = vpop.f32.mrb[49].mxu0  ;;  %16100 = vmatmul.mubr.msk.bf16.gmra.mrb[188].mxu1 %vm23287_vm10, %v8340_v41  ;;  %8511 = vmatprep.mubr.bf16.mxu0 %v22831_v62  ;;  %v8331_v35 = vmul.f32 %v18532_v11, %v16081_v33  ;;  %vm23321_vm11 = vmmov %vm23287_vm10  ;;  %v23332_v33 = vld [vmem:[#allocation60_spill] sm:$0xff]  ;;  %v23334_v11 = vld [vmem:[#allocation63_spill] sm:$0xff] }
0x1256   :  { %v16082_v59 = vpop.f32.mrb[50].mxu0  ;;  %v8329_v5 = vmul.f32 %v18530_v3, %v8274_v25  ;;  %v23329_v3 = vld [vmem:[#allocation55_spill] sm:$0xff]  ;;  %v23337_v25 = vld [vmem:[#allocation68_spill] sm:$0xff] }
0x1257   :  { %v8332_v12 = vmul.f32 %v18534_v0, %v16082_v59  ;;  %v8277_v1 = vpop.f32.mrb[51].mxu0  ;;  %v23339_v0 = vld [vmem:[#allocation71_spill] sm:$0xff]  ;;  %v23341_v59 = vld [vmem:[#allocation76_spill] sm:$0xff] }
0x1258   :  { %v8330_v38 = vmul.f32 %v18536_v63, %v8277_v1  ;;  %v23342_v63 = vld [vmem:[#allocation125_spill] sm:$0xff] }
0x1259   :  { %v8342_v60 = vpack.c.bf16 %v8332_v12, %v8331_v35  ;;  %16126 = vmatpush3.bf16.xpose.msra.mxu1 %v8962_v6  ;;  %v22790_v35 = vsub.s32 0, %v23342_v63  ;;  %v3769_v12 = vld [vmem:[%s22585_s3] sm:$0x7]  ;;  %v22789_v1 = vsub.s32 1, %v23342_v63 }
0x125a   :  { %v8341_v40 = vpack.c.bf16 %v8330_v38, %v8329_v5  ;;  %v22788_v5 = vsub.s32 2, %v23342_v63 }
0x125b   :  { %v21287_v38 = vrot.slane %v3769_v12, %v22790_v35  ;;  %v21291_v6 = vrot.slane %v3769_v12, %v22789_v1 }
0x125c   :  { %v16085_v22 = vpop.f32.mrb[52].mxu0  ;;  %14514 = vmatmul.mubr.msk.bf16.gmra.mrb[212].mxu0 %vm23319_vm12, %v8340_v41  ;;  %16103 = vmatprep.mubr.msk.bf16.mxu1 %vm23320_vm15, %v8341_v40  ;;  %vm23323_vm12 = vmmov %vm23287_vm10  ;;  %v23324_v41 = vld [vmem:[#allocation48_spill] sm:$0xff] }
0x125d   :  { %v8290_v16 = vpop.f32.mrb[53].mxu0  ;;  %16104 = vmatmul.mubr.msk.bf16.gmra.mrb[192].mxu1 %vm23321_vm11, %v8342_v60  ;;  %8521 = vmatprep.mubr.bf16.mxu0 %v22831_v62  ;;  %v8335_v15 = vmul.f32 %v18540_v54, %v16085_v22  ;;  %vm23325_vm15 = vmmov %vm23287_vm10 }
0x125e   :  { %v16086_v14 = vpop.f32.mrb[54].mxu0  ;;  %v8333_v27 = vmul.f32 %v18538_v58, %v8290_v16  ;;  %vm23326_vm11 = vmmov %vm23287_vm10 }
0x125f   :  { %v8336_v28 = vmul.f32 %v18542_v47, %v16086_v14  ;;  %v8293_v4 = vpop.f32.mrb[55].mxu0 }
0x1260   :  { %v8334_v7 = vmul.f32 %v18544_v23, %v8293_v4 }
0x1261   :  { %v8344_v53 = vpack.c.bf16 %v8336_v28, %v8335_v15 }
0x1262   :  { %v8343_v10 = vpack.c.bf16 %v8334_v7, %v8333_v27 }
0x1264   :  { %14515 = vmatmul.mubr.msk.bf16.gmra.mrb[216].mxu0 %vm23287_vm10, %v8341_v40  ;;  %16107 = vmatprep.mubr.msk.bf16.mxu1 %vm23322_vm14, %v8343_v10  ;;  %vm23331_vm10 = vmmov %vm23330_vm0 }
0x1265   :  { %16108 = vmatmul.mubr.msk.bf16.gmra.mrb[196].mxu1 %vm23323_vm12, %v8344_v53  ;;  %8531 = vmatprep.mubr.bf16.mxu0 %v22831_v62  ;;  %vm23333_vm14 = vmmov %vm23330_vm0 }
0x1266   :  { %16127 = vmatprep.mubr.msk.bf16.mxu1 %vm23325_vm15, %v23324_v41  ;;  %vm23335_vm12 = vmmov %vm23330_vm0 }
0x1267   :  { %vm23336_vm15 = vmmov %vm23330_vm0 }
0x126c   :  { %14516 = vmatmul.mubr.msk.bf16.gmra.mrb[220].mxu0 %vm23326_vm11, %v8342_v60  ;;  %vm23338_vm11 = vmmov %vm23330_vm0  ;;  %v21295_v60 = vrot.slane %v3769_v12, %v22788_v5 }
0x126d   :  { %16128 = vmatmul.mubr.msk.bf16.vlgmr.msra.gmra.mrb[24].mxu1 %vm23328_vm13, %v23327_v48  ;;  %8541 = vmatprep.mubr.bf16.mxu0 %v22831_v62  ;;  %vm23340_vm13 = vmmov %vm23330_vm0 }
0x126e   :  { %16131 = vmatprep.mubr.msk.bf16.mxu1 %vm23330_vm0, %v23329_v3 }
0x1274   :  { %14517 = vmatmul.mubr.msk.bf16.gmra.mrb[224].mxu0 %vm23331_vm10, %v8343_v10  ;;  %vm23343_vm10 = vnez %v23060_v43 }
0x1275   :  { %16132 = vmatmul.mubr.msk.bf16.gmra.mrb[28].mxu1 %vm23333_vm14, %v23332_v33  ;;  %8551 = vmatprep.mubr.bf16.mxu0 %v22831_v62  ;;  %vm23344_vm14 = vnez %v23064_v61 }
0x1276   :  { %16135 = vmatprep.mubr.msk.bf16.mxu1 %vm23335_vm12, %v23334_v11  ;;  %vm23345_vm12 = vnez %v23062_v34 }
0x127c   :  { %14518 = vmatmul.mubr.msk.bf16.gmra.mrb[228].mxu0 %vm23336_vm15, %v8344_v53  ;;  %vm23346_vm15 = vnez %v23280_v39 }
0x127d   :  { %16136 = vmatmul.mubr.msk.bf16.gmra.mrb[32].mxu1 %vm23338_vm11, %v23337_v25  ;;  %vm23347_vm11 = vnez %v23066_v31 }
0x127e   :  { %16139 = vmatprep.mubr.msk.bf16.mxu1 %vm23340_vm13, %v23339_v0  ;;  %vm23348_vm13 = vnez %v23284_v36  ;;  %v18074_v36 = vld [vmem:[#allocation7 + $0x48] ss:$12 sps:$4 sm:$0xff]  }
0x1285   :  { %16140 = vmatmul.mubr.msk.bf16.gmra.mrb[36].mxu1 %vm23330_vm0, %v23341_v59  ;;  %vm23349_vm0 = vnez %v23282_v18 }
0x1286   :  { %9470 = vmatprep.mubr.bf16.mxu1 %v22831_v62 }
0x12f2   :  { %v8483_v40 = vpop.f32.mrb[200].mxu0 }
0x12f3   :  { %v16655_v58 = vadd.f32 %v8483_v40, %v21287_v38  ;;  %v8485_v22 = vpop.f32.mrb[201].mxu0  ;;  %v16097_v54 = vpop.f32.mrb[184].mxu1 }
0x12f4   :  { %v16656_v16 = vadd.f32 %v8485_v22, %v21291_v6  ;;  %v16687_v47 = vadd.f32 %v16097_v54, %v21295_v60  ;;  %v8487_v14 = vpop.f32.mrb[202].mxu0  ;;  %v8596_v23 = vpop.f32.mrb[185].mxu1 }
0x12f5   :  { %v16657_v15 = vadd.f32 %v8487_v14, %v21287_v38  ;;  %v16688_v28 = vadd.f32 %v8596_v23, %v21295_v60  ;;  %v8489_v4 = vpop.f32.mrb[203].mxu0  ;;  %v16098_v27 = vpop.f32.mrb[186].mxu1 }
0x12f6   :  { %v14807_v7 = vpack.c.bf16 %v16656_v16, %v16655_v58  ;;  %v14812_v53 = vpack.c.bf16 %v16687_v47, %v16687_v47  ;;  %v16658_v10 = vadd.f32 %v8489_v4, %v21291_v6  ;;  %v16689_v12 = vadd.f32 %v16098_v27, %v21295_v60  ;;  %v8599_v40 = vpop.f32.mrb[187].mxu1 }
0x12f7   :  { %v14808_v5 = vpack.c.bf16 %v16688_v28, %v16688_v28  ;;  %v16690_v22 = vadd.f32 %v8599_v40, %v21295_v60 }
0x12f8   :  { %8867 = vst [vmem:[#allocation8] sm:$0xff] %v14807_v7  ;;  %8872 = vst [vmem:[#allocation8 + $0x20] sm:$0xf] %v14812_v53  ;;  %v14809_v54 = vpack.c.bf16 %v16658_v10, %v16657_v15  ;;  %v14814_v1 = vpack.c.bf16 %v16689_v12, %v16689_v12 }
0x12f9   :  { %8868 = vst [vmem:[#allocation8 + $0x8] sm:$0xf] %v14808_v5  ;;  %v14810_v14 = vpack.c.bf16 %v16690_v22, %v16690_v22 }
0x12fa   :  { %8869 = vst [vmem:[#allocation8 + $0xc] sm:$0xff] %v14809_v54  ;;  %8874 = vst [vmem:[#allocation8 + $0x2c] sm:$0xf] %v14814_v1  ;;  %v8493_v23 = vpop.f32.mrb[204].mxu0 }
0x12fb   :  { %8870 = vst [vmem:[#allocation8 + $0x14] sm:$0xf] %v14810_v14  ;;  %v16659_v58 = vadd.f32 %v8493_v23, %v21287_v38  ;;  %v8495_v16 = vpop.f32.mrb[205].mxu0 }
0x12fc   :  { %v16660_v47 = vadd.f32 %v8495_v16, %v21291_v6  ;;  %v8497_v4 = vpop.f32.mrb[206].mxu0 }
0x12fd   :  { %v16661_v28 = vadd.f32 %v8497_v4, %v21287_v38  ;;  %v8499_v27 = vpop.f32.mrb[207].mxu0 }
0x12fe   :  { %v14811_v40 = vpack.c.bf16 %v16660_v47, %v16659_v58  ;;  %v16662_v7 = vadd.f32 %v8499_v27, %v21291_v6 }
0x1300   :  { %8871 = vst [vmem:[#allocation8 + $0x18] sm:$0xff] %v14811_v40  ;;  %v14813_v15 = vpack.c.bf16 %v16662_v7, %v16661_v28 }
0x1302   :  { %8873 = vst [vmem:[#allocation8 + $0x24] sm:$0xff] %v14813_v15 }
0x1327   :  { %v8503_v5 = vpop.f32.mrb[208].mxu0 }
0x1328   :  { %v16663_v1 = vadd.f32 %v8503_v5, %v21287_v38  ;;  %v8505_v53 = vpop.f32.mrb[209].mxu0  ;;  %v16101_v10 = vpop.f32.mrb[188].mxu1 }
0x1329   :  { %v16664_v12 = vadd.f32 %v8505_v53, %v21291_v6  ;;  %v16691_v22 = vadd.f32 %v16101_v10, %v21295_v60  ;;  %v8507_v54 = vpop.f32.mrb[210].mxu0  ;;  %v8612_v14 = vpop.f32.mrb[189].mxu1 }
0x132a   :  { %v16665_v23 = vadd.f32 %v8507_v54, %v21287_v38  ;;  %v16692_v58 = vadd.f32 %v8612_v14, %v21295_v60  ;;  %v8509_v16 = vpop.f32.mrb[211].mxu0  ;;  %v16102_v47 = vpop.f32.mrb[190].mxu1 }
0x132b   :  { %v14815_v4 = vpack.c.bf16 %v16664_v12, %v16663_v1  ;;  %v14820_v28 = vpack.c.bf16 %v16691_v22, %v16691_v22  ;;  %v16666_v27 = vadd.f32 %v8509_v16, %v21291_v6  ;;  %v16693_v40 = vadd.f32 %v16102_v47, %v21295_v60  ;;  %v8615_v7 = vpop.f32.mrb[191].mxu1 }
0x132c   :  { %v14816_v15 = vpack.c.bf16 %v16692_v58, %v16692_v58  ;;  %v16694_v5 = vadd.f32 %v8615_v7, %v21295_v60 }
0x132d   :  { %8875 = vst [vmem:[#allocation8 + $0x30] sm:$0xff] %v14815_v4  ;;  %8880 = vst [vmem:[#allocation8 + $0x50] sm:$0xf] %v14820_v28  ;;  %v14817_v53 = vpack.c.bf16 %v16666_v27, %v16665_v23  ;;  %v14822_v10 = vpack.c.bf16 %v16693_v40, %v16693_v40 }
0x132e   :  { %8876 = vst [vmem:[#allocation8 + $0x38] sm:$0xf] %v14816_v15  ;;  %v14818_v54 = vpack.c.bf16 %v16694_v5, %v16694_v5 }
0x132f   :  { %8877 = vst [vmem:[#allocation8 + $0x3c] sm:$0xff] %v14817_v53  ;;  %8882 = vst [vmem:[#allocation8 + $0x5c] sm:$0xf] %v14822_v10  ;;  %v8513_v14 = vpop.f32.mrb[212].mxu0 }
0x1330   :  { %8878 = vst [vmem:[#allocation8 + $0x44] sm:$0xf] %v14818_v54  ;;  %v16667_v1 = vadd.f32 %v8513_v14, %v21287_v38  ;;  %v8515_v12 = vpop.f32.mrb[213].mxu0  ;;  %v16105_v22 = vpop.f32.mrb[192].mxu1 }
0x1331   :  { %v16668_v16 = vadd.f32 %v8515_v12, %v21291_v6  ;;  %v16695_v58 = vadd.f32 %v16105_v22, %v21295_v60  ;;  %v8517_v47 = vpop.f32.mrb[214].mxu0  ;;  %v8628_v7 = vpop.f32.mrb[193].mxu1 }
0x1332   :  { %v16669_v4 = vadd.f32 %v8517_v47, %v21287_v38  ;;  %v16696_v23 = vadd.f32 %v8628_v7, %v21295_v60  ;;  %v8519_v28 = vpop.f32.mrb[215].mxu0  ;;  %v16106_v27 = vpop.f32.mrb[194].mxu1 }
0x1333   :  { %v14819_v40 = vpack.c.bf16 %v16668_v16, %v16667_v1  ;;  %v14828_v15 = vpack.c.bf16 %v16695_v58, %v16695_v58  ;;  %v16670_v5 = vadd.f32 %v8519_v28, %v21291_v6  ;;  %v16697_v53 = vadd.f32 %v16106_v27, %v21295_v60  ;;  %v8631_v10 = vpop.f32.mrb[195].mxu1 }
0x1334   :  { %v14824_v54 = vpack.c.bf16 %v16696_v23, %v16696_v23  ;;  %v16698_v14 = vadd.f32 %v8631_v10, %v21295_v60 }
0x1335   :  { %8879 = vst [vmem:[#allocation8 + $0x48] sm:$0xff] %v14819_v40  ;;  %8888 = vst [vmem:[#allocation8 + $0x80] sm:$0xf] %v14828_v15  ;;  %v14821_v12 = vpack.c.bf16 %v16670_v5, %v16669_v4  ;;  %v14830_v22 = vpack.c.bf16 %v16697_v53, %v16697_v53 }
0x1336   :  { %8884 = vst [vmem:[#allocation8 + $0x68] sm:$0xf] %v14824_v54  ;;  %v14826_v47 = vpack.c.bf16 %v16698_v14, %v16698_v14 }
0x1337   :  { %8881 = vst [vmem:[#allocation8 + $0x54] sm:$0xff] %v14821_v12  ;;  %8890 = vst [vmem:[#allocation8 + $0x8c] sm:$0xf] %v14830_v22  ;;  %v8523_v7 = vpop.f32.mrb[216].mxu0 }
0x1338   :  { %8886 = vst [vmem:[#allocation8 + $0x74] sm:$0xf] %v14826_v47  ;;  %v16671_v1 = vadd.f32 %v8523_v7, %v21287_v38  ;;  %v8525_v16 = vpop.f32.mrb[217].mxu0  ;;  %v16109_v58 = vpop.f32.mrb[196].mxu1 }
0x1339   :  { %v16672_v28 = vadd.f32 %v8525_v16, %v21291_v6  ;;  %v16699_v23 = vadd.f32 %v16109_v58, %v21295_v60  ;;  %v8527_v27 = vpop.f32.mrb[218].mxu0  ;;  %v8644_v10 = vpop.f32.mrb[197].mxu1 }
0x133a   :  { %v16673_v40 = vadd.f32 %v8527_v27, %v21287_v38  ;;  %v16700_v4 = vadd.f32 %v8644_v10, %v21295_v60  ;;  %v8529_v15 = vpop.f32.mrb[219].mxu0  ;;  %v16110_v5 = vpop.f32.mrb[198].mxu1 }
0x133b   :  { %v14823_v53 = vpack.c.bf16 %v16672_v28, %v16671_v1  ;;  %v14836_v54 = vpack.c.bf16 %v16699_v23, %v16699_v23  ;;  %v16674_v14 = vadd.f32 %v8529_v15, %v21291_v6  ;;  %v16701_v12 = vadd.f32 %v16110_v5, %v21295_v60  ;;  %v8647_v22 = vpop.f32.mrb[199].mxu1 }
0x133c   :  { %v14832_v47 = vpack.c.bf16 %v16700_v4, %v16700_v4  ;;  %v16702_v7 = vadd.f32 %v8647_v22, %v21295_v60 }
0x133d   :  { %8883 = vst [vmem:[#allocation8 + $0x60] sm:$0xff] %v14823_v53  ;;  %8896 = vst [vmem:[#allocation8 + $0xb0] sm:$0xf] %v14836_v54  ;;  %v14825_v16 = vpack.c.bf16 %v16674_v14, %v16673_v40  ;;  %v14838_v58 = vpack.c.bf16 %v16701_v12, %v16701_v12 }
0x133e   :  { %8892 = vst [vmem:[#allocation8 + $0x98] sm:$0xf] %v14832_v47  ;;  %v14834_v27 = vpack.c.bf16 %v16702_v7, %v16702_v7 }
0x133f   :  { %8885 = vst [vmem:[#allocation8 + $0x6c] sm:$0xff] %v14825_v16  ;;  %8898 = vst [vmem:[#allocation8 + $0xbc] sm:$0xf] %v14838_v58  ;;  %v8533_v10 = vpop.f32.mrb[220].mxu0 }
0x1340   :  { %8894 = vst [vmem:[#allocation8 + $0xa4] sm:$0xf] %v14834_v27  ;;  %v16675_v1 = vadd.f32 %v8533_v10, %v21287_v38  ;;  %v8535_v28 = vpop.f32.mrb[221].mxu0  ;;  %v16129_v23 = vpop.f32.mrb[24].mxu1 }
0x1341   :  { %v16676_v15 = vadd.f32 %v8535_v28, %v21291_v6  ;;  %v8537_v5 = vpop.f32.mrb[222].mxu0  ;;  %v8998_v4 = vpop.f32.mrb[25].mxu1  ;;  %v21349_v16 = vsel %vm19908_vm1, %v16129_v23, -1e+30 }
0x1342   :  { %v16677_v60 = vadd.f32 %v8537_v5, %v21287_v38  ;;  %v21338_v40 = vsel %vm19915_vm2, %v8998_v4, -1e+30  ;;  %v8539_v53 = vpop.f32.mrb[223].mxu0  ;;  %v16130_v54 = vpop.f32.mrb[26].mxu1 }
0x1343   :  { %v14827_v14 = vpack.c.bf16 %v16676_v15, %v16675_v1  ;;  %v16678_v12 = vadd.f32 %v8539_v53, %v21291_v6  ;;  %9077 = vmax.xlane.f32.xlu0 %v21338_v40  ;;  %v9001_v22 = vpop.f32.mrb[27].mxu1  ;;  %v21354_v27 = vsel %vm19932_vm3, %v16130_v54, -1e+30 }
0x1344   :  { %v21344_v47 = vsel %vm19938_vm4, %v9001_v22, -1e+30 }
0x1345   :  { %8887 = vst [vmem:[#allocation8 + $0x78] sm:$0xff] %v14827_v14  ;;  %v14829_v7 = vpack.c.bf16 %v16678_v12, %v16677_v60  ;;  %9079 = vmax.xlane.f32.xlu1 %v21344_v47 }
0x1347   :  { %8889 = vst [vmem:[#allocation8 + $0x84] sm:$0xff] %v14829_v7  ;;  %9081 = vmax.xlane.f32.xlu0 %v21349_v16  ;;  %v8543_v58 = vpop.f32.mrb[224].mxu0 }
0x1348   :  { %v16679_v10 = vadd.f32 %v8543_v58, %v21287_v38  ;;  %v8545_v1 = vpop.f32.mrb[225].mxu0  ;;  %v16133_v28 = vpop.f32.mrb[28].mxu1 }
0x1349   :  { %v16680_v15 = vadd.f32 %v8545_v1, %v21291_v6  ;;  %9083 = vmax.xlane.f32.xlu1 %v21354_v27  ;;  %v8547_v5 = vpop.f32.mrb[226].mxu0  ;;  %v9014_v4 = vpop.f32.mrb[29].mxu1  ;;  %v21373_v1 = vsel %vm19976_vm7, %v16133_v28, -1e+30 }
0x134a   :  { %v16681_v23 = vadd.f32 %v8547_v5, %v21287_v38  ;;  %v21362_v60 = vsel %vm19957_vm5, %v9014_v4, -1e+30  ;;  %v8549_v53 = vpop.f32.mrb[227].mxu0  ;;  %v16134_v14 = vpop.f32.mrb[30].mxu1 }
0x134b   :  { %v14831_v54 = vpack.c.bf16 %v16680_v15, %v16679_v10  ;;  %v16682_v12 = vadd.f32 %v8549_v53, %v21291_v6  ;;  %9085 = vmax.xlane.f32.xlu0 %v21362_v60  ;;  %v9017_v22 = vpop.f32.mrb[31].mxu1  ;;  %v21378_v15 = vsel %vm19988_vm8, %v16134_v14, -1e+30 }
0x134c   :  { %v21368_v7 = vsel %vm19965_vm6, %v9017_v22, -1e+30 }
0x134d   :  { %8891 = vst [vmem:[#allocation8 + $0x90] sm:$0xff] %v14831_v54  ;;  %v14833_v58 = vpack.c.bf16 %v16682_v12, %v16681_v23  ;;  %9087 = vmax.xlane.f32.xlu1 %v21368_v7 }
0x134f   :  { %8893 = vst [vmem:[#allocation8 + $0x9c] sm:$0xff] %v14833_v58  ;;  %9089 = vmax.xlane.f32.xlu0 %v21373_v1  ;;  %v8553_v10 = vpop.f32.mrb[228].mxu0 }
0x1350   :  { %v16683_v5 = vadd.f32 %v8553_v10, %v21287_v38  ;;  %v8555_v4 = vpop.f32.mrb[229].mxu0  ;;  %v16137_v53 = vpop.f32.mrb[32].mxu1 }
0x1351   :  { %v16684_v23 = vadd.f32 %v8555_v4, %v21291_v6  ;;  %9091 = vmax.xlane.f32.xlu1 %v21378_v15  ;;  %v8557_v54 = vpop.f32.mrb[230].mxu0  ;;  %v9030_v12 = vpop.f32.mrb[33].mxu1 }
0x1352   :  { %v16685_v28 = vadd.f32 %v8557_v54, %v21287_v38  ;;  %v21386_v22 = vsel %vm20000_vm9, %v9030_v12, -1e+30  ;;  %v8559_v58 = vpop.f32.mrb[231].mxu0  ;;  %v16138_v35 = vpop.f32.mrb[34].mxu1  ;;  %v21397_v38 = vsel %vm23344_vm14, %v16137_v53, -1e+30 }
0x1353   :  { %v14835_v14 = vpack.c.bf16 %v16684_v23, %v16683_v5  ;;  %v16686_v63 = vadd.f32 %v8559_v58, %v21291_v6  ;;  %9093 = vmax.xlane.f32.xlu0 %v21386_v22  ;;  %v9033_v10 = vpop.f32.mrb[35].mxu1  ;;  %v21402_v6 = vsel %vm23345_vm12, %v16138_v35, -1e+30  ;;  %v18065_v58 = vld [vmem:[#allocation7] ss:$12 sps:$4 sm:$0xff]  }
0x1354   :  { %v21392_v4 = vsel %vm23343_vm10, %v9033_v10, -1e+30  ;;  %v18068_v10 = vld [vmem:[#allocation7 + $0x18] ss:$12 sps:$4 sm:$0xff]  }
0x1355   :  { %8895 = vst [vmem:[#allocation8 + $0xa8] sm:$0xff] %v14835_v14  ;;  %v14837_v13 = vpack.c.bf16 %v16686_v63, %v16685_v28  ;;  %9095 = vmax.xlane.f32.xlu1 %v21392_v4  ;;  %v18067_v28 = vld [vmem:[#allocation7 + $0x4] ss:$12 sps:$4 sm:$0xff]   ;;  %v18070_v14 = vld [vmem:[#allocation7 + $0x1c] ss:$12 sps:$4 sm:$0xff]  }
0x1356   :  { %9438 = vmatprep.subr.bf16.mxu1 %v18067_v28 }
0x1357   :  { %8897 = vst [vmem:[#allocation8 + $0xb4] sm:$0xff] %v14837_v13  ;;  %9097 = vmax.xlane.f32.xlu0 %v21397_v38  ;;  %9439 = vmatpush1.bf16.msra.mxu1 %v18065_v58 }
0x1358   :  { %v16141_v5 = vpop.f32.mrb[36].mxu1  ;;  %9440 = vmatprep.subr.bf16.mxu1 %v18070_v14 }
0x1359   :  { %9099 = vmax.xlane.f32.xlu1 %v21402_v6  ;;  %v9046_v23 = vpop.f32.mrb[37].mxu1  ;;  %v21417_v35 = vsel %vm23348_vm13, %v16141_v5, -1e+30  ;;  %v18076_v5 = vld [vmem:[#allocation7 + $0x4c] ss:$12 sps:$4 sm:$0xff]   ;;  %vm23350_vm13 = vcmask 523264  }
0x135a   :  { %v21407_v63 = vsel %vm23346_vm15, %v9046_v23, -1e+30  ;;  %v16142_v54 = vpop.f32.mrb[38].mxu1  ;;  %v18073_v23 = vld [vmem:[#allocation7 + $0x34] ss:$12 sps:$4 sm:$0xff]  }
0x135b   :  { %9101 = vmax.xlane.f32.xlu0 %v21407_v63  ;;  %v9049_v53 = vpop.f32.mrb[39].mxu1  ;;  %v21422_v12 = vsel %vm23349_vm0, %v16142_v54, -1e+30  ;;  %9441 = vmatpush1.bf16.msra.mxu1 %v18068_v10  ;;  %vm23351_vm0 = vmmov %vm23350_vm13 }
0x135c   :  { %v21412_v13 = vsel %vm23347_vm11, %v9049_v53, -1e+30  ;;  %v18071_v53 = vld [vmem:[#allocation7 + $0x30] ss:$12 sps:$4 sm:$0xff]   ;;  %9442 = vmatprep.subr.bf16.mxu1 %v18073_v23  ;;  %vm23352_vm15 = vmmov %vm23351_vm0 }
0x135d   :  { %9103 = vmax.xlane.f32.xlu1 %v21412_v13  ;;  %vm23353_vm11 = vmmov %vm23351_vm0 }
0x135e   :  { %vm23354_vm14 = vmmov %vm23351_vm0 }
0x135f   :  { %9105 = vmax.xlane.f32.xlu0 %v21417_v35  ;;  %9443 = vmatpush1.bf16.msra.mxu1 %v18071_v53  ;;  %vm23367_vm12 = vmmov %vm23351_vm0 }
0x1360   :  { %9444 = vmatprep.subr.bf16.mxu1 %v18076_v5 }
0x1361   :  { %9107 = vmax.xlane.f32.xlu1 %v21422_v12 }
0x1363   :  { %9445 = vmatpush1.bf16.msra.mxu1 %v18074_v36 }
0x1372   :  { %9730 = vrot.lane.b32.xlu1 %v23292_v21, %s19071_s2 }
0x1375   :  { %9728 = vrot.lane.b32.xlu0 %v23273_v57, %s19071_s2 }
0x1379   :  { %9732 = vrot.lane.b32.xlu0 %v23297_v8, %s19071_s2 }
0x13d0   :  { %v9078_v54 = vpop.xlane.xlu0 %9077 }
0x13d1   :  { %v9109_v28 = vsub.f32 %v21338_v40, %v9078_v54 }
0x13d2   :  { %v9080_v58 = vpop.xlane.xlu1 %9079 }
0x13d3   :  { %v9125_v14 = vmul.f32 1.442695, %v9109_v28  ;;  %v9110_v10 = vsub.f32 %v21344_v47, %v9080_v58 }
0x13d4   :  { %v9082_v23 = vpop.xlane.xlu0 %9081 }
0x13d5   :  { %v9127_v53 = vmul.f32 1.442695, %v9110_v10  ;;  %v9111_v36 = vsub.f32 %v21349_v16, %v9082_v23  ;;  %18545 = vpow2.f32 %v9125_v14 }
0x13d6   :  { %v9084_v5 = vpop.xlane.xlu1 %9083 }
0x13d7   :  { %18547 = vpow2.f32 %v9127_v53  ;;  %v9129_v21 = vmul.f32 1.442695, %v9111_v36  ;;  %v9112_v57 = vsub.f32 %v21354_v27, %v9084_v5 }
0x13d8   :  { %v9086_v18 = vpop.xlane.xlu0 %9085 }
0x13d9   :  { %18549 = vpow2.f32 %v9129_v21  ;;  %v9131_v8 = vmul.f32 1.442695, %v9112_v57  ;;  %v9113_v39 = vsub.f32 %v21362_v60, %v9086_v18 }
0x13da   :  { %v9088_v40 = vpop.xlane.xlu1 %9087 }
0x13db   :  { %18551 = vpow2.f32 %v9131_v8  ;;  %v9133_v54 = vmul.f32 1.442695, %v9113_v39  ;;  %v9114_v47 = vsub.f32 %v21368_v7, %v9088_v40 }
0x13dc   :  { %v9090_v28 = vpop.xlane.xlu0 %9089 }
0x13dd   :  { %v9135_v58 = vmul.f32 1.442695, %v9114_v47  ;;  %v9115_v16 = vsub.f32 %v21373_v1, %v9090_v28  ;;  %18553 = vpow2.f32 %v9133_v54 }
0x13de   :  { %v9092_v14 = vpop.xlane.xlu1 %9091 }
0x13df   :  { %18555 = vpow2.f32 %v9135_v58  ;;  %v9137_v10 = vmul.f32 1.442695, %v9115_v16  ;;  %v9116_v27 = vsub.f32 %v21378_v15, %v9092_v14  ;;  %v18546_v23 = vpop.eup %18545 }
0x13e0   :  { %v9094_v53 = vpop.xlane.xlu0 %9093 }
0x13e1   :  { %v18548_v36 = vpop.eup %18547  ;;  %18557 = vpow2.f32 %v9137_v10  ;;  %v9139_v18 = vmul.f32 1.442695, %v9116_v27  ;;  %v9117_v60 = vsub.f32 %v21386_v22, %v9094_v53 }
0x13e2   :  { %v9096_v39 = vpop.xlane.xlu1 %9095  ;;  %v9189_v5 = vpack.c.bf16 %v18548_v36, %v18546_v23 }
0x13e3   :  { %v18550_v7 = vpop.eup %18549  ;;  %18559 = vpow2.f32 %v9139_v18  ;;  %v9141_v21 = vmul.f32 1.442695, %v9117_v60  ;;  %v9118_v1 = vsub.f32 %v21392_v4, %v9096_v39 }
0x13e4   :  { %v9098_v57 = vpop.xlane.xlu0 %9097  ;;  %9161 = vadd.xlane.f32.xlu0 %v18550_v7  ;;  %16159 = vmatprep.mubr.bf16.mxu0 %v9189_v5 }
0x13e5   :  { %v18552_v8 = vpop.eup %18551  ;;  %v9143_v40 = vmul.f32 1.442695, %v9118_v1  ;;  %v9119_v15 = vsub.f32 %v21397_v38, %v9098_v57  ;;  %18561 = vpow2.f32 %v9141_v21 }
0x13e6   :  { %v9190_v54 = vpack.c.bf16 %v18552_v8, %v18550_v7  ;;  %v9100_v47 = vpop.xlane.xlu1 %9099  ;;  %9163 = vadd.xlane.f32.xlu1 %v18552_v8 }
0x13e7   :  { %18563 = vpow2.f32 %v9143_v40  ;;  %v9145_v22 = vmul.f32 1.442695, %v9119_v15  ;;  %v9120_v28 = vsub.f32 %v21402_v6, %v9100_v47  ;;  %v18554_v58 = vpop.eup %18553 }
0x13e8   :  { %9157 = vadd.xlane.f32.xlu0 %v18546_v23  ;;  %v9102_v16 = vpop.xlane.xlu0 %9101  ;;  %16160 = vmatmul.mubr.bf16.vlgmr.msra.gmra.mrb[56].mxu0 %v9190_v54 }
0x13e9   :  { %v18556_v4 = vpop.eup %18555  ;;  %18565 = vpow2.f32 %v9145_v22  ;;  %v9147_v14 = vmul.f32 1.442695, %v9120_v28  ;;  %v9121_v10 = vsub.f32 %v21407_v63, %v9102_v16 }
0x13ea   :  { %9159 = vadd.xlane.f32.xlu1 %v18548_v36  ;;  %v9104_v27 = vpop.xlane.xlu1 %9103  ;;  %v9191_v38 = vpack.c.bf16 %v18556_v4, %v18554_v58 }
0x13eb   :  { %v18558_v53 = vpop.eup %18557  ;;  %18567 = vpow2.f32 %v9147_v14  ;;  %v9149_v18 = vmul.f32 1.442695, %v9121_v10  ;;  %v9122_v60 = vsub.f32 %v21412_v13, %v9104_v27  ;;  %v18077_v14 = vld [vmem:[#allocation7 + $0x8] ss:$12 sps:$4 sm:$0xff]   ;;  %v18079_v10 = vld [vmem:[#allocation7 + $0x38] ss:$12 sps:$4 sm:$0xff]  }
0x13ec   :  { %9169 = vadd.xlane.f32.xlu0 %v18558_v53  ;;  %v9106_v39 = vpop.xlane.xlu0 %9105  ;;  %16163 = vmatprep.mubr.bf16.mxu0 %v9191_v38 }
0x13ed   :  { %v18560_v6 = vpop.eup %18559  ;;  %v9151_v23 = vmul.f32 1.442695, %v9122_v60  ;;  %v9123_v5 = vsub.f32 %v21417_v35, %v9106_v39  ;;  %18569 = vpow2.f32 %v9149_v18  ;;  %16175 = vmatprep.subr.bf16.mxu0 %v18077_v14 }
0x13ee   :  { %v9192_v7 = vpack.c.bf16 %v18560_v6, %v18558_v53  ;;  %v9108_v21 = vpop.xlane.xlu1 %9107  ;;  %16176 = vmatpush3.bf16.msra.mxu0 %v18077_v14 }
0x13ef   :  { %18571 = vpow2.f32 %v9151_v23  ;;  %v9153_v63 = vmul.f32 1.442695, %v9123_v5  ;;  %v9124_v36 = vsub.f32 %v21422_v12, %v9108_v21  ;;  %v18562_v1 = vpop.eup %18561 }
0x13f0   :  { %9165 = vadd.xlane.f32.xlu0 %v18554_v58  ;;  %v21447_v57 = vpop.permute.xlu0 %9728  ;;  %16164 = vmatmul.mubr.bf16.gmra.mrb[60].mxu0 %v9192_v7 }
0x13f1   :  { %v18564_v13 = vpop.eup %18563  ;;  %v9155_v8 = vmul.f32 1.442695, %v9124_v36  ;;  %17543 = vmatprep.subr.msk.bf16.mxu1 %vm23350_vm13, %v21447_v57  ;;  %18573 = vpow2.f32 %v9153_v63 }
0x13f2   :  { %v9193_v40 = vpack.c.bf16 %v18564_v13, %v18562_v1 }
0x13f3   :  { %v18566_v35 = vpop.eup %18565  ;;  %18575 = vpow2.f32 %v9155_v8 }
0x13f4   :  { %9177 = vadd.xlane.f32.xlu0 %v18566_v35  ;;  %16167 = vmatprep.mubr.bf16.mxu0 %v9193_v40 }
0x13f5   :  { %v18568_v15 = vpop.eup %18567 }
0x13f6   :  { %v9194_v54 = vpack.c.bf16 %v18568_v15, %v18566_v35 }
0x13f7   :  { %v18570_v47 = vpop.eup %18569 }
0x13f8   :  { %16168 = vmatmul.mubr.bf16.gmra.mrb[64].mxu0 %v9194_v54  ;;  %v9769_v54 = vsel %vm23352_vm15, %v21447_v57, 0  ;;  %vm23356_vm15 = vmmov %vm23351_vm0 }
0x13f9   :  { %v18572_v12 = vpop.eup %18571 }
0x13fa   :  { %v9195_v22 = vpack.c.bf16 %v18572_v12, %v18570_v47 }
0x13fb   :  { %9734 = vrot.lane.b32.xlu1 %v23302_v2, %s19071_s2  ;;  %v18574_v28 = vpop.eup %18573  ;;  %v18078_v2 = vld [vmem:[#allocation7 + $0x20] ss:$12 sps:$4 sm:$0xff]  }
0x13fc   :  { %16171 = vmatprep.mubr.bf16.mxu0 %v9195_v22  ;;  %16177 = vmatprep.subr.bf16.mxu0 %v18078_v2 }
0x13fd   :  { %v18576_v58 = vpop.eup %18575  ;;  %16178 = vmatpush3.bf16.msra.mxu0 %v18078_v2 }
0x13fe   :  { %v9196_v16 = vpack.c.bf16 %v18576_v58, %v18574_v28  ;;  %16179 = vmatprep.subr.bf16.mxu0 %v18079_v10 }
0x1400   :  { %16172 = vmatmul.mubr.bf16.gmra.mrb[68].mxu0 %v9196_v16 }
0x1401   :  { %16180 = vmatpush3.bf16.msra.mxu0 %v18079_v10 }
0x140a   :  { %9736 = vrot.lane.b32.xlu0 %v23306_v30, %s19071_s2  ;;  %v18080_v30 = vld [vmem:[#allocation7 + $0x50] ss:$12 sps:$4 sm:$0xff]  }
0x140b   :  { %16181 = vmatprep.subr.bf16.mxu0 %v18080_v30 }
0x140c   :  { %16182 = vmatpush3.bf16.msra.mxu0 %v18080_v30 }
0x141f   :  { %9171 = vadd.xlane.f32.xlu1 %v18560_v6 }
0x1423   :  { %9167 = vadd.xlane.f32.xlu1 %v18556_v4 }
0x1427   :  { %9173 = vadd.xlane.f32.xlu1 %v18562_v1 }
0x1429   :  { %9185 = vadd.xlane.f32.xlu0 %v18574_v28 }
0x142b   :  { %9179 = vadd.xlane.f32.xlu1 %v18568_v15 }
0x142f   :  { %9175 = vadd.xlane.f32.xlu1 %v18564_v13 }
0x1433   :  { %9181 = vadd.xlane.f32.xlu1 %v18570_v47 }
0x1437   :  { %9187 = vadd.xlane.f32.xlu1 %v18576_v58 }
0x143b   :  { %9183 = vadd.xlane.f32.xlu1 %v18572_v12 }
0x143f   :  { %9740 = vrot.lane.b32.xlu0 %v23312_v46, %s19071_s2  ;;  %v21491_v46 = vpop.permute.xlu1 %9730 }
0x1443   :  { %9742 = vrot.lane.b32.xlu0 %v23314_v56, %s19071_s2 }
0x1447   :  { %9704 = vrot.lane.b32.xlu0 %v23324_v41, %s19071_s2 }
0x144b   :  { %9708 = vrot.lane.b32.xlu0 %v23329_v3, %s19071_s2 }
0x144c   :  { %9738 = vrot.lane.b32.xlu1 %v23309_v24, %s19071_s2 }
0x144f   :  { %9712 = vrot.lane.b32.xlu0 %v23334_v11, %s19071_s2 }
0x1450   :  { %9706 = vrot.lane.b32.xlu1 %v23327_v48, %s19071_s2 }
0x1453   :  { %9716 = vrot.lane.b32.xlu0 %v23339_v0, %s19071_s2 }
0x1454   :  { %9710 = vrot.lane.b32.xlu1 %v23332_v33, %s19071_s2 }
0x1457   :  { %10033 = vrot.lane.b32.xlu0 %v23286_v20, %s19071_s2  ;;  %v21489_v20 = vpop.permute.xlu0 %9732 }
0x1458   :  { %9714 = vrot.lane.b32.xlu1 %v23337_v25, %s19071_s2 }
0x145b   :  { %10037 = vrot.lane.b32.xlu0 %v23294_v9, %s19071_s2 }
0x145c   :  { %9718 = vrot.lane.b32.xlu1 %v23341_v59, %s19071_s2 }
0x145f   :  { %10039 = vrot.lane.b32.xlu0 %v23296_v52, %s19071_s2 }
0x1460   :  { %10035 = vrot.lane.b32.xlu1 %v23291_v44, %s19071_s2 }
0x1463   :  { %10041 = vrot.lane.b32.xlu0 %v23299_v19, %s19071_s2 }
0x1464   :  { %10043 = vrot.lane.b32.xlu1 %v23301_v17, %s19071_s2 }
0x1471   :  { %v9162_v24 = vpop.xlane.xlu0 %9161 }
0x1472   :  { %18577 = vrcp.f32 %v9162_v24 }
0x1473   :  { %v9164_v56 = vpop.xlane.xlu1 %9163 }
0x1474   :  { %18579 = vrcp.f32 %v9164_v56 }
0x1475   :  { %v9158_v9 = vpop.xlane.xlu0 %9157 }
0x1476   :  { %18581 = vrcp.f32 %v9158_v9 }
0x1477   :  { %v9160_v48 = vpop.xlane.xlu1 %9159 }
0x1478   :  { %18583 = vrcp.f32 %v9160_v48 }
0x1479   :  { %v9170_v41 = vpop.xlane.xlu0 %9169 }
0x147a   :  { %18585 = vrcp.f32 %v9170_v41 }
0x147b   :  { %v21493_v52 = vpop.permute.xlu1 %9734 }
0x147c   :  { %v18578_v4 = vpop.eup %18577 }
0x147d   :  { %v9166_v3 = vpop.xlane.xlu0 %9165 }
0x147e   :  { %18587 = vrcp.f32 %v9166_v3  ;;  %v18580_v38 = vpop.eup %18579 }
0x1480   :  { %v18582_v60 = vpop.eup %18581 }
0x1481   :  { %v9178_v33 = vpop.xlane.xlu0 %9177 }
0x1482   :  { %v18584_v6 = vpop.eup %18583 }
0x1484   :  { %v18586_v35 = vpop.eup %18585 }
0x1485   :  { %v21495_v19 = vpop.permute.xlu0 %9736 }
0x1488   :  { %v18588_v47 = vpop.eup %18587 }
0x14ac   :  { %v9172_v44 = vpop.xlane.xlu1 %9171 }
0x14ad   :  { %18589 = vrcp.f32 %v9172_v44 }
0x14b0   :  { %v9168_v11 = vpop.xlane.xlu1 %9167 }
0x14b1   :  { %18591 = vrcp.f32 %v9168_v11 }
0x14b2   :  { %18593 = vrcp.f32 %v9178_v33 }
0x14b4   :  { %v9174_v17 = vpop.xlane.xlu1 %9173 }
0x14b5   :  { %18595 = vrcp.f32 %v9174_v17 }
0x14b6   :  { %v9186_v25 = vpop.xlane.xlu0 %9185 }
0x14b7   :  { %v18590_v28 = vpop.eup %18589 }
0x14b8   :  { %v9180_v0 = vpop.xlane.xlu1 %9179 }
0x14b9   :  { %18597 = vrcp.f32 %v9180_v0 }
0x14ba   :  { %v21497_v59 = vpop.permute.xlu0 %9740 }
0x14bb   :  { %v16161_v27 = vpop.f32.mrb[56].mxu0  ;;  %v18592_v16 = vpop.eup %18591 }
0x14bc   :  { %v9176_v53 = vpop.xlane.xlu1 %9175  ;;  %v9231_v18 = vpop.f32.mrb[57].mxu0  ;;  %v9312_v23 = vmul.f32 %v18578_v4, %v16161_v27 }
0x14bd   :  { %v16162_v39 = vpop.f32.mrb[58].mxu0  ;;  %v9310_v63 = vmul.f32 %v18582_v60, %v9231_v18  ;;  %18599 = vrcp.f32 %v9176_v53  ;;  %v18594_v3 = vpop.eup %18593 }
0x14be   :  { %v9313_v5 = vmul.f32 %v18580_v38, %v16162_v39  ;;  %v21499_v7 = vpop.permute.xlu0 %9742  ;;  %v9234_v21 = vpop.f32.mrb[59].mxu0  ;;  %18601 = vrcp.f32 %v9186_v25 }
0x14bf   :  { %v9311_v36 = vmul.f32 %v18584_v6, %v9234_v21  ;;  %v18596_v11 = vpop.eup %18595 }
0x14c0   :  { %v9327_v1 = vpack.c.bf16 %v9313_v5, %v9312_v23  ;;  %v9182_v13 = vpop.xlane.xlu1 %9181 }
0x14c1   :  { %v9326_v8 = vpack.c.bf16 %v9311_v36, %v9310_v63  ;;  %18603 = vrcp.f32 %v9182_v13 }
0x14c2   :  { %v21501_v40 = vpop.permute.xlu0 %9704 }
0x14c3   :  { %v16165_v15 = vpop.f32.mrb[60].mxu0  ;;  %14579 = vmatmul.mubr.msk.bf16.vlgmr.msra.gmra.mrb[40].mxu1 %vm23350_vm13, %v9326_v8  ;;  %16183 = vmatprep.mubr.msk.bf16.mxu0 %vm23351_vm0, %v9326_v8  ;;  %v18598_v0 = vpop.eup %18597  ;;  %vm23358_vm13 = vmmov %vm23351_vm0 }
0x14c4   :  { %16200 = vmatpush3.bf16.xpose.msra.mxu1 %v9769_v54  ;;  %v9188_v12 = vpop.xlane.xlu1 %9187  ;;  %v9247_v22 = vpop.f32.mrb[61].mxu0  ;;  %16184 = vmatmul.mubr.msk.bf16.vlgmr.msra.gmra.mrb[72].mxu0 %vm23353_vm11, %v9327_v1  ;;  %v9316_v14 = vmul.f32 %v18586_v35, %v16165_v15  ;;  %vm23357_vm11 = vmmov %vm23351_vm0 }
0x14c5   :  { %17544 = vmatprep.subr.msk.bf16.mxu1 %vm23354_vm14, %v21491_v46  ;;  %v16166_v58 = vpop.f32.mrb[62].mxu0  ;;  %9480 = vmatprep.mubr.bf16.mxu1 %v22831_v62  ;;  %v9314_v30 = vmul.f32 %v18588_v47, %v9247_v22  ;;  %18605 = vrcp.f32 %v9188_v12  ;;  %vm23355_vm14 = vmmov %vm23351_vm0  ;;  %v9772_v44 = vsel %vm23357_vm11, %v21491_v46, 0 }
0x14c6   :  { %v9317_v2 = vmul.f32 %v18590_v28, %v16166_v58  ;;  %v21511_v10 = vpop.permute.xlu0 %9708  ;;  %v9250_v57 = vpop.f32.mrb[63].mxu0  ;;  %vm23361_vm11 = vmmov %vm23351_vm0 }
0x14c7   :  { %v9315_v24 = vmul.f32 %v18592_v16, %v9250_v57  ;;  %v18600_v27 = vpop.eup %18599 }
0x14c8   :  { %v9329_v9 = vpack.c.bf16 %v9317_v2, %v9316_v14  ;;  %v9184_v56 = vpop.xlane.xlu1 %9183  ;;  %v18602_v63 = vpop.eup %18601 }
0x14c9   :  { %v9328_v41 = vpack.c.bf16 %v9315_v24, %v9314_v30  ;;  %18607 = vrcp.f32 %v9184_v56 }
0x14ca   :  { %v21513_v48 = vpop.permute.xlu0 %9712 }
0x14cb   :  { %v16169_v33 = vpop.f32.mrb[64].mxu0  ;;  %14580 = vmatmul.mubr.msk.bf16.gmra.mrb[44].mxu1 %vm23355_vm14, %v9327_v1  ;;  %16187 = vmatprep.mubr.msk.bf16.mxu0 %vm23356_vm15, %v9328_v41  ;;  %vm23359_vm14 = vmmov %vm23351_vm0  ;;  %v9775_v1 = vsel %vm23361_vm11, %v21489_v20, 0  ;;  %v18604_v13 = vpop.eup %18603 }
0x14cc   :  { %16202 = vmatpush3.bf16.xpose.msra.mxu1 %v9772_v44  ;;  %v21519_v17 = vpop.permute.xlu1 %9738  ;;  %v9263_v25 = vpop.f32.mrb[65].mxu0  ;;  %16188 = vmatmul.mubr.msk.bf16.gmra.mrb[76].mxu0 %vm23351_vm0, %v9329_v9  ;;  %v9320_v38 = vmul.f32 %v18594_v3, %v16169_v33  ;;  %vm23360_vm15 = vmmov %vm23351_vm0  ;;  %v18083_v44 = vld [vmem:[#allocation7 + $0x64] ss:$12 sps:$4 sm:$0xff]  }
0x14cd   :  { %17545 = vmatprep.subr.msk.bf16.mxu1 %vm23358_vm13, %v21489_v20  ;;  %v16170_v4 = vpop.f32.mrb[66].mxu0  ;;  %9490 = vmatprep.mubr.bf16.mxu1 %v22831_v62  ;;  %v9318_v60 = vmul.f32 %v18596_v11, %v9263_v25  ;;  %vm23362_vm13 = vmmov %vm23351_vm0  ;;  %v9784_v3 = vsel %vm23351_vm0, %v21519_v17, 0  ;;  %v9790_v11 = vsel %vm23351_vm0, %v21499_v7, 0  ;;  %v18086_v25 = vld [vmem:[#allocation7 + $0x7c] ss:$12 sps:$4 sm:$0xff]  }
0x14ce   :  { %v9321_v53 = vmul.f32 %v18598_v0, %v16170_v4  ;;  %v21525_v18 = vpop.permute.xlu0 %9716  ;;  %v9266_v46 = vpop.f32.mrb[67].mxu0  ;;  %vm23365_vm11 = vmmov %vm23351_vm0  ;;  %v18089_v0 = vld [vmem:[#allocation7 + $0x94] ss:$12 sps:$4 sm:$0xff]   ;;  %v18087_v4 = vld [vmem:[#allocation7 + $0x90] ss:$12 sps:$4 sm:$0xff]  }
0x14cf   :  { %v9319_v39 = vmul.f32 %v18600_v27, %v9266_v46  ;;  %v18606_v15 = vpop.eup %18605  ;;  %v9778_v57 = vsel %vm23365_vm11, %v21493_v52, 0  ;;  %vm23370_vm11 = vmmov %vm23351_vm0  ;;  %v23381_v27 = vld [vmem:[#allocation81_spill] sm:$0xff] }
0x14d0   :  { %v9331_v6 = vpack.c.bf16 %v9321_v53, %v9320_v38  ;;  %v21527_v23 = vpop.permute.xlu1 %9706 }
0x14d1   :  { %v9330_v5 = vpack.c.bf16 %v9319_v39, %v9318_v60 }
0x14d2   :  { %v10034_v21 = vpop.permute.xlu0 %10033 }
0x14d3   :  { %v16173_v36 = vpop.f32.mrb[68].mxu0  ;;  %14581 = vmatmul.mubr.msk.bf16.gmra.mrb[48].mxu1 %vm23359_vm14, %v9328_v41  ;;  %16191 = vmatprep.mubr.msk.bf16.mxu0 %vm23360_vm15, %v9330_v5  ;;  %v18608_v47 = vpop.eup %18607  ;;  %vm23363_vm14 = vmmov %vm23351_vm0 }
0x14d4   :  { %16204 = vmatpush3.bf16.xpose.msra.mxu1 %v9775_v1  ;;  %16231 = vmatprep.subr.bf16.mxu0 %v10034_v21  ;;  %v21533_v8 = vpop.permute.xlu1 %9710  ;;  %v9279_v35 = vpop.f32.mrb[69].mxu0  ;;  %v9324_v12 = vmul.f32 %v18602_v63, %v16173_v36  ;;  %vm23364_vm15 = vmmov %vm23351_vm0 }
0x14d5   :  { %16192 = vmatmul.mubr.msk.bf16.gmra.mrb[80].mxu0 %vm23351_vm0, %v9331_v6  ;;  %17546 = vmatprep.subr.msk.bf16.mxu1 %vm23362_vm13, %v21493_v52  ;;  %v16174_v54 = vpop.f32.mrb[70].mxu0  ;;  %v9322_v20 = vmul.f32 %v18604_v13, %v9279_v35  ;;  %vm23366_vm13 = vmmov %vm23351_vm0 }
0x14d6   :  { %16232 = vmatpush3.bf16.msra.mxu0 %v10034_v21  ;;  %v9325_v22 = vmul.f32 %v18606_v15, %v16174_v54  ;;  %v9282_v28 = vpop.f32.mrb[71].mxu0  ;;  %9500 = vmatprep.mubr.bf16.mxu1 %v22831_v62  ;;  %v10038_v24 = vpop.permute.xlu0 %10037 }
0x14d7   :  { %v9323_v58 = vmul.f32 %v18608_v47, %v9282_v28 }
0x14d8   :  { %v9333_v16 = vpack.c.bf16 %v9325_v22, %v9324_v12  ;;  %v21539_v14 = vpop.permute.xlu1 %9714 }
0x14d9   :  { %v9332_v2 = vpack.c.bf16 %v9323_v58, %v9322_v20 }
0x14da   :  { %v10040_v52 = vpop.permute.xlu0 %10039 }
0x14db   :  { %14582 = vmatmul.mubr.msk.bf16.gmra.mrb[52].mxu1 %vm23363_vm14, %v9329_v9  ;;  %16195 = vmatprep.mubr.msk.bf16.mxu0 %vm23364_vm15, %v9332_v2  ;;  %vm23368_vm14 = vmmov %vm23351_vm0 }
0x14dc   :  { %16206 = vmatpush3.bf16.xpose.msra.mxu1 %v9778_v57  ;;  %v9719_v30 = vpop.permute.xlu1 %9718  ;;  %9510 = vmatprep.mubr.bf16.mxu1 %v22831_v62  ;;  %v9781_v9 = vsel %vm23368_vm14, %v21495_v19, 0  ;;  %vm23369_vm15 = vmmov %vm23351_vm0 }
0x14dd   :  { %16196 = vmatmul.mubr.msk.bf16.gmra.mrb[84].mxu0 %vm23351_vm0, %v9333_v16  ;;  %17547 = vmatprep.subr.msk.bf16.mxu1 %vm23366_vm13, %v21495_v19  ;;  %vm23372_vm13 = vmmov %vm23351_vm0 }
0x14de   :  { %v10042_v41 = vpop.permute.xlu0 %10041  ;;  %vm23373_vm14 = vmmov %vm23351_vm0 }
0x14df   :  { %v9787_v33 = vsel %vm23373_vm14, %v21497_v59, 0  ;;  %vm23378_vm14 = vmmov %vm23351_vm0 }
0x14e0   :  { %v10036_v56 = vpop.permute.xlu1 %10035 }
0x14e1   :  { %16233 = vmatprep.subr.bf16.mxu0 %v10036_v56 }
0x14e2   :  { %16234 = vmatpush3.bf16.msra.mxu0 %v10036_v56  ;;  %v23392_v56 = vld [vmem:[#allocation145_spill] sm:$0xff] }
0x14e3   :  { %14583 = vmatmul.mubr.msk.bf16.gmra.mrb[56].mxu1 %vm23367_vm12, %v9330_v5  ;;  %16235 = vmatprep.subr.bf16.mxu0 %v10038_v24  ;;  %vm23371_vm12 = vmmov %vm23351_vm0 }
0x14e4   :  { %16208 = vmatpush3.bf16.xpose.msra.mxu1 %v9781_v9  ;;  %9520 = vmatprep.mubr.bf16.mxu1 %v22831_v62  ;;  %v10044_v19 = vpop.permute.xlu1 %10043 }
0x14e5   :  { %17548 = vmatprep.subr.msk.bf16.mxu1 %vm23369_vm15, %v21519_v17  ;;  %vm23374_vm15 = vmmov %vm23351_vm0  ;;  %v18081_v17 = vld [vmem:[#allocation7 + $0x60] ss:$12 sps:$4 sm:$0xff]  }
0x14e6   :  { %16236 = vmatpush3.bf16.msra.mxu0 %v10038_v24 }
0x14e7   :  { %16237 = vmatprep.subr.bf16.mxu0 %v10040_v52 }
0x14ea   :  { %16238 = vmatpush3.bf16.msra.mxu0 %v10040_v52 }
0x14eb   :  { %14584 = vmatmul.mubr.msk.bf16.gmra.mrb[60].mxu1 %vm23370_vm11, %v9331_v6  ;;  %16239 = vmatprep.subr.bf16.mxu0 %v10042_v41  ;;  %vm23375_vm11 = vmmov %vm23351_vm0 }
0x14ec   :  { %16210 = vmatpush3.bf16.xpose.msra.mxu1 %v9784_v3  ;;  %9530 = vmatprep.mubr.bf16.mxu1 %v22831_v62 }
0x14ed   :  { %17549 = vmatprep.subr.msk.bf16.mxu1 %vm23371_vm12, %v21497_v59  ;;  %vm23376_vm12 = vmmov %vm23351_vm0  ;;  %v18084_v59 = vld [vmem:[#allocation7 + $0x78] ss:$12 sps:$4 sm:$0xff]  }
0x14ee   :  { %16240 = vmatpush3.bf16.msra.mxu0 %v10042_v41 }
0x14ef   :  { %16241 = vmatprep.subr.bf16.mxu0 %v10044_v19 }
0x14f2   :  { %16242 = vmatpush3.bf16.msra.mxu0 %v10044_v19 }
0x14f3   :  { %14585 = vmatmul.mubr.msk.bf16.gmra.mrb[64].mxu1 %vm23372_vm13, %v9332_v2  ;;  %vm23377_vm13 = vmmov %vm23351_vm0  ;;  %v23388_v2 = vld [vmem:[#allocation142_spill] sm:$0xff] }
0x14f4   :  { %16212 = vmatpush3.bf16.xpose.msra.mxu1 %v9787_v33  ;;  %9540 = vmatprep.mubr.bf16.mxu1 %v22831_v62 }
0x14f5   :  { %17550 = vmatprep.subr.msk.bf16.mxu1 %vm23374_vm15, %v21499_v7  ;;  %v18092_v7 = vld [vmem:[#allocation7 + $0xac] ss:$12 sps:$4 sm:$0xff]   ;;  %vm23379_vm15 = vmmov %vm23351_vm0 }
0x14fb   :  { %14586 = vmatmul.mubr.msk.bf16.gmra.mrb[68].mxu1 %vm23375_vm11, %v9333_v16  ;;  %vm23380_vm11 = vmmov %vm23351_vm0 }
0x14fc   :  { %16214 = vmatpush3.bf16.xpose.msra.mxu1 %v9790_v11  ;;  %16215 = vmatprep.mubr.msk.bf16.mxu1 %vm23376_vm12, %v21501_v40  ;;  %v18090_v40 = vld [vmem:[#allocation7 + $0xa8] ss:$12 sps:$4 sm:$0xff]   ;;  %vm23382_vm12 = vmmov %vm23351_vm0 }
0x14fd   :  { %10298 = vmatprep.subr.bf16.mxu1 %v18083_v44 }
0x1503   :  { %16216 = vmatmul.mubr.msk.bf16.vlgmr.msra.gmra.mrb[72].mxu1 %vm23377_vm13, %v21527_v23  ;;  %vm23383_vm13 = vmmov %vm23351_vm0 }
0x1504   :  { %10299 = vmatpush1.bf16.msra.mxu1 %v18081_v17  ;;  %16219 = vmatprep.mubr.msk.bf16.mxu1 %vm23378_vm14, %v21511_v10  ;;  %vm23385_vm14 = vnez %v23062_v34 }
0x1505   :  { %10300 = vmatprep.subr.bf16.mxu1 %v18086_v25 }
0x1508   :  { %10301 = vmatpush1.bf16.msra.mxu1 %v18084_v59 }
0x1509   :  { %10302 = vmatprep.subr.bf16.mxu1 %v18089_v0 }
0x150b   :  { %16220 = vmatmul.mubr.msk.bf16.gmra.mrb[76].mxu1 %vm23379_vm15, %v21533_v8  ;;  %vm23386_vm15 = vnez %v23064_v61 }
0x150c   :  { %10303 = vmatpush1.bf16.msra.mxu1 %v18087_v4  ;;  %16223 = vmatprep.mubr.msk.bf16.mxu1 %vm23380_vm11, %v21513_v48  ;;  %vm23387_vm11 = vnez %v23066_v31 }
0x150d   :  { %10304 = vmatprep.subr.bf16.mxu1 %v18092_v7 }
0x1510   :  { %10305 = vmatpush1.bf16.msra.mxu1 %v18090_v40  ;;  %v18093_v40 = vld [vmem:[#allocation7 + $0x68] ss:$12 sps:$4 sm:$0xff]  }
0x1511   :  { %16319 = vmatprep.subr.bf16.mxu1 %v23381_v27 }
0x1513   :  { %16224 = vmatmul.mubr.msk.bf16.gmra.mrb[80].mxu1 %vm23351_vm0, %v21539_v14  ;;  %vm23389_vm0 = vnez %v23388_v2 }
0x1514   :  { %16227 = vmatprep.mubr.msk.bf16.mxu1 %vm23382_vm12, %v21525_v18 }
0x151b   :  { %16228 = vmatmul.mubr.msk.bf16.gmra.mrb[84].mxu1 %vm23383_vm13, %v9719_v30  ;;  %v23390_v30 = vld [vmem:[#allocation146_spill] sm:$0xff]  ;;  %vm23393_vm13 = vnez %v23392_v56 }
0x151c   :  { %10330 = vmatprep.mubr.bf16.mxu1 %v22831_v62  ;;  %vm23391_vm12 = vnez %v23390_v30 }
0x15d6   :  { %v16217_v10 = vpop.f32.mrb[72].mxu1 }
0x15d7   :  { %v9891_v38 = vsel %vm19908_vm1, %v16217_v10, -1e+30  ;;  %v9826_v48 = vpop.f32.mrb[73].mxu1 }
0x15d8   :  { %v9889_v53 = vsel %vm19915_vm2, %v9826_v48, -1e+30  ;;  %9909 = vmax.xlane.f32.xlu1 %v9891_v38  ;;  %v16218_v46 = vpop.f32.mrb[74].mxu1 }
0x15d9   :  { %9905 = vmax.xlane.f32.xlu0 %v9889_v53  ;;  %v9829_v60 = vpop.f32.mrb[75].mxu1  ;;  %v9892_v39 = vsel %vm19932_vm3, %v16218_v46, -1e+30 }
0x15da   :  { %v9890_v6 = vsel %vm19938_vm4, %v9829_v60, -1e+30 }
0x15dc   :  { %9911 = vmax.xlane.f32.xlu1 %v9892_v39 }
0x15de   :  { %v16221_v18 = vpop.f32.mrb[76].mxu1 }
0x15df   :  { %v9842_v23 = vpop.f32.mrb[77].mxu1  ;;  %v21606_v12 = vsel %vm19976_vm7, %v16221_v18, -1e+30  ;;  %v18094_v18 = vld [vmem:[#allocation7 + $0x80] ss:$12 sps:$4 sm:$0xff]  }
0x15e0   :  { %9907 = vmax.xlane.f32.xlu1 %v9890_v6  ;;  %v16222_v5 = vpop.f32.mrb[78].mxu1  ;;  %v21601_v47 = vsel %vm19957_vm5, %v9842_v23, -1e+30  ;;  %v18096_v23 = vld [vmem:[#allocation7 + $0xb0] ss:$12 sps:$4 sm:$0xff]  }
0x15e1   :  { %v9845_v21 = vpop.f32.mrb[79].mxu1 }
0x15e6   :  { %v16225_v63 = vpop.f32.mrb[80].mxu1 }
0x15e7   :  { %v9858_v36 = vpop.f32.mrb[81].mxu1  ;;  %v21635_v16 = vsel %vm23386_vm15, %v16225_v63, -1e+30 }
0x15e8   :  { %v16226_v1 = vpop.f32.mrb[82].mxu1  ;;  %v21625_v20 = vsel %vm20000_vm9, %v9858_v36, -1e+30 }
0x15e9   :  { %v9861_v13 = vpop.f32.mrb[83].mxu1  ;;  %v21631_v58 = vsel %vm23385_vm14, %v16226_v1, -1e+30 }
0x15ea   :  { %v21621_v28 = vsel %vm23343_vm10, %v9861_v13, -1e+30 }
0x15ee   :  { %v16229_v8 = vpop.f32.mrb[84].mxu1 }
0x15ef   :  { %10045 = vrot.lane.b32.xlu0 %v23304_v26, %s19071_s2  ;;  %v9874_v35 = vpop.f32.mrb[85].mxu1  ;;  %v21611_v26 = vsel %vm19965_vm6, %v9845_v21, -1e+30  ;;  %v21655_v9 = vsel %vm23393_vm13, %v16229_v8, -1e+30 }
0x15f0   :  { %v16230_v15 = vpop.f32.mrb[86].mxu1  ;;  %v21645_v57 = vsel %vm23389_vm0, %v9874_v35, -1e+30 }
0x15f1   :  { %10047 = vrot.lane.b32.xlu1 %v23305_v37, %s19071_s2  ;;  %v9877_v54 = vpop.f32.mrb[87].mxu1  ;;  %v21615_v37 = vsel %vm19988_vm8, %v16222_v5, -1e+30  ;;  %v21651_v24 = vsel %vm23391_vm12, %v16230_v15, -1e+30  ;;  %v23394_v5 = vld [vmem:[#allocation80_spill] sm:$0xff] }
0x15f2   :  { %v21641_v14 = vsel %vm23387_vm11, %v9877_v54, -1e+30  ;;  %vm23395_vm12 = vcmask 523264  }
0x15f3   :  { %vm23396_vm13 = vmmov %vm23395_vm12 }
0x15f4   :  { %vm23397_vm11 = vmmov %vm23395_vm12 }
0x15f5   :  { %vm23398_vm0 = vmmov %vm23397_vm11 }
0x15f6   :  { %vm23401_vm14 = vmmov %vm23398_vm0 }
0x15f7   :  { %vm23436_vm15 = vmmov %vm23398_vm0 }
0x15f8   :  { %vm23438_vm10 = vmmov %vm23398_vm0 }
0x160e   :  { %9913 = vmax.xlane.f32.xlu0 %v21601_v47 }
0x1612   :  { %9917 = vmax.xlane.f32.xlu0 %v21606_v12 }
0x1615   :  { %9915 = vmax.xlane.f32.xlu1 %v21611_v26 }
0x1616   :  { %9919 = vmax.xlane.f32.xlu0 %v21615_v37 }
0x1619   :  { %9923 = vmax.xlane.f32.xlu1 %v21621_v28 }
0x161a   :  { %9921 = vmax.xlane.f32.xlu0 %v21625_v20 }
0x161d   :  { %9927 = vmax.xlane.f32.xlu1 %v21631_v58 }
0x161e   :  { %9925 = vmax.xlane.f32.xlu0 %v21635_v16 }
0x1621   :  { %9931 = vmax.xlane.f32.xlu1 %v21641_v14 }
0x1622   :  { %9929 = vmax.xlane.f32.xlu0 %v21645_v57 }
0x1625   :  { %9935 = vmax.xlane.f32.xlu1 %v21651_v24 }
0x1626   :  { %9933 = vmax.xlane.f32.xlu0 %v21655_v9 }
0x1665   :  { %v9910_v52 = vpop.xlane.xlu1 %9909 }
0x1666   :  { %v9906_v41 = vpop.xlane.xlu0 %9905  ;;  %v9939_v3 = vsub.f32 %v9891_v38, %v9910_v52 }
0x1667   :  { %v9937_v19 = vsub.f32 %v9889_v53, %v9906_v41 }
0x1668   :  { %v9957_v25 = vmul.f32 1.442695, %v9939_v3 }
0x1669   :  { %v9953_v33 = vmul.f32 1.442695, %v9937_v19  ;;  %v9912_v44 = vpop.xlane.xlu1 %9911 }
0x166a   :  { %v9940_v11 = vsub.f32 %v9892_v39, %v9912_v44  ;;  %v10046_v17 = vpop.permute.xlu0 %10045 }
0x166b   :  { %18609 = vpow2.f32 %v9953_v33  ;;  %16243 = vmatprep.subr.bf16.mxu0 %v10046_v17 }
0x166c   :  { %16244 = vmatpush3.bf16.msra.mxu0 %v10046_v17  ;;  %v9959_v59 = vmul.f32 1.442695, %v9940_v11  ;;  %18611 = vpow2.f32 %v9957_v25 }
0x166d   :  { %v9908_v0 = vpop.xlane.xlu1 %9907 }
0x166e   :  { %v9938_v4 = vsub.f32 %v9890_v6, %v9908_v0  ;;  %18613 = vpow2.f32 %v9959_v59  ;;  %v18095_v6 = vld [vmem:[#allocation7 + $0x98] ss:$12 sps:$4 sm:$0xff]  }
0x1670   :  { %v9955_v7 = vmul.f32 1.442695, %v9938_v4 }
0x1671   :  { %v10048_v10 = vpop.permute.xlu1 %10047 }
0x1672   :  { %18615 = vpow2.f32 %v9955_v7  ;;  %16245 = vmatprep.subr.bf16.mxu0 %v10048_v10 }
0x1673   :  { %16246 = vmatpush3.bf16.msra.mxu0 %v10048_v10 }
0x1674   :  { %16263 = vmatprep.subr.bf16.mxu0 %v18093_v40 }
0x1675   :  { %v18610_v38 = vpop.eup %18609 }
0x1676   :  { %9985 = vadd.xlane.f32.xlu0 %v18610_v38  ;;  %v18612_v48 = vpop.eup %18611 }
0x1678   :  { %v18614_v53 = vpop.eup %18613 }
0x1679   :  { %v10018_v39 = vpack.c.bf16 %v18614_v53, %v18612_v48 }
0x167a   :  { %9989 = vadd.xlane.f32.xlu0 %v18612_v48 }
0x167c   :  { %v18616_v46 = vpop.eup %18615 }
0x167d   :  { %9987 = vadd.xlane.f32.xlu1 %v18616_v46  ;;  %v10017_v60 = vpack.c.bf16 %v18616_v46, %v18610_v38 }
0x167f   :  { %16247 = vmatprep.mubr.bf16.mxu0 %v10017_v60 }
0x1680   :  { %16248 = vmatmul.mubr.bf16.vlgmr.msra.gmra.mrb[88].mxu0 %v10018_v39 }
0x1681   :  { %16264 = vmatpush3.bf16.msra.mxu0 %v18093_v40  ;;  %9991 = vadd.xlane.f32.xlu1 %v18614_v53 }
0x1682   :  { %16265 = vmatprep.subr.bf16.mxu0 %v18094_v18 }
0x1685   :  { %16266 = vmatpush3.bf16.msra.mxu0 %v18094_v18 }
0x1686   :  { %16267 = vmatprep.subr.bf16.mxu0 %v18095_v6 }
0x1689   :  { %16268 = vmatpush3.bf16.msra.mxu0 %v18095_v6 }
0x168a   :  { %16269 = vmatprep.subr.bf16.mxu0 %v18096_v23 }
0x168d   :  { %16270 = vmatpush3.bf16.msra.mxu0 %v18096_v23 }
0x168e   :  { %17551 = vmatprep.subr.msk.bf16.mxu0 %vm23395_vm12, %v23394_v5 }
0x169b   :  { %v9914_v21 = vpop.xlane.xlu0 %9913 }
0x169c   :  { %v9941_v63 = vsub.f32 %v21601_v47, %v9914_v21 }
0x169e   :  { %v9961_v36 = vmul.f32 1.442695, %v9941_v63 }
0x169f   :  { %v9918_v1 = vpop.xlane.xlu0 %9917 }
0x16a0   :  { %18617 = vpow2.f32 %v9961_v36  ;;  %v9943_v13 = vsub.f32 %v21606_v12, %v9918_v1 }
0x16a2   :  { %v9965_v8 = vmul.f32 1.442695, %v9943_v13  ;;  %v9916_v35 = vpop.xlane.xlu1 %9915 }
0x16a3   :  { %v9942_v15 = vsub.f32 %v21611_v26, %v9916_v35  ;;  %v9920_v54 = vpop.xlane.xlu0 %9919 }
0x16a4   :  { %18619 = vpow2.f32 %v9965_v8  ;;  %v9944_v52 = vsub.f32 %v21615_v37, %v9920_v54 }
0x16a5   :  { %v9963_v41 = vmul.f32 1.442695, %v9942_v15 }
0x16a6   :  { %v9967_v3 = vmul.f32 1.442695, %v9944_v52  ;;  %v9924_v19 = vpop.xlane.xlu1 %9923 }
0x16a7   :  { %18621 = vpow2.f32 %v9963_v41  ;;  %v9946_v33 = vsub.f32 %v21621_v28, %v9924_v19  ;;  %v9922_v47 = vpop.xlane.xlu0 %9921 }
0x16a8   :  { %18623 = vpow2.f32 %v9967_v3  ;;  %v9945_v44 = vsub.f32 %v21625_v20, %v9922_v47 }
0x16a9   :  { %v9971_v11 = vmul.f32 1.442695, %v9946_v33 }
0x16aa   :  { %v18618_v12 = vpop.eup %18617  ;;  %v9969_v17 = vmul.f32 1.442695, %v9945_v44  ;;  %v9928_v25 = vpop.xlane.xlu1 %9927 }
0x16ab   :  { %18625 = vpow2.f32 %v9971_v11  ;;  %v9948_v26 = vsub.f32 %v21631_v58, %v9928_v25  ;;  %v9926_v59 = vpop.xlane.xlu0 %9925  ;;  %9993 = vadd.xlane.f32.xlu0 %v18618_v12 }
0x16ac   :  { %18627 = vpow2.f32 %v9969_v17  ;;  %v9947_v37 = vsub.f32 %v21635_v16, %v9926_v59 }
0x16ad   :  { %v9975_v0 = vmul.f32 1.442695, %v9948_v26 }
0x16ae   :  { %v18620_v4 = vpop.eup %18619  ;;  %v9973_v7 = vmul.f32 1.442695, %v9947_v37  ;;  %v9932_v28 = vpop.xlane.xlu1 %9931 }
0x16af   :  { %18629 = vpow2.f32 %v9975_v0  ;;  %v9950_v40 = vsub.f32 %v21641_v14, %v9932_v28  ;;  %9997 = vadd.xlane.f32.xlu0 %v18620_v4  ;;  %v9930_v20 = vpop.xlane.xlu0 %9929 }
0x16b0   :  { %18631 = vpow2.f32 %v9973_v7  ;;  %v9949_v10 = vsub.f32 %v21645_v57, %v9930_v20  ;;  %v23399_v20 = vld [vmem:[#allocation85_spill] sm:$0xff] }
0x16b1   :  { %v18622_v38 = vpop.eup %18621  ;;  %v9979_v48 = vmul.f32 1.442695, %v9950_v40  ;;  %v10581_v40 = vsel %vm23398_vm0, %v23394_v5, 0 }
0x16b2   :  { %v18624_v58 = vpop.eup %18623  ;;  %v9977_v53 = vmul.f32 1.442695, %v9949_v10  ;;  %9995 = vadd.xlane.f32.xlu1 %v18622_v38  ;;  %v9936_v46 = vpop.xlane.xlu1 %9935  ;;  %v10019_v60 = vpack.c.bf16 %v18622_v38, %v18618_v12  ;;  %v23400_v10 = vld [vmem:[#allocation84_spill] sm:$0xff]  ;;  %v23402_v38 = vld [vmem:[#allocation91_spill] sm:$0xff] }
0x16b3   :  { %v10020_v16 = vpack.c.bf16 %v18624_v58, %v18620_v4  ;;  %18633 = vpow2.f32 %v9979_v48  ;;  %v9952_v39 = vsub.f32 %v21651_v24, %v9936_v46  ;;  %v9934_v18 = vpop.xlane.xlu0 %9933  ;;  %v23408_v46 = vld [vmem:[#allocation103_spill] sm:$0xff] }
0x16b4   :  { %18635 = vpow2.f32 %v9977_v53  ;;  %v9951_v14 = vsub.f32 %v21655_v9, %v9934_v18  ;;  %16251 = vmatprep.mubr.bf16.mxu0 %v10019_v60  ;;  %v23406_v53 = vld [vmem:[#allocation90_spill] sm:$0xff] }
0x16b5   :  { %v18626_v6 = vpop.eup %18625  ;;  %v9983_v23 = vmul.f32 1.442695, %v9952_v39  ;;  %16252 = vmatmul.mubr.bf16.gmra.mrb[92].mxu0 %v10020_v16  ;;  %v10587_v60 = vsel %vm23398_vm0, %v23406_v53, 0  ;;  %v23409_v16 = vld [vmem:[#allocation109_spill] sm:$0xff]  ;;  %v23410_v39 = vld [vmem:[#allocation96_spill] sm:$0xff] }
0x16b6   :  { %v18628_v57 = vpop.eup %18627  ;;  %v9981_v21 = vmul.f32 1.442695, %v9951_v14  ;;  %9999 = vadd.xlane.f32.xlu1 %v18624_v58  ;;  %v23405_v58 = vld [vmem:[#allocation97_spill] sm:$0xff] }
0x16b7   :  { %18637 = vpow2.f32 %v9983_v23  ;;  %10001 = vadd.xlane.f32.xlu0 %v18628_v57  ;;  %v10021_v63 = vpack.c.bf16 %v18626_v6, %v18628_v57 }
0x16b8   :  { %18639 = vpow2.f32 %v9981_v21  ;;  %v23414_v21 = vld [vmem:[#allocation117_spill] sm:$0xff] }
0x16b9   :  { %v18630_v36 = vpop.eup %18629  ;;  %16255 = vmatprep.mubr.bf16.mxu0 %v10021_v63 }
0x16ba   :  { %v18632_v1 = vpop.eup %18631  ;;  %10003 = vadd.xlane.f32.xlu1 %v18626_v6  ;;  %v23412_v6 = vld [vmem:[#allocation113_spill] sm:$0xff] }
0x16bb   :  { %v10022_v24 = vpack.c.bf16 %v18630_v36, %v18632_v1  ;;  %10005 = vadd.xlane.f32.xlu0 %v18632_v1 }
0x16bd   :  { %v18634_v13 = vpop.eup %18633  ;;  %16256 = vmatmul.mubr.bf16.gmra.mrb[96].mxu0 %v10022_v24 }
0x16be   :  { %v18636_v9 = vpop.eup %18635  ;;  %10007 = vadd.xlane.f32.xlu1 %v18630_v36  ;;  %v23415_v36 = vld [vmem:[#allocation102_spill] sm:$0xff] }
0x16bf   :  { %10009 = vadd.xlane.f32.xlu0 %v18636_v9  ;;  %v10023_v8 = vpack.c.bf16 %v18634_v13, %v18636_v9  ;;  %v23418_v9 = vld [vmem:[#allocation108_spill] sm:$0xff] }
0x16c1   :  { %v18638_v35 = vpop.eup %18637  ;;  %16259 = vmatprep.mubr.bf16.mxu0 %v10023_v8 }
0x16c2   :  { %v18640_v15 = vpop.eup %18639  ;;  %10011 = vadd.xlane.f32.xlu1 %v18634_v13 }
0x16c3   :  { %v10024_v54 = vpack.c.bf16 %v18638_v35, %v18640_v15  ;;  %10013 = vadd.xlane.f32.xlu0 %v18640_v15 }
0x16c5   :  { %16260 = vmatmul.mubr.bf16.gmra.mrb[100].mxu0 %v10024_v54 }
0x16c6   :  { %10015 = vadd.xlane.f32.xlu1 %v18638_v35 }
0x1703   :  { %v9986_v52 = vpop.xlane.xlu0 %9985 }
0x1704   :  { %18641 = vrcp.f32 %v9986_v52  ;;  %v23420_v52 = vld [vmem:[#allocation112_spill] sm:$0xff] }
0x1707   :  { %v9990_v3 = vpop.xlane.xlu0 %9989 }
0x1708   :  { %18643 = vrcp.f32 %v9990_v3 }
0x170a   :  { %v9988_v41 = vpop.xlane.xlu1 %9987 }
0x170e   :  { %v9992_v19 = vpop.xlane.xlu1 %9991  ;;  %v18642_v33 = vpop.eup %18641 }
0x170f   :  { %18645 = vrcp.f32 %v9992_v19 }
0x1710   :  { %18647 = vrcp.f32 %v9988_v41 }
0x1712   :  { %v18644_v44 = vpop.eup %18643 }
0x1719   :  { %v18646_v12 = vpop.eup %18645 }
0x171a   :  { %v18648_v25 = vpop.eup %18647 }
0x1738   :  { %v9994_v14 = vpop.xlane.xlu0 %9993 }
0x1739   :  { %18649 = vrcp.f32 %v9994_v14 }
0x173c   :  { %v9998_v63 = vpop.xlane.xlu0 %9997 }
0x173d   :  { %18651 = vrcp.f32 %v9998_v63 }
0x173f   :  { %v9996_v18 = vpop.xlane.xlu1 %9995 }
0x1743   :  { %v10000_v57 = vpop.xlane.xlu1 %9999  ;;  %v18650_v3 = vpop.eup %18649 }
0x1744   :  { %v10002_v1 = vpop.xlane.xlu0 %10001  ;;  %18653 = vrcp.f32 %v10000_v57 }
0x1745   :  { %18655 = vrcp.f32 %v9996_v18 }
0x1746   :  { %18657 = vrcp.f32 %v10002_v1 }
0x1747   :  { %v10004_v24 = vpop.xlane.xlu1 %10003 }
0x1748   :  { %v10006_v8 = vpop.xlane.xlu0 %10005 }
0x1749   :  { %18659 = vrcp.f32 %v10006_v8 }
0x174b   :  { %v10008_v35 = vpop.xlane.xlu1 %10007 }
0x174c   :  { %v10010_v54 = vpop.xlane.xlu0 %10009  ;;  %18661 = vrcp.f32 %v10008_v35 }
0x174d   :  { %18663 = vrcp.f32 %v10004_v24 }
0x174e   :  { %18665 = vrcp.f32 %v10010_v54 }
0x174f   :  { %v10012_v41 = vpop.xlane.xlu1 %10011 }
0x1753   :  { %v16249_v47 = vpop.f32.mrb[88].mxu0 }
0x1754   :  { %v10091_v11 = vpop.f32.mrb[89].mxu0  ;;  %v10172_v26 = vmul.f32 %v18644_v44, %v16249_v47 }
0x1755   :  { %v16250_v17 = vpop.f32.mrb[90].mxu0  ;;  %v10170_v0 = vmul.f32 %v18642_v33, %v10091_v11  ;;  %v18652_v33 = vpop.eup %18651 }
0x1756   :  { %v10173_v59 = vmul.f32 %v18646_v12, %v16250_v17  ;;  %v10094_v37 = vpop.f32.mrb[91].mxu0  ;;  %v18654_v44 = vpop.eup %18653 }
0x1757   :  { %v10171_v4 = vmul.f32 %v18648_v25, %v10094_v37  ;;  %v18656_v12 = vpop.eup %18655 }
0x1758   :  { %v10187_v7 = vpack.c.bf16 %v10173_v59, %v10172_v26  ;;  %v10014_v59 = vpop.xlane.xlu0 %10013 }
0x1759   :  { %v10186_v28 = vpack.c.bf16 %v10171_v4, %v10170_v0  ;;  %18667 = vrcp.f32 %v10014_v59 }
0x175b   :  { %14615 = vmatmul.mubr.msk.bf16.vlgmr.msra.gmra.mrb[40].mxu1 %vm23395_vm12, %v10186_v28  ;;  %16271 = vmatprep.mubr.msk.bf16.mxu0 %vm23396_vm13, %v10186_v28  ;;  %vm23403_vm13 = vmmov %vm23398_vm0 }
0x175c   :  { %16320 = vmatpush3.bf16.msra.mxu1 %v23381_v27  ;;  %16272 = vmatmul.mubr.msk.bf16.vlgmr.msra.gmra.mrb[72].mxu0 %vm23397_vm11, %v10187_v7  ;;  %vm23404_vm11 = vmmov %vm23398_vm0 }
0x175d   :  { %16288 = vmatpush3.bf16.xpose.msra.mxu0 %v10581_v40  ;;  %16321 = vmatprep.subr.bf16.mxu1 %v23399_v20  ;;  %v10584_v48 = vsel %vm23404_vm11, %v23400_v10, 0  ;;  %vm23411_vm12 = vmmov %vm23398_vm0 }
0x175e   :  { %17552 = vmatprep.subr.msk.bf16.mxu0 %vm23401_vm14, %v23400_v10  ;;  %10340 = vmatprep.mubr.bf16.mxu1 %v22831_v62  ;;  %vm23407_vm14 = vmmov %vm23398_vm0 }
0x175f   :  { %vm23416_vm11 = vmmov %vm23398_vm0 }
0x1760   :  { %16322 = vmatpush3.bf16.msra.mxu1 %v23399_v20 }
0x1761   :  { %16323 = vmatprep.subr.bf16.mxu1 %v23402_v38 }
0x1763   :  { %14616 = vmatmul.mubr.msk.bf16.gmra.mrb[44].mxu1 %vm23403_vm13, %v10187_v7  ;;  %vm23413_vm13 = vmmov %vm23398_vm0  ;;  %v10016_v7 = vpop.xlane.xlu1 %10015 }
0x1764   :  { %16324 = vmatpush3.bf16.msra.mxu1 %v23402_v38  ;;  %10350 = vmatprep.mubr.bf16.mxu1 %v22831_v62  ;;  %v10590_v23 = vsel %vm23413_vm13, %v23410_v39, 0  ;;  %vm23421_vm13 = vmmov %vm23398_vm0  ;;  %18669 = vrcp.f32 %v10016_v7 }
0x1765   :  { %16290 = vmatpush3.bf16.xpose.msra.mxu0 %v10584_v48  ;;  %16325 = vmatprep.subr.bf16.mxu1 %v23405_v58  ;;  %v23423_v48 = vld [vmem:[#allocation116_spill] sm:$0xff]  ;;  %18671 = vrcp.f32 %v10012_v41 }
0x1766   :  { %17553 = vmatprep.subr.msk.bf16.mxu0 %vm23407_vm14, %v23406_v53  ;;  %vm23417_vm14 = vmmov %vm23398_vm0 }
0x1767   :  { %v10593_v13 = vsel %vm23417_vm14, %v23415_v36, 0  ;;  %vm23424_vm14 = vmmov %vm23398_vm0 }
0x1768   :  { %16326 = vmatpush3.bf16.msra.mxu1 %v23405_v58 }
0x1769   :  { %16327 = vmatprep.subr.bf16.mxu1 %v23408_v46 }
0x176c   :  { %16328 = vmatpush3.bf16.msra.mxu1 %v23408_v46 }
0x176d   :  { %16292 = vmatpush3.bf16.xpose.msra.mxu0 %v10587_v60  ;;  %16329 = vmatprep.subr.bf16.mxu1 %v23409_v16  ;;  %v18658_v60 = vpop.eup %18657 }
0x176e   :  { %17554 = vmatprep.subr.msk.bf16.mxu0 %vm23411_vm12, %v23410_v39  ;;  %vm23419_vm12 = vmmov %vm23398_vm0  ;;  %v18660_v14 = vpop.eup %18659 }
0x176f   :  { %v10596_v15 = vsel %vm23419_vm12, %v23418_v9, 0  ;;  %vm23425_vm12 = vmmov %vm23398_vm0  ;;  %v18662_v57 = vpop.eup %18661 }
0x1770   :  { %16330 = vmatpush3.bf16.msra.mxu1 %v23409_v16  ;;  %v18664_v1 = vpop.eup %18663 }
0x1771   :  { %16331 = vmatprep.subr.bf16.mxu1 %v23412_v6  ;;  %v18666_v41 = vpop.eup %18665 }
0x1774   :  { %16332 = vmatpush3.bf16.msra.mxu1 %v23412_v6 }
0x1775   :  { %16294 = vmatpush3.bf16.xpose.msra.mxu0 %v10590_v23  ;;  %16333 = vmatprep.subr.bf16.mxu1 %v23414_v21 }
0x1776   :  { %17555 = vmatprep.subr.msk.bf16.mxu0 %vm23416_vm11, %v23415_v36  ;;  %vm23422_vm11 = vmmov %vm23398_vm0 }
0x1777   :  { %v10599_v4 = vsel %vm23422_vm11, %v23420_v52, 0  ;;  %vm23427_vm11 = vmmov %vm23398_vm0 }
0x1778   :  { %16334 = vmatpush3.bf16.msra.mxu1 %v23414_v21  ;;  %v10602_v54 = vsel %vm23427_vm11, %v23423_v48, 0  ;;  %vm23431_vm11 = vmmov %vm23398_vm0 }
0x177d   :  { %16296 = vmatpush3.bf16.xpose.msra.mxu0 %v10593_v13 }
0x177e   :  { %17556 = vmatprep.subr.msk.bf16.mxu0 %vm23398_vm0, %v23418_v9 }
0x1785   :  { %16298 = vmatpush3.bf16.xpose.msra.mxu0 %v10596_v15 }
0x1786   :  { %17557 = vmatprep.subr.msk.bf16.mxu0 %vm23421_vm13, %v23420_v52  ;;  %vm23426_vm13 = vmmov %vm23398_vm0 }
0x1788   :  { %v16253_v19 = vpop.f32.mrb[92].mxu0 }
0x1789   :  { %v10107_v47 = vpop.f32.mrb[93].mxu0  ;;  %v10176_v17 = vmul.f32 %v18652_v33, %v16253_v19 }
0x178a   :  { %v16254_v11 = vpop.f32.mrb[94].mxu0  ;;  %v10174_v37 = vmul.f32 %v18650_v3, %v10107_v47  ;;  %v18668_v47 = vpop.eup %18667 }
0x178b   :  { %v10177_v25 = vmul.f32 %v18654_v44, %v16254_v11  ;;  %v10110_v26 = vpop.f32.mrb[95].mxu0  ;;  %v18670_v11 = vpop.eup %18669 }
0x178c   :  { %v10175_v0 = vmul.f32 %v18656_v12, %v10110_v26 }
0x178d   :  { %v10189_v28 = vpack.c.bf16 %v10177_v25, %v10176_v17  ;;  %16300 = vmatpush3.bf16.xpose.msra.mxu0 %v10599_v4  ;;  %v18672_v17 = vpop.eup %18671 }
0x178e   :  { %v10188_v40 = vpack.c.bf16 %v10175_v0, %v10174_v37  ;;  %17558 = vmatprep.subr.msk.bf16.mxu0 %vm23424_vm14, %v23423_v48  ;;  %vm23428_vm14 = vmmov %vm23398_vm0 }
0x1790   :  { %v16257_v18 = vpop.f32.mrb[96].mxu0  ;;  %14617 = vmatmul.mubr.msk.bf16.gmra.mrb[48].mxu1 %vm23398_vm0, %v10188_v40  ;;  %16275 = vmatprep.mubr.msk.bf16.mxu0 %vm23425_vm12, %v10188_v40  ;;  %vm23429_vm12 = vmmov %vm23398_vm0  ;;  %v23435_v40 = vld [vmem:[#allocation54_spill] sm:$0xff] }
0x1791   :  { %v10123_v23 = vpop.f32.mrb[97].mxu0  ;;  %16276 = vmatmul.mubr.msk.bf16.gmra.mrb[76].mxu0 %vm23426_vm13, %v10189_v28  ;;  %10360 = vmatprep.mubr.bf16.mxu1 %v22831_v62  ;;  %v10180_v24 = vmul.f32 %v18660_v14, %v16257_v18  ;;  %vm23430_vm13 = vmmov %vm23398_vm0  ;;  %v23440_v18 = vld [vmem:[#allocation61_spill] sm:$0xff] }
0x1792   :  { %v16258_v63 = vpop.f32.mrb[98].mxu0  ;;  %v10178_v35 = vmul.f32 %v18658_v60, %v10123_v23  ;;  %v23437_v60 = vld [vmem:[#allocation57_spill] sm:$0xff] }
0x1793   :  { %v10181_v13 = vmul.f32 %v18662_v57, %v16258_v63  ;;  %v10126_v8 = vpop.f32.mrb[99].mxu0  ;;  %v23442_v14 = vld [vmem:[#allocation65_spill] sm:$0xff] }
0x1794   :  { %v10179_v15 = vmul.f32 %v18664_v1, %v10126_v8  ;;  %v23444_v23 = vld [vmem:[#allocation69_spill] sm:$0xff] }
0x1795   :  { %v10191_v3 = vpack.c.bf16 %v10181_v13, %v10180_v24  ;;  %16302 = vmatpush3.bf16.xpose.msra.mxu0 %v10602_v54  ;;  %v23446_v57 = vld [vmem:[#allocation73_spill] sm:$0xff] }
0x1796   :  { %v10190_v19 = vpack.c.bf16 %v10179_v15, %v10178_v35  ;;  %v23448_v63 = vld [vmem:[#allocation77_spill] sm:$0xff] }
0x1798   :  { %v16261_v33 = vpop.f32.mrb[100].mxu0  ;;  %14618 = vmatmul.mubr.msk.bf16.gmra.mrb[52].mxu1 %vm23428_vm14, %v10189_v28  ;;  %16279 = vmatprep.mubr.msk.bf16.mxu0 %vm23398_vm0, %v10190_v19  ;;  %vm23432_vm14 = vmmov %vm23398_vm0  ;;  %v23433_v28 = vld [vmem:[#allocation50_spill] sm:$0xff] }
0x1799   :  { %v10139_v44 = vpop.f32.mrb[101].mxu0  ;;  %16280 = vmatmul.mubr.msk.bf16.gmra.mrb[80].mxu0 %vm23429_vm12, %v10191_v3  ;;  %10370 = vmatprep.mubr.bf16.mxu1 %v22831_v62  ;;  %v10184_v25 = vmul.f32 %v18668_v47, %v16261_v33  ;;  %vm23434_vm12 = vmmov %vm23398_vm0 }
0x179a   :  { %v16262_v12 = vpop.f32.mrb[102].mxu0  ;;  %v10182_v37 = vmul.f32 %v18666_v41, %v10139_v44 }
0x179b   :  { %v10185_v26 = vmul.f32 %v18670_v11, %v16262_v12  ;;  %v10142_v59 = vpop.f32.mrb[103].mxu0 }
0x179c   :  { %v10183_v0 = vmul.f32 %v18672_v17, %v10142_v59 }
0x179d   :  { %v10193_v4 = vpack.c.bf16 %v10185_v26, %v10184_v25 }
0x179e   :  { %v10192_v7 = vpack.c.bf16 %v10183_v0, %v10182_v37 }
0x17a0   :  { %14619 = vmatmul.mubr.msk.bf16.gmra.mrb[56].mxu1 %vm23430_vm13, %v10190_v19  ;;  %16283 = vmatprep.mubr.msk.bf16.mxu0 %vm23431_vm11, %v10192_v7  ;;  %vm23439_vm13 = vmmov %vm23398_vm0 }
0x17a1   :  { %16284 = vmatmul.mubr.msk.bf16.gmra.mrb[84].mxu0 %vm23432_vm14, %v10193_v4  ;;  %10380 = vmatprep.mubr.bf16.mxu1 %v22831_v62  ;;  %vm23441_vm11 = vmmov %vm23398_vm0 }
0x17a2   :  { %16303 = vmatprep.mubr.msk.bf16.mxu0 %vm23398_vm0, %v23433_v28  ;;  %vm23443_vm14 = vmmov %vm23398_vm0 }
0x17a8   :  { %14620 = vmatmul.mubr.msk.bf16.gmra.mrb[60].mxu1 %vm23434_vm12, %v10191_v3  ;;  %vm23445_vm12 = vmmov %vm23398_vm0 }
0x17a9   :  { %16304 = vmatmul.mubr.msk.bf16.vlgmr.msra.gmra.mrb[104].mxu0 %vm23436_vm15, %v23435_v40  ;;  %10390 = vmatprep.mubr.bf16.mxu1 %v22831_v62  ;;  %vm23447_vm15 = vmmov %vm23398_vm0 }
0x17aa   :  { %16307 = vmatprep.mubr.msk.bf16.mxu0 %vm23438_vm10, %v23437_v60  ;;  %vm23449_vm10 = vmmov %vm23398_vm0 }
0x17b0   :  { %14621 = vmatmul.mubr.msk.bf16.gmra.mrb[64].mxu1 %vm23439_vm13, %v10192_v7  ;;  %vm23450_vm13 = vnez %v23060_v43 }
0x17b1   :  { %16308 = vmatmul.mubr.msk.bf16.gmra.mrb[108].mxu0 %vm23441_vm11, %v23440_v18  ;;  %10400 = vmatprep.mubr.bf16.mxu1 %v22831_v62  ;;  %vm23451_vm11 = vnez %v23064_v61 }
0x17b2   :  { %16311 = vmatprep.mubr.msk.bf16.mxu0 %vm23443_vm14, %v23442_v14  ;;  %vm23452_vm14 = vnez %v23062_v34 }
0x17b8   :  { %14622 = vmatmul.mubr.msk.bf16.gmra.mrb[68].mxu1 %vm23398_vm0, %v10193_v4  ;;  %vm23453_vm0 = vnez %v23388_v2 }
0x17b9   :  { %16312 = vmatmul.mubr.msk.bf16.gmra.mrb[112].mxu0 %vm23445_vm12, %v23444_v23  ;;  %vm23454_vm12 = vnez %v23066_v31 }
0x17ba   :  { %16315 = vmatprep.mubr.msk.bf16.mxu0 %vm23447_vm15, %v23446_v57  ;;  %vm23455_vm15 = vnez %v23392_v56 }
0x17c1   :  { %16316 = vmatmul.mubr.msk.bf16.gmra.mrb[116].mxu0 %vm23449_vm10, %v23448_v63  ;;  %vm23456_vm10 = vnez %v23390_v30 }
0x187c   :  { %v16305_v1 = vpop.f32.mrb[104].mxu0 }
0x187d   :  { %v10638_v24 = vpop.f32.mrb[105].mxu0  ;;  %v21769_v54 = vsel %vm19908_vm1, %v16305_v1, -1e+30 }
0x187e   :  { %v21759_v13 = vsel %vm19915_vm2, %v10638_v24, -1e+30  ;;  %v16306_v8 = vpop.f32.mrb[106].mxu0 }
0x187f   :  { %10717 = vmax.xlane.f32.xlu0 %v21759_v13  ;;  %v10641_v35 = vpop.f32.mrb[107].mxu0  ;;  %v21774_v3 = vsel %vm19932_vm3, %v16306_v8, -1e+30 }
0x1880   :  { %v21764_v15 = vsel %vm19938_vm4, %v10641_v35, -1e+30 }
0x1881   :  { %10719 = vmax.xlane.f32.xlu1 %v21764_v15 }
0x1883   :  { %10721 = vmax.xlane.f32.xlu0 %v21769_v54 }
0x1884   :  { %v16309_v19 = vpop.f32.mrb[108].mxu0 }
0x1885   :  { %10723 = vmax.xlane.f32.xlu1 %v21774_v3  ;;  %v10654_v41 = vpop.f32.mrb[109].mxu0  ;;  %v21789_v12 = vsel %vm19976_vm7, %v16309_v19, -1e+30 }
0x1886   :  { %v21779_v33 = vsel %vm19957_vm5, %v10654_v41, -1e+30  ;;  %v16310_v47 = vpop.f32.mrb[110].mxu0 }
0x1887   :  { %10725 = vmax.xlane.f32.xlu0 %v21779_v33  ;;  %v10657_v44 = vpop.f32.mrb[111].mxu0  ;;  %v21794_v17 = vsel %vm19988_vm8, %v16310_v47, -1e+30 }
0x1888   :  { %v21784_v11 = vsel %vm19965_vm6, %v10657_v44, -1e+30 }
0x1889   :  { %10727 = vmax.xlane.f32.xlu1 %v21784_v11 }
0x188b   :  { %10729 = vmax.xlane.f32.xlu0 %v21789_v12 }
0x188c   :  { %v16313_v25 = vpop.f32.mrb[112].mxu0 }
0x188d   :  { %10731 = vmax.xlane.f32.xlu1 %v21794_v17  ;;  %v10670_v26 = vpop.f32.mrb[113].mxu0  ;;  %v21809_v7 = vsel %vm23451_vm11, %v16313_v25, -1e+30 }
0x188e   :  { %v21799_v59 = vsel %vm20000_vm9, %v10670_v26, -1e+30  ;;  %v16314_v37 = vpop.f32.mrb[114].mxu0  ;;  %v18097_v26 = vld [vmem:[#allocation7 + $0xc8] ss:$12 sps:$4 sm:$0xff]  }
0x188f   :  { %10733 = vmax.xlane.f32.xlu0 %v21799_v59  ;;  %v10673_v0 = vpop.f32.mrb[115].mxu0  ;;  %v21814_v1 = vsel %vm23452_vm14, %v16314_v37, -1e+30  ;;  %16351 = vmatprep.subr.bf16.mxu0 %v18097_v26  ;;  %v18098_v37 = vld [vmem:[#allocation7 + $0xe0] ss:$12 sps:$4 sm:$0xff]  }
0x1890   :  { %v21804_v4 = vsel %vm23450_vm13, %v10673_v0, -1e+30  ;;  %16352 = vmatpush3.bf16.msra.mxu0 %v18097_v26  ;;  %v18099_v0 = vld [vmem:[#allocation7 + $0xf8] ss:$12 sps:$4 sm:$0xff]  }
0x1891   :  { %10735 = vmax.xlane.f32.xlu1 %v21804_v4  ;;  %16353 = vmatprep.subr.bf16.mxu0 %v18098_v37 }
0x1893   :  { %10737 = vmax.xlane.f32.xlu0 %v21809_v7 }
0x1894   :  { %v16317_v24 = vpop.f32.mrb[116].mxu0  ;;  %16354 = vmatpush3.bf16.msra.mxu0 %v18098_v37 }
0x1895   :  { %10739 = vmax.xlane.f32.xlu1 %v21814_v1  ;;  %v10686_v8 = vpop.f32.mrb[117].mxu0  ;;  %v21829_v44 = vsel %vm23455_vm15, %v16317_v24, -1e+30  ;;  %16355 = vmatprep.subr.bf16.mxu0 %v18099_v0  ;;  %vm23457_vm15 = vcmask 523264  }
0x1896   :  { %v21819_v35 = vsel %vm23453_vm0, %v10686_v8, -1e+30  ;;  %v16318_v19 = vpop.f32.mrb[118].mxu0  ;;  %v18100_v8 = vld [vmem:[#allocation7 + $0x110] ss:$12 sps:$4 sm:$0xff]  }
0x1897   :  { %10741 = vmax.xlane.f32.xlu0 %v21819_v35  ;;  %v10689_v41 = vpop.f32.mrb[119].mxu0  ;;  %v21834_v25 = vsel %vm23456_vm10, %v16318_v19, -1e+30  ;;  %vm23458_vm10 = vmmov %vm23457_vm15 }
0x1898   :  { %v21824_v47 = vsel %vm23454_vm12, %v10689_v41, -1e+30  ;;  %16356 = vmatpush3.bf16.msra.mxu0 %v18099_v0  ;;  %vm23459_vm0 = vmmov %vm23458_vm10 }
0x1899   :  { %10743 = vmax.xlane.f32.xlu1 %v21824_v47  ;;  %16357 = vmatprep.subr.bf16.mxu0 %v18100_v8  ;;  %vm23460_vm12 = vmmov %vm23459_vm0 }
0x189a   :  { %vm23471_vm11 = vmmov %vm23459_vm0 }
0x189b   :  { %10745 = vmax.xlane.f32.xlu0 %v21829_v44  ;;  %vm23473_vm14 = vmmov %vm23459_vm0 }
0x189c   :  { %16358 = vmatpush3.bf16.msra.mxu0 %v18100_v8 }
0x189d   :  { %10747 = vmax.xlane.f32.xlu1 %v21834_v25 }
0x18ae   :  { %11370 = vrot.lane.b32.xlu1 %v23400_v10, %s19071_s2 }
0x18b1   :  { %11368 = vrot.lane.b32.xlu0 %v23394_v5, %s19071_s2 }
0x18b2   :  { %11374 = vrot.lane.b32.xlu1 %v23410_v39, %s19071_s2 }
0x18b5   :  { %11372 = vrot.lane.b32.xlu0 %v23406_v53, %s19071_s2 }
0x190c   :  { %v10718_v24 = vpop.xlane.xlu0 %10717 }
0x190d   :  { %v10749_v19 = vsub.f32 %v21759_v13, %v10718_v24 }
0x190e   :  { %v10720_v41 = vpop.xlane.xlu1 %10719 }
0x190f   :  { %v10765_v26 = vmul.f32 1.442695, %v10749_v19  ;;  %v10750_v37 = vsub.f32 %v21764_v15, %v10720_v41 }
0x1910   :  { %v10722_v0 = vpop.xlane.xlu0 %10721 }
0x1911   :  { %v10767_v56 = vmul.f32 1.442695, %v10750_v37  ;;  %v10751_v10 = vsub.f32 %v21769_v54, %v10722_v0  ;;  %18673 = vpow2.f32 %v10765_v26 }
0x1912   :  { %v10724_v8 = vpop.xlane.xlu1 %10723 }
0x1913   :  { %18675 = vpow2.f32 %v10767_v56  ;;  %v10769_v5 = vmul.f32 1.442695, %v10751_v10  ;;  %v10752_v39 = vsub.f32 %v21774_v3, %v10724_v8 }
0x1914   :  { %v10726_v30 = vpop.xlane.xlu0 %10725 }
0x1915   :  { %18677 = vpow2.f32 %v10769_v5  ;;  %v10771_v53 = vmul.f32 1.442695, %v10752_v39  ;;  %v10753_v2 = vsub.f32 %v21779_v33, %v10726_v30 }
0x1916   :  { %v10728_v13 = vpop.xlane.xlu1 %10727 }
0x1917   :  { %18679 = vpow2.f32 %v10771_v53  ;;  %v10773_v24 = vmul.f32 1.442695, %v10753_v2  ;;  %v10754_v15 = vsub.f32 %v21784_v11, %v10728_v13 }
0x1918   :  { %v10730_v19 = vpop.xlane.xlu0 %10729 }
0x1919   :  { %v10775_v41 = vmul.f32 1.442695, %v10754_v15  ;;  %v10755_v54 = vsub.f32 %v21789_v12, %v10730_v19  ;;  %18681 = vpow2.f32 %v10773_v24 }
0x191a   :  { %v10732_v26 = vpop.xlane.xlu1 %10731 }
0x191b   :  { %18683 = vpow2.f32 %v10775_v41  ;;  %v10777_v56 = vmul.f32 1.442695, %v10755_v54  ;;  %v10756_v3 = vsub.f32 %v21794_v17, %v10732_v26  ;;  %v18674_v37 = vpop.eup %18673 }
0x191c   :  { %v10734_v0 = vpop.xlane.xlu0 %10733 }
0x191d   :  { %v18676_v10 = vpop.eup %18675  ;;  %v10779_v8 = vmul.f32 1.442695, %v10756_v3  ;;  %v10757_v30 = vsub.f32 %v21799_v59, %v10734_v0  ;;  %18685 = vpow2.f32 %v10777_v56 }
0x191e   :  { %v10736_v2 = vpop.xlane.xlu1 %10735  ;;  %v10829_v33 = vpack.c.bf16 %v18676_v10, %v18674_v37 }
0x191f   :  { %v18678_v11 = vpop.eup %18677  ;;  %18687 = vpow2.f32 %v10779_v8  ;;  %v10781_v5 = vmul.f32 1.442695, %v10757_v30  ;;  %v10758_v12 = vsub.f32 %v21804_v4, %v10736_v2 }
0x1920   :  { %v10738_v39 = vpop.xlane.xlu0 %10737  ;;  %10801 = vadd.xlane.f32.xlu0 %v18678_v11  ;;  %16335 = vmatprep.mubr.bf16.mxu1 %v10829_v33 }
0x1921   :  { %v18680_v53 = vpop.eup %18679  ;;  %v10783_v13 = vmul.f32 1.442695, %v10758_v12  ;;  %v10759_v17 = vsub.f32 %v21809_v7, %v10738_v39  ;;  %18689 = vpow2.f32 %v10781_v5 }
0x1922   :  { %v10830_v24 = vpack.c.bf16 %v18680_v53, %v18678_v11  ;;  %v10740_v15 = vpop.xlane.xlu1 %10739  ;;  %10803 = vadd.xlane.f32.xlu1 %v18680_v53 }
0x1923   :  { %18691 = vpow2.f32 %v10783_v13  ;;  %v10785_v59 = vmul.f32 1.442695, %v10759_v17  ;;  %v10760_v19 = vsub.f32 %v21814_v1, %v10740_v15  ;;  %v18682_v41 = vpop.eup %18681 }
0x1924   :  { %10797 = vadd.xlane.f32.xlu0 %v18674_v37  ;;  %v10742_v54 = vpop.xlane.xlu0 %10741  ;;  %16336 = vmatmul.mubr.bf16.vlgmr.msra.gmra.mrb[88].mxu1 %v10830_v24 }
0x1925   :  { %v18684_v4 = vpop.eup %18683  ;;  %v10787_v26 = vmul.f32 1.442695, %v10760_v19  ;;  %v10761_v56 = vsub.f32 %v21819_v35, %v10742_v54  ;;  %18693 = vpow2.f32 %v10785_v59 }
0x1926   :  { %10799 = vadd.xlane.f32.xlu1 %v18676_v10  ;;  %v10744_v3 = vpop.xlane.xlu1 %10743  ;;  %v10831_v7 = vpack.c.bf16 %v18684_v4, %v18682_v41 }
0x1927   :  { %18695 = vpow2.f32 %v10787_v26  ;;  %v10789_v0 = vmul.f32 1.442695, %v10761_v56  ;;  %v10762_v8 = vsub.f32 %v21824_v47, %v10744_v3  ;;  %v18686_v30 = vpop.eup %18685  ;;  %v18103_v56 = vld [vmem:[#allocation7 + $0xc4] ss:$12 sps:$4 sm:$0xff]   ;;  %v18106_v3 = vld [vmem:[#allocation7 + $0xdc] ss:$12 sps:$4 sm:$0xff]  }
0x1928   :  { %v10746_v2 = vpop.xlane.xlu0 %10745  ;;  %16339 = vmatprep.mubr.bf16.mxu1 %v10831_v7  ;;  %11078 = vmatprep.subr.bf16.mxu1 %v18103_v56  ;;  %v18109_v7 = vld [vmem:[#allocation7 + $0xf4] ss:$12 sps:$4 sm:$0xff]  }
0x1929   :  { %v18688_v1 = vpop.eup %18687  ;;  %v10791_v33 = vmul.f32 1.442695, %v10762_v8  ;;  %v10763_v37 = vsub.f32 %v21829_v44, %v10746_v2  ;;  %18697 = vpow2.f32 %v10789_v0  ;;  %v18110_v0 = vld [vmem:[#allocation7 + $0x108] ss:$12 sps:$4 sm:$0xff]  }
0x192a   :  { %v10832_v11 = vpack.c.bf16 %v18688_v1, %v18686_v30  ;;  %v10748_v5 = vpop.xlane.xlu1 %10747 }
0x192b   :  { %18699 = vpow2.f32 %v10791_v33  ;;  %v10793_v35 = vmul.f32 1.442695, %v10763_v37  ;;  %v10764_v10 = vsub.f32 %v21834_v25, %v10748_v5  ;;  %v18690_v12 = vpop.eup %18689 }
0x192c   :  { %v21861_v39 = vpop.permute.xlu0 %11368  ;;  %16340 = vmatmul.mubr.bf16.gmra.mrb[92].mxu1 %v10832_v11 }
0x192d   :  { %v18692_v53 = vpop.eup %18691  ;;  %v10795_v47 = vmul.f32 1.442695, %v10764_v10  ;;  %17559 = vmatprep.subr.msk.bf16.mxu0 %vm23457_vm15, %v21861_v39  ;;  %18701 = vpow2.f32 %v10793_v35 }
0x192e   :  { %v10833_v13 = vpack.c.bf16 %v18692_v53, %v18690_v12 }
0x192f   :  { %18703 = vpow2.f32 %v10795_v47  ;;  %v18694_v44 = vpop.eup %18693 }
0x1930   :  { %16343 = vmatprep.mubr.bf16.mxu1 %v10833_v13 }
0x1931   :  { %v18696_v17 = vpop.eup %18695 }
0x1932   :  { %v10834_v24 = vpack.c.bf16 %v18696_v17, %v18694_v44 }
0x1933   :  { %v18698_v15 = vpop.eup %18697 }
0x1934   :  { %16344 = vmatmul.mubr.bf16.gmra.mrb[96].mxu1 %v10834_v24 }
0x1935   :  { %v18700_v59 = vpop.eup %18699 }
0x1936   :  { %v10835_v25 = vpack.c.bf16 %v18700_v59, %v18698_v15 }
0x1937   :  { %11378 = vrot.lane.b32.xlu1 %v23418_v9, %s19071_s2  ;;  %v18702_v19 = vpop.eup %18701  ;;  %v18101_v9 = vld [vmem:[#allocation7 + $0xc0] ss:$12 sps:$4 sm:$0xff]  }
0x1938   :  { %16347 = vmatprep.mubr.bf16.mxu1 %v10835_v25  ;;  %11079 = vmatpush1.bf16.msra.mxu1 %v18101_v9 }
0x1939   :  { %v18704_v54 = vpop.eup %18703  ;;  %11080 = vmatprep.subr.bf16.mxu1 %v18106_v3 }
0x193a   :  { %v10836_v26 = vpack.c.bf16 %v18704_v54, %v18702_v19  ;;  %11376 = vrot.lane.b32.xlu0 %v23415_v36, %s19071_s2  ;;  %v18104_v36 = vld [vmem:[#allocation7 + $0xd8] ss:$12 sps:$4 sm:$0xff]  }
0x193c   :  { %16348 = vmatmul.mubr.bf16.gmra.mrb[100].mxu1 %v10836_v26 }
0x193d   :  { %11110 = vmatprep.mubr.bf16.mxu1 %v22831_v62  ;;  %11081 = vmatpush1.bf16.msra.mxu1 %v18104_v36  ;;  %v11409_v36 = vsel %vm23460_vm12, %v21861_v39, 0  ;;  %vm23462_vm12 = vmmov %vm23459_vm0 }
0x193e   :  { %11082 = vmatprep.subr.bf16.mxu1 %v18109_v7 }
0x1959   :  { %10809 = vadd.xlane.f32.xlu0 %v18686_v30 }
0x195b   :  { %10805 = vadd.xlane.f32.xlu1 %v18682_v41  ;;  %v18107_v41 = vld [vmem:[#allocation7 + $0xf0] ss:$12 sps:$4 sm:$0xff]  }
0x195c   :  { %11083 = vmatpush1.bf16.msra.mxu1 %v18107_v41 }
0x195d   :  { %10807 = vadd.xlane.f32.xlu0 %v18684_v4  ;;  %v18112_v4 = vld [vmem:[#allocation7 + $0x10c] ss:$12 sps:$4 sm:$0xff]  }
0x195e   :  { %11084 = vmatprep.subr.bf16.mxu1 %v18112_v4 }
0x195f   :  { %10811 = vadd.xlane.f32.xlu1 %v18688_v1 }
0x1960   :  { %11085 = vmatpush1.bf16.msra.mxu1 %v18110_v0 }
0x1961   :  { %10825 = vadd.xlane.f32.xlu0 %v18702_v19 }
0x1963   :  { %10817 = vadd.xlane.f32.xlu1 %v18694_v44 }
0x1965   :  { %10821 = vadd.xlane.f32.xlu0 %v18698_v15 }
0x1967   :  { %10813 = vadd.xlane.f32.xlu1 %v18690_v12 }
0x1969   :  { %10827 = vadd.xlane.f32.xlu0 %v18704_v54 }
0x196b   :  { %10819 = vadd.xlane.f32.xlu1 %v18696_v17 }
0x196f   :  { %10815 = vadd.xlane.f32.xlu1 %v18692_v53 }
0x1973   :  { %10823 = vadd.xlane.f32.xlu1 %v18700_v59 }
0x197f   :  { %11380 = vrot.lane.b32.xlu0 %v23420_v52, %s19071_s2  ;;  %v21902_v52 = vpop.permute.xlu1 %11370 }
0x1983   :  { %11344 = vrot.lane.b32.xlu0 %v23433_v28, %s19071_s2 }
0x1984   :  { %11382 = vrot.lane.b32.xlu1 %v23423_v48, %s19071_s2  ;;  %v21906_v48 = vpop.permute.xlu1 %11374 }
0x1987   :  { %11348 = vrot.lane.b32.xlu0 %v23437_v60, %s19071_s2 }
0x1988   :  { %11346 = vrot.lane.b32.xlu1 %v23435_v40, %s19071_s2 }
0x198b   :  { %11352 = vrot.lane.b32.xlu0 %v23442_v14, %s19071_s2 }
0x198c   :  { %11350 = vrot.lane.b32.xlu1 %v23440_v18, %s19071_s2 }
0x198f   :  { %11356 = vrot.lane.b32.xlu0 %v23446_v57, %s19071_s2 }
0x1990   :  { %11354 = vrot.lane.b32.xlu1 %v23444_v23, %s19071_s2 }
0x1993   :  { %11673 = vrot.lane.b32.xlu0 %v23381_v27, %s19071_s2  ;;  %v21904_v27 = vpop.permute.xlu0 %11372 }
0x1994   :  { %11358 = vrot.lane.b32.xlu1 %v23448_v63, %s19071_s2 }
0x1997   :  { %11677 = vrot.lane.b32.xlu0 %v23402_v38, %s19071_s2 }
0x1998   :  { %11675 = vrot.lane.b32.xlu1 %v23399_v20, %s19071_s2 }
0x199b   :  { %11679 = vrot.lane.b32.xlu0 %v23405_v58, %s19071_s2 }
0x199c   :  { %11683 = vrot.lane.b32.xlu1 %v23409_v16, %s19071_s2 }
0x199f   :  { %11681 = vrot.lane.b32.xlu0 %v23408_v46, %s19071_s2 }
0x19ad   :  { %v10802_v28 = vpop.xlane.xlu0 %10801 }
0x19ae   :  { %18705 = vrcp.f32 %v10802_v28 }
0x19af   :  { %v10804_v38 = vpop.xlane.xlu1 %10803 }
0x19b0   :  { %18707 = vrcp.f32 %v10804_v38 }
0x19b1   :  { %v10798_v40 = vpop.xlane.xlu0 %10797 }
0x19b2   :  { %18709 = vrcp.f32 %v10798_v40 }
0x19b3   :  { %v10800_v60 = vpop.xlane.xlu1 %10799 }
0x19b4   :  { %18711 = vrcp.f32 %v10800_v60 }
0x19b5   :  { %v21908_v20 = vpop.permute.xlu0 %11376 }
0x19b7   :  { %v21910_v18 = vpop.permute.xlu1 %11378 }
0x19b8   :  { %v18706_v2 = vpop.eup %18705 }
0x19ba   :  { %v18708_v33 = vpop.eup %18707 }
0x19bc   :  { %v18710_v5 = vpop.eup %18709 }
0x19be   :  { %v18712_v10 = vpop.eup %18711 }
0x19e6   :  { %v10810_v58 = vpop.xlane.xlu0 %10809 }
0x19e7   :  { %18713 = vrcp.f32 %v10810_v58 }
0x19e8   :  { %v10806_v14 = vpop.xlane.xlu1 %10805 }
0x19e9   :  { %18715 = vrcp.f32 %v10806_v14 }
0x19ea   :  { %v10808_v16 = vpop.xlane.xlu0 %10807 }
0x19ec   :  { %v10812_v23 = vpop.xlane.xlu1 %10811 }
0x19ed   :  { %18717 = vrcp.f32 %v10812_v23 }
0x19ee   :  { %v10826_v46 = vpop.xlane.xlu0 %10825  ;;  %18719 = vrcp.f32 %v10808_v16 }
0x19f0   :  { %v10818_v57 = vpop.xlane.xlu1 %10817 }
0x19f1   :  { %18721 = vrcp.f32 %v10818_v57  ;;  %v18714_v19 = vpop.eup %18713 }
0x19f2   :  { %v10822_v63 = vpop.xlane.xlu0 %10821 }
0x19f3   :  { %v18716_v26 = vpop.eup %18715 }
0x19f4   :  { %v10814_v8 = vpop.xlane.xlu1 %10813 }
0x19f5   :  { %18723 = vrcp.f32 %v10814_v8 }
0x19f6   :  { %v10828_v30 = vpop.xlane.xlu0 %10827 }
0x19f7   :  { %v16337_v1 = vpop.f32.mrb[88].mxu1  ;;  %v18718_v3 = vpop.eup %18717 }
0x19f8   :  { %v10820_v37 = vpop.xlane.xlu1 %10819  ;;  %v10871_v11 = vpop.f32.mrb[89].mxu1  ;;  %v10952_v12 = vmul.f32 %v18706_v2, %v16337_v1 }
0x19f9   :  { %v16338_v35 = vpop.f32.mrb[90].mxu1  ;;  %v10950_v44 = vmul.f32 %v18710_v5, %v10871_v11  ;;  %18725 = vrcp.f32 %v10820_v37  ;;  %v18720_v41 = vpop.eup %18719 }
0x19fa   :  { %v10953_v53 = vmul.f32 %v18708_v33, %v16338_v35  ;;  %v21912_v47 = vpop.permute.xlu0 %11380  ;;  %v10874_v13 = vpop.f32.mrb[91].mxu1 }
0x19fb   :  { %v10951_v17 = vmul.f32 %v18712_v10, %v10874_v13  ;;  %v18722_v23 = vpop.eup %18721 }
0x19fc   :  { %v10967_v24 = vpack.c.bf16 %v10953_v53, %v10952_v12  ;;  %v10816_v15 = vpop.xlane.xlu1 %10815 }
0x19fd   :  { %v10966_v59 = vpack.c.bf16 %v10951_v17, %v10950_v44  ;;  %18727 = vrcp.f32 %v10816_v15 }
0x19fe   :  { %v21914_v25 = vpop.permute.xlu0 %11344  ;;  %18729 = vrcp.f32 %v10826_v46 }
0x19ff   :  { %v16341_v54 = vpop.f32.mrb[92].mxu1  ;;  %14651 = vmatmul.mubr.msk.bf16.vlgmr.msra.gmra.mrb[40].mxu1 %vm23457_vm15, %v10966_v59  ;;  %16359 = vmatprep.mubr.msk.bf16.mxu0 %vm23458_vm10, %v10966_v59  ;;  %vm23461_vm15 = vmmov %vm23459_vm0  ;;  %18731 = vrcp.f32 %v10822_v63  ;;  %v18724_v8 = vpop.eup %18723 }
0x1a00   :  { %v10824_v9 = vpop.xlane.xlu1 %10823  ;;  %v10887_v56 = vpop.f32.mrb[93].mxu1  ;;  %16360 = vmatmul.mubr.msk.bf16.vlgmr.msra.gmra.mrb[72].mxu0 %vm23459_vm0, %v10967_v24  ;;  %11120 = vmatprep.mubr.bf16.mxu1 %v22831_v62  ;;  %v10956_v4 = vmul.f32 %v18714_v19, %v16341_v54  ;;  %18733 = vrcp.f32 %v10828_v30  ;;  %vm23463_vm10 = vmmov %vm23459_vm0  ;;  %v11415_v54 = vsel %vm23459_vm0, %v21904_v27, 0 }
0x1a01   :  { %16376 = vmatpush3.bf16.xpose.msra.mxu0 %v11409_v36  ;;  %v16342_v7 = vpop.f32.mrb[94].mxu1  ;;  %v10954_v40 = vmul.f32 %v18716_v26, %v10887_v56  ;;  %18735 = vrcp.f32 %v10824_v9 }
0x1a02   :  { %v10957_v0 = vmul.f32 %v18718_v3, %v16342_v7  ;;  %17560 = vmatprep.subr.msk.bf16.mxu0 %vm23461_vm15, %v21902_v52  ;;  %v21924_v28 = vpop.permute.xlu0 %11348  ;;  %v10890_v38 = vpop.f32.mrb[95].mxu1  ;;  %vm23464_vm15 = vmmov %vm23459_vm0 }
0x1a03   :  { %v10955_v60 = vmul.f32 %v18720_v41, %v10890_v38  ;;  %v11412_v46 = vsel %vm23464_vm15, %v21902_v52, 0  ;;  %v18726_v63 = vpop.eup %18725  ;;  %vm23467_vm15 = vmmov %vm23459_vm0 }
0x1a04   :  { %v10969_v58 = vpack.c.bf16 %v10957_v0, %v10956_v4  ;;  %v21926_v14 = vpop.permute.xlu1 %11382 }
0x1a05   :  { %v10968_v39 = vpack.c.bf16 %v10955_v60, %v10954_v40 }
0x1a06   :  { %v21928_v16 = vpop.permute.xlu0 %11352 }
0x1a07   :  { %v16345_v57 = vpop.f32.mrb[96].mxu1  ;;  %14652 = vmatmul.mubr.msk.bf16.gmra.mrb[44].mxu1 %vm23459_vm0, %v10967_v24  ;;  %16363 = vmatprep.mubr.msk.bf16.mxu0 %vm23462_vm12, %v10968_v39  ;;  %v18728_v33 = vpop.eup %18727  ;;  %vm23465_vm12 = vmmov %vm23459_vm0 }
0x1a08   :  { %v21932_v2 = vpop.permute.xlu1 %11346  ;;  %v10903_v1 = vpop.f32.mrb[97].mxu1  ;;  %16364 = vmatmul.mubr.msk.bf16.gmra.mrb[76].mxu0 %vm23463_vm10, %v10969_v58  ;;  %11130 = vmatprep.mubr.bf16.mxu1 %v22831_v62  ;;  %v10960_v37 = vmul.f32 %v18722_v23, %v16345_v57  ;;  %vm23466_vm10 = vmmov %vm23459_vm0  ;;  %v11424_v57 = vsel %vm23459_vm0, %v21910_v18, 0 }
0x1a09   :  { %16378 = vmatpush3.bf16.xpose.msra.mxu0 %v11412_v46  ;;  %v16346_v30 = vpop.f32.mrb[98].mxu1  ;;  %v10958_v10 = vmul.f32 %v18724_v8, %v10903_v1  ;;  %v18730_v17 = vpop.eup %18729  ;;  %v18113_v8 = vld [vmem:[#allocation7 + $0x128] ss:$12 sps:$4 sm:$0xff]   ;;  %v18114_v1 = vld [vmem:[#allocation7 + $0x140] ss:$12 sps:$4 sm:$0xff]  }
0x1a0a   :  { %v10961_v11 = vmul.f32 %v18726_v63, %v16346_v30  ;;  %17561 = vmatprep.subr.msk.bf16.mxu0 %vm23459_vm0, %v21904_v27  ;;  %v21940_v5 = vpop.permute.xlu0 %11356  ;;  %v10906_v35 = vpop.f32.mrb[99].mxu1  ;;  %v18116_v46 = vld [vmem:[#allocation7 + $0x170] ss:$12 sps:$4 sm:$0xff]  }
0x1a0b   :  { %v10959_v12 = vmul.f32 %v18728_v33, %v10906_v35  ;;  %v18732_v15 = vpop.eup %18731 }
0x1a0c   :  { %v10971_v53 = vpack.c.bf16 %v10961_v11, %v10960_v37  ;;  %v21942_v13 = vpop.permute.xlu1 %11350  ;;  %v18734_v26 = vpop.eup %18733 }
0x1a0d   :  { %v10970_v52 = vpack.c.bf16 %v10959_v12, %v10958_v10  ;;  %v18736_v56 = vpop.eup %18735 }
0x1a0e   :  { %v11674_v44 = vpop.permute.xlu0 %11673 }
0x1a0f   :  { %v16349_v24 = vpop.f32.mrb[100].mxu1  ;;  %14653 = vmatmul.mubr.msk.bf16.gmra.mrb[48].mxu1 %vm23465_vm12, %v10968_v39  ;;  %16367 = vmatprep.mubr.msk.bf16.mxu0 %vm23466_vm10, %v10970_v52  ;;  %vm23468_vm12 = vmmov %vm23459_vm0  ;;  %v11418_v39 = vsel %vm23471_vm11, %v21906_v48, 0 }
0x1a10   :  { %16407 = vmatprep.subr.bf16.mxu1 %v11674_v44  ;;  %v21946_v59 = vpop.permute.xlu1 %11354  ;;  %v10919_v19 = vpop.f32.mrb[101].mxu1  ;;  %16368 = vmatmul.mubr.msk.bf16.gmra.mrb[80].mxu0 %vm23467_vm15, %v10971_v53  ;;  %v10964_v36 = vmul.f32 %v18730_v17, %v16349_v24  ;;  %vm23469_vm10 = vmmov %vm23459_vm0 }
0x1a11   :  { %16380 = vmatpush3.bf16.xpose.msra.mxu0 %v11415_v54  ;;  %16408 = vmatpush3.bf16.msra.mxu1 %v11674_v44  ;;  %v16350_v9 = vpop.f32.mrb[102].mxu1  ;;  %v10962_v41 = vmul.f32 %v18732_v15, %v10919_v19  ;;  %vm23470_vm15 = vmmov %vm23459_vm0 }
0x1a12   :  { %v10965_v3 = vmul.f32 %v18734_v26, %v16350_v9  ;;  %17562 = vmatprep.subr.msk.bf16.mxu0 %vm23468_vm12, %v21906_v48  ;;  %v10922_v7 = vpop.f32.mrb[103].mxu1  ;;  %11140 = vmatprep.mubr.bf16.mxu1 %v22831_v62  ;;  %v11678_v60 = vpop.permute.xlu0 %11677  ;;  %vm23472_vm12 = vmmov %vm23459_vm0 }
0x1a13   :  { %v10963_v4 = vmul.f32 %v18736_v56, %v10922_v7  ;;  %vm23476_vm11 = vmmov %vm23459_vm0  ;;  %v23494_v7 = vld [vmem:[#allocation142_spill] sm:$0xff] }
0x1a14   :  { %v10973_v0 = vpack.c.bf16 %v10965_v3, %v10964_v36  ;;  %v11359_v38 = vpop.permute.xlu1 %11358 }
0x1a15   :  { %v10972_v40 = vpack.c.bf16 %v10963_v4, %v10962_v41  ;;  %v23496_v4 = vld [vmem:[#allocation146_spill] sm:$0xff] }
0x1a17   :  { %14654 = vmatmul.mubr.msk.bf16.gmra.mrb[52].mxu1 %vm23469_vm10, %v10969_v58  ;;  %16371 = vmatprep.mubr.msk.bf16.mxu0 %vm23470_vm15, %v10972_v40  ;;  %v11680_v58 = vpop.permute.xlu0 %11679  ;;  %vm23474_vm10 = vmmov %vm23459_vm0 }
0x1a18   :  { %v11676_v27 = vpop.permute.xlu1 %11675  ;;  %16372 = vmatmul.mubr.msk.bf16.gmra.mrb[84].mxu0 %vm23459_vm0, %v10973_v0  ;;  %11150 = vmatprep.mubr.bf16.mxu1 %v22831_v62  ;;  %vm23475_vm15 = vmmov %vm23459_vm0 }
0x1a19   :  { %16382 = vmatpush3.bf16.xpose.msra.mxu0 %v11418_v39  ;;  %16391 = vmatprep.mubr.msk.bf16.mxu0 %vm23472_vm12, %v21914_v25  ;;  %v11421_v48 = vsel %vm23475_vm15, %v21908_v20, 0  ;;  %vm23478_vm12 = vmmov %vm23459_vm0 }
0x1a1a   :  { %17563 = vmatprep.subr.msk.bf16.mxu0 %vm23473_vm14, %v21908_v20  ;;  %16409 = vmatprep.subr.bf16.mxu1 %v11676_v27  ;;  %vm23477_vm14 = vmmov %vm23459_vm0 }
0x1a1b   :  { %16410 = vmatpush3.bf16.msra.mxu1 %v11676_v27  ;;  %v11682_v25 = vpop.permute.xlu0 %11681  ;;  %vm23480_vm15 = vmmov %vm23459_vm0 }
0x1a1c   :  { %16411 = vmatprep.subr.bf16.mxu1 %v11678_v60  ;;  %v11684_v23 = vpop.permute.xlu1 %11683  ;;  %v11427_v20 = vsel %vm23480_vm15, %v21912_v47, 0  ;;  %vm23485_vm15 = vmmov %vm23459_vm0 }
0x1a1f   :  { %16412 = vmatpush3.bf16.msra.mxu1 %v11678_v60 }
0x1a20   :  { %14655 = vmatmul.mubr.msk.bf16.gmra.mrb[56].mxu1 %vm23474_vm10, %v10970_v52  ;;  %16413 = vmatprep.subr.bf16.mxu1 %v11680_v58  ;;  %vm23479_vm10 = vmmov %vm23459_vm0 }
0x1a21   :  { %16384 = vmatpush3.bf16.xpose.msra.mxu0 %v11421_v48  ;;  %11160 = vmatprep.mubr.bf16.mxu1 %v22831_v62 }
0x1a22   :  { %17564 = vmatprep.subr.msk.bf16.mxu0 %vm23476_vm11, %v21910_v18  ;;  %vm23481_vm11 = vmmov %vm23459_vm0  ;;  %v11430_v18 = vsel %vm23459_vm0, %v21926_v14, 0 }
0x1a23   :  { %16414 = vmatpush3.bf16.msra.mxu1 %v11680_v58 }
0x1a24   :  { %16415 = vmatprep.subr.bf16.mxu1 %v11682_v25 }
0x1a27   :  { %16416 = vmatpush3.bf16.msra.mxu1 %v11682_v25 }
0x1a28   :  { %14656 = vmatmul.mubr.msk.bf16.gmra.mrb[60].mxu1 %vm23477_vm14, %v10971_v53  ;;  %16417 = vmatprep.subr.bf16.mxu1 %v11684_v23  ;;  %vm23482_vm14 = vmmov %vm23459_vm0 }
0x1a29   :  { %16386 = vmatpush3.bf16.xpose.msra.mxu0 %v11424_v57  ;;  %11170 = vmatprep.mubr.bf16.mxu1 %v22831_v62 }
0x1a2a   :  { %17565 = vmatprep.subr.msk.bf16.mxu0 %vm23478_vm12, %v21912_v47  ;;  %vm23483_vm12 = vmmov %vm23459_vm0  ;;  %v18115_v47 = vld [vmem:[#allocation7 + $0x158] ss:$12 sps:$4 sm:$0xff]  }
0x1a2b   :  { %16418 = vmatpush3.bf16.msra.mxu1 %v11684_v23 }
0x1a30   :  { %14657 = vmatmul.mubr.msk.bf16.gmra.mrb[64].mxu1 %vm23479_vm10, %v10972_v40  ;;  %vm23484_vm10 = vmmov %vm23459_vm0 }
0x1a31   :  { %16388 = vmatpush3.bf16.xpose.msra.mxu0 %v11427_v20  ;;  %11180 = vmatprep.mubr.bf16.mxu1 %v22831_v62 }
0x1a32   :  { %17566 = vmatprep.subr.msk.bf16.mxu0 %vm23481_vm11, %v21926_v14  ;;  %vm23486_vm11 = vmmov %vm23459_vm0  ;;  %v23487_v14 = vld [vmem:[#allocation82_spill] sm:$0xff] }
0x1a38   :  { %14658 = vmatmul.mubr.msk.bf16.gmra.mrb[68].mxu1 %vm23482_vm14, %v10973_v0  ;;  %vm23488_vm14 = vmmov %vm23459_vm0 }
0x1a39   :  { %16390 = vmatpush3.bf16.xpose.msra.mxu0 %v11430_v18 }
0x1a3a   :  { %16439 = vmatprep.subr.bf16.mxu0 %v18113_v8 }
0x1a40   :  { %16392 = vmatmul.mubr.msk.bf16.vlgmr.msra.gmra.mrb[120].mxu0 %vm23483_vm12, %v21932_v2  ;;  %vm23489_vm12 = vmmov %vm23459_vm0 }
0x1a41   :  { %16395 = vmatprep.mubr.msk.bf16.mxu0 %vm23484_vm10, %v21924_v28  ;;  %16440 = vmatpush3.bf16.msra.mxu0 %v18113_v8  ;;  %vm23490_vm10 = vmmov %vm23459_vm0 }
0x1a42   :  { %16441 = vmatprep.subr.bf16.mxu0 %v18114_v1 }
0x1a45   :  { %16442 = vmatpush3.bf16.msra.mxu0 %v18114_v1 }
0x1a46   :  { %16443 = vmatprep.subr.bf16.mxu0 %v18115_v47 }
0x1a48   :  { %16396 = vmatmul.mubr.msk.bf16.gmra.mrb[124].mxu0 %vm23485_vm15, %v21942_v13  ;;  %vm23491_vm15 = vnez %v23062_v34 }
0x1a49   :  { %16399 = vmatprep.mubr.msk.bf16.mxu0 %vm23486_vm11, %v21928_v16  ;;  %16444 = vmatpush3.bf16.msra.mxu0 %v18115_v47  ;;  %vm23492_vm11 = vnez %v23064_v61 }
0x1a4a   :  { %16445 = vmatprep.subr.bf16.mxu0 %v18116_v46 }
0x1a4d   :  { %16446 = vmatpush3.bf16.msra.mxu0 %v18116_v46  ;;  %v18119_v46 = vld [vmem:[#allocation7 + $0x124] ss:$12 sps:$4 sm:$0xff]  }
0x1a4e   :  { %17567 = vmatprep.subr.msk.bf16.mxu0 %vm23488_vm14, %v23487_v14  ;;  %vm23493_vm14 = vnez %v23066_v31 }
0x1a50   :  { %16400 = vmatmul.mubr.msk.bf16.gmra.mrb[128].mxu0 %vm23459_vm0, %v21946_v59  ;;  %vm23495_vm0 = vnez %v23494_v7 }
0x1a51   :  { %16403 = vmatprep.mubr.msk.bf16.mxu0 %vm23489_vm12, %v21940_v5  ;;  %vm23497_vm12 = vnez %v23496_v4 }
0x1a58   :  { %16404 = vmatmul.mubr.msk.bf16.gmra.mrb[132].mxu0 %vm23490_vm10, %v11359_v38  ;;  %v23498_v38 = vld [vmem:[#allocation145_spill] sm:$0xff] }
0x1a59   :  { %vm23499_vm10 = vnez %v23498_v38 }
0x1b13   :  { %v16393_v28 = vpop.f32.mrb[120].mxu0 }
0x1b14   :  { %v11531_v2 = vsel %vm19908_vm1, %v16393_v28, -1e+30  ;;  %v11466_v63 = vpop.f32.mrb[121].mxu0 }
0x1b15   :  { %v11529_v16 = vsel %vm19915_vm2, %v11466_v63, -1e+30  ;;  %11549 = vmax.xlane.f32.xlu1 %v11531_v2  ;;  %v16394_v30 = vpop.f32.mrb[122].mxu0 }
0x1b16   :  { %11545 = vmax.xlane.f32.xlu0 %v11529_v16  ;;  %v11469_v33 = vpop.f32.mrb[123].mxu0  ;;  %v11532_v37 = vsel %vm19932_vm3, %v16394_v30, -1e+30 }
0x1b17   :  { %v11530_v5 = vsel %vm19938_vm4, %v11469_v33, -1e+30 }
0x1b19   :  { %11551 = vmax.xlane.f32.xlu1 %v11532_v37 }
0x1b1b   :  { %v16397_v11 = vpop.f32.mrb[124].mxu0 }
0x1b1c   :  { %v11482_v35 = vpop.f32.mrb[125].mxu0  ;;  %v22019_v54 = vsel %vm19976_vm7, %v16397_v11, -1e+30 }
0x1b1d   :  { %11547 = vmax.xlane.f32.xlu1 %v11530_v5  ;;  %v16398_v10 = vpop.f32.mrb[126].mxu0  ;;  %v22014_v19 = vsel %vm19957_vm5, %v11482_v35, -1e+30  ;;  %v18120_v35 = vld [vmem:[#allocation7 + $0x138] ss:$12 sps:$4 sm:$0xff]  }
0x1b1e   :  { %v11485_v12 = vpop.f32.mrb[127].mxu0 }
0x1b23   :  { %v16401_v53 = vpop.f32.mrb[128].mxu0 }
0x1b24   :  { %v11498_v13 = vpop.f32.mrb[129].mxu0  ;;  %v22048_v36 = vsel %vm23492_vm11, %v16401_v53, -1e+30  ;;  %v18128_v53 = vld [vmem:[#allocation7 + $0x16c] ss:$12 sps:$4 sm:$0xff]  }
0x1b25   :  { %v16402_v52 = vpop.f32.mrb[130].mxu0  ;;  %v22038_v9 = vsel %vm20000_vm9, %v11498_v13, -1e+30  ;;  %v18126_v13 = vld [vmem:[#allocation7 + $0x168] ss:$12 sps:$4 sm:$0xff]  }
0x1b26   :  { %v11501_v44 = vpop.f32.mrb[131].mxu0  ;;  %v22044_v56 = vsel %vm23491_vm15, %v16402_v52, -1e+30  ;;  %v23500_v52 = vld [vmem:[#allocation133_spill] sm:$0xff] }
0x1b27   :  { %v22034_v26 = vsel %vm23450_vm13, %v11501_v44, -1e+30 }
0x1b2b   :  { %v16405_v17 = vpop.f32.mrb[132].mxu0 }
0x1b2c   :  { %11685 = vrot.lane.b32.xlu0 %v23412_v6, %s19071_s2  ;;  %v11514_v24 = vpop.f32.mrb[133].mxu0  ;;  %v22024_v6 = vsel %vm19965_vm6, %v11485_v12, -1e+30  ;;  %v22068_v40 = vsel %vm23499_vm10, %v16405_v17, -1e+30 }
0x1b2d   :  { %v16406_v15 = vpop.f32.mrb[134].mxu0  ;;  %v22058_v41 = vsel %vm23495_vm0, %v11514_v24, -1e+30  ;;  %v18123_v12 = vld [vmem:[#allocation7 + $0x150] ss:$12 sps:$4 sm:$0xff]  }
0x1b2e   :  { %11687 = vrot.lane.b32.xlu1 %v23414_v21, %s19071_s2  ;;  %v11517_v59 = vpop.f32.mrb[135].mxu0  ;;  %v22028_v21 = vsel %vm19988_vm8, %v16398_v10, -1e+30  ;;  %v22064_v0 = vsel %vm23497_vm12, %v16406_v15, -1e+30  ;;  %vm23501_vm12 = vcmask 523264  }
0x1b2f   :  { %v22054_v3 = vsel %vm23493_vm14, %v11517_v59, -1e+30  ;;  %v18125_v10 = vld [vmem:[#allocation7 + $0x154] ss:$12 sps:$4 sm:$0xff]   ;;  %vm23502_vm10 = vmmov %vm23501_vm12 }
0x1b30   :  { %vm23503_vm14 = vmmov %vm23502_vm10 }
0x1b31   :  { %vm23504_vm0 = vmmov %vm23502_vm10 }
0x1b32   :  { %vm23507_vm15 = vmmov %vm23504_vm0 }
0x1b33   :  { %vm23542_vm11 = vmmov %vm23504_vm0 }
0x1b34   :  { %vm23544_vm13 = vmmov %vm23504_vm0 }
0x1b4b   :  { %11553 = vmax.xlane.f32.xlu0 %v22014_v19 }
0x1b4f   :  { %11557 = vmax.xlane.f32.xlu0 %v22019_v54 }
0x1b52   :  { %11555 = vmax.xlane.f32.xlu1 %v22024_v6 }
0x1b53   :  { %11559 = vmax.xlane.f32.xlu0 %v22028_v21 }
0x1b56   :  { %11563 = vmax.xlane.f32.xlu1 %v22034_v26 }
0x1b57   :  { %11561 = vmax.xlane.f32.xlu0 %v22038_v9 }
0x1b5a   :  { %11567 = vmax.xlane.f32.xlu1 %v22044_v56 }
0x1b5b   :  { %11565 = vmax.xlane.f32.xlu0 %v22048_v36 }
0x1b5e   :  { %11571 = vmax.xlane.f32.xlu1 %v22054_v3 }
0x1b5f   :  { %11569 = vmax.xlane.f32.xlu0 %v22058_v41 }
0x1b62   :  { %11575 = vmax.xlane.f32.xlu1 %v22064_v0 }
0x1b63   :  { %11573 = vmax.xlane.f32.xlu0 %v22068_v40 }
0x1ba2   :  { %v11550_v60 = vpop.xlane.xlu1 %11549 }
0x1ba3   :  { %v11546_v27 = vpop.xlane.xlu0 %11545  ;;  %v11579_v39 = vsub.f32 %v11531_v2, %v11550_v60 }
0x1ba4   :  { %v11577_v58 = vsub.f32 %v11529_v16, %v11546_v27 }
0x1ba5   :  { %v11597_v20 = vmul.f32 1.442695, %v11579_v39 }
0x1ba6   :  { %v11593_v48 = vmul.f32 1.442695, %v11577_v58  ;;  %v11552_v25 = vpop.xlane.xlu1 %11551 }
0x1ba7   :  { %v11580_v23 = vsub.f32 %v11532_v37, %v11552_v25  ;;  %v11686_v57 = vpop.permute.xlu0 %11685  ;;  %v18117_v37 = vld [vmem:[#allocation7 + $0x120] ss:$12 sps:$4 sm:$0xff]  }
0x1ba8   :  { %18737 = vpow2.f32 %v11593_v48  ;;  %16419 = vmatprep.subr.bf16.mxu1 %v11686_v57 }
0x1ba9   :  { %16420 = vmatpush3.bf16.msra.mxu1 %v11686_v57  ;;  %v11599_v8 = vmul.f32 1.442695, %v11580_v23  ;;  %18739 = vpow2.f32 %v11597_v20 }
0x1baa   :  { %v11548_v18 = vpop.xlane.xlu1 %11547 }
0x1bab   :  { %v11578_v1 = vsub.f32 %v11530_v5, %v11548_v18  ;;  %18741 = vpow2.f32 %v11599_v8  ;;  %v18122_v5 = vld [vmem:[#allocation7 + $0x13c] ss:$12 sps:$4 sm:$0xff]  }
0x1bad   :  { %v11595_v47 = vmul.f32 1.442695, %v11578_v1 }
0x1bae   :  { %v11688_v28 = vpop.permute.xlu1 %11687 }
0x1baf   :  { %18743 = vpow2.f32 %v11595_v47  ;;  %16421 = vmatprep.subr.bf16.mxu1 %v11688_v28 }
0x1bb0   :  { %16422 = vmatpush3.bf16.msra.mxu1 %v11688_v28 }
0x1bb1   :  { %11938 = vmatprep.subr.bf16.mxu1 %v18119_v46 }
0x1bb2   :  { %v18738_v2 = vpop.eup %18737 }
0x1bb3   :  { %11625 = vadd.xlane.f32.xlu0 %v18738_v2  ;;  %v18740_v63 = vpop.eup %18739 }
0x1bb5   :  { %v18742_v16 = vpop.eup %18741 }
0x1bb6   :  { %v11658_v11 = vpack.c.bf16 %v18742_v16, %v18740_v63 }
0x1bb7   :  { %11629 = vadd.xlane.f32.xlu0 %v18740_v63 }
0x1bb9   :  { %v18744_v30 = vpop.eup %18743 }
0x1bba   :  { %11627 = vadd.xlane.f32.xlu1 %v18744_v30  ;;  %v11657_v33 = vpack.c.bf16 %v18744_v30, %v18738_v2 }
0x1bbc   :  { %16423 = vmatprep.mubr.bf16.mxu1 %v11657_v33 }
0x1bbd   :  { %16424 = vmatmul.mubr.bf16.vlgmr.msra.gmra.mrb[104].mxu1 %v11658_v11 }
0x1bbe   :  { %11939 = vmatpush1.bf16.msra.mxu1 %v18117_v37  ;;  %11631 = vadd.xlane.f32.xlu1 %v18742_v16 }
0x1bbf   :  { %11940 = vmatprep.subr.bf16.mxu1 %v18122_v5 }
0x1bc2   :  { %11941 = vmatpush1.bf16.msra.mxu1 %v18120_v35 }
0x1bc3   :  { %11942 = vmatprep.subr.bf16.mxu1 %v18125_v10 }
0x1bc6   :  { %11943 = vmatpush1.bf16.msra.mxu1 %v18123_v12 }
0x1bc7   :  { %11944 = vmatprep.subr.bf16.mxu1 %v18128_v53 }
0x1bca   :  { %11945 = vmatpush1.bf16.msra.mxu1 %v18126_v13 }
0x1bcb   :  { %16495 = vmatprep.subr.bf16.mxu1 %v23500_v52 }
0x1bd8   :  { %v11554_v44 = vpop.xlane.xlu0 %11553 }
0x1bd9   :  { %v11581_v17 = vsub.f32 %v22014_v19, %v11554_v44 }
0x1bdb   :  { %v11601_v24 = vmul.f32 1.442695, %v11581_v17 }
0x1bdc   :  { %v11558_v15 = vpop.xlane.xlu0 %11557 }
0x1bdd   :  { %18745 = vpow2.f32 %v11601_v24  ;;  %v11583_v59 = vsub.f32 %v22019_v54, %v11558_v15 }
0x1bdf   :  { %v11605_v60 = vmul.f32 1.442695, %v11583_v59  ;;  %v11556_v27 = vpop.xlane.xlu1 %11555 }
0x1be0   :  { %v11582_v39 = vsub.f32 %v22024_v6, %v11556_v27  ;;  %v11560_v58 = vpop.xlane.xlu0 %11559 }
0x1be1   :  { %18747 = vpow2.f32 %v11605_v60  ;;  %v11584_v48 = vsub.f32 %v22028_v21, %v11560_v58 }
0x1be2   :  { %v11603_v25 = vmul.f32 1.442695, %v11582_v39 }
0x1be3   :  { %v11607_v23 = vmul.f32 1.442695, %v11584_v48  ;;  %v11564_v57 = vpop.xlane.xlu1 %11563 }
0x1be4   :  { %18749 = vpow2.f32 %v11603_v25  ;;  %v11586_v20 = vsub.f32 %v22034_v26, %v11564_v57  ;;  %v11562_v19 = vpop.xlane.xlu0 %11561 }
0x1be5   :  { %18751 = vpow2.f32 %v11607_v23  ;;  %v11585_v8 = vsub.f32 %v22038_v9, %v11562_v19 }
0x1be6   :  { %v11611_v18 = vmul.f32 1.442695, %v11586_v20 }
0x1be7   :  { %v18746_v54 = vpop.eup %18745  ;;  %v11609_v1 = vmul.f32 1.442695, %v11585_v8  ;;  %v11568_v47 = vpop.xlane.xlu1 %11567 }
0x1be8   :  { %18753 = vpow2.f32 %v11611_v18  ;;  %v11588_v6 = vsub.f32 %v22044_v56, %v11568_v47  ;;  %v11566_v46 = vpop.xlane.xlu0 %11565  ;;  %11633 = vadd.xlane.f32.xlu0 %v18746_v54 }
0x1be9   :  { %18755 = vpow2.f32 %v11609_v1  ;;  %v11587_v21 = vsub.f32 %v22048_v36, %v11566_v46 }
0x1bea   :  { %v11615_v28 = vmul.f32 1.442695, %v11588_v6 }
0x1beb   :  { %v18748_v2 = vpop.eup %18747  ;;  %v11613_v63 = vmul.f32 1.442695, %v11587_v21  ;;  %v11572_v26 = vpop.xlane.xlu1 %11571 }
0x1bec   :  { %18757 = vpow2.f32 %v11615_v28  ;;  %v11590_v16 = vsub.f32 %v22054_v3, %v11572_v26  ;;  %11637 = vadd.xlane.f32.xlu0 %v18748_v2  ;;  %v11570_v9 = vpop.xlane.xlu0 %11569 }
0x1bed   :  { %18759 = vpow2.f32 %v11613_v63  ;;  %v11589_v30 = vsub.f32 %v22058_v41, %v11570_v9  ;;  %v23505_v9 = vld [vmem:[#allocation138_spill] sm:$0xff] }
0x1bee   :  { %v18750_v33 = vpop.eup %18749  ;;  %v11619_v37 = vmul.f32 1.442695, %v11590_v16  ;;  %v12221_v16 = vsel %vm23504_vm0, %v23487_v14, 0 }
0x1bef   :  { %v18752_v56 = vpop.eup %18751  ;;  %v11617_v11 = vmul.f32 1.442695, %v11589_v30  ;;  %11635 = vadd.xlane.f32.xlu1 %v18750_v33  ;;  %v11576_v5 = vpop.xlane.xlu1 %11575  ;;  %v11659_v35 = vpack.c.bf16 %v18750_v33, %v18746_v54  ;;  %v23506_v30 = vld [vmem:[#allocation86_spill] sm:$0xff]  ;;  %v23508_v33 = vld [vmem:[#allocation143_spill] sm:$0xff] }
0x1bf0   :  { %v11660_v36 = vpack.c.bf16 %v18752_v56, %v18748_v2  ;;  %18761 = vpow2.f32 %v11619_v37  ;;  %v11592_v10 = vsub.f32 %v22064_v0, %v11576_v5  ;;  %v11574_v12 = vpop.xlane.xlu0 %11573  ;;  %v23514_v5 = vld [vmem:[#allocation148_spill] sm:$0xff] }
0x1bf1   :  { %18763 = vpow2.f32 %v11617_v11  ;;  %v11591_v3 = vsub.f32 %v22068_v40, %v11574_v12  ;;  %16427 = vmatprep.mubr.bf16.mxu1 %v11659_v35  ;;  %v23512_v11 = vld [vmem:[#allocation92_spill] sm:$0xff] }
0x1bf2   :  { %v18754_v53 = vpop.eup %18753  ;;  %v11623_v13 = vmul.f32 1.442695, %v11592_v10  ;;  %16428 = vmatmul.mubr.bf16.gmra.mrb[108].mxu1 %v11660_v36  ;;  %v12227_v35 = vsel %vm23504_vm0, %v23512_v11, 0  ;;  %v23515_v36 = vld [vmem:[#allocation149_spill] sm:$0xff]  ;;  %v23516_v10 = vld [vmem:[#allocation98_spill] sm:$0xff] }
0x1bf3   :  { %v18756_v41 = vpop.eup %18755  ;;  %v11621_v44 = vmul.f32 1.442695, %v11591_v3  ;;  %11639 = vadd.xlane.f32.xlu1 %v18752_v56  ;;  %v23511_v56 = vld [vmem:[#allocation147_spill] sm:$0xff] }
0x1bf4   :  { %18765 = vpow2.f32 %v11623_v13  ;;  %11641 = vadd.xlane.f32.xlu0 %v18756_v41  ;;  %v11661_v17 = vpack.c.bf16 %v18754_v53, %v18756_v41 }
0x1bf5   :  { %18767 = vpow2.f32 %v11621_v44  ;;  %v23520_v44 = vld [vmem:[#allocation151_spill] sm:$0xff] }
0x1bf6   :  { %v18758_v24 = vpop.eup %18757  ;;  %16431 = vmatprep.mubr.bf16.mxu1 %v11661_v17 }
0x1bf7   :  { %v18760_v15 = vpop.eup %18759  ;;  %11643 = vadd.xlane.f32.xlu1 %v18754_v53  ;;  %v23518_v53 = vld [vmem:[#allocation150_spill] sm:$0xff] }
0x1bf8   :  { %v11662_v0 = vpack.c.bf16 %v18758_v24, %v18760_v15  ;;  %11645 = vadd.xlane.f32.xlu0 %v18760_v15 }
0x1bfa   :  { %v18762_v59 = vpop.eup %18761  ;;  %16432 = vmatmul.mubr.bf16.gmra.mrb[112].mxu1 %v11662_v0 }
0x1bfb   :  { %v18764_v40 = vpop.eup %18763  ;;  %11647 = vadd.xlane.f32.xlu1 %v18758_v24  ;;  %v23521_v24 = vld [vmem:[#allocation104_spill] sm:$0xff] }
0x1bfc   :  { %11649 = vadd.xlane.f32.xlu0 %v18764_v40  ;;  %v11663_v60 = vpack.c.bf16 %v18762_v59, %v18764_v40  ;;  %v23524_v40 = vld [vmem:[#allocation110_spill] sm:$0xff] }
0x1bfe   :  { %v18766_v27 = vpop.eup %18765  ;;  %16435 = vmatprep.mubr.bf16.mxu1 %v11663_v60 }
0x1bff   :  { %v18768_v39 = vpop.eup %18767  ;;  %11651 = vadd.xlane.f32.xlu1 %v18762_v59 }
0x1c00   :  { %v11664_v58 = vpack.c.bf16 %v18766_v27, %v18768_v39  ;;  %11653 = vadd.xlane.f32.xlu0 %v18768_v39 }
0x1c02   :  { %16436 = vmatmul.mubr.bf16.gmra.mrb[116].mxu1 %v11664_v58 }
0x1c03   :  { %11655 = vadd.xlane.f32.xlu1 %v18766_v27  ;;  %11970 = vmatprep.mubr.bf16.mxu1 %v22831_v62 }
0x1c40   :  { %v11626_v48 = vpop.xlane.xlu0 %11625 }
0x1c41   :  { %18769 = vrcp.f32 %v11626_v48  ;;  %v23526_v48 = vld [vmem:[#allocation114_spill] sm:$0xff] }
0x1c44   :  { %v11630_v23 = vpop.xlane.xlu0 %11629 }
0x1c45   :  { %18771 = vrcp.f32 %v11630_v23 }
0x1c47   :  { %v11628_v25 = vpop.xlane.xlu1 %11627 }
0x1c4b   :  { %v11632_v57 = vpop.xlane.xlu1 %11631  ;;  %v18770_v20 = vpop.eup %18769 }
0x1c4c   :  { %18773 = vrcp.f32 %v11632_v57 }
0x1c4d   :  { %18775 = vrcp.f32 %v11628_v25 }
0x1c4f   :  { %v18772_v8 = vpop.eup %18771 }
0x1c56   :  { %v18774_v54 = vpop.eup %18773 }
0x1c57   :  { %v18776_v47 = vpop.eup %18775 }
0x1c75   :  { %v11634_v3 = vpop.xlane.xlu0 %11633 }
0x1c76   :  { %18777 = vrcp.f32 %v11634_v3 }
0x1c79   :  { %v11638_v17 = vpop.xlane.xlu0 %11637 }
0x1c7a   :  { %18779 = vrcp.f32 %v11638_v17 }
0x1c7c   :  { %v11636_v12 = vpop.xlane.xlu1 %11635 }
0x1c80   :  { %v11640_v41 = vpop.xlane.xlu1 %11639  ;;  %v18778_v23 = vpop.eup %18777 }
0x1c81   :  { %v11642_v15 = vpop.xlane.xlu0 %11641  ;;  %18781 = vrcp.f32 %v11640_v41 }
0x1c82   :  { %18783 = vrcp.f32 %v11636_v12 }
0x1c83   :  { %18785 = vrcp.f32 %v11642_v15 }
0x1c84   :  { %v11644_v0 = vpop.xlane.xlu1 %11643 }
0x1c85   :  { %v11646_v60 = vpop.xlane.xlu0 %11645 }
0x1c86   :  { %18787 = vrcp.f32 %v11646_v60 }
0x1c88   :  { %v11648_v27 = vpop.xlane.xlu1 %11647 }
0x1c89   :  { %v11650_v58 = vpop.xlane.xlu0 %11649  ;;  %18789 = vrcp.f32 %v11648_v27 }
0x1c8a   :  { %18791 = vrcp.f32 %v11644_v0 }
0x1c8b   :  { %18793 = vrcp.f32 %v11650_v58 }
0x1c8c   :  { %v11652_v25 = vpop.xlane.xlu1 %11651 }
0x1c90   :  { %v16425_v19 = vpop.f32.mrb[104].mxu1 }
0x1c91   :  { %v11731_v18 = vpop.f32.mrb[105].mxu1  ;;  %v11812_v6 = vmul.f32 %v18772_v8, %v16425_v19 }
0x1c92   :  { %v16426_v1 = vpop.f32.mrb[106].mxu1  ;;  %v11810_v28 = vmul.f32 %v18770_v20, %v11731_v18  ;;  %v18780_v20 = vpop.eup %18779 }
0x1c93   :  { %v11813_v46 = vmul.f32 %v18774_v54, %v16426_v1  ;;  %v11734_v21 = vpop.f32.mrb[107].mxu1  ;;  %v18782_v8 = vpop.eup %18781 }
0x1c94   :  { %v11811_v2 = vmul.f32 %v18776_v47, %v11734_v21  ;;  %v18784_v54 = vpop.eup %18783 }
0x1c95   :  { %v11827_v63 = vpack.c.bf16 %v11813_v46, %v11812_v6  ;;  %v11654_v46 = vpop.xlane.xlu0 %11653 }
0x1c96   :  { %v11826_v26 = vpack.c.bf16 %v11811_v2, %v11810_v28  ;;  %18795 = vrcp.f32 %v11654_v46 }
0x1c98   :  { %14687 = vmatmul.mubr.msk.bf16.vlgmr.msra.gmra.mrb[40].mxu1 %vm23501_vm12, %v11826_v26  ;;  %16447 = vmatprep.mubr.msk.bf16.mxu0 %vm23502_vm10, %v11826_v26  ;;  %vm23509_vm12 = vmmov %vm23504_vm0 }
0x1c99   :  { %16496 = vmatpush3.bf16.msra.mxu1 %v23500_v52  ;;  %16448 = vmatmul.mubr.msk.bf16.vlgmr.msra.gmra.mrb[72].mxu0 %vm23503_vm14, %v11827_v63  ;;  %vm23510_vm14 = vmmov %vm23504_vm0 }
0x1c9a   :  { %16464 = vmatpush3.bf16.xpose.msra.mxu0 %v12221_v16  ;;  %16497 = vmatprep.subr.bf16.mxu1 %v23505_v9  ;;  %v12224_v37 = vsel %vm23510_vm14, %v23506_v30, 0  ;;  %vm23517_vm10 = vmmov %vm23504_vm0 }
0x1c9b   :  { %17568 = vmatprep.subr.msk.bf16.mxu0 %vm23507_vm15, %v23506_v30  ;;  %11980 = vmatprep.mubr.bf16.mxu1 %v22831_v62  ;;  %vm23513_vm15 = vmmov %vm23504_vm0 }
0x1c9c   :  { %vm23522_vm14 = vmmov %vm23504_vm0 }
0x1c9d   :  { %16498 = vmatpush3.bf16.msra.mxu1 %v23505_v9 }
0x1c9e   :  { %16499 = vmatprep.subr.bf16.mxu1 %v23508_v33 }
0x1ca0   :  { %14688 = vmatmul.mubr.msk.bf16.gmra.mrb[44].mxu1 %vm23509_vm12, %v11827_v63  ;;  %vm23519_vm12 = vmmov %vm23504_vm0  ;;  %v11656_v63 = vpop.xlane.xlu1 %11655 }
0x1ca1   :  { %16500 = vmatpush3.bf16.msra.mxu1 %v23508_v33  ;;  %11990 = vmatprep.mubr.bf16.mxu1 %v22831_v62  ;;  %v12230_v13 = vsel %vm23519_vm12, %v23516_v10, 0  ;;  %vm23527_vm12 = vmmov %vm23504_vm0  ;;  %18797 = vrcp.f32 %v11656_v63 }
0x1ca2   :  { %16466 = vmatpush3.bf16.xpose.msra.mxu0 %v12224_v37  ;;  %16501 = vmatprep.subr.bf16.mxu1 %v23511_v56  ;;  %v23529_v37 = vld [vmem:[#allocation118_spill] sm:$0xff]  ;;  %18799 = vrcp.f32 %v11652_v25 }
0x1ca3   :  { %17569 = vmatprep.subr.msk.bf16.mxu0 %vm23513_vm15, %v23512_v11  ;;  %vm23523_vm15 = vmmov %vm23504_vm0 }
0x1ca4   :  { %v12233_v59 = vsel %vm23523_vm15, %v23521_v24, 0  ;;  %vm23530_vm15 = vmmov %vm23504_vm0 }
0x1ca5   :  { %16502 = vmatpush3.bf16.msra.mxu1 %v23511_v56 }
0x1ca6   :  { %16503 = vmatprep.subr.bf16.mxu1 %v23514_v5 }
0x1ca9   :  { %16504 = vmatpush3.bf16.msra.mxu1 %v23514_v5 }
0x1caa   :  { %16468 = vmatpush3.bf16.xpose.msra.mxu0 %v12227_v35  ;;  %16505 = vmatprep.subr.bf16.mxu1 %v23515_v36  ;;  %v18786_v35 = vpop.eup %18785 }
0x1cab   :  { %17570 = vmatprep.subr.msk.bf16.mxu0 %vm23517_vm10, %v23516_v10  ;;  %vm23525_vm10 = vmmov %vm23504_vm0  ;;  %v18788_v3 = vpop.eup %18787 }
0x1cac   :  { %v12236_v39 = vsel %vm23525_vm10, %v23524_v40, 0  ;;  %vm23531_vm10 = vmmov %vm23504_vm0  ;;  %v18790_v41 = vpop.eup %18789 }
0x1cad   :  { %16506 = vmatpush3.bf16.msra.mxu1 %v23515_v36  ;;  %v18792_v15 = vpop.eup %18791 }
0x1cae   :  { %16507 = vmatprep.subr.bf16.mxu1 %v23518_v53  ;;  %v18794_v25 = vpop.eup %18793 }
0x1cb1   :  { %16508 = vmatpush3.bf16.msra.mxu1 %v23518_v53 }
0x1cb2   :  { %16470 = vmatpush3.bf16.xpose.msra.mxu0 %v12230_v13  ;;  %16509 = vmatprep.subr.bf16.mxu1 %v23520_v44 }
0x1cb3   :  { %17571 = vmatprep.subr.msk.bf16.mxu0 %vm23522_vm14, %v23521_v24  ;;  %vm23528_vm14 = vmmov %vm23504_vm0 }
0x1cb4   :  { %v12239_v2 = vsel %vm23528_vm14, %v23526_v48, 0  ;;  %vm23533_vm14 = vmmov %vm23504_vm0 }
0x1cb5   :  { %16510 = vmatpush3.bf16.msra.mxu1 %v23520_v44  ;;  %v12242_v58 = vsel %vm23533_vm14, %v23529_v37, 0  ;;  %vm23537_vm14 = vmmov %vm23504_vm0 }
0x1cba   :  { %16472 = vmatpush3.bf16.xpose.msra.mxu0 %v12233_v59 }
0x1cbb   :  { %17572 = vmatprep.subr.msk.bf16.mxu0 %vm23504_vm0, %v23524_v40 }
0x1cc2   :  { %16474 = vmatpush3.bf16.xpose.msra.mxu0 %v12236_v39 }
0x1cc3   :  { %17573 = vmatprep.subr.msk.bf16.mxu0 %vm23527_vm12, %v23526_v48  ;;  %vm23532_vm12 = vmmov %vm23504_vm0 }
0x1cc5   :  { %v16429_v57 = vpop.f32.mrb[108].mxu1 }
0x1cc6   :  { %v11747_v19 = vpop.f32.mrb[109].mxu1  ;;  %v11816_v1 = vmul.f32 %v18780_v20, %v16429_v57 }
0x1cc7   :  { %v16430_v18 = vpop.f32.mrb[110].mxu1  ;;  %v11814_v21 = vmul.f32 %v18778_v23, %v11747_v19  ;;  %v18796_v19 = vpop.eup %18795 }
0x1cc8   :  { %v11817_v47 = vmul.f32 %v18782_v8, %v16430_v18  ;;  %v11750_v6 = vpop.f32.mrb[111].mxu1  ;;  %v18798_v18 = vpop.eup %18797 }
0x1cc9   :  { %v11815_v28 = vmul.f32 %v18784_v54, %v11750_v6 }
0x1cca   :  { %v11829_v26 = vpack.c.bf16 %v11817_v47, %v11816_v1  ;;  %16476 = vmatpush3.bf16.xpose.msra.mxu0 %v12239_v2  ;;  %v18800_v1 = vpop.eup %18799 }
0x1ccb   :  { %v11828_v16 = vpack.c.bf16 %v11815_v28, %v11814_v21  ;;  %17574 = vmatprep.subr.msk.bf16.mxu0 %vm23530_vm15, %v23529_v37  ;;  %vm23534_vm15 = vmmov %vm23504_vm0 }
0x1ccd   :  { %v16433_v12 = vpop.f32.mrb[112].mxu1  ;;  %14689 = vmatmul.mubr.msk.bf16.gmra.mrb[48].mxu1 %vm23504_vm0, %v11828_v16  ;;  %16451 = vmatprep.mubr.msk.bf16.mxu0 %vm23531_vm10, %v11828_v16  ;;  %vm23535_vm10 = vmmov %vm23504_vm0  ;;  %v23541_v16 = vld [vmem:[#allocation51_spill] sm:$0xff] }
0x1cce   :  { %v11763_v13 = vpop.f32.mrb[113].mxu1  ;;  %16452 = vmatmul.mubr.msk.bf16.gmra.mrb[76].mxu0 %vm23532_vm12, %v11829_v26  ;;  %12000 = vmatprep.mubr.bf16.mxu1 %v22831_v62  ;;  %v11820_v0 = vmul.f32 %v18788_v3, %v16433_v12  ;;  %vm23536_vm12 = vmmov %vm23504_vm0  ;;  %v23546_v12 = vld [vmem:[#allocation59_spill] sm:$0xff]  ;;  %v23548_v3 = vld [vmem:[#allocation64_spill] sm:$0xff] }
0x1ccf   :  { %v16434_v17 = vpop.f32.mrb[114].mxu1  ;;  %v11818_v27 = vmul.f32 %v18786_v35, %v11763_v13  ;;  %v23543_v35 = vld [vmem:[#allocation56_spill] sm:$0xff]  ;;  %v23550_v13 = vld [vmem:[#allocation67_spill] sm:$0xff] }
0x1cd0   :  { %v11821_v59 = vmul.f32 %v18790_v41, %v16434_v17  ;;  %v11766_v60 = vpop.f32.mrb[115].mxu1  ;;  %v23552_v41 = vld [vmem:[#allocation72_spill] sm:$0xff]  ;;  %v23554_v17 = vld [vmem:[#allocation75_spill] sm:$0xff] }
0x1cd1   :  { %v11819_v39 = vmul.f32 %v18792_v15, %v11766_v60 }
0x1cd2   :  { %v11831_v23 = vpack.c.bf16 %v11821_v59, %v11820_v0  ;;  %16478 = vmatpush3.bf16.xpose.msra.mxu0 %v12242_v58 }
0x1cd3   :  { %v11830_v57 = vpack.c.bf16 %v11819_v39, %v11818_v27 }
0x1cd5   :  { %v16437_v20 = vpop.f32.mrb[116].mxu1  ;;  %14690 = vmatmul.mubr.msk.bf16.gmra.mrb[52].mxu1 %vm23534_vm15, %v11829_v26  ;;  %16455 = vmatprep.mubr.msk.bf16.mxu0 %vm23504_vm0, %v11830_v57  ;;  %vm23538_vm15 = vmmov %vm23504_vm0  ;;  %v23539_v26 = vld [vmem:[#allocation47_spill] sm:$0xff] }
0x1cd6   :  { %v11779_v8 = vpop.f32.mrb[117].mxu1  ;;  %16456 = vmatmul.mubr.msk.bf16.gmra.mrb[80].mxu0 %vm23535_vm10, %v11831_v23  ;;  %12010 = vmatprep.mubr.bf16.mxu1 %v22831_v62  ;;  %v11824_v47 = vmul.f32 %v18796_v19, %v16437_v20  ;;  %vm23540_vm10 = vmmov %vm23504_vm0 }
0x1cd7   :  { %v16438_v54 = vpop.f32.mrb[118].mxu1  ;;  %v11822_v21 = vmul.f32 %v18794_v25, %v11779_v8 }
0x1cd8   :  { %v11825_v6 = vmul.f32 %v18798_v18, %v16438_v54  ;;  %v11782_v46 = vpop.f32.mrb[119].mxu1 }
0x1cd9   :  { %v11823_v28 = vmul.f32 %v18800_v1, %v11782_v46 }
0x1cda   :  { %v11833_v2 = vpack.c.bf16 %v11825_v6, %v11824_v47 }
0x1cdb   :  { %v11832_v63 = vpack.c.bf16 %v11823_v28, %v11822_v21 }
0x1cdd   :  { %14691 = vmatmul.mubr.msk.bf16.gmra.mrb[56].mxu1 %vm23536_vm12, %v11830_v57  ;;  %16459 = vmatprep.mubr.msk.bf16.mxu0 %vm23537_vm14, %v11832_v63  ;;  %vm23545_vm12 = vmmov %vm23504_vm0 }
0x1cde   :  { %16460 = vmatmul.mubr.msk.bf16.gmra.mrb[84].mxu0 %vm23538_vm15, %v11833_v2  ;;  %12020 = vmatprep.mubr.bf16.mxu1 %v22831_v62  ;;  %vm23547_vm14 = vmmov %vm23504_vm0 }
0x1cdf   :  { %16479 = vmatprep.mubr.msk.bf16.mxu0 %vm23504_vm0, %v23539_v26  ;;  %vm23549_vm15 = vmmov %vm23504_vm0 }
0x1ce5   :  { %14692 = vmatmul.mubr.msk.bf16.gmra.mrb[60].mxu1 %vm23540_vm10, %v11831_v23  ;;  %vm23551_vm10 = vmmov %vm23504_vm0 }
0x1ce6   :  { %16480 = vmatmul.mubr.msk.bf16.vlgmr.msra.gmra.mrb[136].mxu0 %vm23542_vm11, %v23541_v16  ;;  %12030 = vmatprep.mubr.bf16.mxu1 %v22831_v62  ;;  %vm23553_vm11 = vmmov %vm23504_vm0 }
0x1ce7   :  { %16483 = vmatprep.mubr.msk.bf16.mxu0 %vm23544_vm13, %v23543_v35  ;;  %vm23555_vm13 = vmmov %vm23504_vm0 }
0x1ced   :  { %14693 = vmatmul.mubr.msk.bf16.gmra.mrb[64].mxu1 %vm23545_vm12, %v11832_v63  ;;  %vm23556_vm12 = vnez %v23060_v43 }
0x1cee   :  { %16484 = vmatmul.mubr.msk.bf16.gmra.mrb[140].mxu0 %vm23547_vm14, %v23546_v12  ;;  %12040 = vmatprep.mubr.bf16.mxu1 %v22831_v62  ;;  %vm23557_vm14 = vnez %v23064_v61 }
0x1cef   :  { %16487 = vmatprep.mubr.msk.bf16.mxu0 %vm23549_vm15, %v23548_v3  ;;  %vm23558_vm15 = vnez %v23062_v34 }
0x1cf5   :  { %14694 = vmatmul.mubr.msk.bf16.gmra.mrb[68].mxu1 %vm23504_vm0, %v11833_v2  ;;  %vm23559_vm0 = vnez %v23494_v7 }
0x1cf6   :  { %16488 = vmatmul.mubr.msk.bf16.gmra.mrb[144].mxu0 %vm23551_vm10, %v23550_v13  ;;  %vm23560_vm10 = vnez %v23066_v31 }
0x1cf7   :  { %16491 = vmatprep.mubr.msk.bf16.mxu0 %vm23553_vm11, %v23552_v41  ;;  %vm23561_vm11 = vnez %v23498_v38 }
0x1cfe   :  { %16492 = vmatmul.mubr.msk.bf16.gmra.mrb[148].mxu0 %vm23555_vm13, %v23554_v17  ;;  %vm23562_vm13 = vnez %v23496_v4 }
0x1db9   :  { %v16481_v15 = vpop.f32.mrb[136].mxu0 }
0x1dba   :  { %v12278_v0 = vpop.f32.mrb[137].mxu0  ;;  %v22182_v58 = vsel %vm19908_vm1, %v16481_v15, -1e+30 }
0x1dbb   :  { %v22172_v59 = vsel %vm19915_vm2, %v12278_v0, -1e+30  ;;  %v16482_v60 = vpop.f32.mrb[138].mxu0 }
0x1dbc   :  { %12357 = vmax.xlane.f32.xlu0 %v22172_v59  ;;  %v12281_v27 = vpop.f32.mrb[139].mxu0  ;;  %v22187_v23 = vsel %vm19932_vm3, %v16482_v60, -1e+30 }
0x1dbd   :  { %v22177_v39 = vsel %vm19938_vm4, %v12281_v27, -1e+30 }
0x1dbe   :  { %12359 = vmax.xlane.f32.xlu1 %v22177_v39 }
0x1dc0   :  { %12361 = vmax.xlane.f32.xlu0 %v22182_v58 }
0x1dc1   :  { %v16485_v57 = vpop.f32.mrb[140].mxu0 }
0x1dc2   :  { %12363 = vmax.xlane.f32.xlu1 %v22187_v23  ;;  %v12294_v25 = vpop.f32.mrb[141].mxu0  ;;  %v22202_v54 = vsel %vm19976_vm7, %v16485_v57, -1e+30 }
0x1dc3   :  { %v22192_v20 = vsel %vm19957_vm5, %v12294_v25, -1e+30  ;;  %v16486_v19 = vpop.f32.mrb[142].mxu0 }
0x1dc4   :  { %12365 = vmax.xlane.f32.xlu0 %v22192_v20  ;;  %v12297_v8 = vpop.f32.mrb[143].mxu0  ;;  %v22207_v1 = vsel %vm19988_vm8, %v16486_v19, -1e+30 }
0x1dc5   :  { %v22197_v18 = vsel %vm19965_vm6, %v12297_v8, -1e+30 }
0x1dc6   :  { %12367 = vmax.xlane.f32.xlu1 %v22197_v18 }
0x1dc8   :  { %12369 = vmax.xlane.f32.xlu0 %v22202_v54 }
0x1dc9   :  { %v16489_v47 = vpop.f32.mrb[144].mxu0 }
0x1dca   :  { %12371 = vmax.xlane.f32.xlu1 %v22207_v1  ;;  %v12310_v6 = vpop.f32.mrb[145].mxu0  ;;  %v22222_v63 = vsel %vm23557_vm14, %v16489_v47, -1e+30 }
0x1dcb   :  { %v22212_v46 = vsel %vm20000_vm9, %v12310_v6, -1e+30  ;;  %v16490_v21 = vpop.f32.mrb[146].mxu0  ;;  %v18129_v6 = vld [vmem:[#allocation7 + $0x188] ss:$12 sps:$4 sm:$0xff]  }
0x1dcc   :  { %12373 = vmax.xlane.f32.xlu0 %v22212_v46  ;;  %v12313_v28 = vpop.f32.mrb[147].mxu0  ;;  %v22227_v15 = vsel %vm23558_vm15, %v16490_v21, -1e+30  ;;  %16527 = vmatprep.subr.bf16.mxu0 %v18129_v6  ;;  %v18130_v21 = vld [vmem:[#allocation7 + $0x1a0] ss:$12 sps:$4 sm:$0xff]  }
0x1dcd   :  { %v22217_v2 = vsel %vm23556_vm12, %v12313_v28, -1e+30  ;;  %16528 = vmatpush3.bf16.msra.mxu0 %v18129_v6  ;;  %v18131_v28 = vld [vmem:[#allocation7 + $0x1b8] ss:$12 sps:$4 sm:$0xff]  }
0x1dce   :  { %12375 = vmax.xlane.f32.xlu1 %v22217_v2  ;;  %16529 = vmatprep.subr.bf16.mxu0 %v18130_v21 }
0x1dd0   :  { %12377 = vmax.xlane.f32.xlu0 %v22222_v63 }
0x1dd1   :  { %v16493_v0 = vpop.f32.mrb[148].mxu0  ;;  %16530 = vmatpush3.bf16.msra.mxu0 %v18130_v21 }
0x1dd2   :  { %12379 = vmax.xlane.f32.xlu1 %v22227_v15  ;;  %v12326_v60 = vpop.f32.mrb[149].mxu0  ;;  %v22242_v8 = vsel %vm23561_vm11, %v16493_v0, -1e+30  ;;  %16531 = vmatprep.subr.bf16.mxu0 %v18131_v28  ;;  %vm23563_vm11 = vcmask 523264  }
0x1dd3   :  { %v22232_v27 = vsel %vm23559_vm0, %v12326_v60, -1e+30  ;;  %v16494_v57 = vpop.f32.mrb[150].mxu0  ;;  %v18132_v60 = vld [vmem:[#allocation7 + $0x1d0] ss:$12 sps:$4 sm:$0xff]   ;;  %vm23565_vm0 = vmmov %vm23563_vm11 }
0x1dd4   :  { %12381 = vmax.xlane.f32.xlu0 %v22232_v27  ;;  %v12329_v25 = vpop.f32.mrb[151].mxu0  ;;  %v22247_v47 = vsel %vm23562_vm13, %v16494_v57, -1e+30  ;;  %vm23564_vm13 = vmmov %vm23563_vm11 }
0x1dd5   :  { %v22237_v19 = vsel %vm23560_vm10, %v12329_v25, -1e+30  ;;  %16532 = vmatpush3.bf16.msra.mxu0 %v18131_v28  ;;  %vm23566_vm10 = vmmov %vm23565_vm0 }
0x1dd6   :  { %12383 = vmax.xlane.f32.xlu1 %v22237_v19  ;;  %16533 = vmatprep.subr.bf16.mxu0 %v18132_v60  ;;  %vm23577_vm15 = vmmov %vm23565_vm0 }
0x1dd7   :  { %vm23579_vm12 = vmmov %vm23565_vm0 }
0x1dd8   :  { %12385 = vmax.xlane.f32.xlu0 %v22242_v8  ;;  %vm23589_vm14 = vmmov %vm23565_vm0 }
0x1dd9   :  { %16534 = vmatpush3.bf16.msra.mxu0 %v18132_v60  ;;  %vm23593_vm9 = vmmov %vm23565_vm0 }
0x1dda   :  { %12387 = vmax.xlane.f32.xlu1 %v22247_v47 }
0x1deb   :  { %13010 = vrot.lane.b32.xlu1 %v23506_v30, %s19071_s2 }
0x1dee   :  { %13008 = vrot.lane.b32.xlu0 %v23487_v14, %s19071_s2 }
0x1def   :  { %13014 = vrot.lane.b32.xlu1 %v23516_v10, %s19071_s2 }
0x1df2   :  { %13012 = vrot.lane.b32.xlu0 %v23512_v11, %s19071_s2 }
0x1e49   :  { %v12358_v0 = vpop.xlane.xlu0 %12357 }
0x1e4a   :  { %v12389_v57 = vsub.f32 %v22172_v59, %v12358_v0 }
0x1e4b   :  { %v12360_v25 = vpop.xlane.xlu1 %12359 }
0x1e4c   :  { %v12405_v6 = vmul.f32 1.442695, %v12389_v57  ;;  %v12390_v21 = vsub.f32 %v22177_v39, %v12360_v25 }
0x1e4d   :  { %v12362_v28 = vpop.xlane.xlu0 %12361 }
0x1e4e   :  { %v12407_v60 = vmul.f32 1.442695, %v12390_v21  ;;  %v12391_v30 = vsub.f32 %v22182_v58, %v12362_v28  ;;  %18801 = vpow2.f32 %v12405_v6 }
0x1e4f   :  { %v12364_v38 = vpop.xlane.xlu1 %12363 }
0x1e50   :  { %18803 = vpow2.f32 %v12407_v60  ;;  %v12409_v14 = vmul.f32 1.442695, %v12391_v30  ;;  %v12392_v10 = vsub.f32 %v22187_v23, %v12364_v38 }
0x1e51   :  { %v12366_v4 = vpop.xlane.xlu0 %12365 }
0x1e52   :  { %18805 = vpow2.f32 %v12409_v14  ;;  %v12411_v11 = vmul.f32 1.442695, %v12392_v10  ;;  %v12393_v7 = vsub.f32 %v22192_v20, %v12366_v4 }
0x1e53   :  { %v12368_v59 = vpop.xlane.xlu1 %12367 }
0x1e54   :  { %18807 = vpow2.f32 %v12411_v11  ;;  %v12413_v0 = vmul.f32 1.442695, %v12393_v7  ;;  %v12394_v39 = vsub.f32 %v22197_v18, %v12368_v59 }
0x1e55   :  { %v12370_v57 = vpop.xlane.xlu0 %12369 }
0x1e56   :  { %v12415_v25 = vmul.f32 1.442695, %v12394_v39  ;;  %v12395_v58 = vsub.f32 %v22202_v54, %v12370_v57  ;;  %18809 = vpow2.f32 %v12413_v0 }
0x1e57   :  { %v12372_v6 = vpop.xlane.xlu1 %12371 }
0x1e58   :  { %18811 = vpow2.f32 %v12415_v25  ;;  %v12417_v21 = vmul.f32 1.442695, %v12395_v58  ;;  %v12396_v38 = vsub.f32 %v22207_v1, %v12372_v6  ;;  %v18802_v23 = vpop.eup %18801 }
0x1e59   :  { %v12374_v28 = vpop.xlane.xlu0 %12373 }
0x1e5a   :  { %v18804_v60 = vpop.eup %18803  ;;  %v12419_v30 = vmul.f32 1.442695, %v12396_v38  ;;  %v12397_v4 = vsub.f32 %v22212_v46, %v12374_v28  ;;  %18813 = vpow2.f32 %v12417_v21 }
0x1e5b   :  { %v12376_v7 = vpop.xlane.xlu1 %12375  ;;  %v12469_v20 = vpack.c.bf16 %v18804_v60, %v18802_v23 }
0x1e5c   :  { %v18806_v18 = vpop.eup %18805  ;;  %18815 = vpow2.f32 %v12419_v30  ;;  %v12421_v14 = vmul.f32 1.442695, %v12397_v4  ;;  %v12398_v54 = vsub.f32 %v22217_v2, %v12376_v7 }
0x1e5d   :  { %v12378_v10 = vpop.xlane.xlu0 %12377  ;;  %12441 = vadd.xlane.f32.xlu0 %v18806_v18  ;;  %16511 = vmatprep.mubr.bf16.mxu1 %v12469_v20 }
0x1e5e   :  { %v18808_v11 = vpop.eup %18807  ;;  %v12423_v59 = vmul.f32 1.442695, %v12398_v54  ;;  %v12399_v1 = vsub.f32 %v22222_v63, %v12378_v10  ;;  %18817 = vpow2.f32 %v12421_v14 }
0x1e5f   :  { %v12470_v0 = vpack.c.bf16 %v18808_v11, %v18806_v18  ;;  %v12380_v39 = vpop.xlane.xlu1 %12379  ;;  %12443 = vadd.xlane.f32.xlu1 %v18808_v11 }
0x1e60   :  { %18819 = vpow2.f32 %v12423_v59  ;;  %v12425_v46 = vmul.f32 1.442695, %v12399_v1  ;;  %v12400_v57 = vsub.f32 %v22227_v15, %v12380_v39  ;;  %v18810_v25 = vpop.eup %18809 }
0x1e61   :  { %12437 = vadd.xlane.f32.xlu0 %v18802_v23  ;;  %v12382_v58 = vpop.xlane.xlu0 %12381  ;;  %16512 = vmatmul.mubr.bf16.vlgmr.msra.gmra.mrb[120].mxu1 %v12470_v0 }
0x1e62   :  { %v18812_v2 = vpop.eup %18811  ;;  %v12427_v6 = vmul.f32 1.442695, %v12400_v57  ;;  %v12401_v21 = vsub.f32 %v22232_v27, %v12382_v58  ;;  %18821 = vpow2.f32 %v12425_v46 }
0x1e63   :  { %12439 = vadd.xlane.f32.xlu1 %v18804_v60  ;;  %v12384_v38 = vpop.xlane.xlu1 %12383  ;;  %v12471_v63 = vpack.c.bf16 %v18812_v2, %v18810_v25 }
0x1e64   :  { %18823 = vpow2.f32 %v12427_v6  ;;  %v12429_v28 = vmul.f32 1.442695, %v12401_v21  ;;  %v12402_v30 = vsub.f32 %v22237_v19, %v12384_v38  ;;  %v18814_v4 = vpop.eup %18813  ;;  %v18133_v21 = vld [vmem:[#allocation7 + $0x180] ss:$12 sps:$4 sm:$0xff]   ;;  %v18138_v38 = vld [vmem:[#allocation7 + $0x19c] ss:$12 sps:$4 sm:$0xff]  }
0x1e65   :  { %v12386_v7 = vpop.xlane.xlu0 %12385  ;;  %16515 = vmatprep.mubr.bf16.mxu1 %v12471_v63  ;;  %v18141_v63 = vld [vmem:[#allocation7 + $0x1b4] ss:$12 sps:$4 sm:$0xff]  }
0x1e66   :  { %v18816_v15 = vpop.eup %18815  ;;  %v12431_v20 = vmul.f32 1.442695, %v12402_v30  ;;  %v12403_v23 = vsub.f32 %v22242_v8, %v12386_v7  ;;  %18825 = vpow2.f32 %v12429_v28  ;;  %v18142_v28 = vld [vmem:[#allocation7 + $0x1c8] ss:$12 sps:$4 sm:$0xff]  }
0x1e67   :  { %v12472_v18 = vpack.c.bf16 %v18816_v15, %v18814_v4  ;;  %v12388_v14 = vpop.xlane.xlu1 %12387 }
0x1e68   :  { %18827 = vpow2.f32 %v12431_v20  ;;  %v12433_v27 = vmul.f32 1.442695, %v12403_v23  ;;  %v12404_v60 = vsub.f32 %v22247_v47, %v12388_v14  ;;  %v18818_v54 = vpop.eup %18817 }
0x1e69   :  { %v22274_v10 = vpop.permute.xlu0 %13008  ;;  %16516 = vmatmul.mubr.bf16.gmra.mrb[124].mxu1 %v12472_v18 }
0x1e6a   :  { %v18820_v11 = vpop.eup %18819  ;;  %v12435_v19 = vmul.f32 1.442695, %v12404_v60  ;;  %17575 = vmatprep.subr.msk.bf16.mxu0 %vm23563_vm11, %v22274_v10  ;;  %18829 = vpow2.f32 %v12433_v27 }
0x1e6b   :  { %v12473_v59 = vpack.c.bf16 %v18820_v11, %v18818_v54 }
0x1e6c   :  { %18831 = vpow2.f32 %v12435_v19  ;;  %v18822_v8 = vpop.eup %18821 }
0x1e6d   :  { %16519 = vmatprep.mubr.bf16.mxu1 %v12473_v59 }
0x1e6e   :  { %v18824_v1 = vpop.eup %18823 }
0x1e6f   :  { %v12474_v0 = vpack.c.bf16 %v18824_v1, %v18822_v8 }
0x1e70   :  { %v18826_v39 = vpop.eup %18825 }
0x1e71   :  { %16520 = vmatmul.mubr.bf16.gmra.mrb[128].mxu1 %v12474_v0 }
0x1e72   :  { %v18828_v46 = vpop.eup %18827 }
0x1e73   :  { %v12475_v47 = vpack.c.bf16 %v18828_v46, %v18826_v39 }
0x1e74   :  { %13018 = vrot.lane.b32.xlu1 %v23524_v40, %s19071_s2  ;;  %v18830_v57 = vpop.eup %18829  ;;  %v18135_v40 = vld [vmem:[#allocation7 + $0x184] ss:$12 sps:$4 sm:$0xff]  }
0x1e75   :  { %16523 = vmatprep.mubr.bf16.mxu1 %v12475_v47  ;;  %12718 = vmatprep.subr.bf16.mxu1 %v18135_v40 }
0x1e76   :  { %v18832_v58 = vpop.eup %18831  ;;  %12719 = vmatpush1.bf16.msra.mxu1 %v18133_v21  ;;  %v13049_v21 = vsel %vm23565_vm0, %v22274_v10, 0 }
0x1e77   :  { %v12476_v6 = vpack.c.bf16 %v18832_v58, %v18830_v57  ;;  %13016 = vrot.lane.b32.xlu0 %v23521_v24, %s19071_s2  ;;  %v18136_v24 = vld [vmem:[#allocation7 + $0x198] ss:$12 sps:$4 sm:$0xff]   ;;  %12720 = vmatprep.subr.bf16.mxu1 %v18138_v38 }
0x1e79   :  { %16524 = vmatmul.mubr.bf16.gmra.mrb[132].mxu1 %v12476_v6 }
0x1e7a   :  { %12750 = vmatprep.mubr.bf16.mxu1 %v22831_v62  ;;  %12721 = vmatpush1.bf16.msra.mxu1 %v18136_v24 }
0x1e7b   :  { %12722 = vmatprep.subr.bf16.mxu1 %v18141_v63 }
0x1e96   :  { %12449 = vadd.xlane.f32.xlu0 %v18814_v4 }
0x1e98   :  { %12445 = vadd.xlane.f32.xlu1 %v18810_v25  ;;  %v18139_v25 = vld [vmem:[#allocation7 + $0x1b0] ss:$12 sps:$4 sm:$0xff]  }
0x1e99   :  { %12723 = vmatpush1.bf16.msra.mxu1 %v18139_v25 }
0x1e9a   :  { %12447 = vadd.xlane.f32.xlu0 %v18812_v2  ;;  %v18144_v2 = vld [vmem:[#allocation7 + $0x1cc] ss:$12 sps:$4 sm:$0xff]  }
0x1e9b   :  { %12724 = vmatprep.subr.bf16.mxu1 %v18144_v2 }
0x1e9c   :  { %12451 = vadd.xlane.f32.xlu1 %v18816_v15 }
0x1e9d   :  { %12725 = vmatpush1.bf16.msra.mxu1 %v18142_v28 }
0x1e9e   :  { %12465 = vadd.xlane.f32.xlu0 %v18830_v57 }
0x1ea0   :  { %12457 = vadd.xlane.f32.xlu1 %v18822_v8 }
0x1ea2   :  { %12461 = vadd.xlane.f32.xlu0 %v18826_v39 }
0x1ea4   :  { %12453 = vadd.xlane.f32.xlu1 %v18818_v54 }
0x1ea6   :  { %12467 = vadd.xlane.f32.xlu0 %v18832_v58 }
0x1ea8   :  { %12459 = vadd.xlane.f32.xlu1 %v18824_v1 }
0x1eac   :  { %12455 = vadd.xlane.f32.xlu1 %v18820_v11 }
0x1eb0   :  { %12463 = vadd.xlane.f32.xlu1 %v18828_v46 }
0x1ebc   :  { %13020 = vrot.lane.b32.xlu0 %v23526_v48, %s19071_s2  ;;  %v22313_v48 = vpop.permute.xlu1 %13010 }
0x1ec0   :  { %12984 = vrot.lane.b32.xlu0 %v23539_v26, %s19071_s2 }
0x1ec1   :  { %13022 = vrot.lane.b32.xlu1 %v23529_v37, %s19071_s2  ;;  %v22315_v37 = vpop.permute.xlu0 %13012 }
0x1ec4   :  { %12988 = vrot.lane.b32.xlu0 %v23543_v35, %s19071_s2 }
0x1ec5   :  { %12986 = vrot.lane.b32.xlu1 %v23541_v16, %s19071_s2 }
0x1ec8   :  { %12992 = vrot.lane.b32.xlu0 %v23548_v3, %s19071_s2 }
0x1ec9   :  { %12990 = vrot.lane.b32.xlu1 %v23546_v12, %s19071_s2 }
0x1ecc   :  { %12996 = vrot.lane.b32.xlu0 %v23552_v41, %s19071_s2 }
0x1ecd   :  { %12994 = vrot.lane.b32.xlu1 %v23550_v13, %s19071_s2 }
0x1ed0   :  { %13313 = vrot.lane.b32.xlu0 %v23500_v52, %s19071_s2  ;;  %v22317_v52 = vpop.permute.xlu1 %13014 }
0x1ed1   :  { %12998 = vrot.lane.b32.xlu1 %v23554_v17, %s19071_s2 }
0x1ed4   :  { %13317 = vrot.lane.b32.xlu0 %v23508_v33, %s19071_s2 }
0x1ed5   :  { %13315 = vrot.lane.b32.xlu1 %v23505_v9, %s19071_s2 }
0x1ed8   :  { %13319 = vrot.lane.b32.xlu0 %v23511_v56, %s19071_s2 }
0x1edc   :  { %13321 = vrot.lane.b32.xlu0 %v23514_v5, %s19071_s2 }
0x1eea   :  { %v12442_v26 = vpop.xlane.xlu0 %12441 }
0x1eeb   :  { %18833 = vrcp.f32 %v12442_v26 }
0x1eec   :  { %v12444_v16 = vpop.xlane.xlu1 %12443 }
0x1eed   :  { %18835 = vrcp.f32 %v12444_v16 }
0x1eee   :  { %v12438_v35 = vpop.xlane.xlu0 %12437 }
0x1eef   :  { %18837 = vrcp.f32 %v12438_v35 }
0x1ef0   :  { %v12440_v12 = vpop.xlane.xlu1 %12439 }
0x1ef1   :  { %18839 = vrcp.f32 %v12440_v12 }
0x1ef2   :  { %v22319_v33 = vpop.permute.xlu0 %13016 }
0x1ef4   :  { %v22321_v3 = vpop.permute.xlu1 %13018 }
0x1ef5   :  { %v18834_v15 = vpop.eup %18833 }
0x1ef7   :  { %v18836_v23 = vpop.eup %18835 }
0x1ef9   :  { %v18838_v27 = vpop.eup %18837 }
0x1efb   :  { %v18840_v54 = vpop.eup %18839 }
0x1f23   :  { %v12450_v9 = vpop.xlane.xlu0 %12449 }
0x1f24   :  { %18841 = vrcp.f32 %v12450_v9 }
0x1f25   :  { %v12446_v13 = vpop.xlane.xlu1 %12445 }
0x1f26   :  { %18843 = vrcp.f32 %v12446_v13 }
0x1f27   :  { %v12448_v56 = vpop.xlane.xlu0 %12447 }
0x1f29   :  { %v12452_v41 = vpop.xlane.xlu1 %12451 }
0x1f2a   :  { %18845 = vrcp.f32 %v12452_v41 }
0x1f2b   :  { %v12466_v5 = vpop.xlane.xlu0 %12465  ;;  %18847 = vrcp.f32 %v12448_v56 }
0x1f2d   :  { %v12458_v17 = vpop.xlane.xlu1 %12457 }
0x1f2e   :  { %18849 = vrcp.f32 %v12458_v17  ;;  %v18842_v58 = vpop.eup %18841 }
0x1f2f   :  { %v12462_v30 = vpop.xlane.xlu0 %12461 }
0x1f30   :  { %v18844_v40 = vpop.eup %18843 }
0x1f31   :  { %v12454_v4 = vpop.xlane.xlu1 %12453 }
0x1f32   :  { %18851 = vrcp.f32 %v12454_v4 }
0x1f33   :  { %v12468_v7 = vpop.xlane.xlu0 %12467 }
0x1f34   :  { %v16513_v20 = vpop.f32.mrb[120].mxu1  ;;  %v18846_v63 = vpop.eup %18845 }
0x1f35   :  { %v12460_v18 = vpop.xlane.xlu1 %12459  ;;  %v12511_v14 = vpop.f32.mrb[121].mxu1  ;;  %v12592_v11 = vmul.f32 %v18834_v15, %v16513_v20 }
0x1f36   :  { %v16514_v60 = vpop.f32.mrb[122].mxu1  ;;  %v12590_v1 = vmul.f32 %v18838_v27, %v12511_v14  ;;  %18853 = vrcp.f32 %v12460_v18  ;;  %v18848_v2 = vpop.eup %18847 }
0x1f37   :  { %v12593_v19 = vmul.f32 %v18836_v23, %v16514_v60  ;;  %v22323_v59 = vpop.permute.xlu0 %13020  ;;  %v12514_v8 = vpop.f32.mrb[123].mxu1 }
0x1f38   :  { %v12591_v0 = vmul.f32 %v18840_v54, %v12514_v8  ;;  %v18850_v17 = vpop.eup %18849 }
0x1f39   :  { %v12607_v39 = vpack.c.bf16 %v12593_v19, %v12592_v11  ;;  %v12456_v46 = vpop.xlane.xlu1 %12455 }
0x1f3a   :  { %v12606_v47 = vpack.c.bf16 %v12591_v0, %v12590_v1  ;;  %18855 = vrcp.f32 %v12456_v46 }
0x1f3b   :  { %v22325_v57 = vpop.permute.xlu0 %12984  ;;  %18857 = vrcp.f32 %v12466_v5 }
0x1f3c   :  { %v16517_v6 = vpop.f32.mrb[124].mxu1  ;;  %14723 = vmatmul.mubr.msk.bf16.vlgmr.msra.gmra.mrb[40].mxu1 %vm23563_vm11, %v12606_v47  ;;  %16535 = vmatprep.mubr.msk.bf16.mxu0 %vm23564_vm13, %v12606_v47  ;;  %vm23567_vm11 = vmmov %vm23565_vm0  ;;  %18859 = vrcp.f32 %v12462_v30  ;;  %v18852_v15 = vpop.eup %18851 }
0x1f3d   :  { %v12464_v38 = vpop.xlane.xlu1 %12463  ;;  %v12527_v24 = vpop.f32.mrb[125].mxu1  ;;  %16536 = vmatmul.mubr.msk.bf16.vlgmr.msra.gmra.mrb[72].mxu0 %vm23566_vm10, %v12607_v39  ;;  %12760 = vmatprep.mubr.bf16.mxu1 %v22831_v62  ;;  %v12596_v28 = vmul.f32 %v18842_v58, %v16517_v6  ;;  %18861 = vrcp.f32 %v12468_v7  ;;  %vm23568_vm10 = vmmov %vm23565_vm0 }
0x1f3e   :  { %16552 = vmatpush3.bf16.xpose.msra.mxu0 %v13049_v21  ;;  %v16518_v25 = vpop.f32.mrb[126].mxu1  ;;  %v12594_v10 = vmul.f32 %v18844_v40, %v12527_v24  ;;  %vm23569_vm13 = vmmov %vm23565_vm0  ;;  %18863 = vrcp.f32 %v12464_v38 }
0x1f3f   :  { %v12597_v26 = vmul.f32 %v18846_v63, %v16518_v25  ;;  %17576 = vmatprep.subr.msk.bf16.mxu0 %vm23567_vm11, %v22313_v48  ;;  %v22335_v16 = vpop.permute.xlu0 %12988  ;;  %v12530_v35 = vpop.f32.mrb[127].mxu1  ;;  %v13052_v20 = vsel %vm23569_vm13, %v22313_v48, 0  ;;  %vm23570_vm11 = vmmov %vm23565_vm0 }
0x1f40   :  { %v12595_v12 = vmul.f32 %v18848_v2, %v12530_v35  ;;  %v18854_v5 = vpop.eup %18853  ;;  %vm23572_vm13 = vmmov %vm23565_vm0 }
0x1f41   :  { %v12609_v9 = vpack.c.bf16 %v12597_v26, %v12596_v28  ;;  %v22337_v13 = vpop.permute.xlu1 %13022 }
0x1f42   :  { %v12608_v56 = vpack.c.bf16 %v12595_v12, %v12594_v10 }
0x1f43   :  { %v22339_v41 = vpop.permute.xlu0 %12992 }
0x1f44   :  { %v16521_v4 = vpop.f32.mrb[128].mxu1  ;;  %14724 = vmatmul.mubr.msk.bf16.gmra.mrb[44].mxu1 %vm23565_vm0, %v12607_v39  ;;  %16539 = vmatprep.mubr.msk.bf16.mxu0 %vm23568_vm10, %v12608_v56  ;;  %v18856_v7 = vpop.eup %18855  ;;  %vm23571_vm10 = vmmov %vm23565_vm0 }
0x1f45   :  { %v22345_v23 = vpop.permute.xlu1 %12986  ;;  %v12543_v18 = vpop.f32.mrb[129].mxu1  ;;  %16540 = vmatmul.mubr.msk.bf16.gmra.mrb[76].mxu0 %vm23570_vm11, %v12609_v9  ;;  %12770 = vmatprep.mubr.bf16.mxu1 %v22831_v62  ;;  %v12600_v14 = vmul.f32 %v18850_v17, %v16521_v4  ;;  %vm23573_vm11 = vmmov %vm23565_vm0 }
0x1f46   :  { %16554 = vmatpush3.bf16.xpose.msra.mxu0 %v13052_v20  ;;  %v16522_v30 = vpop.f32.mrb[130].mxu1  ;;  %v12598_v54 = vmul.f32 %v18852_v15, %v12543_v18  ;;  %v18858_v39 = vpop.eup %18857  ;;  %v13055_v58 = vsel %vm23573_vm11, %v22315_v37, 0  ;;  %vm23576_vm11 = vmmov %vm23565_vm0 }
0x1f47   :  { %v12601_v27 = vmul.f32 %v18854_v5, %v16522_v30  ;;  %17577 = vmatprep.subr.msk.bf16.mxu0 %vm23565_vm0, %v22315_v37  ;;  %v22351_v60 = vpop.permute.xlu0 %12996  ;;  %v12546_v48 = vpop.f32.mrb[131].mxu1 }
0x1f48   :  { %v12599_v11 = vmul.f32 %v18856_v7, %v12546_v48  ;;  %v18860_v47 = vpop.eup %18859 }
0x1f49   :  { %v12611_v19 = vpack.c.bf16 %v12601_v27, %v12600_v14  ;;  %v22353_v8 = vpop.permute.xlu1 %12990  ;;  %v18862_v21 = vpop.eup %18861 }
0x1f4a   :  { %v12610_v1 = vpack.c.bf16 %v12599_v11, %v12598_v54  ;;  %v18864_v24 = vpop.eup %18863 }
0x1f4b   :  { %v13314_v0 = vpop.permute.xlu0 %13313 }
0x1f4c   :  { %v16525_v46 = vpop.f32.mrb[132].mxu1  ;;  %14725 = vmatmul.mubr.msk.bf16.gmra.mrb[48].mxu1 %vm23571_vm10, %v12608_v56  ;;  %16543 = vmatprep.mubr.msk.bf16.mxu0 %vm23572_vm13, %v12610_v1  ;;  %vm23574_vm10 = vmmov %vm23565_vm0  ;;  %v13058_v56 = vsel %vm23565_vm0, %v22317_v52, 0 }
0x1f4d   :  { %16583 = vmatprep.subr.bf16.mxu1 %v13314_v0  ;;  %v12995_v6 = vpop.permute.xlu1 %12994  ;;  %v12559_v40 = vpop.f32.mrb[133].mxu1  ;;  %16544 = vmatmul.mubr.msk.bf16.gmra.mrb[80].mxu0 %vm23565_vm0, %v12611_v19  ;;  %v12604_v63 = vmul.f32 %v18858_v39, %v16525_v46  ;;  %vm23575_vm13 = vmmov %vm23565_vm0 }
0x1f4e   :  { %16556 = vmatpush3.bf16.xpose.msra.mxu0 %v13055_v58  ;;  %16584 = vmatpush3.bf16.msra.mxu1 %v13314_v0  ;;  %v16526_v38 = vpop.f32.mrb[134].mxu1  ;;  %v12602_v28 = vmul.f32 %v18860_v47, %v12559_v40 }
0x1f4f   :  { %v12605_v25 = vmul.f32 %v18862_v21, %v16526_v38  ;;  %17578 = vmatprep.subr.msk.bf16.mxu0 %vm23574_vm10, %v22317_v52  ;;  %v12562_v2 = vpop.f32.mrb[135].mxu1  ;;  %12780 = vmatprep.mubr.bf16.mxu1 %v22831_v62  ;;  %v13318_v12 = vpop.permute.xlu0 %13317  ;;  %vm23578_vm10 = vmmov %vm23565_vm0 }
0x1f50   :  { %v12603_v37 = vmul.f32 %v18864_v24, %v12562_v2 }
0x1f51   :  { %v12613_v26 = vpack.c.bf16 %v12605_v25, %v12604_v63  ;;  %v12999_v35 = vpop.permute.xlu1 %12998 }
0x1f52   :  { %v12612_v10 = vpack.c.bf16 %v12603_v37, %v12602_v28 }
0x1f54   :  { %14726 = vmatmul.mubr.msk.bf16.gmra.mrb[52].mxu1 %vm23575_vm13, %v12609_v9  ;;  %16547 = vmatprep.mubr.msk.bf16.mxu0 %vm23576_vm11, %v12612_v10  ;;  %v13320_v9 = vpop.permute.xlu0 %13319  ;;  %vm23580_vm13 = vmmov %vm23565_vm0 }
0x1f55   :  { %v13316_v17 = vpop.permute.xlu1 %13315  ;;  %16548 = vmatmul.mubr.msk.bf16.gmra.mrb[84].mxu0 %vm23577_vm15, %v12613_v26  ;;  %12790 = vmatprep.mubr.bf16.mxu1 %v22831_v62  ;;  %v13061_v52 = vsel %vm23580_vm13, %v22319_v33, 0  ;;  %vm23581_vm11 = vmmov %vm23565_vm0 }
0x1f56   :  { %16558 = vmatpush3.bf16.xpose.msra.mxu0 %v13058_v56  ;;  %16567 = vmatprep.mubr.msk.bf16.mxu0 %vm23578_vm10, %v22325_v57  ;;  %vm23582_vm15 = vmmov %vm23565_vm0 }
0x1f57   :  { %17579 = vmatprep.subr.msk.bf16.mxu0 %vm23579_vm12, %v22319_v33  ;;  %16585 = vmatprep.subr.bf16.mxu1 %v13316_v17  ;;  %vm23583_vm12 = vmmov %vm23565_vm0 }
0x1f58   :  { %16586 = vmatpush3.bf16.msra.mxu1 %v13316_v17  ;;  %v13322_v57 = vpop.permute.xlu0 %13321  ;;  %v13064_v4 = vsel %vm23583_vm12, %v22321_v3, 0  ;;  %vm23584_vm10 = vmmov %vm23565_vm0 }
0x1f59   :  { %16587 = vmatprep.subr.bf16.mxu1 %v13318_v12  ;;  %vm23585_vm13 = vmmov %vm23565_vm0 }
0x1f5a   :  { %v13067_v33 = vsel %vm23585_vm13, %v22323_v59, 0  ;;  %vm23588_vm12 = vmmov %vm23565_vm0 }
0x1f5b   :  { %vm23591_vm13 = vmmov %vm23565_vm0 }
0x1f5c   :  { %16588 = vmatpush3.bf16.msra.mxu1 %v13318_v12 }
0x1f5d   :  { %14727 = vmatmul.mubr.msk.bf16.gmra.mrb[56].mxu1 %vm23581_vm11, %v12610_v1  ;;  %16589 = vmatprep.subr.bf16.mxu1 %v13320_v9  ;;  %vm23586_vm11 = vmmov %vm23565_vm0 }
0x1f5e   :  { %16560 = vmatpush3.bf16.xpose.msra.mxu0 %v13061_v52  ;;  %12800 = vmatprep.mubr.bf16.mxu1 %v22831_v62 }
0x1f5f   :  { %17580 = vmatprep.subr.msk.bf16.mxu0 %vm23582_vm15, %v22321_v3  ;;  %vm23587_vm15 = vmmov %vm23565_vm0  ;;  %v13070_v3 = vsel %vm23588_vm12, %v22337_v13, 0 }
0x1f60   :  { %16590 = vmatpush3.bf16.msra.mxu1 %v13320_v9  ;;  %vm23595_vm12 = vmmov %vm23565_vm0 }
0x1f61   :  { %16591 = vmatprep.subr.bf16.mxu1 %v13322_v57 }
0x1f64   :  { %16592 = vmatpush3.bf16.msra.mxu1 %v13322_v57 }
0x1f65   :  { %14728 = vmatmul.mubr.msk.bf16.gmra.mrb[60].mxu1 %vm23565_vm0, %v12611_v19 }
0x1f66   :  { %16562 = vmatpush3.bf16.xpose.msra.mxu0 %v13064_v4  ;;  %12810 = vmatprep.mubr.bf16.mxu1 %v22831_v62 }
0x1f67   :  { %17581 = vmatprep.subr.msk.bf16.mxu0 %vm23584_vm10, %v22323_v59  ;;  %vm23590_vm10 = vmmov %vm23565_vm0 }
0x1f6d   :  { %14729 = vmatmul.mubr.msk.bf16.gmra.mrb[64].mxu1 %vm23586_vm11, %v12612_v10  ;;  %vm23592_vm11 = vmmov %vm23565_vm0 }
0x1f6e   :  { %16564 = vmatpush3.bf16.xpose.msra.mxu0 %v13067_v33  ;;  %12820 = vmatprep.mubr.bf16.mxu1 %v22831_v62 }
0x1f6f   :  { %17582 = vmatprep.subr.msk.bf16.mxu0 %vm23587_vm15, %v22337_v13  ;;  %vm23594_vm15 = vmmov %vm23565_vm0 }
0x1f75   :  { %14730 = vmatmul.mubr.msk.bf16.gmra.mrb[68].mxu1 %vm23565_vm0, %v12613_v26 }
0x1f76   :  { %16566 = vmatpush3.bf16.xpose.msra.mxu0 %v13070_v3 }
0x1f7d   :  { %16568 = vmatmul.mubr.msk.bf16.vlgmr.msra.gmra.mrb[152].mxu0 %vm23589_vm14, %v22345_v23  ;;  %vm23608_vm14 = vmmov %vm23565_vm0 }
0x1f7e   :  { %16571 = vmatprep.mubr.msk.bf16.mxu0 %vm23590_vm10, %v22335_v16  ;;  %vm23609_vm10 = vmmov %vm23565_vm0 }
0x1f85   :  { %16572 = vmatmul.mubr.msk.bf16.gmra.mrb[156].mxu0 %vm23591_vm13, %v22353_v8  ;;  %v23605_v8 = vld [vmem:[#allocation145_spill] sm:$0xff]  ;;  %vm23610_vm13 = vmmov %vm23565_vm0 }
0x1f86   :  { %16575 = vmatprep.mubr.msk.bf16.mxu0 %vm23592_vm11, %v22339_v41  ;;  %vm23611_vm11 = vmmov %vm23565_vm0 }
0x1f8d   :  { %16576 = vmatmul.mubr.msk.bf16.gmra.mrb[160].mxu0 %vm23593_vm9, %v12995_v6  ;;  %vm23607_vm9 = vmmov %vm23565_vm0 }
0x1f8e   :  { %16579 = vmatprep.mubr.msk.bf16.mxu0 %vm23594_vm15, %v22351_v60  ;;  %vm23612_vm15 = vmmov %vm23565_vm0 }
0x1f95   :  { %16580 = vmatmul.mubr.msk.bf16.gmra.mrb[164].mxu0 %vm23595_vm12, %v12999_v35  ;;  %vm23613_vm12 = vmmov %vm23565_vm0 }
0x2050   :  { %v16569_v59 = vpop.f32.mrb[152].mxu0 }
0x2051   :  { %v13171_v13 = vsel %vm19908_vm1, %v16569_v59, -1e+30  ;;  %v13106_v15 = vpop.f32.mrb[153].mxu0  ;;  %vm23596_vm1 = vnez %v23061_v55 }
0x2052   :  { %v13169_v16 = vsel %vm19915_vm2, %v13106_v15, -1e+30  ;;  %13189 = vmax.xlane.f32.xlu1 %v13171_v13  ;;  %v16570_v20 = vpop.f32.mrb[154].mxu0  ;;  %vm23597_vm2 = vnez %v23064_v61  ;;  %v23601_v61 = vld [vmem:[#allocation142_spill] sm:$0xff] }
0x2053   :  { %13185 = vmax.xlane.f32.xlu0 %v13169_v16  ;;  %v13109_v23 = vpop.f32.mrb[155].mxu0  ;;  %v13172_v41 = vsel %vm19932_vm3, %v16570_v20, -1e+30  ;;  %vm23598_vm3 = vnez %v23060_v43  ;;  %v23603_v43 = vld [vmem:[#allocation146_spill] sm:$0xff] }
0x2054   :  { %v13170_v5 = vsel %vm19938_vm4, %v13109_v23, -1e+30  ;;  %vm23599_vm4 = vnez %v23062_v34 }
0x2056   :  { %13191 = vmax.xlane.f32.xlu1 %v13172_v41 }
0x2058   :  { %v16573_v18 = vpop.f32.mrb[156].mxu0 }
0x2059   :  { %v13122_v30 = vpop.f32.mrb[157].mxu0  ;;  %v13175_v14 = vsel %vm19976_vm7, %v16573_v18, -1e+30  ;;  %vm23604_vm7 = vnez %v23603_v43 }
0x205a   :  { %v13173_v50 = vsel %vm19957_vm5, %v13122_v30, -1e+30  ;;  %13187 = vmax.xlane.f32.xlu1 %v13170_v5  ;;  %v16574_v7 = vpop.f32.mrb[158].mxu0  ;;  %vm23600_vm5 = vnez %v23066_v31 }
0x205b   :  { %13193 = vmax.xlane.f32.xlu0 %v13173_v50  ;;  %v13125_v45 = vpop.f32.mrb[159].mxu0  ;;  %v22420_v42 = vsel %vm19988_vm8, %v16574_v7, -1e+30  ;;  %vm23606_vm8 = vnez %v23605_v8 }
0x205c   :  { %v13174_v49 = vsel %vm19965_vm6, %v13125_v45, -1e+30  ;;  %vm23602_vm6 = vnez %v23601_v61 }
0x205e   :  { %13197 = vmax.xlane.f32.xlu1 %v13175_v14 }
0x2060   :  { %v16577_v27 = vpop.f32.mrb[160].mxu0 }
0x2061   :  { %v13138_v60 = vpop.f32.mrb[161].mxu0  ;;  %v22438_v32 = vsel %vm23597_vm2, %v16577_v27, -1e+30  ;;  %vm23615_vm2 = vmmov %vm23565_vm0 }
0x2062   :  { %13199 = vmax.xlane.f32.xlu1 %v22420_v42  ;;  %v16578_v51 = vpop.f32.mrb[162].mxu0  ;;  %v22433_v22 = vsel %vm23596_vm1, %v13138_v60, -1e+30  ;;  %vm23614_vm1 = vmmov %vm23565_vm0 }
0x2063   :  { %v13141_v48 = vpop.f32.mrb[163].mxu0 }
0x2066   :  { %13195 = vmax.xlane.f32.xlu1 %v13174_v49 }
0x2068   :  { %v16581_v54 = vpop.f32.mrb[164].mxu0 }
0x2069   :  { %v13154_v11 = vpop.f32.mrb[165].mxu0  ;;  %v22467_v1 = vsel %vm23606_vm8, %v16581_v54, -1e+30  ;;  %vm23621_vm8 = vmmov %vm23565_vm0 }
0x206a   :  { %v16582_v19 = vpop.f32.mrb[166].mxu0 }
0x206b   :  { %v13157_v29 = vpop.f32.mrb[167].mxu0  ;;  %v22463_v34 = vsel %vm23604_vm7, %v16582_v19, -1e+30  ;;  %vm23620_vm7 = vmmov %vm23565_vm0 }
0x206c   :  { %v22453_v55 = vsel %vm23600_vm5, %v13157_v29, -1e+30  ;;  %vm23618_vm5 = vmmov %vm23565_vm0 }
0x2071   :  { %13325 = vrot.lane.b32.xlu0 %v23518_v53, %s19071_s2  ;;  %v22443_v53 = vsel %vm23598_vm3, %v13141_v48, -1e+30  ;;  %vm23616_vm3 = vmmov %vm23565_vm0 }
0x2075   :  { %13327 = vrot.lane.b32.xlu0 %v23520_v44, %s19071_s2  ;;  %v22447_v44 = vsel %vm23599_vm4, %v16578_v51, -1e+30  ;;  %vm23617_vm4 = vmmov %vm23565_vm0 }
0x2077   :  { %13323 = vrot.lane.b32.xlu1 %v23515_v36, %s19071_s2  ;;  %v22457_v36 = vsel %vm23602_vm6, %v13154_v11, -1e+30  ;;  %vm23619_vm6 = vmmov %vm23565_vm0 }
0x2094   :  { %13201 = vmax.xlane.f32.xlu0 %v22433_v22 }
0x2098   :  { %13205 = vmax.xlane.f32.xlu0 %v22438_v32 }
0x209b   :  { %13203 = vmax.xlane.f32.xlu1 %v22443_v53 }
0x209c   :  { %13207 = vmax.xlane.f32.xlu0 %v22447_v44 }
0x209f   :  { %13211 = vmax.xlane.f32.xlu1 %v22453_v55 }
0x20a0   :  { %13209 = vmax.xlane.f32.xlu0 %v22457_v36 }
0x20a3   :  { %13215 = vmax.xlane.f32.xlu1 %v22463_v34 }
0x20a4   :  { %13213 = vmax.xlane.f32.xlu0 %v22467_v1 }
0x20df   :  { %v13190_v31 = vpop.xlane.xlu1 %13189 }
0x20e0   :  { %v13186_v0 = vpop.xlane.xlu0 %13185  ;;  %v13219_v39 = vsub.f32 %v13171_v13, %v13190_v31 }
0x20e1   :  { %v13217_v46 = vsub.f32 %v13169_v16, %v13186_v0 }
0x20e2   :  { %v13237_v6 = vmul.f32 1.442695, %v13219_v39 }
0x20e3   :  { %v13233_v47 = vmul.f32 1.442695, %v13217_v46  ;;  %v13192_v58 = vpop.xlane.xlu1 %13191 }
0x20e4   :  { %v13220_v40 = vsub.f32 %v13172_v41, %v13192_v58 }
0x20e5   :  { %18865 = vpow2.f32 %v13233_v47 }
0x20e6   :  { %18867 = vpow2.f32 %v13237_v6  ;;  %v13239_v2 = vmul.f32 1.442695, %v13220_v40 }
0x20e7   :  { %v13188_v21 = vpop.xlane.xlu1 %13187 }
0x20e8   :  { %v13218_v38 = vsub.f32 %v13170_v5, %v13188_v21  ;;  %v13194_v24 = vpop.xlane.xlu0 %13193 }
0x20e9   :  { %v13221_v63 = vsub.f32 %v13173_v50, %v13194_v24 }
0x20ea   :  { %v13235_v25 = vmul.f32 1.442695, %v13218_v38 }
0x20eb   :  { %v13241_v28 = vmul.f32 1.442695, %v13221_v63  ;;  %v13198_v37 = vpop.xlane.xlu1 %13197 }
0x20ec   :  { %18869 = vpow2.f32 %v13235_v25  ;;  %v13223_v26 = vsub.f32 %v13175_v14, %v13198_v37  ;;  %v13326_v3 = vpop.permute.xlu0 %13325  ;;  %v18147_v25 = vld [vmem:[#allocation7 + $0x1e4] ss:$12 sps:$4 sm:$0xff]   ;;  %v18151_v37 = vld [vmem:[#allocation7 + $0x1fc] ss:$12 sps:$4 sm:$0xff]  }
0x20ed   :  { %18871 = vpow2.f32 %v13241_v28  ;;  %v18148_v28 = vld [vmem:[#allocation7 + $0x1e8] ss:$12 sps:$4 sm:$0xff]  }
0x20ee   :  { %v13245_v35 = vmul.f32 1.442695, %v13223_v26  ;;  %18873 = vpow2.f32 %v13239_v2  ;;  %v18145_v2 = vld [vmem:[#allocation7 + $0x1e0] ss:$12 sps:$4 sm:$0xff]   ;;  %16615 = vmatprep.subr.bf16.mxu0 %v18148_v28  ;;  %v18149_v26 = vld [vmem:[#allocation7 + $0x1f8] ss:$12 sps:$4 sm:$0xff]  }
0x20ef   :  { %v18866_v10 = vpop.eup %18865  ;;  %v13200_v12 = vpop.xlane.xlu1 %13199  ;;  %16616 = vmatpush3.bf16.msra.mxu0 %v18148_v28 }
0x20f0   :  { %18875 = vpow2.f32 %v13245_v35  ;;  %13265 = vadd.xlane.f32.xlu0 %v18866_v10  ;;  %v18868_v56 = vpop.eup %18867  ;;  %v13224_v9 = vsub.f32 %v22420_v42, %v13200_v12  ;;  %v13328_v23 = vpop.permute.xlu0 %13327  ;;  %v18152_v35 = vld [vmem:[#allocation7 + $0x200] ss:$12 sps:$4 sm:$0xff]   ;;  %v18153_v12 = vld [vmem:[#allocation7 + $0x210] ss:$12 sps:$4 sm:$0xff]  }
0x20f1   :  { %16617 = vmatprep.subr.bf16.mxu0 %v18152_v35 }
0x20f2   :  { %v13247_v15 = vmul.f32 1.442695, %v13224_v9  ;;  %v18157_v9 = vld [vmem:[#allocation7 + $0x228] ss:$12 sps:$4 sm:$0xff]  }
0x20f3   :  { %v13196_v17 = vpop.xlane.xlu1 %13195  ;;  %16618 = vmatpush3.bf16.msra.mxu0 %v18152_v35 }
0x20f4   :  { %v13222_v52 = vsub.f32 %v13174_v49, %v13196_v17  ;;  %13269 = vadd.xlane.f32.xlu0 %v18868_v56  ;;  %v18159_v17 = vld [vmem:[#allocation7 + $0x22c] ss:$12 sps:$4 sm:$0xff]  }
0x20f6   :  { %v18870_v57 = vpop.eup %18869  ;;  %v13243_v4 = vmul.f32 1.442695, %v13222_v52  ;;  %v18160_v52 = vld [vmem:[#allocation7 + $0x230] ss:$12 sps:$4 sm:$0xff]  }
0x20f7   :  { %v18872_v33 = vpop.eup %18871  ;;  %v13324_v59 = vpop.permute.xlu1 %13323  ;;  %13267 = vadd.xlane.f32.xlu1 %v18870_v57  ;;  %v13297_v13 = vpack.c.bf16 %v18870_v57, %v18866_v10  ;;  %v18155_v10 = vld [vmem:[#allocation7 + $0x214] ss:$12 sps:$4 sm:$0xff]  }
0x20f8   :  { %18877 = vpow2.f32 %v13243_v4  ;;  %16593 = vmatprep.subr.bf16.mxu1 %v13324_v59  ;;  %13273 = vadd.xlane.f32.xlu0 %v18872_v33  ;;  %v18874_v16 = vpop.eup %18873 }
0x20f9   :  { %16594 = vmatpush3.bf16.msra.mxu1 %v13324_v59  ;;  %16599 = vmatprep.mubr.bf16.mxu1 %v13297_v13  ;;  %18879 = vpow2.f32 %v13247_v15  ;;  %v13298_v18 = vpack.c.bf16 %v18874_v16, %v18868_v56  ;;  %v18156_v56 = vld [vmem:[#allocation7 + $0x218] ss:$12 sps:$4 sm:$0xff]  }
0x20fa   :  { %v18876_v20 = vpop.eup %18875  ;;  %16595 = vmatprep.subr.bf16.mxu1 %v13326_v3  ;;  %16619 = vmatprep.subr.bf16.mxu0 %v18156_v56 }
0x20fb   :  { %13271 = vadd.xlane.f32.xlu1 %v18874_v16  ;;  %16620 = vmatpush3.bf16.msra.mxu0 %v18156_v56 }
0x20fc   :  { %13277 = vadd.xlane.f32.xlu0 %v18876_v20  ;;  %16621 = vmatprep.subr.bf16.mxu0 %v18160_v52 }
0x20fd   :  { %16596 = vmatpush3.bf16.msra.mxu1 %v13326_v3 }
0x20fe   :  { %16597 = vmatprep.subr.bf16.mxu1 %v13328_v23 }
0x20ff   :  { %16622 = vmatpush3.bf16.msra.mxu0 %v18160_v52 }
0x2101   :  { %16598 = vmatpush3.bf16.msra.mxu1 %v13328_v23 }
0x2102   :  { %v18878_v41 = vpop.eup %18877  ;;  %13578 = vmatprep.subr.bf16.mxu1 %v18147_v25 }
0x2103   :  { %13275 = vadd.xlane.f32.xlu1 %v18878_v41  ;;  %v13299_v5 = vpack.c.bf16 %v18878_v41, %v18872_v33  ;;  %v18880_v30 = vpop.eup %18879 }
0x2104   :  { %16600 = vmatmul.mubr.bf16.vlgmr.msra.gmra.mrb[136].mxu1 %v13298_v18  ;;  %v13300_v50 = vpack.c.bf16 %v18880_v30, %v18876_v20 }
0x2105   :  { %16603 = vmatprep.mubr.bf16.mxu1 %v13299_v5  ;;  %13579 = vmatpush1.bf16.msra.mxu1 %v18145_v2 }
0x2106   :  { %13580 = vmatprep.subr.bf16.mxu1 %v18151_v37 }
0x2107   :  { %13279 = vadd.xlane.f32.xlu1 %v18880_v30 }
0x2109   :  { %13581 = vmatpush1.bf16.msra.mxu1 %v18149_v26 }
0x210a   :  { %13582 = vmatprep.subr.bf16.mxu1 %v18155_v10 }
0x210c   :  { %16604 = vmatmul.mubr.bf16.gmra.mrb[140].mxu1 %v13300_v50 }
0x210d   :  { %13583 = vmatpush1.bf16.msra.mxu1 %v18153_v12 }
0x210e   :  { %13584 = vmatprep.subr.bf16.mxu1 %v18159_v17 }
0x2111   :  { %13585 = vmatpush1.bf16.msra.mxu1 %v18157_v9 }
0x2121   :  { %v13202_v7 = vpop.xlane.xlu0 %13201 }
0x2122   :  { %v13225_v45 = vsub.f32 %v22433_v22, %v13202_v7 }
0x2124   :  { %v13249_v14 = vmul.f32 1.442695, %v13225_v45 }
0x2125   :  { %v13206_v27 = vpop.xlane.xlu0 %13205 }
0x2126   :  { %18881 = vpow2.f32 %v13249_v14  ;;  %v13227_v42 = vsub.f32 %v22438_v32, %v13206_v27 }
0x2128   :  { %v13253_v60 = vmul.f32 1.442695, %v13227_v42  ;;  %v13204_v51 = vpop.xlane.xlu1 %13203 }
0x2129   :  { %v13226_v48 = vsub.f32 %v22443_v53, %v13204_v51  ;;  %v13208_v49 = vpop.xlane.xlu0 %13207 }
0x212a   :  { %18883 = vpow2.f32 %v13253_v60  ;;  %v13228_v54 = vsub.f32 %v22447_v44, %v13208_v49 }
0x212b   :  { %v13251_v11 = vmul.f32 1.442695, %v13226_v48 }
0x212c   :  { %v13255_v19 = vmul.f32 1.442695, %v13228_v54  ;;  %v13212_v29 = vpop.xlane.xlu1 %13211 }
0x212d   :  { %18885 = vpow2.f32 %v13251_v11  ;;  %v13230_v61 = vsub.f32 %v22453_v55, %v13212_v29  ;;  %v13210_v22 = vpop.xlane.xlu0 %13209 }
0x212e   :  { %18887 = vpow2.f32 %v13255_v19  ;;  %v13229_v43 = vsub.f32 %v22457_v36, %v13210_v22 }
0x212f   :  { %v13259_v8 = vmul.f32 1.442695, %v13230_v61 }
0x2130   :  { %v18882_v32 = vpop.eup %18881  ;;  %v13257_v31 = vmul.f32 1.442695, %v13229_v43  ;;  %v13216_v0 = vpop.xlane.xlu1 %13215 }
0x2131   :  { %18889 = vpow2.f32 %v13259_v8  ;;  %v13232_v53 = vsub.f32 %v22463_v34, %v13216_v0  ;;  %13281 = vadd.xlane.f32.xlu0 %v18882_v32  ;;  %v13214_v39 = vpop.xlane.xlu0 %13213 }
0x2132   :  { %18891 = vpow2.f32 %v13257_v31  ;;  %v13231_v44 = vsub.f32 %v22467_v1, %v13214_v39 }
0x2133   :  { %v13263_v46 = vmul.f32 1.442695, %v13232_v53 }
0x2134   :  { %v18884_v47 = vpop.eup %18883  ;;  %v13261_v58 = vmul.f32 1.442695, %v13231_v44 }
0x2135   :  { %18893 = vpow2.f32 %v13263_v46  ;;  %13285 = vadd.xlane.f32.xlu0 %v18884_v47 }
0x2136   :  { %18895 = vpow2.f32 %v13261_v58 }
0x2137   :  { %v18886_v55 = vpop.eup %18885 }
0x2138   :  { %v18888_v36 = vpop.eup %18887  ;;  %13283 = vadd.xlane.f32.xlu1 %v18886_v55  ;;  %v13301_v6 = vpack.c.bf16 %v18886_v55, %v18882_v32 }
0x2139   :  { %v13302_v40 = vpack.c.bf16 %v18888_v36, %v18884_v47 }
0x213a   :  { %16607 = vmatprep.mubr.bf16.mxu1 %v13301_v6 }
0x213b   :  { %v18890_v21 = vpop.eup %18889  ;;  %16608 = vmatmul.mubr.bf16.gmra.mrb[144].mxu1 %v13302_v40 }
0x213c   :  { %v18892_v34 = vpop.eup %18891  ;;  %13287 = vadd.xlane.f32.xlu1 %v18888_v36 }
0x213d   :  { %13289 = vadd.xlane.f32.xlu0 %v18892_v34  ;;  %v13303_v38 = vpack.c.bf16 %v18890_v21, %v18892_v34 }
0x213f   :  { %v18894_v24 = vpop.eup %18893  ;;  %16611 = vmatprep.mubr.bf16.mxu1 %v13303_v38 }
0x2140   :  { %v18896_v1 = vpop.eup %18895  ;;  %13291 = vadd.xlane.f32.xlu1 %v18890_v21 }
0x2141   :  { %v13304_v63 = vpack.c.bf16 %v18894_v24, %v18896_v1  ;;  %13293 = vadd.xlane.f32.xlu0 %v18896_v1 }
0x2143   :  { %16612 = vmatmul.mubr.bf16.gmra.mrb[148].mxu1 %v13304_v63 }
0x2144   :  { %13295 = vadd.xlane.f32.xlu1 %v18894_v24  ;;  %13610 = vmatprep.mubr.bf16.mxu1 %v22831_v62 }
0x217d   :  { %v13266_v57 = vpop.xlane.xlu0 %13265 }
0x217e   :  { %18897 = vrcp.f32 %v13266_v57 }
0x2181   :  { %v13270_v33 = vpop.xlane.xlu0 %13269 }
0x2182   :  { %18899 = vrcp.f32 %v13270_v33 }
0x2184   :  { %v13268_v4 = vpop.xlane.xlu1 %13267 }
0x2185   :  { %v13274_v59 = vpop.xlane.xlu0 %13273 }
0x2188   :  { %v13272_v3 = vpop.xlane.xlu1 %13271  ;;  %v18898_v20 = vpop.eup %18897 }
0x2189   :  { %18901 = vrcp.f32 %v13272_v3  ;;  %v13278_v15 = vpop.xlane.xlu0 %13277 }
0x218a   :  { %18903 = vrcp.f32 %v13268_v4 }
0x218b   :  { %18905 = vrcp.f32 %v13274_v59 }
0x218c   :  { %18907 = vrcp.f32 %v13278_v15  ;;  %v18900_v41 = vpop.eup %18899 }
0x2190   :  { %v13276_v13 = vpop.xlane.xlu1 %13275 }
0x2193   :  { %v18902_v5 = vpop.eup %18901 }
0x2194   :  { %v13280_v16 = vpop.xlane.xlu1 %13279  ;;  %v18904_v50 = vpop.eup %18903 }
0x2195   :  { %18909 = vrcp.f32 %v13280_v16  ;;  %v18906_v48 = vpop.eup %18905 }
0x2196   :  { %18911 = vrcp.f32 %v13276_v13  ;;  %v18908_v54 = vpop.eup %18907 }
0x219f   :  { %v18910_v19 = vpop.eup %18909 }
0x21a0   :  { %v18912_v61 = vpop.eup %18911 }
0x21be   :  { %v13282_v44 = vpop.xlane.xlu0 %13281 }
0x21bf   :  { %18913 = vrcp.f32 %v13282_v44 }
0x21c2   :  { %v13286_v47 = vpop.xlane.xlu0 %13285 }
0x21c3   :  { %18915 = vrcp.f32 %v13286_v47 }
0x21c5   :  { %v13284_v39 = vpop.xlane.xlu1 %13283 }
0x21c9   :  { %v13288_v46 = vpop.xlane.xlu1 %13287  ;;  %v18914_v40 = vpop.eup %18913 }
0x21ca   :  { %v13290_v58 = vpop.xlane.xlu0 %13289  ;;  %18917 = vrcp.f32 %v13288_v46 }
0x21cb   :  { %18919 = vrcp.f32 %v13284_v39 }
0x21cc   :  { %18921 = vrcp.f32 %v13290_v58 }
0x21cd   :  { %v13292_v55 = vpop.xlane.xlu1 %13291  ;;  %v18916_v34 = vpop.eup %18915 }
0x21ce   :  { %v13294_v36 = vpop.xlane.xlu0 %13293 }
0x21cf   :  { %18923 = vrcp.f32 %v13294_v36 }
0x21d1   :  { %v13296_v6 = vpop.xlane.xlu1 %13295 }
0x21d2   :  { %18925 = vrcp.f32 %v13296_v6 }
0x21d3   :  { %18927 = vrcp.f32 %v13292_v55 }
0x21d4   :  { %v18918_v24 = vpop.eup %18917 }
0x21d5   :  { %v18920_v63 = vpop.eup %18919 }
0x21d6   :  { %v18922_v12 = vpop.eup %18921 }
0x21d7   :  { %v16601_v23 = vpop.f32.mrb[136].mxu1 }
0x21d8   :  { %v13371_v18 = vpop.f32.mrb[137].mxu1  ;;  %v13452_v7 = vmul.f32 %v18900_v41, %v16601_v23  ;;  %v8899_v23 = vld [vmem:[%s22585_s3] sm:$0x7]  ;;  %v23622_v41 = vld [vmem:[#allocation125_spill] sm:$0xff]  ;;  %s19072_s3 = smov [#allocation8]  }
0x21d9   :  { %v16602_v30 = vpop.f32.mrb[138].mxu1  ;;  %v13450_v27 = vmul.f32 %v18898_v20, %v13371_v18  ;;  %v18924_v17 = vpop.eup %18923  ;;  %v23623_v18 = vsub.s32 0, %v23622_v41  ;;  %s14034_s5 = sshll.u32 %s19072_s3, 4  ;;  %s14035_s5 = int_to_ptr.vmem [resolvable:$true] %s14034_s5 }
0x21da   :  { %v13453_v45 = vmul.f32 %v18902_v5, %v16602_v30  ;;  %v13374_v14 = vpop.f32.mrb[139].mxu1  ;;  %v23624_v30 = vsub.s32 1, %v23622_v41  ;;  %s19035_s6 = scalar_lea.vmem %s14035_s5, 6144  ;;  %p19040_p11 = scmp.lt.s32.totalorder %s14035_s5, %s14035_s5 }
0x21db   :  { %v13451_v42 = vmul.f32 %v18904_v50, %v13374_v14  ;;  %v22509_v5 = vrot.slane %v8899_v23, %v23623_v18  ;;  %p19036_p10 = scmp.ne.s32.totalorder %s14035_s5, %s19035_s6  ;;  %p19041_p12 = scmp.lt.s32.totalorder %s19035_s6, %s19035_s6 }
0x21dc   :  { %v13467_v60 = vpack.c.bf16 %v13453_v45, %v13452_v7  ;;  %v18926_v52 = vpop.eup %18925  ;;  %v22513_v50 = vrot.slane %v8899_v23, %v23624_v30  ;;  %v23625_v7 = vsub.s32 2, %v23622_v41 }
0x21dd   :  { %v13466_v51 = vpack.c.bf16 %v13451_v42, %v13450_v27  ;;  %v18928_v4 = vpop.eup %18927  ;;  %p19042_p13 = por %p19041_p12, %p19040_p11 }
0x21de   :  { %v22517_v45 = vrot.slane %v8899_v23, %v23625_v7 }
0x21df   :  { %v16605_v49 = vpop.f32.mrb[140].mxu1  ;;  %14759 = vmatmul.mubr.msk.bf16.vlgmr.msra.gmra.mrb[40].mxu1 %vm23607_vm9, %v13466_v51  ;;  %16623 = vmatprep.mubr.msk.bf16.mxu0 %vm23608_vm14, %v13466_v51  ;;  %p19043_p0 = pnand %p19042_p13, %p19036_p10 }
0x21e0   :  { %v13387_v11 = vpop.f32.mrb[141].mxu1  ;;  %16624 = vmatmul.mubr.msk.bf16.vlgmr.msra.gmra.mrb[72].mxu0 %vm23565_vm0, %v13467_v60  ;;  %13620 = vmatprep.mubr.bf16.mxu1 %v22831_v62  ;;  %v13456_v22 = vmul.f32 %v18908_v54, %v16605_v49 }
0x21e1   :  { %v16606_v29 = vpop.f32.mrb[142].mxu1  ;;  %v13454_v32 = vmul.f32 %v18906_v48, %v13387_v11 }
0x21e2   :  { %v13457_v43 = vmul.f32 %v18910_v19, %v16606_v29  ;;  %v13390_v8 = vpop.f32.mrb[143].mxu1 }
0x21e3   :  { %v13455_v31 = vmul.f32 %v18912_v61, %v13390_v8 }
0x21e4   :  { %v13469_v0 = vpack.c.bf16 %v13457_v43, %v13456_v22 }
0x21e5   :  { %v13468_v53 = vpack.c.bf16 %v13455_v31, %v13454_v32 }
0x21e7   :  { %14760 = vmatmul.mubr.msk.bf16.gmra.mrb[44].mxu1 %vm23609_vm10, %v13467_v60  ;;  %16627 = vmatprep.mubr.msk.bf16.mxu0 %vm23610_vm13, %v13468_v53 }
0x21e8   :  { %16628 = vmatmul.mubr.msk.bf16.gmra.mrb[76].mxu0 %vm23611_vm11, %v13469_v0  ;;  %13630 = vmatprep.mubr.bf16.mxu1 %v22831_v62 }
0x21ef   :  { %14761 = vmatmul.mubr.msk.bf16.gmra.mrb[48].mxu1 %vm23612_vm15, %v13468_v53 }
0x21f0   :  { %13640 = vmatprep.mubr.bf16.mxu1 %v22831_v62 }
0x21f7   :  { %14762 = vmatmul.mubr.msk.bf16.gmra.mrb[52].mxu1 %vm23613_vm12, %v13469_v0 }
0x21f8   :  { %13650 = vmatprep.mubr.bf16.mxu1 %v22831_v62 }
0x220e   :  { %v16609_v21 = vpop.f32.mrb[144].mxu1 }
0x220f   :  { %v13403_v38 = vpop.f32.mrb[145].mxu1  ;;  %v13460_v25 = vmul.f32 %v18916_v34, %v16609_v21 }
0x2210   :  { %v16610_v1 = vpop.f32.mrb[146].mxu1  ;;  %v13458_v37 = vmul.f32 %v18914_v40, %v13403_v38 }
0x2211   :  { %v13461_v2 = vmul.f32 %v18918_v24, %v16610_v1  ;;  %v13406_v28 = vpop.f32.mrb[147].mxu1 }
0x2212   :  { %v13459_v26 = vmul.f32 %v18920_v63, %v13406_v28 }
0x2213   :  { %v13471_v35 = vpack.c.bf16 %v13461_v2, %v13460_v25 }
0x2214   :  { %v13470_v10 = vpack.c.bf16 %v13459_v26, %v13458_v37 }
0x2216   :  { %v16613_v56 = vpop.f32.mrb[148].mxu1  ;;  %14763 = vmatmul.mubr.msk.bf16.gmra.mrb[56].mxu1 %vm23614_vm1, %v13470_v10  ;;  %16631 = vmatprep.mubr.msk.bf16.mxu0 %vm23615_vm2, %v13470_v10 }
0x2217   :  { %v13419_v9 = vpop.f32.mrb[149].mxu1  ;;  %16632 = vmatmul.mubr.msk.bf16.gmra.mrb[80].mxu0 %vm23616_vm3, %v13471_v35  ;;  %13660 = vmatprep.mubr.bf16.mxu1 %v22831_v62  ;;  %v13464_v33 = vmul.f32 %v18924_v17, %v16613_v56 }
0x2218   :  { %v16614_v57 = vpop.f32.mrb[150].mxu1  ;;  %v13462_v13 = vmul.f32 %v18922_v12, %v13419_v9 }
0x2219   :  { %v13465_v3 = vmul.f32 %v18926_v52, %v16614_v57  ;;  %v13422_v59 = vpop.f32.mrb[151].mxu1 }
0x221a   :  { %v13463_v15 = vmul.f32 %v18928_v4, %v13422_v59 }
0x221b   :  { %v13473_v16 = vpack.c.bf16 %v13465_v3, %v13464_v33 }
0x221c   :  { %v13472_v20 = vpack.c.bf16 %v13463_v15, %v13462_v13 }
0x221e   :  { %14764 = vmatmul.mubr.msk.bf16.gmra.mrb[60].mxu1 %vm23617_vm4, %v13471_v35  ;;  %16635 = vmatprep.mubr.msk.bf16.mxu0 %vm23618_vm5, %v13472_v20 }
0x221f   :  { %16636 = vmatmul.mubr.msk.bf16.gmra.mrb[84].mxu0 %vm23619_vm6, %v13473_v16  ;;  %13670 = vmatprep.mubr.bf16.mxu1 %v22831_v62 }
0x2226   :  { %14765 = vmatmul.mubr.msk.bf16.gmra.mrb[64].mxu1 %vm23620_vm7, %v13472_v20 }
0x2227   :  { %13680 = vmatprep.mubr.bf16.mxu1 %v22831_v62 }
0x222e   :  { %14766 = vmatmul.mubr.msk.bf16.gmra.mrb[68].mxu1 %vm23621_vm8, %v13473_v16 }
0x22b2   :  { %v13612_v14 = vpop.f32.mrb[40].mxu1 }
0x22b3   :  { %v16703_v62 = vadd.f32 %v13612_v14, %v22509_v5  ;;  %v13614_v27 = vpop.f32.mrb[41].mxu1  ;;  %v16625_v42 = vpop.f32.mrb[72].mxu0 }
0x22b4   :  { %v16704_v60 = vadd.f32 %v13614_v27, %v22513_v50  ;;  %v16735_v51 = vadd.f32 %v16625_v42, %v22517_v45  ;;  %v13616_v48 = vpop.f32.mrb[42].mxu1  ;;  %v13725_v49 = vpop.f32.mrb[73].mxu0 }
0x22b5   :  { %v16705_v54 = vadd.f32 %v13616_v48, %v22509_v5  ;;  %v16736_v11 = vadd.f32 %v13725_v49, %v22517_v45  ;;  %v13618_v19 = vpop.f32.mrb[43].mxu1  ;;  %v16626_v29 = vpop.f32.mrb[74].mxu0 }
0x22b6   :  { %v14839_v61 = vpack.c.bf16 %v16704_v60, %v16703_v62  ;;  %v14844_v22 = vpack.c.bf16 %v16735_v51, %v16735_v51  ;;  %v16706_v43 = vadd.f32 %v13618_v19, %v22513_v50  ;;  %v16737_v8 = vadd.f32 %v16626_v29, %v22517_v45  ;;  %v13728_v32 = vpop.f32.mrb[75].mxu0 }
0x22b7   :  { %v14840_v31 = vpack.c.bf16 %v16736_v11, %v16736_v11  ;;  %v16738_v0 = vadd.f32 %v13728_v32, %v22517_v45 }
0x22b8   :  { %13997 = vst [vmem:[#allocation8 + $0xc0] sm:$0xff] %v14839_v61  ;;  %14002 = vst [vmem:[#allocation8 + $0xe0] sm:$0xf] %v14844_v22  ;;  %v14841_v53 = vpack.c.bf16 %v16706_v43, %v16705_v54  ;;  %v14846_v39 = vpack.c.bf16 %v16737_v8, %v16737_v8 }
0x22b9   :  { %13998 = vst [vmem:[#allocation8 + $0xc8] sm:$0xf] %v14840_v31  ;;  %v14842_v44 = vpack.c.bf16 %v16738_v0, %v16738_v0 }
0x22ba   :  { %13999 = vst [vmem:[#allocation8 + $0xcc] sm:$0xff] %v14841_v53  ;;  %14004 = vst [vmem:[#allocation8 + $0xec] sm:$0xf] %v14846_v39  ;;  %v13622_v46 = vpop.f32.mrb[44].mxu1 }
0x22bb   :  { %14000 = vst [vmem:[#allocation8 + $0xd4] sm:$0xf] %v14842_v44  ;;  %v16707_v47 = vadd.f32 %v13622_v46, %v22509_v5  ;;  %v13624_v58 = vpop.f32.mrb[45].mxu1  ;;  %v16629_v55 = vpop.f32.mrb[76].mxu0 }
0x22bc   :  { %v16708_v36 = vadd.f32 %v13624_v58, %v22513_v50  ;;  %v16739_v6 = vadd.f32 %v16629_v55, %v22517_v45  ;;  %v13626_v40 = vpop.f32.mrb[46].mxu1  ;;  %v13741_v21 = vpop.f32.mrb[77].mxu0 }
0x22bd   :  { %v16709_v34 = vadd.f32 %v13626_v40, %v22509_v5  ;;  %v16740_v38 = vadd.f32 %v13741_v21, %v22517_v45  ;;  %v13628_v24 = vpop.f32.mrb[47].mxu1  ;;  %v16630_v1 = vpop.f32.mrb[78].mxu0 }
0x22be   :  { %v14843_v63 = vpack.c.bf16 %v16708_v36, %v16707_v47  ;;  %v14852_v25 = vpack.c.bf16 %v16739_v6, %v16739_v6  ;;  %v16710_v2 = vadd.f32 %v13628_v24, %v22513_v50  ;;  %v16741_v28 = vadd.f32 %v16630_v1, %v22517_v45  ;;  %v13744_v37 = vpop.f32.mrb[79].mxu0 }
0x22bf   :  { %v14848_v26 = vpack.c.bf16 %v16740_v38, %v16740_v38  ;;  %v16742_v35 = vadd.f32 %v13744_v37, %v22517_v45 }
0x22c0   :  { %14001 = vst [vmem:[#allocation8 + $0xd8] sm:$0xff] %v14843_v63  ;;  %14010 = vst [vmem:[#allocation8 + $0x110] sm:$0xf] %v14852_v25  ;;  %v14845_v10 = vpack.c.bf16 %v16710_v2, %v16709_v34  ;;  %v14854_v12 = vpack.c.bf16 %v16741_v28, %v16741_v28 }
0x22c1   :  { %14006 = vst [vmem:[#allocation8 + $0xf8] sm:$0xf] %v14848_v26  ;;  %v14850_v56 = vpack.c.bf16 %v16742_v35, %v16742_v35 }
0x22c2   :  { %14003 = vst [vmem:[#allocation8 + $0xe4] sm:$0xff] %v14845_v10  ;;  %14012 = vst [vmem:[#allocation8 + $0x11c] sm:$0xf] %v14854_v12  ;;  %v13632_v17 = vpop.f32.mrb[48].mxu1 }
0x22c3   :  { %14008 = vst [vmem:[#allocation8 + $0x104] sm:$0xf] %v14850_v56  ;;  %v16711_v9 = vadd.f32 %v13632_v17, %v22509_v5  ;;  %v13634_v52 = vpop.f32.mrb[49].mxu1 }
0x22c4   :  { %v16712_v57 = vadd.f32 %v13634_v52, %v22513_v50  ;;  %v13636_v4 = vpop.f32.mrb[50].mxu1 }
0x22c5   :  { %v16713_v33 = vadd.f32 %v13636_v4, %v22509_v5  ;;  %v13638_v3 = vpop.f32.mrb[51].mxu1 }
0x22c6   :  { %v14847_v59 = vpack.c.bf16 %v16712_v57, %v16711_v9  ;;  %v16714_v13 = vadd.f32 %v13638_v3, %v22513_v50 }
0x22c8   :  { %14005 = vst [vmem:[#allocation8 + $0xf0] sm:$0xff] %v14847_v59  ;;  %v14849_v15 = vpack.c.bf16 %v16714_v13, %v16713_v33 }
0x22ca   :  { %14007 = vst [vmem:[#allocation8 + $0xfc] sm:$0xff] %v14849_v15  ;;  %v13642_v16 = vpop.f32.mrb[52].mxu1 }
0x22cb   :  { %v16715_v20 = vadd.f32 %v13642_v16, %v22509_v5  ;;  %v13644_v23 = vpop.f32.mrb[53].mxu1 }
0x22cc   :  { %v16716_v41 = vadd.f32 %v13644_v23, %v22513_v50  ;;  %v13646_v18 = vpop.f32.mrb[54].mxu1 }
0x22cd   :  { %v16717_v30 = vadd.f32 %v13646_v18, %v22509_v5  ;;  %v13648_v7 = vpop.f32.mrb[55].mxu1 }
0x22ce   :  { %v14851_v14 = vpack.c.bf16 %v16716_v41, %v16715_v20  ;;  %v16718_v62 = vadd.f32 %v13648_v7, %v22513_v50 }
0x22d0   :  { %14009 = vst [vmem:[#allocation8 + $0x108] sm:$0xff] %v14851_v14  ;;  %v14853_v27 = vpack.c.bf16 %v16718_v62, %v16717_v30 }
0x22d2   :  { %14011 = vst [vmem:[#allocation8 + $0x114] sm:$0xff] %v14853_v27 }
0x22e9   :  { %v13652_v42 = vpop.f32.mrb[56].mxu1 }
0x22ea   :  { %v16719_v60 = vadd.f32 %v13652_v42, %v22509_v5  ;;  %v13654_v51 = vpop.f32.mrb[57].mxu1  ;;  %v16633_v48 = vpop.f32.mrb[80].mxu0 }
0x22eb   :  { %v16720_v49 = vadd.f32 %v13654_v51, %v22513_v50  ;;  %v16743_v54 = vadd.f32 %v16633_v48, %v22517_v45  ;;  %v13656_v11 = vpop.f32.mrb[58].mxu1  ;;  %v13757_v19 = vpop.f32.mrb[81].mxu0 }
0x22ec   :  { %v16721_v29 = vadd.f32 %v13656_v11, %v22509_v5  ;;  %v16744_v61 = vadd.f32 %v13757_v19, %v22517_v45  ;;  %v13658_v22 = vpop.f32.mrb[59].mxu1  ;;  %v16634_v43 = vpop.f32.mrb[82].mxu0 }
0x22ed   :  { %v14855_v8 = vpack.c.bf16 %v16720_v49, %v16719_v60  ;;  %v14860_v32 = vpack.c.bf16 %v16743_v54, %v16743_v54  ;;  %v16722_v31 = vadd.f32 %v13658_v22, %v22513_v50  ;;  %v16745_v0 = vadd.f32 %v16634_v43, %v22517_v45  ;;  %v13760_v53 = vpop.f32.mrb[83].mxu0 }
0x22ee   :  { %v14856_v39 = vpack.c.bf16 %v16744_v61, %v16744_v61  ;;  %v16746_v44 = vadd.f32 %v13760_v53, %v22517_v45 }
0x22ef   :  { %14013 = vst [vmem:[#allocation8 + $0x120] sm:$0xff] %v14855_v8  ;;  %14018 = vst [vmem:[#allocation8 + $0x140] sm:$0xf] %v14860_v32  ;;  %v14857_v46 = vpack.c.bf16 %v16722_v31, %v16721_v29  ;;  %v14862_v47 = vpack.c.bf16 %v16745_v0, %v16745_v0 }
0x22f0   :  { %14014 = vst [vmem:[#allocation8 + $0x128] sm:$0xf] %v14856_v39  ;;  %v14858_v58 = vpack.c.bf16 %v16746_v44, %v16746_v44 }
0x22f1   :  { %14015 = vst [vmem:[#allocation8 + $0x12c] sm:$0xff] %v14857_v46  ;;  %14020 = vst [vmem:[#allocation8 + $0x14c] sm:$0xf] %v14862_v47  ;;  %v13662_v55 = vpop.f32.mrb[60].mxu1 }
0x22f2   :  { %14016 = vst [vmem:[#allocation8 + $0x134] sm:$0xf] %v14858_v58  ;;  %v16723_v36 = vadd.f32 %v13662_v55, %v22509_v5  ;;  %v13664_v6 = vpop.f32.mrb[61].mxu1  ;;  %v16637_v40 = vpop.f32.mrb[84].mxu0 }
0x22f3   :  { %v16724_v21 = vadd.f32 %v13664_v6, %v22513_v50  ;;  %v16747_v34 = vadd.f32 %v16637_v40, %v22517_v45  ;;  %v13666_v38 = vpop.f32.mrb[62].mxu1  ;;  %v13773_v24 = vpop.f32.mrb[85].mxu0 }
0x22f4   :  { %v16725_v1 = vadd.f32 %v13666_v38, %v22509_v5  ;;  %v16748_v63 = vadd.f32 %v13773_v24, %v22517_v45  ;;  %v13668_v25 = vpop.f32.mrb[63].mxu1  ;;  %v16638_v2 = vpop.f32.mrb[86].mxu0 }
0x22f5   :  { %v14859_v28 = vpack.c.bf16 %v16724_v21, %v16723_v36  ;;  %v14868_v37 = vpack.c.bf16 %v16747_v34, %v16747_v34  ;;  %v16726_v26 = vadd.f32 %v13668_v25, %v22513_v50  ;;  %v16749_v35 = vadd.f32 %v16638_v2, %v22517_v45  ;;  %v13776_v10 = vpop.f32.mrb[87].mxu0 }
0x22f6   :  { %v14864_v12 = vpack.c.bf16 %v16748_v63, %v16748_v63  ;;  %v16750_v56 = vadd.f32 %v13776_v10, %v22517_v45 }
0x22f7   :  { %14017 = vst [vmem:[#allocation8 + $0x138] sm:$0xff] %v14859_v28  ;;  %14026 = vst [vmem:[#allocation8 + $0x170] sm:$0xf] %v14868_v37  ;;  %v14861_v17 = vpack.c.bf16 %v16726_v26, %v16725_v1  ;;  %v14870_v9 = vpack.c.bf16 %v16749_v35, %v16749_v35 }
0x22f8   :  { %14022 = vst [vmem:[#allocation8 + $0x158] sm:$0xf] %v14864_v12  ;;  %v14866_v52 = vpack.c.bf16 %v16750_v56, %v16750_v56 }
0x22f9   :  { %14019 = vst [vmem:[#allocation8 + $0x144] sm:$0xff] %v14861_v17  ;;  %14028 = vst [vmem:[#allocation8 + $0x17c] sm:$0xf] %v14870_v9  ;;  %v13672_v57 = vpop.f32.mrb[64].mxu1 }
0x22fa   :  { %14024 = vst [vmem:[#allocation8 + $0x164] sm:$0xf] %v14866_v52  ;;  %v16727_v4 = vadd.f32 %v13672_v57, %v22509_v5  ;;  %v13674_v33 = vpop.f32.mrb[65].mxu1 }
0x22fb   :  { %v16728_v3 = vadd.f32 %v13674_v33, %v22513_v50  ;;  %v13676_v59 = vpop.f32.mrb[66].mxu1 }
0x22fc   :  { %v16729_v13 = vadd.f32 %v13676_v59, %v22509_v5  ;;  %v13678_v15 = vpop.f32.mrb[67].mxu1 }
0x22fd   :  { %v14863_v45 = vpack.c.bf16 %v16728_v3, %v16727_v4  ;;  %v16730_v16 = vadd.f32 %v13678_v15, %v22513_v50 }
0x22ff   :  { %14021 = vst [vmem:[#allocation8 + $0x150] sm:$0xff] %v14863_v45  ;;  %v14865_v20 = vpack.c.bf16 %v16730_v16, %v16729_v13 }
0x2301   :  { %14023 = vst [vmem:[#allocation8 + $0x15c] sm:$0xff] %v14865_v20  ;;  %v13682_v23 = vpop.f32.mrb[68].mxu1 }
0x2302   :  { %v16731_v41 = vadd.f32 %v13682_v23, %v22509_v5  ;;  %v13684_v18 = vpop.f32.mrb[69].mxu1 }
0x2303   :  { %v16732_v30 = vadd.f32 %v13684_v18, %v22513_v50  ;;  %v13686_v7 = vpop.f32.mrb[70].mxu1 }
0x2304   :  { %v16733_v14 = vadd.f32 %v13686_v7, %v22509_v5  ;;  %v13688_v62 = vpop.f32.mrb[71].mxu1 }
0x2305   :  { %v14867_v27 = vpack.c.bf16 %v16732_v30, %v16731_v41  ;;  %v16734_v42 = vadd.f32 %v13688_v62, %v22513_v50 }
0x2307   :  { %14025 = vst [vmem:[#allocation8 + $0x168] sm:$0xff] %v14867_v27  ;;  %v14869_v60 = vpack.c.bf16 %v16734_v42, %v16733_v14 }
0x2309   :  { %14027 = vst [vmem:[#allocation8 + $0x174] sm:$0xff] %v14869_v60 }
0x230a   :  { %19046 = shalt.err (!%p19043_p0)
}
0x230b   :  { %s19047_s9 = scalar_lea.hbm %s22586_s4, 6144 }
0x230c   :  { %p19048_p1 = scmp.ne.s32.totalorder %s22586_s4, %s19047_s9  ;;  %p19051_p2 = scmp.lt.u32.totalorder %s19047_s9, %s22586_s4 }
0x230e   :  { %p19053_p3 = pnand %p19051_p2, %p19048_p1 }
0x2310   :  { %19056 = shalt.err (!%p19053_p3)
}
0x2311   :  { %14040 = dma.vmem_to_hbm [thread:$0]  %s14035_s5, 6144, %s22586_s4, [#allocation4], %s19067_s1, %s19067_s1, %s19068_s13  }
0x2312   :  { %19061 = dma.done.wait [#allocation4], 6144  }
0x2313   :  { %19062 = vsyncadd [#allocation4], 4294961152 }
0x2314   :  { %14044 = vsyncpa [#allocation3], 1 }
0x2315   :  { %14045 = vsyncpa [#allocation6], 1 }
0x2316   :  { %14046 = vsyncpa [#allocation4], 1 }

</bundles_post_ra>
